<compile_context>
chip_gen: v7x
topology: tpu7x:2x2x1
jax: 0.10.0
libtpu: 0.0.40
codegen_flags: <defaults>
</compile_context>

<pallas_src>
import math
import functools

import jax
import jax.numpy as jnp
from jax.experimental import pallas as pl
from jax.experimental.pallas import tpu as pltpu


# ----------------------------------------------------------------------------
# Single fused kernel: one grid step per batch element.
# ----------------------------------------------------------------------------
def _rfdetr_seg_kernel(
        # inputs -------------------------------------------------------------
        x_ref,                              # (1, H, W, C)  f32  backbone features (NHWC)
        mem_ref,                            # (1, Q, D)     f32  decoder queries hs[-1]
        wq_ref, bq_ref,                     # (D, D) bf16 / (1, D) f32   attention q-proj
        wk_ref, bk_ref,                     # (D, D) bf16 / (1, D) f32   attention k-proj
        w1_ref, b1_ref, g1_ref, be1_ref,    # lay1 (9C, Hid) bf16 + gn1
        w2_ref, b2_ref, g2_ref, be2_ref,    # lay2 (9Hid, Hid) bf16 + gn2
        w3_ref, b3_ref, g3_ref, be3_ref,    # lay3 (9Hid, Hid) bf16 + gn3
        wa_ref, ba_ref,                     # adapter1 (C, D) bf16 / (1, D)
        wout_ref, bout_ref,                 # out_lay (9, D) bf16 / (1, 1)
        onehot_ref, onehot_t_ref,           # (Hid, G), (G, Hid) group membership
        maskt_ref,                          # (9, HW) in-bounds tap mask (for the mem term)
        # outputs ------------------------------------------------------------
        o_ref,                              # (1, Q, HW) f32  sigmoid(mask logits)
        # scratch ------------------------------------------------------------
        pad_x,                              # (H+2, W+2, C)
        pad_h,                              # (H+2, W+2, Hid)
        pad_t,                              # (9, H+2, W+2)
        pad_a,                              # (Q, H+2, W+2)
        *, H, W, C, Hid, D, Q, G, nH, eps):
    f32, bf16 = jnp.float32, jnp.bfloat16
    HW = H * W
    dh = D // nH

    x = x_ref[0]                            # (H, W, C)
    x_flat = x.reshape(HW, C)
    mem = mem_ref[0]                        # (Q, D)

    # ---- bbox_attention weights: mean over heads of softmax((qWq+bq)(kWk+bk)^T / sqrt(dh)) ----
    # (nn.MultiheadAttention's attn_output is discarded by the reference forward.)
    qp = jnp.dot(mem.astype(bf16), wq_ref[...], preferred_element_type=f32) + bq_ref[...]
    kp = jnp.dot(x_flat.astype(bf16), wk_ref[...], preferred_element_type=f32) + bk_ref[...]
    scores = []
    for h in range(nH):                     # K = dh per-head matmuls (intrinsic to MHA);
        qh = qp[:, h * dh:(h + 1) * dh].astype(bf16)      # softmax is vectorized over all heads.
        kh = kp[:, h * dh:(h + 1) * dh].astype(bf16)
        scores.append(jax.lax.dot_general(
            qh, kh, (((1,), (1,)), ((), ())), preferred_element_type=f32))
    s = jnp.concatenate(scores, axis=0) * (1.0 / math.sqrt(dh))        # (nH*Q, HW)
    s = s - jnp.max(s, axis=-1, keepdims=True)
    e = jnp.exp(s)
    e = e * pl.reciprocal(jnp.sum(e, axis=-1, keepdims=True), approx=True)
    attn = jnp.zeros((Q, HW), f32)
    for h in range(nH):
        attn = attn + e[h * Q:(h + 1) * Q, :]
    attn = attn * (1.0 / nH)                                           # (Q, HW)

    # ---- MaskHeadSmallConv trunk: 3 x (conv3x3 + GroupNorm + ReLU), VMEM-resident ----
    def zero_border(ref, ch):
        # only the 1-pixel halo needs zeroing; the interior is overwritten every step.
        zr = jnp.zeros((1, W + 2, ch), f32)
        ref[0:1, :, :] = zr
        ref[H + 1:H + 2, :, :] = zr
        zc = jnp.zeros((H + 2, 1, ch), f32)
        ref[:, 0:1, :] = zc
        ref[:, W + 1:W + 2, :] = zc

    def conv3x3_gn_relu(pad_ref, cin, w_ref, b_ref, g_ref, be_ref):
        # single im2col matmul, K = 9*cin
        patches = jnp.concatenate(
            [pad_ref[dy:dy + H, dx:dx + W, :].reshape(HW, cin)
             for dy in range(3) for dx in range(3)], axis=-1)          # (HW, 9*cin)
        acc = jnp.dot(patches.astype(bf16), w_ref[...],
                      preferred_element_type=f32) + b_ref[...]          # (HW, Hid)
        # GroupNorm: per-group stats via one-hot matmuls, per-channel affine, ReLU.
        inv_n = 1.0 / float(HW * (Hid // G))
        cs = jnp.sum(acc, axis=0, keepdims=True)                        # (1, Hid)
        mean_c = jnp.dot(jnp.dot(cs, onehot_ref[...]) * inv_n, onehot_t_ref[...])
        d = acc - mean_c
        dss = jnp.sum(d * d, axis=0, keepdims=True)                     # (1, Hid)
        var_g = jnp.dot(dss, onehot_ref[...]) * inv_n                   # (1, G)
        inv_c = jnp.dot(jax.lax.rsqrt(var_g + eps), onehot_t_ref[...])  # (1, Hid)
        return jnp.maximum(d * inv_c * g_ref[...] + be_ref[...], 0.0)   # (HW, Hid)

    zero_border(pad_x, C)
    zero_border(pad_h, Hid)
    pad_x[1:H + 1, 1:W + 1, :] = x
    a = conv3x3_gn_relu(pad_x, C, w1_ref, b1_ref, g1_ref, be1_ref)
    pad_h[1:H + 1, 1:W + 1, :] = a.reshape(H, W, Hid)
    a = conv3x3_gn_relu(pad_h, Hid, w2_ref, b2_ref, g2_ref, be2_ref)
    pad_h[1:H + 1, 1:W + 1, :] = a.reshape(H, W, Hid)
    a = conv3x3_gn_relu(pad_h, Hid, w3_ref, b3_ref, g3_ref, be3_ref)

    # adapter1 (1x1 conv) + residual -> trunk (HW, D)
    trunk = a + jnp.dot(x_flat.astype(bf16), wa_ref[...],
                        preferred_element_type=f32) + ba_ref[...]

    # ---- out_lay 3x3 conv on (trunk*attn_q + mem_q), restructured per batch ----
    # T[k, p] = Wout[k, :] . trunk[p, :]         (one matmul per batch)
    Tt = jax.lax.dot_general(wout_ref[...], trunk.astype(bf16),
                             (((1,), (1,)), ((), ())),
                             preferred_element_type=f32)                # (9, HW)
    pad_t[...] = jnp.zeros((9, H + 2, W + 2), f32)
    pad_t[:, 1:H + 1, 1:W + 1] = Tt.reshape(9, H, W)
    pad_a[...] = jnp.zeros((Q, H + 2, W + 2), f32)
    pad_a[:, 1:H + 1, 1:W + 1] = attn.reshape(Q, H, W)

    # broadcast-memory term with border tap-count correction:
    #   sum_k inbounds(p,k) * (Wout[k,:] . mem_q)
    m = jax.lax.dot_general(mem.astype(bf16), wout_ref[...],
                            (((1,), (1,)), ((), ())),
                            preferred_element_type=f32)                 # (Q, 9)
    out = jnp.dot(m, maskt_ref[...], preferred_element_type=f32)        # (Q, HW)

    # trunk*attn term: sum_k shift_k(attn) * shift_k(T[k])  (VPU work, vectorized over queries)
    k = 0
    for dy in range(3):
        for dx in range(3):
            a_s = pad_a[:, dy:dy + H, dx:dx + W].reshape(Q, HW)         # (Q, HW)
            t_s = pad_t[k, dy:dy + H, dx:dx + W].reshape(1, HW)         # (1, HW)
            out = out + a_s * t_s
            k += 1

    z = out + bout_ref[...]
    o_ref[0] = 1.0 / (1.0 + jnp.exp(-z))    # fused sigmoid, lane-dense (Q, HW) store


# ----------------------------------------------------------------------------
# Wrapper around the fused kernel
# ----------------------------------------------------------------------------
def rfdetr_seg_mask_kernel(x_nhwc, query_embed, params, *, num_heads, num_groups):
    B, H, W, C = x_nhwc.shape
    Q, D = query_embed.shape[1], query_embed.shape[2]
    Hid = params["lay1_w"].shape[-1]
    HW = H * W
    G = num_groups
    assert C == D and Hid == D, "demo requires context_dim == query_dim == hidden_dim"

    bf = jnp.bfloat16
    cpg = Hid // G
    onehot = (jnp.arange(Hid)[:, None] // cpg ==
              jnp.arange(G)[None, :]).astype(jnp.float32)               # (Hid, G)
    ys = jnp.arange(H)[:, None]
    xs = jnp.arange(W)[None, :]
    maskt = jnp.stack(
        [(((ys + dy - 1) >= 0) & ((ys + dy - 1) < H) &
          ((xs + dx - 1) >= 0) & ((xs + dx - 1) < W)).reshape(-1)
         for dy in range(3) for dx in range(3)], axis=0).astype(jnp.float32)   # (9, HW)

    weight_ops = [
        params["wq"].astype(bf), params["bq"],
        params["wk"].astype(bf), params["bk"],
        params["lay1_w"].reshape(9 * C, Hid).astype(bf), params["lay1_b"],
        params["gn1_g"], params["gn1_b"],
        params["lay2_w"].reshape(9 * Hid, Hid).astype(bf), params["lay2_b"],
        params["gn2_g"], params["gn2_b"],
        params["lay3_w"].reshape(9 * Hid, Hid).astype(bf), params["lay3_b"],
        params["gn3_g"], params["gn3_b"],
        params["adapter1_w"].astype(bf), params["adapter1_b"],
        params["out_lay_w"].reshape(9, D).astype(bf), params["out_lay_b"].reshape(1, 1),
        onehot, onehot.T, maskt,
    ]

    kern = functools.partial(_rfdetr_seg_kernel, H=H, W=W, C=C, Hid=Hid, D=D,
                             Q=Q, G=G, nH=num_heads, eps=1e-5)

    in_specs = ([pl.BlockSpec((1, H, W, C), lambda i: (i, 0, 0, 0)),
                 pl.BlockSpec((1, Q, D), lambda i: (i, 0, 0))]
                + [pl.BlockSpec(a.shape, lambda i: (0, 0)) for a in weight_ops])

    masks = pl.pallas_call(
        kern,
        out_shape=jax.ShapeDtypeStruct((B, Q, HW), jnp.float32),
        grid=(B,),
        in_specs=in_specs,
        out_specs=pl.BlockSpec((1, Q, HW), lambda i: (i, 0, 0)),
        scratch_shapes=[
            pltpu.VMEM((H + 2, W + 2, C), jnp.float32),
            pltpu.VMEM((H + 2, W + 2, Hid), jnp.float32),
            pltpu.VMEM((9, H + 2, W + 2), jnp.float32),
            pltpu.VMEM((Q, H + 2, W + 2), jnp.float32),
        ],
        compiler_params=pltpu.CompilerParams(
            dimension_semantics=("parallel",),
            vmem_limit_bytes=32 * 1024 * 1024),
    )(x_nhwc, query_embed, *weight_ops)
    return masks   # (B, Q, H*W) with sigmoid already applied


# ----------------------------------------------------------------------------
# Parameter init (deterministic, mirrors the module's __init__ shapes)
# ----------------------------------------------------------------------------
def kaiming_uniform(key, shape, fan_in, a=1.0):
    bound = math.sqrt(6.0 / ((1.0 + a * a) * fan_in))
    return jax.random.uniform(key, shape, jnp.float32, -bound, bound)


def init_params(key, context_dim, query_dim, hidden_dim):
    keys = jax.random.split(key, 8)
    D = query_dim
    p = {}
    # bbox_attention (only q/k projections matter for the returned attention weights)
    bnd = math.sqrt(6.0 / (2 * D))
    p["wq"] = jax.random.uniform(keys[0], (D, D), jnp.float32, -bnd, bnd)
    p["wk"] = jax.random.uniform(keys[1], (D, D), jnp.float32, -bnd, bnd)
    p["bq"] = jnp.zeros((1, D), jnp.float32)
    p["bk"] = jnp.zeros((1, D), jnp.float32)
    # MaskHeadSmallConv (conv weights in HWIO)
    p["lay1_w"] = kaiming_uniform(keys[2], (3, 3, context_dim, hidden_dim), 9 * context_dim)
    p["lay1_b"] = jnp.zeros((1, hidden_dim), jnp.float32)
    p["gn1_g"] = jnp.ones((1, hidden_dim), jnp.float32)
    p["gn1_b"] = jnp.zeros((1, hidden_dim), jnp.float32)
    p["lay2_w"] = kaiming_uniform(keys[3], (3, 3, hidden_dim, hidden_dim), 9 * hidden_dim)
    p["lay2_b"] = jnp.zeros((1, hidden_dim), jnp.float32)
    p["gn2_g"] = jnp.ones((1, hidden_dim), jnp.float32)
    p["gn2_b"] = jnp.zeros((1, hidden_dim), jnp.float32)
    p["lay3_w"] = kaiming_uniform(keys[4], (3, 3, hidden_dim, hidden_dim), 9 * hidden_dim)
    p["lay3_b"] = jnp.zeros((1, hidden_dim), jnp.float32)
    p["gn3_g"] = jnp.ones((1, hidden_dim), jnp.float32)
    p["gn3_b"] = jnp.zeros((1, hidden_dim), jnp.float32)
    p["adapter1_w"] = kaiming_uniform(keys[5], (context_dim, D), context_dim)
    p["adapter1_b"] = jnp.zeros((1, D), jnp.float32)
    p["out_lay_w"] = kaiming_uniform(keys[6], (3, 3, D, 1), 9 * D)
    p["out_lay_b"] = jnp.zeros((1,), jnp.float32)
    # NOTE: adapter2 and fpn_layers exist in __init__ but are never used in forward; omitted.
    return p


# ----------------------------------------------------------------------------
# RFDETRSegmentation.forward (detr sub-module outputs supplied as inputs)
# ----------------------------------------------------------------------------
def rfdetr_segmentation_forward(params, src_nchw, detr_outputs, *, num_heads=8, num_groups=8):
    pred_logits = detr_outputs["pred_logits"]
    pred_boxes = detr_outputs["pred_boxes"]
    hs = detr_outputs["decoder_outputs"]
    query_embed = hs[-1]                                  # (B, Q, D)
    B, C, H, W = src_nchw.shape
    Q = query_embed.shape[1]

    # TODO(synk): detr.transformer.encoder(src) ('memory') is computed by the reference but its
    # result is never consumed by the rest of this forward pass; it is omitted here.

    x_nhwc = jnp.transpose(src_nchw, (0, 2, 3, 1))        # NCHW -> NHWC (channels on lanes)

    # TODO(synk): the reference applies nn.Conv2d to a 5-D tensor (would error in PyTorch);
    # implemented as the intended per-query conv producing (B, Q, H, W).
    masks = rfdetr_seg_mask_kernel(x_nhwc, query_embed, params,
                                   num_heads=num_heads, num_groups=num_groups)

    out = {
        "pred_logits": pred_logits,
        "pred_boxes": pred_boxes,
        "pred_masks": masks.reshape(B, Q, H, W),
    }
    if "aux_outputs" in detr_outputs:
        out["aux_outputs"] = detr_outputs["aux_outputs"]
    return out


if __name__ == "__main__":
    # Small, consistent shapes: context_dim == query_dim == hidden_dim (required by the
    # reference's residual add and MultiheadAttention kdim defaults).
    B, C, H, W = 2, 32, 8, 8
    Q, D, HIDDEN = 8, 32, 32
    NUM_CLASSES, DEC_LAYERS = 4, 2

    key = jax.random.PRNGKey(0)
    k_src, k_hs, k_log, k_box, k_par = jax.random.split(key, 5)

    src = jax.random.normal(k_src, (B, C, H, W), jnp.float32)   # backbone features (stub)
    detr_outputs = {
        "pred_logits": jax.random.normal(k_log, (B, Q, NUM_CLASSES), jnp.float32),
        "pred_boxes": jax.nn.sigmoid(jax.random.normal(k_box, (B, Q, 4), jnp.float32)),
        "decoder_outputs": jax.random.normal(k_hs, (DEC_LAYERS, B, Q, D), jnp.float32),
    }

    params = init_params(k_par, context_dim=C, query_dim=D, hidden_dim=HIDDEN)
    fwd = jax.jit(functools.partial(rfdetr_segmentation_forward, num_heads=8, num_groups=8))
    out = fwd(params, src, detr_outputs)
    jax.block_until_ready(out["pred_masks"])

    assert out["pred_masks"].shape == (B, Q, H, W)
    assert out["pred_logits"].shape == (B, Q, NUM_CLASSES)
    assert out["pred_boxes"].shape == (B, Q, 4)
    assert bool(jnp.all(jnp.isfinite(out["pred_masks"])))
    print("KERNEL_OK")
</pallas_src>

<mosaic_0001>
module attributes {stable_mosaic.version = 11 : i64} {
  func.func @_rfdetr_seg_kernel(%arg0: i32, %arg1: memref<1x8x8x32xf32, #tpu.memory_space<vmem>>, %arg2: memref<1x8x32xf32, #tpu.memory_space<vmem>>, %arg3: memref<32x32xbf16, #tpu.memory_space<vmem>>, %arg4: memref<1x32xf32, #tpu.memory_space<vmem>>, %arg5: memref<32x32xbf16, #tpu.memory_space<vmem>>, %arg6: memref<1x32xf32, #tpu.memory_space<vmem>>, %arg7: memref<288x32xbf16, #tpu.memory_space<vmem>>, %arg8: memref<1x32xf32, #tpu.memory_space<vmem>>, %arg9: memref<1x32xf32, #tpu.memory_space<vmem>>, %arg10: memref<1x32xf32, #tpu.memory_space<vmem>>, %arg11: memref<288x32xbf16, #tpu.memory_space<vmem>>, %arg12: memref<1x32xf32, #tpu.memory_space<vmem>>, %arg13: memref<1x32xf32, #tpu.memory_space<vmem>>, %arg14: memref<1x32xf32, #tpu.memory_space<vmem>>, %arg15: memref<288x32xbf16, #tpu.memory_space<vmem>>, %arg16: memref<1x32xf32, #tpu.memory_space<vmem>>, %arg17: memref<1x32xf32, #tpu.memory_space<vmem>>, %arg18: memref<1x32xf32, #tpu.memory_space<vmem>>, %arg19: memref<32x32xbf16, #tpu.memory_space<vmem>>, %arg20: memref<1x32xf32, #tpu.memory_space<vmem>>, %arg21: memref<9x32xbf16, #tpu.memory_space<vmem>>, %arg22: memref<1x1xf32, #tpu.memory_space<vmem>>, %arg23: memref<32x8xf32, #tpu.memory_space<vmem>>, %arg24: memref<8x32xf32, #tpu.memory_space<vmem>>, %arg25: memref<9x64xf32, #tpu.memory_space<vmem>>, %arg26: memref<1x8x64xf32, #tpu.memory_space<vmem>>, %arg27: memref<10x10x32xf32, #tpu.memory_space<vmem>>, %arg28: memref<10x10x32xf32, #tpu.memory_space<vmem>>, %arg29: memref<9x10x10xf32, #tpu.memory_space<vmem>>, %arg30: memref<8x10x10xf32, #tpu.memory_space<vmem>>) attributes {dimension_semantics = [#tpu.dimension_semantics<parallel>], iteration_bounds = array<i64: 2>, scalar_prefetch = 0 : i64, scratch_operands = 4 : i64, tpu.core_type = #tpu.core_type<tc>, window_params = [{transform_indices = @transform_0, window_bounds = array<i64: 1, 8, 8, 32>}, {transform_indices = @transform_1, window_bounds = array<i64: 1, 8, 32>}, {pipeline_mode = #tpu.pipeline_mode<synchronous>, transform_indices = @transform_2, window_bounds = array<i64: 32, 32>}, {pipeline_mode = #tpu.pipeline_mode<synchronous>, transform_indices = @transform_3, window_bounds = array<i64: 1, 32>}, {pipeline_mode = #tpu.pipeline_mode<synchronous>, transform_indices = @transform_4, window_bounds = array<i64: 32, 32>}, {pipeline_mode = #tpu.pipeline_mode<synchronous>, transform_indices = @transform_5, window_bounds = array<i64: 1, 32>}, {pipeline_mode = #tpu.pipeline_mode<synchronous>, transform_indices = @transform_6, window_bounds = array<i64: 288, 32>}, {pipeline_mode = #tpu.pipeline_mode<synchronous>, transform_indices = @transform_7, window_bounds = array<i64: 1, 32>}, {pipeline_mode = #tpu.pipeline_mode<synchronous>, transform_indices = @transform_8, window_bounds = array<i64: 1, 32>}, {pipeline_mode = #tpu.pipeline_mode<synchronous>, transform_indices = @transform_9, window_bounds = array<i64: 1, 32>}, {pipeline_mode = #tpu.pipeline_mode<synchronous>, transform_indices = @transform_10, window_bounds = array<i64: 288, 32>}, {pipeline_mode = #tpu.pipeline_mode<synchronous>, transform_indices = @transform_11, window_bounds = array<i64: 1, 32>}, {pipeline_mode = #tpu.pipeline_mode<synchronous>, transform_indices = @transform_12, window_bounds = array<i64: 1, 32>}, {pipeline_mode = #tpu.pipeline_mode<synchronous>, transform_indices = @transform_13, window_bounds = array<i64: 1, 32>}, {pipeline_mode = #tpu.pipeline_mode<synchronous>, transform_indices = @transform_14, window_bounds = array<i64: 288, 32>}, {pipeline_mode = #tpu.pipeline_mode<synchronous>, transform_indices = @transform_15, window_bounds = array<i64: 1, 32>}, {pipeline_mode = #tpu.pipeline_mode<synchronous>, transform_indices = @transform_16, window_bounds = array<i64: 1, 32>}, {pipeline_mode = #tpu.pipeline_mode<synchronous>, transform_indices = @transform_17, window_bounds = array<i64: 1, 32>}, {pipeline_mode = #tpu.pipeline_mode<synchronous>, transform_indices = @transform_18, window_bounds = array<i64: 32, 32>}, {pipeline_mode = #tpu.pipeline_mode<synchronous>, transform_indices = @transform_19, window_bounds = array<i64: 1, 32>}, {pipeline_mode = #tpu.pipeline_mode<synchronous>, transform_indices = @transform_20, window_bounds = array<i64: 9, 32>}, {pipeline_mode = #tpu.pipeline_mode<synchronous>, transform_indices = @transform_21, window_bounds = array<i64: 1, 1>}, {pipeline_mode = #tpu.pipeline_mode<synchronous>, transform_indices = @transform_22, window_bounds = array<i64: 32, 8>}, {pipeline_mode = #tpu.pipeline_mode<synchronous>, transform_indices = @transform_23, window_bounds = array<i64: 8, 32>}, {pipeline_mode = #tpu.pipeline_mode<synchronous>, transform_indices = @transform_24, window_bounds = array<i64: 9, 64>}, {transform_indices = @transform_25, window_bounds = array<i64: 1, 8, 64>}]} {
    %c0 = arith.constant 0 : index
    %c0_0 = arith.constant 0 : index
    %c0_1 = arith.constant 0 : index
    %c0_2 = arith.constant 0 : index
    %0 = vector.load %arg1[%c0, %c0_0, %c0_1, %c0_2] : memref<1x8x8x32xf32, #tpu.memory_space<vmem>>, vector<1x8x8x32xf32>
    %1 = vector.shape_cast %0 : vector<1x8x8x32xf32> to vector<8x8x32xf32>
    %2 = vector.shape_cast %1 : vector<8x8x32xf32> to vector<64x32xf32>
    %c0_3 = arith.constant 0 : index
    %c0_4 = arith.constant 0 : index
    %c0_5 = arith.constant 0 : index
    %3 = vector.load %arg2[%c0_3, %c0_4, %c0_5] : memref<1x8x32xf32, #tpu.memory_space<vmem>>, vector<1x8x32xf32>
    %4 = vector.shape_cast %3 : vector<1x8x32xf32> to vector<8x32xf32>
    %5 = arith.truncf %4 : vector<8x32xf32> to vector<8x32xbf16>
    %c0_6 = arith.constant 0 : index
    %c0_7 = arith.constant 0 : index
    %6 = vector.load %arg3[%c0_6, %c0_7] : memref<32x32xbf16, #tpu.memory_space<vmem>>, vector<32x32xbf16>
    %cst = arith.constant dense<0.000000e+00> : vector<8x32xf32>
    %7 = tpu.matmul %5, %6, %cst {dimension_numbers = #tpu.dot_dimension_numbers<[1], [0], [0], [1], [0, 0, 1, 1], [], []>} : vector<8x32xbf16>, vector<32x32xbf16>, vector<8x32xf32> -> vector<8x32xf32>
    %c0_8 = arith.constant 0 : index
    %c0_9 = arith.constant 0 : index
    %8 = vector.load %arg4[%c0_8, %c0_9] : memref<1x32xf32, #tpu.memory_space<vmem>>, vector<1x32xf32>
    %9 = vector.broadcast %8 : vector<1x32xf32> to vector<8x32xf32>
    %10 = arith.addf %7, %9 : vector<8x32xf32>
    %11 = arith.truncf %2 : vector<64x32xf32> to vector<64x32xbf16>
    %c0_10 = arith.constant 0 : index
    %c0_11 = arith.constant 0 : index
    %12 = vector.load %arg5[%c0_10, %c0_11] : memref<32x32xbf16, #tpu.memory_space<vmem>>, vector<32x32xbf16>
    %cst_12 = arith.constant dense<0.000000e+00> : vector<64x32xf32>
    %13 = tpu.matmul %11, %12, %cst_12 {dimension_numbers = #tpu.dot_dimension_numbers<[1], [0], [0], [1], [0, 0, 1, 1], [], []>} : vector<64x32xbf16>, vector<32x32xbf16>, vector<64x32xf32> -> vector<64x32xf32>
    %c0_13 = arith.constant 0 : index
    %c0_14 = arith.constant 0 : index
    %14 = vector.load %arg6[%c0_13, %c0_14] : memref<1x32xf32, #tpu.memory_space<vmem>>, vector<1x32xf32>
    %15 = vector.broadcast %14 : vector<1x32xf32> to vector<64x32xf32>
    %16 = arith.addf %13, %15 : vector<64x32xf32>
    %17 = vector.extract_strided_slice %10 {offsets = [0, 0], sizes = [8, 4], strides = [1, 1]} : vector<8x32xf32> to vector<8x4xf32>
    %18 = arith.truncf %17 : vector<8x4xf32> to vector<8x4xbf16>
    %19 = vector.extract_strided_slice %16 {offsets = [0, 0], sizes = [64, 4], strides = [1, 1]} : vector<64x32xf32> to vector<64x4xf32>
    %20 = arith.truncf %19 : vector<64x4xf32> to vector<64x4xbf16>
    %cst_15 = arith.constant dense<0.000000e+00> : vector<8x64xf32>
    %21 = tpu.matmul %18, %20, %cst_15 {dimension_numbers = #tpu.dot_dimension_numbers<[1], [1], [0], [0], [0, 0, 1, 0], [], []>} : vector<8x4xbf16>, vector<64x4xbf16>, vector<8x64xf32> -> vector<8x64xf32>
    %22 = vector.extract_strided_slice %10 {offsets = [0, 4], sizes = [8, 4], strides = [1, 1]} : vector<8x32xf32> to vector<8x4xf32>
    %23 = arith.truncf %22 : vector<8x4xf32> to vector<8x4xbf16>
    %24 = vector.extract_strided_slice %16 {offsets = [0, 4], sizes = [64, 4], strides = [1, 1]} : vector<64x32xf32> to vector<64x4xf32>
    %25 = arith.truncf %24 : vector<64x4xf32> to vector<64x4xbf16>
    %cst_16 = arith.constant dense<0.000000e+00> : vector<8x64xf32>
    %26 = tpu.matmul %23, %25, %cst_16 {dimension_numbers = #tpu.dot_dimension_numbers<[1], [1], [0], [0], [0, 0, 1, 0], [], []>} : vector<8x4xbf16>, vector<64x4xbf16>, vector<8x64xf32> -> vector<8x64xf32>
    %27 = vector.extract_strided_slice %10 {offsets = [0, 8], sizes = [8, 4], strides = [1, 1]} : vector<8x32xf32> to vector<8x4xf32>
    %28 = arith.truncf %27 : vector<8x4xf32> to vector<8x4xbf16>
    %29 = vector.extract_strided_slice %16 {offsets = [0, 8], sizes = [64, 4], strides = [1, 1]} : vector<64x32xf32> to vector<64x4xf32>
    %30 = arith.truncf %29 : vector<64x4xf32> to vector<64x4xbf16>
    %cst_17 = arith.constant dense<0.000000e+00> : vector<8x64xf32>
    %31 = tpu.matmul %28, %30, %cst_17 {dimension_numbers = #tpu.dot_dimension_numbers<[1], [1], [0], [0], [0, 0, 1, 0], [], []>} : vector<8x4xbf16>, vector<64x4xbf16>, vector<8x64xf32> -> vector<8x64xf32>
    %32 = vector.extract_strided_slice %10 {offsets = [0, 12], sizes = [8, 4], strides = [1, 1]} : vector<8x32xf32> to vector<8x4xf32>
    %33 = arith.truncf %32 : vector<8x4xf32> to vector<8x4xbf16>
    %34 = vector.extract_strided_slice %16 {offsets = [0, 12], sizes = [64, 4], strides = [1, 1]} : vector<64x32xf32> to vector<64x4xf32>
    %35 = arith.truncf %34 : vector<64x4xf32> to vector<64x4xbf16>
    %cst_18 = arith.constant dense<0.000000e+00> : vector<8x64xf32>
    %36 = tpu.matmul %33, %35, %cst_18 {dimension_numbers = #tpu.dot_dimension_numbers<[1], [1], [0], [0], [0, 0, 1, 0], [], []>} : vector<8x4xbf16>, vector<64x4xbf16>, vector<8x64xf32> -> vector<8x64xf32>
    %37 = vector.extract_strided_slice %10 {offsets = [0, 16], sizes = [8, 4], strides = [1, 1]} : vector<8x32xf32> to vector<8x4xf32>
    %38 = arith.truncf %37 : vector<8x4xf32> to vector<8x4xbf16>
    %39 = vector.extract_strided_slice %16 {offsets = [0, 16], sizes = [64, 4], strides = [1, 1]} : vector<64x32xf32> to vector<64x4xf32>
    %40 = arith.truncf %39 : vector<64x4xf32> to vector<64x4xbf16>
    %cst_19 = arith.constant dense<0.000000e+00> : vector<8x64xf32>
    %41 = tpu.matmul %38, %40, %cst_19 {dimension_numbers = #tpu.dot_dimension_numbers<[1], [1], [0], [0], [0, 0, 1, 0], [], []>} : vector<8x4xbf16>, vector<64x4xbf16>, vector<8x64xf32> -> vector<8x64xf32>
    %42 = vector.extract_strided_slice %10 {offsets = [0, 20], sizes = [8, 4], strides = [1, 1]} : vector<8x32xf32> to vector<8x4xf32>
    %43 = arith.truncf %42 : vector<8x4xf32> to vector<8x4xbf16>
    %44 = vector.extract_strided_slice %16 {offsets = [0, 20], sizes = [64, 4], strides = [1, 1]} : vector<64x32xf32> to vector<64x4xf32>
    %45 = arith.truncf %44 : vector<64x4xf32> to vector<64x4xbf16>
    %cst_20 = arith.constant dense<0.000000e+00> : vector<8x64xf32>
    %46 = tpu.matmul %43, %45, %cst_20 {dimension_numbers = #tpu.dot_dimension_numbers<[1], [1], [0], [0], [0, 0, 1, 0], [], []>} : vector<8x4xbf16>, vector<64x4xbf16>, vector<8x64xf32> -> vector<8x64xf32>
    %47 = vector.extract_strided_slice %10 {offsets = [0, 24], sizes = [8, 4], strides = [1, 1]} : vector<8x32xf32> to vector<8x4xf32>
    %48 = arith.truncf %47 : vector<8x4xf32> to vector<8x4xbf16>
    %49 = vector.extract_strided_slice %16 {offsets = [0, 24], sizes = [64, 4], strides = [1, 1]} : vector<64x32xf32> to vector<64x4xf32>
    %50 = arith.truncf %49 : vector<64x4xf32> to vector<64x4xbf16>
    %cst_21 = arith.constant dense<0.000000e+00> : vector<8x64xf32>
    %51 = tpu.matmul %48, %50, %cst_21 {dimension_numbers = #tpu.dot_dimension_numbers<[1], [1], [0], [0], [0, 0, 1, 0], [], []>} : vector<8x4xbf16>, vector<64x4xbf16>, vector<8x64xf32> -> vector<8x64xf32>
    %52 = vector.extract_strided_slice %10 {offsets = [0, 28], sizes = [8, 4], strides = [1, 1]} : vector<8x32xf32> to vector<8x4xf32>
    %53 = arith.truncf %52 : vector<8x4xf32> to vector<8x4xbf16>
    %54 = vector.extract_strided_slice %16 {offsets = [0, 28], sizes = [64, 4], strides = [1, 1]} : vector<64x32xf32> to vector<64x4xf32>
    %55 = arith.truncf %54 : vector<64x4xf32> to vector<64x4xbf16>
    %cst_22 = arith.constant dense<0.000000e+00> : vector<8x64xf32>
    %56 = tpu.matmul %53, %55, %cst_22 {dimension_numbers = #tpu.dot_dimension_numbers<[1], [1], [0], [0], [0, 0, 1, 0], [], []>} : vector<8x4xbf16>, vector<64x4xbf16>, vector<8x64xf32> -> vector<8x64xf32>
    %57 = tpu.concatenate %21, %26, %31, %36, %41, %46, %51, %56 in 0 : vector<8x64xf32>, vector<8x64xf32>, vector<8x64xf32>, vector<8x64xf32>, vector<8x64xf32>, vector<8x64xf32>, vector<8x64xf32>, vector<8x64xf32> -> vector<64x64xf32>
    %cst_23 = arith.constant 5.000000e-01 : f32
    %58 = vector.broadcast %cst_23 : f32 to vector<64x64xf32>
    %59 = arith.mulf %57, %58 : vector<64x64xf32>
    %cst_24 = arith.constant dense<0xFF800000> : vector<64xf32>
    %60 = vector.multi_reduction <maximumf>, %59, %cst_24 [1] : vector<64x64xf32> to vector<64xf32>
    %61 = vector.shape_cast %60 : vector<64xf32> to vector<64x1xf32>
    %62 = vector.broadcast %61 : vector<64x1xf32> to vector<64x64xf32>
    %63 = arith.subf %59, %62 : vector<64x64xf32>
    %64 = math.exp %63 : vector<64x64xf32>
    %cst_25 = arith.constant dense<0.000000e+00> : vector<64xf32>
    %65 = vector.multi_reduction <add>, %64, %cst_25 [1] : vector<64x64xf32> to vector<64xf32>
    %66 = vector.shape_cast %65 : vector<64xf32> to vector<64x1xf32>
    %67 = tpu.reciprocal %66 {approx = true} : vector<64x1xf32> -> vector<64x1xf32>
    %68 = vector.broadcast %67 : vector<64x1xf32> to vector<64x64xf32>
    %69 = arith.mulf %64, %68 : vector<64x64xf32>
    %cst_26 = arith.constant 0.000000e+00 : f32
    %70 = vector.broadcast %cst_26 : f32 to vector<8x64xf32>
    %71 = vector.extract_strided_slice %69 {offsets = [0, 0], sizes = [8, 64], strides = [1, 1]} : vector<64x64xf32> to vector<8x64xf32>
    %72 = arith.addf %70, %71 : vector<8x64xf32>
    %73 = vector.extract_strided_slice %69 {offsets = [8, 0], sizes = [8, 64], strides = [1, 1]} : vector<64x64xf32> to vector<8x64xf32>
    %74 = arith.addf %72, %73 : vector<8x64xf32>
    %75 = vector.extract_strided_slice %69 {offsets = [16, 0], sizes = [8, 64], strides = [1, 1]} : vector<64x64xf32> to vector<8x64xf32>
    %76 = arith.addf %74, %75 : vector<8x64xf32>
    %77 = vector.extract_strided_slice %69 {offsets = [24, 0], sizes = [8, 64], strides = [1, 1]} : vector<64x64xf32> to vector<8x64xf32>
    %78 = arith.addf %76, %77 : vector<8x64xf32>
    %79 = vector.extract_strided_slice %69 {offsets = [32, 0], sizes = [8, 64], strides = [1, 1]} : vector<64x64xf32> to vector<8x64xf32>
    %80 = arith.addf %78, %79 : vector<8x64xf32>
    %81 = vector.extract_strided_slice %69 {offsets = [40, 0], sizes = [8, 64], strides = [1, 1]} : vector<64x64xf32> to vector<8x64xf32>
    %82 = arith.addf %80, %81 : vector<8x64xf32>
    %83 = vector.extract_strided_slice %69 {offsets = [48, 0], sizes = [8, 64], strides = [1, 1]} : vector<64x64xf32> to vector<8x64xf32>
    %84 = arith.addf %82, %83 : vector<8x64xf32>
    %85 = vector.extract_strided_slice %69 {offsets = [56, 0], sizes = [8, 64], strides = [1, 1]} : vector<64x64xf32> to vector<8x64xf32>
    %86 = arith.addf %84, %85 : vector<8x64xf32>
    %cst_27 = arith.constant 1.250000e-01 : f32
    %87 = vector.broadcast %cst_27 : f32 to vector<8x64xf32>
    %88 = arith.mulf %86, %87 : vector<8x64xf32>
    %cst_28 = arith.constant 0.000000e+00 : f32
    %89 = vector.broadcast %cst_28 : f32 to vector<1x10x32xf32>
    %c0_29 = arith.constant 0 : index
    %c0_30 = arith.constant 0 : index
    %c0_31 = arith.constant 0 : index
    %90 = vector.load %arg27[%c0_29, %c0_30, %c0_31] : memref<10x10x32xf32, #tpu.memory_space<vmem>>, vector<1x10x32xf32>
    tpu.vector_store %arg27[%c0_29, %c0_30, %c0_31], %89 {strides = array<i32>} : memref<10x10x32xf32, #tpu.memory_space<vmem>>, vector<1x10x32xf32>,
    %c9 = arith.constant 9 : index
    %c0_32 = arith.constant 0 : index
    %c0_33 = arith.constant 0 : index
    %91 = vector.load %arg27[%c9, %c0_32, %c0_33] : memref<10x10x32xf32, #tpu.memory_space<vmem>>, vector<1x10x32xf32>
    tpu.vector_store %arg27[%c9, %c0_32, %c0_33], %89 {strides = array<i32>} : memref<10x10x32xf32, #tpu.memory_space<vmem>>, vector<1x10x32xf32>,
    %cst_34 = arith.constant 0.000000e+00 : f32
    %92 = vector.broadcast %cst_34 : f32 to vector<10x1x32xf32>
    %c0_35 = arith.constant 0 : index
    %c0_36 = arith.constant 0 : index
    %c0_37 = arith.constant 0 : index
    %93 = vector.load %arg27[%c0_35, %c0_36, %c0_37] : memref<10x10x32xf32, #tpu.memory_space<vmem>>, vector<10x1x32xf32>
    tpu.vector_store %arg27[%c0_35, %c0_36, %c0_37], %92 {strides = array<i32>} : memref<10x10x32xf32, #tpu.memory_space<vmem>>, vector<10x1x32xf32>,
    %c0_38 = arith.constant 0 : index
    %c9_39 = arith.constant 9 : index
    %c0_40 = arith.constant 0 : index
    %94 = vector.load %arg27[%c0_38, %c9_39, %c0_40] : memref<10x10x32xf32, #tpu.memory_space<vmem>>, vector<10x1x32xf32>
    tpu.vector_store %arg27[%c0_38, %c9_39, %c0_40], %92 {strides = array<i32>} : memref<10x10x32xf32, #tpu.memory_space<vmem>>, vector<10x1x32xf32>,
    %cst_41 = arith.constant 0.000000e+00 : f32
    %95 = vector.broadcast %cst_41 : f32 to vector<1x10x32xf32>
    %c0_42 = arith.constant 0 : index
    %c0_43 = arith.constant 0 : index
    %c0_44 = arith.constant 0 : index
    %96 = vector.load %arg28[%c0_42, %c0_43, %c0_44] : memref<10x10x32xf32, #tpu.memory_space<vmem>>, vector<1x10x32xf32>
    tpu.vector_store %arg28[%c0_42, %c0_43, %c0_44], %95 {strides = array<i32>} : memref<10x10x32xf32, #tpu.memory_space<vmem>>, vector<1x10x32xf32>,
    %c9_45 = arith.constant 9 : index
    %c0_46 = arith.constant 0 : index
    %c0_47 = arith.constant 0 : index
    %97 = vector.load %arg28[%c9_45, %c0_46, %c0_47] : memref<10x10x32xf32, #tpu.memory_space<vmem>>, vector<1x10x32xf32>
    tpu.vector_store %arg28[%c9_45, %c0_46, %c0_47], %95 {strides = array<i32>} : memref<10x10x32xf32, #tpu.memory_space<vmem>>, vector<1x10x32xf32>,
    %cst_48 = arith.constant 0.000000e+00 : f32
    %98 = vector.broadcast %cst_48 : f32 to vector<10x1x32xf32>
    %c0_49 = arith.constant 0 : index
    %c0_50 = arith.constant 0 : index
    %c0_51 = arith.constant 0 : index
    %99 = vector.load %arg28[%c0_49, %c0_50, %c0_51] : memref<10x10x32xf32, #tpu.memory_space<vmem>>, vector<10x1x32xf32>
    tpu.vector_store %arg28[%c0_49, %c0_50, %c0_51], %98 {strides = array<i32>} : memref<10x10x32xf32, #tpu.memory_space<vmem>>, vector<10x1x32xf32>,
    %c0_52 = arith.constant 0 : index
    %c9_53 = arith.constant 9 : index
    %c0_54 = arith.constant 0 : index
    %100 = vector.load %arg28[%c0_52, %c9_53, %c0_54] : memref<10x10x32xf32, #tpu.memory_space<vmem>>, vector<10x1x32xf32>
    tpu.vector_store %arg28[%c0_52, %c9_53, %c0_54], %98 {strides = array<i32>} : memref<10x10x32xf32, #tpu.memory_space<vmem>>, vector<10x1x32xf32>,
    %c1 = arith.constant 1 : index
    %c1_55 = arith.constant 1 : index
    %c0_56 = arith.constant 0 : index
    %101 = vector.load %arg27[%c1, %c1_55, %c0_56] : memref<10x10x32xf32, #tpu.memory_space<vmem>>, vector<8x8x32xf32>
    tpu.vector_store %arg27[%c1, %c1_55, %c0_56], %1 {strides = array<i32>} : memref<10x10x32xf32, #tpu.memory_space<vmem>>, vector<8x8x32xf32>,
    %c0_57 = arith.constant 0 : index
    %c0_58 = arith.constant 0 : index
    %c0_59 = arith.constant 0 : index
    %102 = vector.load %arg27[%c0_57, %c0_58, %c0_59] : memref<10x10x32xf32, #tpu.memory_space<vmem>>, vector<8x8x32xf32>
    %103 = vector.shape_cast %102 : vector<8x8x32xf32> to vector<64x32xf32>
    %c0_60 = arith.constant 0 : index
    %c1_61 = arith.constant 1 : index
    %c0_62 = arith.constant 0 : index
    %104 = vector.load %arg27[%c0_60, %c1_61, %c0_62] : memref<10x10x32xf32, #tpu.memory_space<vmem>>, vector<8x8x32xf32>
    %105 = vector.shape_cast %104 : vector<8x8x32xf32> to vector<64x32xf32>
    %c0_63 = arith.constant 0 : index
    %c2 = arith.constant 2 : index
    %c0_64 = arith.constant 0 : index
    %106 = vector.load %arg27[%c0_63, %c2, %c0_64] : memref<10x10x32xf32, #tpu.memory_space<vmem>>, vector<8x8x32xf32>
    %107 = vector.shape_cast %106 : vector<8x8x32xf32> to vector<64x32xf32>
    %c1_65 = arith.constant 1 : index
    %c0_66 = arith.constant 0 : index
    %c0_67 = arith.constant 0 : index
    %108 = vector.load %arg27[%c1_65, %c0_66, %c0_67] : memref<10x10x32xf32, #tpu.memory_space<vmem>>, vector<8x8x32xf32>
    %109 = vector.shape_cast %108 : vector<8x8x32xf32> to vector<64x32xf32>
    %c1_68 = arith.constant 1 : index
    %c1_69 = arith.constant 1 : index
    %c0_70 = arith.constant 0 : index
    %110 = vector.load %arg27[%c1_68, %c1_69, %c0_70] : memref<10x10x32xf32, #tpu.memory_space<vmem>>, vector<8x8x32xf32>
    %111 = vector.shape_cast %110 : vector<8x8x32xf32> to vector<64x32xf32>
    %c1_71 = arith.constant 1 : index
    %c2_72 = arith.constant 2 : index
    %c0_73 = arith.constant 0 : index
    %112 = vector.load %arg27[%c1_71, %c2_72, %c0_73] : memref<10x10x32xf32, #tpu.memory_space<vmem>>, vector<8x8x32xf32>
    %113 = vector.shape_cast %112 : vector<8x8x32xf32> to vector<64x32xf32>
    %c2_74 = arith.constant 2 : index
    %c0_75 = arith.constant 0 : index
    %c0_76 = arith.constant 0 : index
    %114 = vector.load %arg27[%c2_74, %c0_75, %c0_76] : memref<10x10x32xf32, #tpu.memory_space<vmem>>, vector<8x8x32xf32>
    %115 = vector.shape_cast %114 : vector<8x8x32xf32> to vector<64x32xf32>
    %c2_77 = arith.constant 2 : index
    %c1_78 = arith.constant 1 : index
    %c0_79 = arith.constant 0 : index
    %116 = vector.load %arg27[%c2_77, %c1_78, %c0_79] : memref<10x10x32xf32, #tpu.memory_space<vmem>>, vector<8x8x32xf32>
    %117 = vector.shape_cast %116 : vector<8x8x32xf32> to vector<64x32xf32>
    %c2_80 = arith.constant 2 : index
    %c2_81 = arith.constant 2 : index
    %c0_82 = arith.constant 0 : index
    %118 = vector.load %arg27[%c2_80, %c2_81, %c0_82] : memref<10x10x32xf32, #tpu.memory_space<vmem>>, vector<8x8x32xf32>
    %119 = vector.shape_cast %118 : vector<8x8x32xf32> to vector<64x32xf32>
    %120 = tpu.concatenate %103, %105, %107, %109, %111, %113, %115, %117, %119 in 1 : vector<64x32xf32>, vector<64x32xf32>, vector<64x32xf32>, vector<64x32xf32>, vector<64x32xf32>, vector<64x32xf32>, vector<64x32xf32>, vector<64x32xf32>, vector<64x32xf32> -> vector<64x288xf32>
    %121 = arith.truncf %120 : vector<64x288xf32> to vector<64x288xbf16>
    %c0_83 = arith.constant 0 : index
    %c0_84 = arith.constant 0 : index
    %122 = vector.load %arg7[%c0_83, %c0_84] : memref<288x32xbf16, #tpu.memory_space<vmem>>, vector<288x32xbf16>
    %cst_85 = arith.constant dense<0.000000e+00> : vector<64x32xf32>
    %123 = tpu.matmul %121, %122, %cst_85 {dimension_numbers = #tpu.dot_dimension_numbers<[1], [0], [0], [1], [0, 0, 1, 1], [], []>} : vector<64x288xbf16>, vector<288x32xbf16>, vector<64x32xf32> -> vector<64x32xf32>
    %c0_86 = arith.constant 0 : index
    %c0_87 = arith.constant 0 : index
    %124 = vector.load %arg8[%c0_86, %c0_87] : memref<1x32xf32, #tpu.memory_space<vmem>>, vector<1x32xf32>
    %125 = vector.broadcast %124 : vector<1x32xf32> to vector<64x32xf32>
    %126 = arith.addf %123, %125 : vector<64x32xf32>
    %cst_88 = arith.constant dense<0.000000e+00> : vector<32xf32>
    %127 = vector.multi_reduction <add>, %126, %cst_88 [0] : vector<64x32xf32> to vector<32xf32>
    %128 = vector.shape_cast %127 : vector<32xf32> to vector<1x32xf32>
    %c0_89 = arith.constant 0 : index
    %c0_90 = arith.constant 0 : index
    %129 = vector.load %arg23[%c0_89, %c0_90] : memref<32x8xf32, #tpu.memory_space<vmem>>, vector<32x8xf32>
    %cst_91 = arith.constant dense<0.000000e+00> : vector<1x8xf32>
    %130 = tpu.matmul %128, %129, %cst_91 {dimension_numbers = #tpu.dot_dimension_numbers<[1], [0], [0], [1], [0, 0, 1, 1], [], []>} : vector<1x32xf32>, vector<32x8xf32>, vector<1x8xf32> -> vector<1x8xf32>
    %cst_92 = arith.constant 3.906250e-03 : f32
    %131 = vector.broadcast %cst_92 : f32 to vector<1x8xf32>
    %132 = arith.mulf %130, %131 : vector<1x8xf32>
    %c0_93 = arith.constant 0 : index
    %c0_94 = arith.constant 0 : index
    %133 = vector.load %arg24[%c0_93, %c0_94] : memref<8x32xf32, #tpu.memory_space<vmem>>, vector<8x32xf32>
    %cst_95 = arith.constant dense<0.000000e+00> : vector<1x32xf32>
    %134 = tpu.matmul %132, %133, %cst_95 {dimension_numbers = #tpu.dot_dimension_numbers<[1], [0], [0], [1], [0, 0, 1, 1], [], []>} : vector<1x8xf32>, vector<8x32xf32>, vector<1x32xf32> -> vector<1x32xf32>
    %135 = vector.broadcast %134 : vector<1x32xf32> to vector<64x32xf32>
    %136 = arith.subf %126, %135 : vector<64x32xf32>
    %137 = arith.mulf %136, %136 : vector<64x32xf32>
    %cst_96 = arith.constant dense<0.000000e+00> : vector<32xf32>
    %138 = vector.multi_reduction <add>, %137, %cst_96 [0] : vector<64x32xf32> to vector<32xf32>
    %139 = vector.shape_cast %138 : vector<32xf32> to vector<1x32xf32>
    %c0_97 = arith.constant 0 : index
    %c0_98 = arith.constant 0 : index
    %140 = vector.load %arg23[%c0_97, %c0_98] : memref<32x8xf32, #tpu.memory_space<vmem>>, vector<32x8xf32>
    %cst_99 = arith.constant dense<0.000000e+00> : vector<1x8xf32>
    %141 = tpu.matmul %139, %140, %cst_99 {dimension_numbers = #tpu.dot_dimension_numbers<[1], [0], [0], [1], [0, 0, 1, 1], [], []>} : vector<1x32xf32>, vector<32x8xf32>, vector<1x8xf32> -> vector<1x8xf32>
    %cst_100 = arith.constant 3.906250e-03 : f32
    %142 = vector.broadcast %cst_100 : f32 to vector<1x8xf32>
    %143 = arith.mulf %141, %142 : vector<1x8xf32>
    %cst_101 = arith.constant 9.99999974E-6 : f32
    %144 = vector.broadcast %cst_101 : f32 to vector<1x8xf32>
    %145 = arith.addf %143, %144 : vector<1x8xf32>
    %146 = math.rsqrt %145 : vector<1x8xf32>
    %c0_102 = arith.constant 0 : index
    %c0_103 = arith.constant 0 : index
    %147 = vector.load %arg24[%c0_102, %c0_103] : memref<8x32xf32, #tpu.memory_space<vmem>>, vector<8x32xf32>
    %cst_104 = arith.constant dense<0.000000e+00> : vector<1x32xf32>
    %148 = tpu.matmul %146, %147, %cst_104 {dimension_numbers = #tpu.dot_dimension_numbers<[1], [0], [0], [1], [0, 0, 1, 1], [], []>} : vector<1x8xf32>, vector<8x32xf32>, vector<1x32xf32> -> vector<1x32xf32>
    %149 = vector.broadcast %148 : vector<1x32xf32> to vector<64x32xf32>
    %150 = arith.mulf %136, %149 : vector<64x32xf32>
    %c0_105 = arith.constant 0 : index
    %c0_106 = arith.constant 0 : index
    %151 = vector.load %arg9[%c0_105, %c0_106] : memref<1x32xf32, #tpu.memory_space<vmem>>, vector<1x32xf32>
    %152 = vector.broadcast %151 : vector<1x32xf32> to vector<64x32xf32>
    %153 = arith.mulf %150, %152 : vector<64x32xf32>
    %c0_107 = arith.constant 0 : index
    %c0_108 = arith.constant 0 : index
    %154 = vector.load %arg10[%c0_107, %c0_108] : memref<1x32xf32, #tpu.memory_space<vmem>>, vector<1x32xf32>
    %155 = vector.broadcast %154 : vector<1x32xf32> to vector<64x32xf32>
    %156 = arith.addf %153, %155 : vector<64x32xf32>
    %cst_109 = arith.constant 0.000000e+00 : f32
    %157 = vector.broadcast %cst_109 : f32 to vector<64x32xf32>
    %158 = arith.maximumf %156, %157 : vector<64x32xf32>
    %159 = vector.shape_cast %158 : vector<64x32xf32> to vector<8x8x32xf32>
    %c1_110 = arith.constant 1 : index
    %c1_111 = arith.constant 1 : index
    %c0_112 = arith.constant 0 : index
    %160 = vector.load %arg28[%c1_110, %c1_111, %c0_112] : memref<10x10x32xf32, #tpu.memory_space<vmem>>, vector<8x8x32xf32>
    tpu.vector_store %arg28[%c1_110, %c1_111, %c0_112], %159 {strides = array<i32>} : memref<10x10x32xf32, #tpu.memory_space<vmem>>, vector<8x8x32xf32>,
    %c0_113 = arith.constant 0 : index
    %c0_114 = arith.constant 0 : index
    %c0_115 = arith.constant 0 : index
    %161 = vector.load %arg28[%c0_113, %c0_114, %c0_115] : memref<10x10x32xf32, #tpu.memory_space<vmem>>, vector<8x8x32xf32>
    %162 = vector.shape_cast %161 : vector<8x8x32xf32> to vector<64x32xf32>
    %c0_116 = arith.constant 0 : index
    %c1_117 = arith.constant 1 : index
    %c0_118 = arith.constant 0 : index
    %163 = vector.load %arg28[%c0_116, %c1_117, %c0_118] : memref<10x10x32xf32, #tpu.memory_space<vmem>>, vector<8x8x32xf32>
    %164 = vector.shape_cast %163 : vector<8x8x32xf32> to vector<64x32xf32>
    %c0_119 = arith.constant 0 : index
    %c2_120 = arith.constant 2 : index
    %c0_121 = arith.constant 0 : index
    %165 = vector.load %arg28[%c0_119, %c2_120, %c0_121] : memref<10x10x32xf32, #tpu.memory_space<vmem>>, vector<8x8x32xf32>
    %166 = vector.shape_cast %165 : vector<8x8x32xf32> to vector<64x32xf32>
    %c1_122 = arith.constant 1 : index
    %c0_123 = arith.constant 0 : index
    %c0_124 = arith.constant 0 : index
    %167 = vector.load %arg28[%c1_122, %c0_123, %c0_124] : memref<10x10x32xf32, #tpu.memory_space<vmem>>, vector<8x8x32xf32>
    %168 = vector.shape_cast %167 : vector<8x8x32xf32> to vector<64x32xf32>
    %c1_125 = arith.constant 1 : index
    %c1_126 = arith.constant 1 : index
    %c0_127 = arith.constant 0 : index
    %169 = vector.load %arg28[%c1_125, %c1_126, %c0_127] : memref<10x10x32xf32, #tpu.memory_space<vmem>>, vector<8x8x32xf32>
    %170 = vector.shape_cast %169 : vector<8x8x32xf32> to vector<64x32xf32>
    %c1_128 = arith.constant 1 : index
    %c2_129 = arith.constant 2 : index
    %c0_130 = arith.constant 0 : index
    %171 = vector.load %arg28[%c1_128, %c2_129, %c0_130] : memref<10x10x32xf32, #tpu.memory_space<vmem>>, vector<8x8x32xf32>
    %172 = vector.shape_cast %171 : vector<8x8x32xf32> to vector<64x32xf32>
    %c2_131 = arith.constant 2 : index
    %c0_132 = arith.constant 0 : index
    %c0_133 = arith.constant 0 : index
    %173 = vector.load %arg28[%c2_131, %c0_132, %c0_133] : memref<10x10x32xf32, #tpu.memory_space<vmem>>, vector<8x8x32xf32>
    %174 = vector.shape_cast %173 : vector<8x8x32xf32> to vector<64x32xf32>
    %c2_134 = arith.constant 2 : index
    %c1_135 = arith.constant 1 : index
    %c0_136 = arith.constant 0 : index
    %175 = vector.load %arg28[%c2_134, %c1_135, %c0_136] : memref<10x10x32xf32, #tpu.memory_space<vmem>>, vector<8x8x32xf32>
    %176 = vector.shape_cast %175 : vector<8x8x32xf32> to vector<64x32xf32>
    %c2_137 = arith.constant 2 : index
    %c2_138 = arith.constant 2 : index
    %c0_139 = arith.constant 0 : index
    %177 = vector.load %arg28[%c2_137, %c2_138, %c0_139] : memref<10x10x32xf32, #tpu.memory_space<vmem>>, vector<8x8x32xf32>
    %178 = vector.shape_cast %177 : vector<8x8x32xf32> to vector<64x32xf32>
    %179 = tpu.concatenate %162, %164, %166, %168, %170, %172, %174, %176, %178 in 1 : vector<64x32xf32>, vector<64x32xf32>, vector<64x32xf32>, vector<64x32xf32>, vector<64x32xf32>, vector<64x32xf32>, vector<64x32xf32>, vector<64x32xf32>, vector<64x32xf32> -> vector<64x288xf32>
    %180 = arith.truncf %179 : vector<64x288xf32> to vector<64x288xbf16>
    %c0_140 = arith.constant 0 : index
    %c0_141 = arith.constant 0 : index
    %181 = vector.load %arg11[%c0_140, %c0_141] : memref<288x32xbf16, #tpu.memory_space<vmem>>, vector<288x32xbf16>
    %cst_142 = arith.constant dense<0.000000e+00> : vector<64x32xf32>
    %182 = tpu.matmul %180, %181, %cst_142 {dimension_numbers = #tpu.dot_dimension_numbers<[1], [0], [0], [1], [0, 0, 1, 1], [], []>} : vector<64x288xbf16>, vector<288x32xbf16>, vector<64x32xf32> -> vector<64x32xf32>
    %c0_143 = arith.constant 0 : index
    %c0_144 = arith.constant 0 : index
    %183 = vector.load %arg12[%c0_143, %c0_144] : memref<1x32xf32, #tpu.memory_space<vmem>>, vector<1x32xf32>
    %184 = vector.broadcast %183 : vector<1x32xf32> to vector<64x32xf32>
    %185 = arith.addf %182, %184 : vector<64x32xf32>
    %cst_145 = arith.constant dense<0.000000e+00> : vector<32xf32>
    %186 = vector.multi_reduction <add>, %185, %cst_145 [0] : vector<64x32xf32> to vector<32xf32>
    %187 = vector.shape_cast %186 : vector<32xf32> to vector<1x32xf32>
    %c0_146 = arith.constant 0 : index
    %c0_147 = arith.constant 0 : index
    %188 = vector.load %arg23[%c0_146, %c0_147] : memref<32x8xf32, #tpu.memory_space<vmem>>, vector<32x8xf32>
    %cst_148 = arith.constant dense<0.000000e+00> : vector<1x8xf32>
    %189 = tpu.matmul %187, %188, %cst_148 {dimension_numbers = #tpu.dot_dimension_numbers<[1], [0], [0], [1], [0, 0, 1, 1], [], []>} : vector<1x32xf32>, vector<32x8xf32>, vector<1x8xf32> -> vector<1x8xf32>
    %cst_149 = arith.constant 3.906250e-03 : f32
    %190 = vector.broadcast %cst_149 : f32 to vector<1x8xf32>
    %191 = arith.mulf %189, %190 : vector<1x8xf32>
    %c0_150 = arith.constant 0 : index
    %c0_151 = arith.constant 0 : index
    %192 = vector.load %arg24[%c0_150, %c0_151] : memref<8x32xf32, #tpu.memory_space<vmem>>, vector<8x32xf32>
    %cst_152 = arith.constant dense<0.000000e+00> : vector<1x32xf32>
    %193 = tpu.matmul %191, %192, %cst_152 {dimension_numbers = #tpu.dot_dimension_numbers<[1], [0], [0], [1], [0, 0, 1, 1], [], []>} : vector<1x8xf32>, vector<8x32xf32>, vector<1x32xf32> -> vector<1x32xf32>
    %194 = vector.broadcast %193 : vector<1x32xf32> to vector<64x32xf32>
    %195 = arith.subf %185, %194 : vector<64x32xf32>
    %196 = arith.mulf %195, %195 : vector<64x32xf32>
    %cst_153 = arith.constant dense<0.000000e+00> : vector<32xf32>
    %197 = vector.multi_reduction <add>, %196, %cst_153 [0] : vector<64x32xf32> to vector<32xf32>
    %198 = vector.shape_cast %197 : vector<32xf32> to vector<1x32xf32>
    %c0_154 = arith.constant 0 : index
    %c0_155 = arith.constant 0 : index
    %199 = vector.load %arg23[%c0_154, %c0_155] : memref<32x8xf32, #tpu.memory_space<vmem>>, vector<32x8xf32>
    %cst_156 = arith.constant dense<0.000000e+00> : vector<1x8xf32>
    %200 = tpu.matmul %198, %199, %cst_156 {dimension_numbers = #tpu.dot_dimension_numbers<[1], [0], [0], [1], [0, 0, 1, 1], [], []>} : vector<1x32xf32>, vector<32x8xf32>, vector<1x8xf32> -> vector<1x8xf32>
    %cst_157 = arith.constant 3.906250e-03 : f32
    %201 = vector.broadcast %cst_157 : f32 to vector<1x8xf32>
    %202 = arith.mulf %200, %201 : vector<1x8xf32>
    %cst_158 = arith.constant 9.99999974E-6 : f32
    %203 = vector.broadcast %cst_158 : f32 to vector<1x8xf32>
    %204 = arith.addf %202, %203 : vector<1x8xf32>
    %205 = math.rsqrt %204 : vector<1x8xf32>
    %c0_159 = arith.constant 0 : index
    %c0_160 = arith.constant 0 : index
    %206 = vector.load %arg24[%c0_159, %c0_160] : memref<8x32xf32, #tpu.memory_space<vmem>>, vector<8x32xf32>
    %cst_161 = arith.constant dense<0.000000e+00> : vector<1x32xf32>
    %207 = tpu.matmul %205, %206, %cst_161 {dimension_numbers = #tpu.dot_dimension_numbers<[1], [0], [0], [1], [0, 0, 1, 1], [], []>} : vector<1x8xf32>, vector<8x32xf32>, vector<1x32xf32> -> vector<1x32xf32>
    %208 = vector.broadcast %207 : vector<1x32xf32> to vector<64x32xf32>
    %209 = arith.mulf %195, %208 : vector<64x32xf32>
    %c0_162 = arith.constant 0 : index
    %c0_163 = arith.constant 0 : index
    %210 = vector.load %arg13[%c0_162, %c0_163] : memref<1x32xf32, #tpu.memory_space<vmem>>, vector<1x32xf32>
    %211 = vector.broadcast %210 : vector<1x32xf32> to vector<64x32xf32>
    %212 = arith.mulf %209, %211 : vector<64x32xf32>
    %c0_164 = arith.constant 0 : index
    %c0_165 = arith.constant 0 : index
    %213 = vector.load %arg14[%c0_164, %c0_165] : memref<1x32xf32, #tpu.memory_space<vmem>>, vector<1x32xf32>
    %214 = vector.broadcast %213 : vector<1x32xf32> to vector<64x32xf32>
    %215 = arith.addf %212, %214 : vector<64x32xf32>
    %cst_166 = arith.constant 0.000000e+00 : f32
    %216 = vector.broadcast %cst_166 : f32 to vector<64x32xf32>
    %217 = arith.maximumf %215, %216 : vector<64x32xf32>
    %218 = vector.shape_cast %217 : vector<64x32xf32> to vector<8x8x32xf32>
    %c1_167 = arith.constant 1 : index
    %c1_168 = arith.constant 1 : index
    %c0_169 = arith.constant 0 : index
    %219 = vector.load %arg28[%c1_167, %c1_168, %c0_169] : memref<10x10x32xf32, #tpu.memory_space<vmem>>, vector<8x8x32xf32>
    tpu.vector_store %arg28[%c1_167, %c1_168, %c0_169], %218 {strides = array<i32>} : memref<10x10x32xf32, #tpu.memory_space<vmem>>, vector<8x8x32xf32>,
    %c0_170 = arith.constant 0 : index
    %c0_171 = arith.constant 0 : index
    %c0_172 = arith.constant 0 : index
    %220 = vector.load %arg28[%c0_170, %c0_171, %c0_172] : memref<10x10x32xf32, #tpu.memory_space<vmem>>, vector<8x8x32xf32>
    %221 = vector.shape_cast %220 : vector<8x8x32xf32> to vector<64x32xf32>
    %c0_173 = arith.constant 0 : index
    %c1_174 = arith.constant 1 : index
    %c0_175 = arith.constant 0 : index
    %222 = vector.load %arg28[%c0_173, %c1_174, %c0_175] : memref<10x10x32xf32, #tpu.memory_space<vmem>>, vector<8x8x32xf32>
    %223 = vector.shape_cast %222 : vector<8x8x32xf32> to vector<64x32xf32>
    %c0_176 = arith.constant 0 : index
    %c2_177 = arith.constant 2 : index
    %c0_178 = arith.constant 0 : index
    %224 = vector.load %arg28[%c0_176, %c2_177, %c0_178] : memref<10x10x32xf32, #tpu.memory_space<vmem>>, vector<8x8x32xf32>
    %225 = vector.shape_cast %224 : vector<8x8x32xf32> to vector<64x32xf32>
    %c1_179 = arith.constant 1 : index
    %c0_180 = arith.constant 0 : index
    %c0_181 = arith.constant 0 : index
    %226 = vector.load %arg28[%c1_179, %c0_180, %c0_181] : memref<10x10x32xf32, #tpu.memory_space<vmem>>, vector<8x8x32xf32>
    %227 = vector.shape_cast %226 : vector<8x8x32xf32> to vector<64x32xf32>
    %c1_182 = arith.constant 1 : index
    %c1_183 = arith.constant 1 : index
    %c0_184 = arith.constant 0 : index
    %228 = vector.load %arg28[%c1_182, %c1_183, %c0_184] : memref<10x10x32xf32, #tpu.memory_space<vmem>>, vector<8x8x32xf32>
    %229 = vector.shape_cast %228 : vector<8x8x32xf32> to vector<64x32xf32>
    %c1_185 = arith.constant 1 : index
    %c2_186 = arith.constant 2 : index
    %c0_187 = arith.constant 0 : index
    %230 = vector.load %arg28[%c1_185, %c2_186, %c0_187] : memref<10x10x32xf32, #tpu.memory_space<vmem>>, vector<8x8x32xf32>
    %231 = vector.shape_cast %230 : vector<8x8x32xf32> to vector<64x32xf32>
    %c2_188 = arith.constant 2 : index
    %c0_189 = arith.constant 0 : index
    %c0_190 = arith.constant 0 : index
    %232 = vector.load %arg28[%c2_188, %c0_189, %c0_190] : memref<10x10x32xf32, #tpu.memory_space<vmem>>, vector<8x8x32xf32>
    %233 = vector.shape_cast %232 : vector<8x8x32xf32> to vector<64x32xf32>
    %c2_191 = arith.constant 2 : index
    %c1_192 = arith.constant 1 : index
    %c0_193 = arith.constant 0 : index
    %234 = vector.load %arg28[%c2_191, %c1_192, %c0_193] : memref<10x10x32xf32, #tpu.memory_space<vmem>>, vector<8x8x32xf32>
    %235 = vector.shape_cast %234 : vector<8x8x32xf32> to vector<64x32xf32>
    %c2_194 = arith.constant 2 : index
    %c2_195 = arith.constant 2 : index
    %c0_196 = arith.constant 0 : index
    %236 = vector.load %arg28[%c2_194, %c2_195, %c0_196] : memref<10x10x32xf32, #tpu.memory_space<vmem>>, vector<8x8x32xf32>
    %237 = vector.shape_cast %236 : vector<8x8x32xf32> to vector<64x32xf32>
    %238 = tpu.concatenate %221, %223, %225, %227, %229, %231, %233, %235, %237 in 1 : vector<64x32xf32>, vector<64x32xf32>, vector<64x32xf32>, vector<64x32xf32>, vector<64x32xf32>, vector<64x32xf32>, vector<64x32xf32>, vector<64x32xf32>, vector<64x32xf32> -> vector<64x288xf32>
    %239 = arith.truncf %238 : vector<64x288xf32> to vector<64x288xbf16>
    %c0_197 = arith.constant 0 : index
    %c0_198 = arith.constant 0 : index
    %240 = vector.load %arg15[%c0_197, %c0_198] : memref<288x32xbf16, #tpu.memory_space<vmem>>, vector<288x32xbf16>
    %cst_199 = arith.constant dense<0.000000e+00> : vector<64x32xf32>
    %241 = tpu.matmul %239, %240, %cst_199 {dimension_numbers = #tpu.dot_dimension_numbers<[1], [0], [0], [1], [0, 0, 1, 1], [], []>} : vector<64x288xbf16>, vector<288x32xbf16>, vector<64x32xf32> -> vector<64x32xf32>
    %c0_200 = arith.constant 0 : index
    %c0_201 = arith.constant 0 : index
    %242 = vector.load %arg16[%c0_200, %c0_201] : memref<1x32xf32, #tpu.memory_space<vmem>>, vector<1x32xf32>
    %243 = vector.broadcast %242 : vector<1x32xf32> to vector<64x32xf32>
    %244 = arith.addf %241, %243 : vector<64x32xf32>
    %cst_202 = arith.constant dense<0.000000e+00> : vector<32xf32>
    %245 = vector.multi_reduction <add>, %244, %cst_202 [0] : vector<64x32xf32> to vector<32xf32>
    %246 = vector.shape_cast %245 : vector<32xf32> to vector<1x32xf32>
    %c0_203 = arith.constant 0 : index
    %c0_204 = arith.constant 0 : index
    %247 = vector.load %arg23[%c0_203, %c0_204] : memref<32x8xf32, #tpu.memory_space<vmem>>, vector<32x8xf32>
    %cst_205 = arith.constant dense<0.000000e+00> : vector<1x8xf32>
    %248 = tpu.matmul %246, %247, %cst_205 {dimension_numbers = #tpu.dot_dimension_numbers<[1], [0], [0], [1], [0, 0, 1, 1], [], []>} : vector<1x32xf32>, vector<32x8xf32>, vector<1x8xf32> -> vector<1x8xf32>
    %cst_206 = arith.constant 3.906250e-03 : f32
    %249 = vector.broadcast %cst_206 : f32 to vector<1x8xf32>
    %250 = arith.mulf %248, %249 : vector<1x8xf32>
    %c0_207 = arith.constant 0 : index
    %c0_208 = arith.constant 0 : index
    %251 = vector.load %arg24[%c0_207, %c0_208] : memref<8x32xf32, #tpu.memory_space<vmem>>, vector<8x32xf32>
    %cst_209 = arith.constant dense<0.000000e+00> : vector<1x32xf32>
    %252 = tpu.matmul %250, %251, %cst_209 {dimension_numbers = #tpu.dot_dimension_numbers<[1], [0], [0], [1], [0, 0, 1, 1], [], []>} : vector<1x8xf32>, vector<8x32xf32>, vector<1x32xf32> -> vector<1x32xf32>
    %253 = vector.broadcast %252 : vector<1x32xf32> to vector<64x32xf32>
    %254 = arith.subf %244, %253 : vector<64x32xf32>
    %255 = arith.mulf %254, %254 : vector<64x32xf32>
    %cst_210 = arith.constant dense<0.000000e+00> : vector<32xf32>
    %256 = vector.multi_reduction <add>, %255, %cst_210 [0] : vector<64x32xf32> to vector<32xf32>
    %257 = vector.shape_cast %256 : vector<32xf32> to vector<1x32xf32>
    %c0_211 = arith.constant 0 : index
    %c0_212 = arith.constant 0 : index
    %258 = vector.load %arg23[%c0_211, %c0_212] : memref<32x8xf32, #tpu.memory_space<vmem>>, vector<32x8xf32>
    %cst_213 = arith.constant dense<0.000000e+00> : vector<1x8xf32>
    %259 = tpu.matmul %257, %258, %cst_213 {dimension_numbers = #tpu.dot_dimension_numbers<[1], [0], [0], [1], [0, 0, 1, 1], [], []>} : vector<1x32xf32>, vector<32x8xf32>, vector<1x8xf32> -> vector<1x8xf32>
    %cst_214 = arith.constant 3.906250e-03 : f32
    %260 = vector.broadcast %cst_214 : f32 to vector<1x8xf32>
    %261 = arith.mulf %259, %260 : vector<1x8xf32>
    %cst_215 = arith.constant 9.99999974E-6 : f32
    %262 = vector.broadcast %cst_215 : f32 to vector<1x8xf32>
    %263 = arith.addf %261, %262 : vector<1x8xf32>
    %264 = math.rsqrt %263 : vector<1x8xf32>
    %c0_216 = arith.constant 0 : index
    %c0_217 = arith.constant 0 : index
    %265 = vector.load %arg24[%c0_216, %c0_217] : memref<8x32xf32, #tpu.memory_space<vmem>>, vector<8x32xf32>
    %cst_218 = arith.constant dense<0.000000e+00> : vector<1x32xf32>
    %266 = tpu.matmul %264, %265, %cst_218 {dimension_numbers = #tpu.dot_dimension_numbers<[1], [0], [0], [1], [0, 0, 1, 1], [], []>} : vector<1x8xf32>, vector<8x32xf32>, vector<1x32xf32> -> vector<1x32xf32>
    %267 = vector.broadcast %266 : vector<1x32xf32> to vector<64x32xf32>
    %268 = arith.mulf %254, %267 : vector<64x32xf32>
    %c0_219 = arith.constant 0 : index
    %c0_220 = arith.constant 0 : index
    %269 = vector.load %arg17[%c0_219, %c0_220] : memref<1x32xf32, #tpu.memory_space<vmem>>, vector<1x32xf32>
    %270 = vector.broadcast %269 : vector<1x32xf32> to vector<64x32xf32>
    %271 = arith.mulf %268, %270 : vector<64x32xf32>
    %c0_221 = arith.constant 0 : index
    %c0_222 = arith.constant 0 : index
    %272 = vector.load %arg18[%c0_221, %c0_222] : memref<1x32xf32, #tpu.memory_space<vmem>>, vector<1x32xf32>
    %273 = vector.broadcast %272 : vector<1x32xf32> to vector<64x32xf32>
    %274 = arith.addf %271, %273 : vector<64x32xf32>
    %cst_223 = arith.constant 0.000000e+00 : f32
    %275 = vector.broadcast %cst_223 : f32 to vector<64x32xf32>
    %276 = arith.maximumf %274, %275 : vector<64x32xf32>
    %277 = arith.truncf %2 : vector<64x32xf32> to vector<64x32xbf16>
    %c0_224 = arith.constant 0 : index
    %c0_225 = arith.constant 0 : index
    %278 = vector.load %arg19[%c0_224, %c0_225] : memref<32x32xbf16, #tpu.memory_space<vmem>>, vector<32x32xbf16>
    %cst_226 = arith.constant dense<0.000000e+00> : vector<64x32xf32>
    %279 = tpu.matmul %277, %278, %cst_226 {dimension_numbers = #tpu.dot_dimension_numbers<[1], [0], [0], [1], [0, 0, 1, 1], [], []>} : vector<64x32xbf16>, vector<32x32xbf16>, vector<64x32xf32> -> vector<64x32xf32>
    %280 = arith.addf %276, %279 : vector<64x32xf32>
    %c0_227 = arith.constant 0 : index
    %c0_228 = arith.constant 0 : index
    %281 = vector.load %arg20[%c0_227, %c0_228] : memref<1x32xf32, #tpu.memory_space<vmem>>, vector<1x32xf32>
    %282 = vector.broadcast %281 : vector<1x32xf32> to vector<64x32xf32>
    %283 = arith.addf %280, %282 : vector<64x32xf32>
    %c0_229 = arith.constant 0 : index
    %c0_230 = arith.constant 0 : index
    %284 = vector.load %arg21[%c0_229, %c0_230] : memref<9x32xbf16, #tpu.memory_space<vmem>>, vector<9x32xbf16>
    %285 = arith.truncf %283 : vector<64x32xf32> to vector<64x32xbf16>
    %cst_231 = arith.constant dense<0.000000e+00> : vector<9x64xf32>
    %286 = tpu.matmul %284, %285, %cst_231 {dimension_numbers = #tpu.dot_dimension_numbers<[1], [1], [0], [0], [0, 0, 1, 0], [], []>} : vector<9x32xbf16>, vector<64x32xbf16>, vector<9x64xf32> -> vector<9x64xf32>
    %cst_232 = arith.constant 0.000000e+00 : f32
    %287 = vector.broadcast %cst_232 : f32 to vector<9x10x10xf32>
    %c0_233 = arith.constant 0 : index
    %c0_234 = arith.constant 0 : index
    %c0_235 = arith.constant 0 : index
    %288 = vector.load %arg29[%c0_233, %c0_234, %c0_235] : memref<9x10x10xf32, #tpu.memory_space<vmem>>, vector<9x10x10xf32>
    tpu.vector_store %arg29[%c0_233, %c0_234, %c0_235], %287 {strides = array<i32>} : memref<9x10x10xf32, #tpu.memory_space<vmem>>, vector<9x10x10xf32>,
    %289 = vector.shape_cast %286 : vector<9x64xf32> to vector<9x8x8xf32>
    %c0_236 = arith.constant 0 : index
    %c1_237 = arith.constant 1 : index
    %c1_238 = arith.constant 1 : index
    %290 = vector.load %arg29[%c0_236, %c1_237, %c1_238] : memref<9x10x10xf32, #tpu.memory_space<vmem>>, vector<9x8x8xf32>
    tpu.vector_store %arg29[%c0_236, %c1_237, %c1_238], %289 {strides = array<i32>} : memref<9x10x10xf32, #tpu.memory_space<vmem>>, vector<9x8x8xf32>,
    %cst_239 = arith.constant 0.000000e+00 : f32
    %291 = vector.broadcast %cst_239 : f32 to vector<8x10x10xf32>
    %c0_240 = arith.constant 0 : index
    %c0_241 = arith.constant 0 : index
    %c0_242 = arith.constant 0 : index
    %292 = vector.load %arg30[%c0_240, %c0_241, %c0_242] : memref<8x10x10xf32, #tpu.memory_space<vmem>>, vector<8x10x10xf32>
    tpu.vector_store %arg30[%c0_240, %c0_241, %c0_242], %291 {strides = array<i32>} : memref<8x10x10xf32, #tpu.memory_space<vmem>>, vector<8x10x10xf32>,
    %293 = vector.shape_cast %88 : vector<8x64xf32> to vector<8x8x8xf32>
    %c0_243 = arith.constant 0 : index
    %c1_244 = arith.constant 1 : index
    %c1_245 = arith.constant 1 : index
    %294 = vector.load %arg30[%c0_243, %c1_244, %c1_245] : memref<8x10x10xf32, #tpu.memory_space<vmem>>, vector<8x8x8xf32>
    tpu.vector_store %arg30[%c0_243, %c1_244, %c1_245], %293 {strides = array<i32>} : memref<8x10x10xf32, #tpu.memory_space<vmem>>, vector<8x8x8xf32>,
    %295 = arith.truncf %4 : vector<8x32xf32> to vector<8x32xbf16>
    %c0_246 = arith.constant 0 : index
    %c0_247 = arith.constant 0 : index
    %296 = vector.load %arg21[%c0_246, %c0_247] : memref<9x32xbf16, #tpu.memory_space<vmem>>, vector<9x32xbf16>
    %cst_248 = arith.constant dense<0.000000e+00> : vector<8x9xf32>
    %297 = tpu.matmul %295, %296, %cst_248 {dimension_numbers = #tpu.dot_dimension_numbers<[1], [1], [0], [0], [0, 0, 1, 0], [], []>} : vector<8x32xbf16>, vector<9x32xbf16>, vector<8x9xf32> -> vector<8x9xf32>
    %c0_249 = arith.constant 0 : index
    %c0_250 = arith.constant 0 : index
    %298 = vector.load %arg25[%c0_249, %c0_250] : memref<9x64xf32, #tpu.memory_space<vmem>>, vector<9x64xf32>
    %cst_251 = arith.constant dense<0.000000e+00> : vector<8x64xf32>
    %299 = tpu.matmul %297, %298, %cst_251 {dimension_numbers = #tpu.dot_dimension_numbers<[1], [0], [0], [1], [0, 0, 1, 1], [], []>} : vector<8x9xf32>, vector<9x64xf32>, vector<8x64xf32> -> vector<8x64xf32>
    %c0_252 = arith.constant 0 : index
    %c0_253 = arith.constant 0 : index
    %c0_254 = arith.constant 0 : index
    %300 = vector.load %arg30[%c0_252, %c0_253, %c0_254] : memref<8x10x10xf32, #tpu.memory_space<vmem>>, vector<8x8x8xf32>
    %301 = vector.shape_cast %300 : vector<8x8x8xf32> to vector<8x64xf32>
    %c0_255 = arith.constant 0 : index
    %c0_256 = arith.constant 0 : index
    %c0_257 = arith.constant 0 : index
    %302 = vector.load %arg29[%c0_255, %c0_256, %c0_257] : memref<9x10x10xf32, #tpu.memory_space<vmem>>, vector<1x8x8xf32>
    %303 = vector.shape_cast %302 : vector<1x8x8xf32> to vector<8x8xf32>
    %304 = vector.shape_cast %303 : vector<8x8xf32> to vector<1x64xf32>
    %305 = vector.broadcast %304 : vector<1x64xf32> to vector<8x64xf32>
    %306 = arith.mulf %301, %305 : vector<8x64xf32>
    %307 = arith.addf %299, %306 : vector<8x64xf32>
    %c0_258 = arith.constant 0 : index
    %c0_259 = arith.constant 0 : index
    %c1_260 = arith.constant 1 : index
    %308 = vector.load %arg30[%c0_258, %c0_259, %c1_260] : memref<8x10x10xf32, #tpu.memory_space<vmem>>, vector<8x8x8xf32>
    %309 = vector.shape_cast %308 : vector<8x8x8xf32> to vector<8x64xf32>
    %c1_261 = arith.constant 1 : index
    %c0_262 = arith.constant 0 : index
    %c1_263 = arith.constant 1 : index
    %310 = vector.load %arg29[%c1_261, %c0_262, %c1_263] : memref<9x10x10xf32, #tpu.memory_space<vmem>>, vector<1x8x8xf32>
    %311 = vector.shape_cast %310 : vector<1x8x8xf32> to vector<8x8xf32>
    %312 = vector.shape_cast %311 : vector<8x8xf32> to vector<1x64xf32>
    %313 = vector.broadcast %312 : vector<1x64xf32> to vector<8x64xf32>
    %314 = arith.mulf %309, %313 : vector<8x64xf32>
    %315 = arith.addf %307, %314 : vector<8x64xf32>
    %c0_264 = arith.constant 0 : index
    %c0_265 = arith.constant 0 : index
    %c2_266 = arith.constant 2 : index
    %316 = vector.load %arg30[%c0_264, %c0_265, %c2_266] : memref<8x10x10xf32, #tpu.memory_space<vmem>>, vector<8x8x8xf32>
    %317 = vector.shape_cast %316 : vector<8x8x8xf32> to vector<8x64xf32>
    %c2_267 = arith.constant 2 : index
    %c0_268 = arith.constant 0 : index
    %c2_269 = arith.constant 2 : index
    %318 = vector.load %arg29[%c2_267, %c0_268, %c2_269] : memref<9x10x10xf32, #tpu.memory_space<vmem>>, vector<1x8x8xf32>
    %319 = vector.shape_cast %318 : vector<1x8x8xf32> to vector<8x8xf32>
    %320 = vector.shape_cast %319 : vector<8x8xf32> to vector<1x64xf32>
    %321 = vector.broadcast %320 : vector<1x64xf32> to vector<8x64xf32>
    %322 = arith.mulf %317, %321 : vector<8x64xf32>
    %323 = arith.addf %315, %322 : vector<8x64xf32>
    %c0_270 = arith.constant 0 : index
    %c1_271 = arith.constant 1 : index
    %c0_272 = arith.constant 0 : index
    %324 = vector.load %arg30[%c0_270, %c1_271, %c0_272] : memref<8x10x10xf32, #tpu.memory_space<vmem>>, vector<8x8x8xf32>
    %325 = vector.shape_cast %324 : vector<8x8x8xf32> to vector<8x64xf32>
    %c3 = arith.constant 3 : index
    %c1_273 = arith.constant 1 : index
    %c0_274 = arith.constant 0 : index
    %326 = vector.load %arg29[%c3, %c1_273, %c0_274] : memref<9x10x10xf32, #tpu.memory_space<vmem>>, vector<1x8x8xf32>
    %327 = vector.shape_cast %326 : vector<1x8x8xf32> to vector<8x8xf32>
    %328 = vector.shape_cast %327 : vector<8x8xf32> to vector<1x64xf32>
    %329 = vector.broadcast %328 : vector<1x64xf32> to vector<8x64xf32>
    %330 = arith.mulf %325, %329 : vector<8x64xf32>
    %331 = arith.addf %323, %330 : vector<8x64xf32>
    %c0_275 = arith.constant 0 : index
    %c1_276 = arith.constant 1 : index
    %c1_277 = arith.constant 1 : index
    %332 = vector.load %arg30[%c0_275, %c1_276, %c1_277] : memref<8x10x10xf32, #tpu.memory_space<vmem>>, vector<8x8x8xf32>
    %333 = vector.shape_cast %332 : vector<8x8x8xf32> to vector<8x64xf32>
    %c4 = arith.constant 4 : index
    %c1_278 = arith.constant 1 : index
    %c1_279 = arith.constant 1 : index
    %334 = vector.load %arg29[%c4, %c1_278, %c1_279] : memref<9x10x10xf32, #tpu.memory_space<vmem>>, vector<1x8x8xf32>
    %335 = vector.shape_cast %334 : vector<1x8x8xf32> to vector<8x8xf32>
    %336 = vector.shape_cast %335 : vector<8x8xf32> to vector<1x64xf32>
    %337 = vector.broadcast %336 : vector<1x64xf32> to vector<8x64xf32>
    %338 = arith.mulf %333, %337 : vector<8x64xf32>
    %339 = arith.addf %331, %338 : vector<8x64xf32>
    %c0_280 = arith.constant 0 : index
    %c1_281 = arith.constant 1 : index
    %c2_282 = arith.constant 2 : index
    %340 = vector.load %arg30[%c0_280, %c1_281, %c2_282] : memref<8x10x10xf32, #tpu.memory_space<vmem>>, vector<8x8x8xf32>
    %341 = vector.shape_cast %340 : vector<8x8x8xf32> to vector<8x64xf32>
    %c5 = arith.constant 5 : index
    %c1_283 = arith.constant 1 : index
    %c2_284 = arith.constant 2 : index
    %342 = vector.load %arg29[%c5, %c1_283, %c2_284] : memref<9x10x10xf32, #tpu.memory_space<vmem>>, vector<1x8x8xf32>
    %343 = vector.shape_cast %342 : vector<1x8x8xf32> to vector<8x8xf32>
    %344 = vector.shape_cast %343 : vector<8x8xf32> to vector<1x64xf32>
    %345 = vector.broadcast %344 : vector<1x64xf32> to vector<8x64xf32>
    %346 = arith.mulf %341, %345 : vector<8x64xf32>
    %347 = arith.addf %339, %346 : vector<8x64xf32>
    %c0_285 = arith.constant 0 : index
    %c2_286 = arith.constant 2 : index
    %c0_287 = arith.constant 0 : index
    %348 = vector.load %arg30[%c0_285, %c2_286, %c0_287] : memref<8x10x10xf32, #tpu.memory_space<vmem>>, vector<8x8x8xf32>
    %349 = vector.shape_cast %348 : vector<8x8x8xf32> to vector<8x64xf32>
    %c6 = arith.constant 6 : index
    %c2_288 = arith.constant 2 : index
    %c0_289 = arith.constant 0 : index
    %350 = vector.load %arg29[%c6, %c2_288, %c0_289] : memref<9x10x10xf32, #tpu.memory_space<vmem>>, vector<1x8x8xf32>
    %351 = vector.shape_cast %350 : vector<1x8x8xf32> to vector<8x8xf32>
    %352 = vector.shape_cast %351 : vector<8x8xf32> to vector<1x64xf32>
    %353 = vector.broadcast %352 : vector<1x64xf32> to vector<8x64xf32>
    %354 = arith.mulf %349, %353 : vector<8x64xf32>
    %355 = arith.addf %347, %354 : vector<8x64xf32>
    %c0_290 = arith.constant 0 : index
    %c2_291 = arith.constant 2 : index
    %c1_292 = arith.constant 1 : index
    %356 = vector.load %arg30[%c0_290, %c2_291, %c1_292] : memref<8x10x10xf32, #tpu.memory_space<vmem>>, vector<8x8x8xf32>
    %357 = vector.shape_cast %356 : vector<8x8x8xf32> to vector<8x64xf32>
    %c7 = arith.constant 7 : index
    %c2_293 = arith.constant 2 : index
    %c1_294 = arith.constant 1 : index
    %358 = vector.load %arg29[%c7, %c2_293, %c1_294] : memref<9x10x10xf32, #tpu.memory_space<vmem>>, vector<1x8x8xf32>
    %359 = vector.shape_cast %358 : vector<1x8x8xf32> to vector<8x8xf32>
    %360 = vector.shape_cast %359 : vector<8x8xf32> to vector<1x64xf32>
    %361 = vector.broadcast %360 : vector<1x64xf32> to vector<8x64xf32>
    %362 = arith.mulf %357, %361 : vector<8x64xf32>
    %363 = arith.addf %355, %362 : vector<8x64xf32>
    %c0_295 = arith.constant 0 : index
    %c2_296 = arith.constant 2 : index
    %c2_297 = arith.constant 2 : index
    %364 = vector.load %arg30[%c0_295, %c2_296, %c2_297] : memref<8x10x10xf32, #tpu.memory_space<vmem>>, vector<8x8x8xf32>
    %365 = vector.shape_cast %364 : vector<8x8x8xf32> to vector<8x64xf32>
    %c8 = arith.constant 8 : index
    %c2_298 = arith.constant 2 : index
    %c2_299 = arith.constant 2 : index
    %366 = vector.load %arg29[%c8, %c2_298, %c2_299] : memref<9x10x10xf32, #tpu.memory_space<vmem>>, vector<1x8x8xf32>
    %367 = vector.shape_cast %366 : vector<1x8x8xf32> to vector<8x8xf32>
    %368 = vector.shape_cast %367 : vector<8x8xf32> to vector<1x64xf32>
    %369 = vector.broadcast %368 : vector<1x64xf32> to vector<8x64xf32>
    %370 = arith.mulf %365, %369 : vector<8x64xf32>
    %371 = arith.addf %363, %370 : vector<8x64xf32>
    %c0_300 = arith.constant 0 : index
    %c0_301 = arith.constant 0 : index
    %372 = vector.load %arg22[%c0_300, %c0_301] : memref<1x1xf32, #tpu.memory_space<vmem>>, vector<1x1xf32>
    %373 = vector.broadcast %372 : vector<1x1xf32> to vector<8x64xf32>
    %374 = arith.addf %371, %373 : vector<8x64xf32>
    %cst_302 = arith.constant 0.000000e+00 : f32
    %375 = vector.broadcast %cst_302 : f32 to vector<8x64xf32>
    %376 = arith.subf %375, %374 : vector<8x64xf32>
    %377 = math.exp %376 : vector<8x64xf32>
    %cst_303 = arith.constant 1.000000e+00 : f32
    %378 = vector.broadcast %cst_303 : f32 to vector<8x64xf32>
    %379 = arith.addf %378, %377 : vector<8x64xf32>
    %cst_304 = arith.constant 1.000000e+00 : f32
    %380 = vector.broadcast %cst_304 : f32 to vector<8x64xf32>
    %381 = arith.divf %380, %379 : vector<8x64xf32>
    %c0_305 = arith.constant 0 : index
    %c0_306 = arith.constant 0 : index
    %c0_307 = arith.constant 0 : index
    %382 = vector.load %arg26[%c0_305, %c0_306, %c0_307] : memref<1x8x64xf32, #tpu.memory_space<vmem>>, vector<1x8x64xf32>
    %383 = vector.shape_cast %382 : vector<1x8x64xf32> to vector<8x64xf32>
    %384 = vector.shape_cast %381 : vector<8x64xf32> to vector<1x8x64xf32>
    tpu.vector_store %arg26[%c0_305, %c0_306, %c0_307], %384 {strides = array<i32>} : memref<1x8x64xf32, #tpu.memory_space<vmem>>, vector<1x8x64xf32>,
    return
  }
  func.func @transform_0(%arg0: i32) -> (i32, i32, i32, i32) {
    %c0_i32 = arith.constant 0 : i32
    %c0_i32_0 = arith.constant 0 : i32
    %c0_i32_1 = arith.constant 0 : i32
    %c0_i32_2 = arith.constant 0 : i32
    return %arg0, %c0_i32, %c0_i32_0, %c0_i32_1 : i32, i32, i32, i32
  }
  func.func @transform_1(%arg0: i32) -> (i32, i32, i32) {
    %c0_i32 = arith.constant 0 : i32
    %c0_i32_0 = arith.constant 0 : i32
    %c0_i32_1 = arith.constant 0 : i32
    return %arg0, %c0_i32, %c0_i32_0 : i32, i32, i32
  }
  func.func @transform_2(%arg0: i32) -> (i32, i32) {
    %c0_i32 = arith.constant 0 : i32
    %c0_i32_0 = arith.constant 0 : i32
    %c0_i32_1 = arith.constant 0 : i32
    return %c0_i32, %c0_i32_0 : i32, i32
  }
  func.func @transform_3(%arg0: i32) -> (i32, i32) {
    %c0_i32 = arith.constant 0 : i32
    %c0_i32_0 = arith.constant 0 : i32
    %c0_i32_1 = arith.constant 0 : i32
    return %c0_i32, %c0_i32_0 : i32, i32
  }
  func.func @transform_4(%arg0: i32) -> (i32, i32) {
    %c0_i32 = arith.constant 0 : i32
    %c0_i32_0 = arith.constant 0 : i32
    %c0_i32_1 = arith.constant 0 : i32
    return %c0_i32, %c0_i32_0 : i32, i32
  }
  func.func @transform_5(%arg0: i32) -> (i32, i32) {
    %c0_i32 = arith.constant 0 : i32
    %c0_i32_0 = arith.constant 0 : i32
    %c0_i32_1 = arith.constant 0 : i32
    return %c0_i32, %c0_i32_0 : i32, i32
  }
  func.func @transform_6(%arg0: i32) -> (i32, i32) {
    %c0_i32 = arith.constant 0 : i32
    %c0_i32_0 = arith.constant 0 : i32
    %c0_i32_1 = arith.constant 0 : i32
    return %c0_i32, %c0_i32_0 : i32, i32
  }
  func.func @transform_7(%arg0: i32) -> (i32, i32) {
    %c0_i32 = arith.constant 0 : i32
    %c0_i32_0 = arith.constant 0 : i32
    %c0_i32_1 = arith.constant 0 : i32
    return %c0_i32, %c0_i32_0 : i32, i32
  }
  func.func @transform_8(%arg0: i32) -> (i32, i32) {
    %c0_i32 = arith.constant 0 : i32
    %c0_i32_0 = arith.constant 0 : i32
    %c0_i32_1 = arith.constant 0 : i32
    return %c0_i32, %c0_i32_0 : i32, i32
  }
  func.func @transform_9(%arg0: i32) -> (i32, i32) {
    %c0_i32 = arith.constant 0 : i32
    %c0_i32_0 = arith.constant 0 : i32
    %c0_i32_1 = arith.constant 0 : i32
    return %c0_i32, %c0_i32_0 : i32, i32
  }
  func.func @transform_10(%arg0: i32) -> (i32, i32) {
    %c0_i32 = arith.constant 0 : i32
    %c0_i32_0 = arith.constant 0 : i32
    %c0_i32_1 = arith.constant 0 : i32
    return %c0_i32, %c0_i32_0 : i32, i32
  }
  func.func @transform_11(%arg0: i32) -> (i32, i32) {
    %c0_i32 = arith.constant 0 : i32
    %c0_i32_0 = arith.constant 0 : i32
    %c0_i32_1 = arith.constant 0 : i32
    return %c0_i32, %c0_i32_0 : i32, i32
  }
  func.func @transform_12(%arg0: i32) -> (i32, i32) {
    %c0_i32 = arith.constant 0 : i32
    %c0_i32_0 = arith.constant 0 : i32
    %c0_i32_1 = arith.constant 0 : i32
    return %c0_i32, %c0_i32_0 : i32, i32
  }
  func.func @transform_13(%arg0: i32) -> (i32, i32) {
    %c0_i32 = arith.constant 0 : i32
    %c0_i32_0 = arith.constant 0 : i32
    %c0_i32_1 = arith.constant 0 : i32
    return %c0_i32, %c0_i32_0 : i32, i32
  }
  func.func @transform_14(%arg0: i32) -> (i32, i32) {
    %c0_i32 = arith.constant 0 : i32
    %c0_i32_0 = arith.constant 0 : i32
    %c0_i32_1 = arith.constant 0 : i32
    return %c0_i32, %c0_i32_0 : i32, i32
  }
  func.func @transform_15(%arg0: i32) -> (i32, i32) {
    %c0_i32 = arith.constant 0 : i32
    %c0_i32_0 = arith.constant 0 : i32
    %c0_i32_1 = arith.constant 0 : i32
    return %c0_i32, %c0_i32_0 : i32, i32
  }
  func.func @transform_16(%arg0: i32) -> (i32, i32) {
    %c0_i32 = arith.constant 0 : i32
    %c0_i32_0 = arith.constant 0 : i32
    %c0_i32_1 = arith.constant 0 : i32
    return %c0_i32, %c0_i32_0 : i32, i32
  }
  func.func @transform_17(%arg0: i32) -> (i32, i32) {
    %c0_i32 = arith.constant 0 : i32
    %c0_i32_0 = arith.constant 0 : i32
    %c0_i32_1 = arith.constant 0 : i32
    return %c0_i32, %c0_i32_0 : i32, i32
  }
  func.func @transform_18(%arg0: i32) -> (i32, i32) {
    %c0_i32 = arith.constant 0 : i32
    %c0_i32_0 = arith.constant 0 : i32
    %c0_i32_1 = arith.constant 0 : i32
    return %c0_i32, %c0_i32_0 : i32, i32
  }
  func.func @transform_19(%arg0: i32) -> (i32, i32) {
    %c0_i32 = arith.constant 0 : i32
    %c0_i32_0 = arith.constant 0 : i32
    %c0_i32_1 = arith.constant 0 : i32
    return %c0_i32, %c0_i32_0 : i32, i32
  }
  func.func @transform_20(%arg0: i32) -> (i32, i32) {
    %c0_i32 = arith.constant 0 : i32
    %c0_i32_0 = arith.constant 0 : i32
    %c0_i32_1 = arith.constant 0 : i32
    return %c0_i32, %c0_i32_0 : i32, i32
  }
  func.func @transform_21(%arg0: i32) -> (i32, i32) {
    %c0_i32 = arith.constant 0 : i32
    %c0_i32_0 = arith.constant 0 : i32
    %c0_i32_1 = arith.constant 0 : i32
    return %c0_i32, %c0_i32_0 : i32, i32
  }
  func.func @transform_22(%arg0: i32) -> (i32, i32) {
    %c0_i32 = arith.constant 0 : i32
    %c0_i32_0 = arith.constant 0 : i32
    %c0_i32_1 = arith.constant 0 : i32
    return %c0_i32, %c0_i32_0 : i32, i32
  }
  func.func @transform_23(%arg0: i32) -> (i32, i32) {
    %c0_i32 = arith.constant 0 : i32
    %c0_i32_0 = arith.constant 0 : i32
    %c0_i32_1 = arith.constant 0 : i32
    return %c0_i32, %c0_i32_0 : i32, i32
  }
  func.func @transform_24(%arg0: i32) -> (i32, i32) {
    %c0_i32 = arith.constant 0 : i32
    %c0_i32_0 = arith.constant 0 : i32
    %c0_i32_1 = arith.constant 0 : i32
    return %c0_i32, %c0_i32_0 : i32, i32
  }
  func.func @transform_25(%arg0: i32) -> (i32, i32, i32) {
    %c0_i32 = arith.constant 0 : i32
    %c0_i32_0 = arith.constant 0 : i32
    %c0_i32_1 = arith.constant 0 : i32
    return %arg0, %c0_i32, %c0_i32_0 : i32, i32, i32
  }
}

</mosaic_0001>

<bundles_post_ra>
// kernel: rfdetr_segmentation_forward.1
= control target key start
LH: loop header
LB: loop body
LE: loop exit
PB: predicated region body
PF: predicated region fallthrough
CT: control target
= control target key end

     0   :  { %s12850_s0 = inlined_call_operand.vmem [shape: f32[2,8,8,32], index: 0, kind: input, shape index: {}]   ;;  %s12851_s1 = inlined_call_operand.vmem [shape: f32[2,8,32], index: 1, kind: input, shape index: {}]   ;;  %s12852_s2 = inlined_call_operand.vmem [shape: bf16[32,32], index: 2, kind: input, shape index: {}]   ;;  %s12853_s3 = inlined_call_operand.vmem [shape: f32[1,32], index: 3, kind: input, shape index: {}]   ;;  %s12854_s4 = inlined_call_operand.vmem [shape: bf16[32,32], index: 4, kind: input, shape index: {}]   ;;  %s12855_s5 = inlined_call_operand.vmem [shape: f32[1,32], index: 5, kind: input, shape index: {}]   ;;  %s12856_s6 = inlined_call_operand.vmem [shape: bf16[288,32], index: 6, kind: input, shape index: {}]   ;;  %s12857_s7 = inlined_call_operand.vmem [shape: f32[1,32], index: 7, kind: input, shape index: {}]   ;;  %s12858_s8 = inlined_call_operand.vmem [shape: f32[1,32], index: 8, kind: input, shape index: {}]   ;;  %s12859_s9 = inlined_call_operand.vmem [shape: f32[1,32], index: 9, kind: input, shape index: {}]   ;;  %s12860_s10 = inlined_call_operand.vmem [shape: bf16[288,32], index: 10, kind: input, shape index: {}]   ;;  %s12861_s11 = inlined_call_operand.vmem [shape: f32[1,32], index: 11, kind: input, shape index: {}]   ;;  %s12862_s12 = inlined_call_operand.vmem [shape: f32[1,32], index: 12, kind: input, shape index: {}]   ;;  %s12863_s13 = inlined_call_operand.vmem [shape: f32[1,32], index: 13, kind: input, shape index: {}]   ;;  %s12864_s14 = inlined_call_operand.vmem [shape: bf16[288,32], index: 14, kind: input, shape index: {}]   ;;  %s12865_s15 = inlined_call_operand.vmem [shape: f32[1,32], index: 15, kind: input, shape index: {}]   ;;  %s12866_s16 = inlined_call_operand.vmem [shape: f32[1,32], index: 16, kind: input, shape index: {}]   ;;  %s12867_s17 = inlined_call_operand.vmem [shape: f32[1,32], index: 17, kind: input, shape index: {}]   ;;  %s12868_s18 = inlined_call_operand.vmem [shape: bf16[32,32], index: 18, kind: input, shape index: {}]   ;;  %s12869_s19 = inlined_call_operand.vmem [shape: f32[1,32], index: 19, kind: input, shape index: {}]   ;;  %s12870_s20 = inlined_call_operand.vmem [shape: bf16[9,32], index: 20, kind: input, shape index: {}]   ;;  %s12871_s21 = inlined_call_operand.<no memory space> [shape: f32[1,1], index: 21, kind: input, shape index: {}]   ;;  %s12872_s22 = inlined_call_operand.vmem [shape: f32[32,8], index: 22, kind: input, shape index: {}]   ;;  %s12873_s23 = inlined_call_operand.vmem [shape: f32[8,32], index: 23, kind: input, shape index: {}]   ;;  %s12874_s24 = inlined_call_operand.vmem [shape: f32[9,64], index: 24, kind: input, shape index: {}]   ;;  %s12875_s25 = inlined_call_operand.vmem [shape: f32[2,8,64], index: 25, kind: output, shape index: {}]  }
   0x1   :  { %12953 = sst [smem:[#allocation57_spill]] %s12850_s0  ;;  %v30_v0 = vstv %s12871_s21 }
   0x2   :  { %12954 = sst [smem:[#allocation58_spill]] %s12851_s1  ;;  %31 = vst [vmem:[#allocation6] sm:$0x1] %v30_v0 }
   0x3   :  { %12955 = sst [smem:[#allocation59_spill]] %s12852_s2 }
   0x4   :  { %12956 = sst [smem:[#allocation60_spill]] %s12853_s3 }
   0x5   :  { %12957 = sst [smem:[#allocation61_spill]] %s12854_s4 }
   0x6   :  { %12958 = sst [smem:[#allocation62_spill]] %s12855_s5 }
   0x7   :  { %12959 = sst [smem:[#allocation63_spill]] %s12856_s6  ;;  %s9627_s6 = smov 0  }
   0x8   :  { %12960 = sst [smem:[#allocation64_spill]] %s12857_s7 }
   0x9   :  { %12961 = sst [smem:[#allocation65_spill]] %s12858_s8 }
   0xa   :  { %12962 = sst [smem:[#allocation66_spill]] %s12859_s9 }
   0xb   :  { %12963 = sst [smem:[#allocation67_spill]] %s12860_s10 }
   0xc   :  { %12964 = sst [smem:[#allocation68_spill]] %s12861_s11 }
   0xd   :  { %12965 = sst [smem:[#allocation69_spill]] %s12862_s12 }
   0xe LB: > { %s8250_s30 = sadd.s32 4294967295, %s9463_s6   ;;  %p8254_p0 = scmp.ge.s32.totalorder %s9463_s6, 1  ;;  %s9463_s6 = sphi %s9627_s6, %s37_s6  }
   0xf   : > { %p698_p1 = scmp.lt.s32.totalorder %s9463_s6, 3 }
  0x11   : > { %p699_p2 = pnand %p8254_p0, %p698_p1 }
  0x13   : > { %702 = sbr.rel (%p699_p2) target bundleno = 5211 (0x145b), region = 120 }
  0x1a   : > { %s12966_s26 = sld [smem:[#allocation61_spill]]  ;;  %p769_p3 = scmp.lt.s32.totalorder %s8250_s30, 1  ;;  %vm816_vm0 = vcmask 261120   ;;  %v12894_v3 = vmov 0.0   ;;  %vm9466_vm1 = vmmov 0   ;;  %vm1597_vm2 = vcmask 253952  }
  0x1b   : > { %8627 = vmatprep.subr.bf16.mxu0 %v12894_v3  ;;  %1591 = vst.msk [vmem:[#allocation2] sm:$0xff] %vm816_vm0, %v12894_v3  ;;  %1595 = vst.msk [vmem:[#allocation2 + $0x90] sm:$0xff] %vm816_vm0, %v12894_v3  ;;  %s12967_s4 = sld [smem:[#allocation59_spill]]  ;;  %8631 = vmatprep.mubr.msk.bf16.mxu0 %vm9466_vm1, %v12894_v3  ;;  %s12968_s7 = sld [smem:[#allocation57_spill]]  ;;  %vm1592_vm3 = vcmask 254976   ;;  %vm969_vm4 = vcmask 31744  }
  0x1c   : > { %s13137_s30 = smov (!%p769_p3, %s8250_s30), 1  ;;  %1618 = vst.msk [vmem:[#allocation3] sm:$0xff] %vm816_vm0, %v12894_v3  ;;  %1621 = vst.msk [vmem:[#allocation3 + $0x90] sm:$0xff] %vm816_vm0, %v12894_v3  ;;  %s12969_s8 = sld [smem:[#allocation58_spill]]  ;;  %vm1493_vm5 = vcmask 523264   ;;  %vm1933_vm6 = vcmask 785408  }
  0x1d   : > { %s8381_s28 = sshll.u32 %s13137_s30, 6  ;;  %s12879_s0 = sshll.u32 %s13137_s30, 3  ;;  %1609 = vst.msk [vmem:[#allocation2 + $0x19] sm:$0x1] %vm1597_vm2, %v12894_v3  ;;  %1610 = vst.msk [vmem:[#allocation2 + $0x29] sm:$0x1] %vm1597_vm2, %v12894_v3 }
  0x1e   : > { %1598 = vst.msk [vmem:[#allocation2] sm:$0x1] %vm1597_vm2, %v12894_v3  ;;  %1599 = vst.msk [vmem:[#allocation2 + $0x10] sm:$0x1] %vm1597_vm2, %v12894_v3  ;;  %s12971_s5 = sld [smem:[#allocation62_spill]]  ;;  %s12882_s29 = smov 120  }
  0x1f   : > { %1600 = vst.msk [vmem:[#allocation2 + $0x20] sm:$0x1] %vm1597_vm2, %v12894_v3  ;;  %1601 = vst.msk [vmem:[#allocation2 + $0x30] sm:$0x1] %vm1597_vm2, %v12894_v3  ;;  %s9468_s2 = smov 124   ;;  %s12972_s21 = sld [smem:[#allocation60_spill]] }
  0x20   : > { %v9351_v1 = vld [vmem:[%s12966_s26] sm:$0xff]   ;;  %v9352_v2 = vld [vmem:[%s12966_s26 + $0x8] sm:$0xff]   ;;  %1602 = vst.msk [vmem:[#allocation2 + $0x40] sm:$0x1] %vm1597_vm2, %v12894_v3  ;;  %1603 = vst.msk [vmem:[#allocation2 + $0x50] sm:$0x1] %vm1597_vm2, %v12894_v3 }
  0x21   : > { %8635 = vmatprep.subr.bf16.mxu1 %v9351_v1  ;;  %v9353_v4 = vld [vmem:[%s12967_s4] sm:$0xff]   ;;  %v9354_v5 = vld [vmem:[%s12967_s4 + $0x8] sm:$0xff]   ;;  %s773_s3 = scalar_lea.vmem %s12968_s7, %s8381_s28  ;;  %1604 = vst.msk [vmem:[#allocation2 + $0x60] sm:$0x1] %vm1597_vm2, %v12894_v3  ;;  %1605 = vst.msk [vmem:[#allocation2 + $0x70] sm:$0x1] %vm1597_vm2, %v12894_v3 }
  0x22   : > { %8636 = vmatpush3.bf16.msra.mxu1 %v9351_v1  ;;  %8628 = vmatpush3.bf16.msra.mxu0 %v9353_v4  ;;  %s777_s27 = scalar_lea.vmem %s12969_s8, %s12879_s0  ;;  %v783_v6 = vld [vmem:[%s773_s3] sm:$0xff]  ;;  %v784_v7 = vld [vmem:[%s773_s3 + $0x8] sm:$0xff]  ;;  %v785_v8 = vld [vmem:[%s773_s3 + $0x10] sm:$0xff]  ;;  %1606 = vst.msk [vmem:[#allocation2 + $0x80] sm:$0x1] %vm1597_vm2, %v12894_v3  ;;  %s12884_s1 = smov 112  }
  0x23   : > { %8637 = vmatprep.subr.bf16.mxu1 %v9352_v2  ;;  %8629 = vmatprep.subr.bf16.mxu0 %v12894_v3  ;;  %v9671_v9 = vpack.c.bf16 %v784_v7, %v783_v6  ;;  %1644 = vst.msk [vmem:[#allocation2 + $0x11] sm:$0xff] %vm816_vm0, %v783_v6  ;;  %1645 = vst.msk [vmem:[#allocation2 + $0x21] sm:$0xff] %vm816_vm0, %v784_v7  ;;  %v786_v10 = vld [vmem:[%s773_s3 + $0x18] sm:$0xff]  ;;  %v787_v11 = vld [vmem:[%s773_s3 + $0x20] sm:$0xff]  ;;  %s9470_s8 = smov 116   ;;  %s9472_s28 = smov 108  }
  0x24   : > { %1646 = vst.msk [vmem:[#allocation2 + $0x31] sm:$0xff] %vm816_vm0, %v785_v8  ;;  %v788_v12 = vld [vmem:[%s773_s3 + $0x28] sm:$0xff]  ;;  %v9676_v13 = vpack.c.bf16 %v786_v10, %v785_v8  ;;  %1647 = vst.msk [vmem:[#allocation2 + $0x41] sm:$0xff] %vm816_vm0, %v786_v10  ;;  %v789_v15 = vld [vmem:[%s773_s3 + $0x30] sm:$0xff]  ;;  %s9473_s9 = smov 100   ;;  %s12886_s7 = smov 96  }
  0x25   : > { %v9679_v14 = vpack.c.bf16 %v788_v12, %v787_v11  ;;  %1648 = vst.msk [vmem:[#allocation2 + $0x51] sm:$0xff] %vm816_vm0, %v787_v11  ;;  %1649 = vst.msk [vmem:[#allocation2 + $0x61] sm:$0xff] %vm816_vm0, %v788_v12  ;;  %v790_v16 = vld [vmem:[%s773_s3 + $0x38] sm:$0xff]  ;;  %v791_v17 = vld [vmem:[%s777_s27] sm:$0xff]  ;;  %8639 = vmatprep.mubr.msk.bf16.mxu1 %vm816_vm0, %v9671_v9  ;;  %s12880_s27 = smov 104   ;;  %vm2371_vm7 = vcmask 64512  }
  0x26   : > { %8638 = vmatpush3.bf16.msra.mxu1 %v9352_v2  ;;  %1650 = vst.msk [vmem:[#allocation2 + $0x71] sm:$0xff] %vm816_vm0, %v789_v15  ;;  %1651 = vst.msk [vmem:[#allocation2 + $0x81] sm:$0xff] %vm816_vm0, %v790_v16  ;;  %8630 = vmatpush3.bf16.msra.mxu0 %v9354_v5  ;;  %v9688_v18 = vpack.c.bf16 %v791_v17, %v791_v17  ;;  %v9699_v19 = vpack.c.bf16 %v790_v16, %v789_v15  ;;  %v8263_v21 = vld [vmem:[%s12971_s5] ss:$0 sm:$0xff]  ;;  %s12890_s5 = smov 32   ;;  %s12976_s10 = sld [smem:[#allocation67_spill]] }
  0x27   : > { %8659 = vmatprep.subr.bf16.mxu1 %v12894_v3  ;;  %8647 = vmatprep.subr.bf16.mxu0 %v12894_v3  ;;  %1607 = vst.msk [vmem:[#allocation2 + $0x90] sm:$0x1] %vm1597_vm2, %v12894_v3  ;;  %1611 = vst.msk [vmem:[#allocation2 + $0x39] sm:$0x1] %vm1597_vm2, %v12894_v3  ;;  %v8259_v45 = vld [vmem:[%s12972_s21] ss:$0 sm:$0xff] }
  0x28   : > { %12970 = vst [vmem:[#allocation7_spill] sm:$0xff] %v9688_v18  ;;  %1612 = vst.msk [vmem:[#allocation2 + $0x49] sm:$0x1] %vm1597_vm2, %v12894_v3  ;;  %s12978_s0 = sld [smem:[#allocation66_spill]]  ;;  %s12979_s21 = smov 64   ;;  %vm4934_vm8 = vcmask 80896  }
  0x29   : > { %8640 = vmatmul.mubr.msk.bf16.vlgmr.msra.gmra.mrb[0].mxu1 %vm816_vm0, %v9676_v13  ;;  %8632 = vmatmul.mubr.msk.bf16.vlgmr.msra.gmra.mrb[0].mxu0 %vm816_vm0, %v9688_v18  ;;  %1613 = vst.msk [vmem:[#allocation2 + $0x59] sm:$0x1] %vm1597_vm2, %v12894_v3  ;;  %1614 = vst.msk [vmem:[#allocation2 + $0x69] sm:$0x1] %vm1597_vm2, %v12894_v3  ;;  %s12981_s11 = sld [smem:[#allocation68_spill]]  ;;  %s12982_s12 = sld [smem:[#allocation69_spill]] }
  0x2a   : > { %8643 = vmatprep.mubr.msk.bf16.mxu1 %vm816_vm0, %v9679_v14  ;;  %8655 = vmatprep.mubr.msk.bf16.mxu0 %vm9466_vm1, %v12894_v3  ;;  %1615 = vst.msk [vmem:[#allocation2 + $0x79] sm:$0x1] %vm1597_vm2, %v12894_v3  ;;  %1616 = vst.msk [vmem:[#allocation2 + $0x89] sm:$0x1] %vm1597_vm2, %v12894_v3  ;;  %v1692_v52 = vld [vmem:[#allocation2 + $0x12] sm:$0xff]  ;;  %v9861_v53 = vld [vmem:[#allocation2 + $0x22] sm:$0xff] }
  0x2b   : > { %1623 = vst.msk [vmem:[#allocation3] sm:$0x1] %vm1597_vm2, %v12894_v3  ;;  %1624 = vst.msk [vmem:[#allocation3 + $0x10] sm:$0x1] %vm1597_vm2, %v12894_v3  ;;  %v9863_v55 = vld [vmem:[#allocation2 + $0x11] sm:$0xff]  ;;  %v8989_v56 = vpack.i.bf16 %v9861_v53, %v1692_v52  ;;  %v9870_v58 = vld [vmem:[#allocation2 + $0x20] sm:$0xff] }
  0x2c   : > { %1625 = vst.msk [vmem:[#allocation3 + $0x20] sm:$0x1] %vm1597_vm2, %v12894_v3  ;;  %1626 = vst.msk [vmem:[#allocation3 + $0x30] sm:$0x1] %vm1597_vm2, %v12894_v3  ;;  %v9872_v59 = vld [vmem:[#allocation2 + $0x30] sm:$0xff]  ;;  %v9878_v63 = vld [vmem:[#allocation2 + $0x21] sm:$0xff] }
  0x2d   : > { %1627 = vst.msk [vmem:[#allocation3 + $0x40] sm:$0x1] %vm1597_vm2, %v12894_v3  ;;  %1628 = vst.msk [vmem:[#allocation3 + $0x50] sm:$0x1] %vm1597_vm2, %v12894_v3  ;;  %v8999_v61 = vpack.i.bf16 %v9872_v59, %v9870_v58  ;;  %v9880_v0 = vld [vmem:[#allocation2 + $0x31] sm:$0xff]  ;;  %v9898_v8 = vld [vmem:[#allocation2 + $0x40] sm:$0xff] }
  0x2e   : > { %1629 = vst.msk [vmem:[#allocation3 + $0x60] sm:$0x1] %vm1597_vm2, %v12894_v3  ;;  %1630 = vst.msk [vmem:[#allocation3 + $0x70] sm:$0x1] %vm1597_vm2, %v12894_v3  ;;  %v9882_v1 = vld [vmem:[#allocation2 + $0x10] sm:$0xff]  ;;  %v9009_v2 = vpack.i.bf16 %v9880_v0, %v9878_v63  ;;  %v9911_v15 = vld [vmem:[#allocation2 + $0x41] sm:$0xff] }
  0x2f   : > { %1631 = vst.msk [vmem:[#allocation3 + $0x80] sm:$0x1] %vm1597_vm2, %v12894_v3  ;;  %1632 = vst.msk [vmem:[#allocation3 + $0x90] sm:$0x1] %vm1597_vm2, %v12894_v3  ;;  %v9014_v4 = vpack.i.bf16 %v9870_v58, %v9882_v1  ;;  %v9890_v5 = vld [vmem:[#allocation2 + $0x32] sm:$0xff]  ;;  %v9892_v6 = vld [vmem:[#allocation2 + $0x42] sm:$0xff] }
  0x30   : > { %1634 = vst.msk [vmem:[#allocation3 + $0x19] sm:$0x1] %vm1597_vm2, %v12894_v3  ;;  %1635 = vst.msk [vmem:[#allocation3 + $0x29] sm:$0x1] %vm1597_vm2, %v12894_v3  ;;  %v9019_v7 = vpack.i.bf16 %v9892_v6, %v9890_v5  ;;  %v9900_v10 = vld [vmem:[#allocation2 + $0x50] sm:$0xff]  ;;  %v9034_v12 = vpack.i.bf16 %v9890_v5, %v9861_v53  ;;  %s12986_s4 = smov 104  }
  0x31   : > { %8644 = vmatmul.mubr.msk.bf16.gmra.mrb[4].mxu1 %vm816_vm0, %v9699_v19  ;;  %1636 = vst.msk [vmem:[#allocation3 + $0x39] sm:$0x1] %vm1597_vm2, %v12894_v3  ;;  %1637 = vst.msk [vmem:[#allocation3 + $0x49] sm:$0x1] %vm1597_vm2, %v12894_v3  ;;  %v9029_v11 = vpack.i.bf16 %v9900_v10, %v9898_v8  ;;  %v9913_v16 = vld [vmem:[#allocation2 + $0x51] sm:$0xff]  ;;  %vm4936_vm9 = vcmask 74752  }
  0x32   : > { %8667 = vmatprep.mubr.msk.bf16.mxu1 %vm9466_vm1, %v12894_v3  ;;  %1638 = vst.msk [vmem:[#allocation3 + $0x59] sm:$0x1] %vm1597_vm2, %v12894_v3  ;;  %1639 = vst.msk [vmem:[#allocation3 + $0x69] sm:$0x1] %vm1597_vm2, %v12894_v3  ;;  %v9039_v17 = vpack.i.bf16 %v9913_v16, %v9911_v15  ;;  %vm5219_vm10 = vcmask 72712   ;;  %s12943_s3 = smov 8  }
  0x33   : > { %1640 = vst.msk [vmem:[#allocation3 + $0x79] sm:$0x1] %vm1597_vm2, %v12894_v3  ;;  %1641 = vst.msk [vmem:[#allocation3 + $0x89] sm:$0x1] %vm1597_vm2, %v12894_v3  ;;  %vm5773_vm11 = vcmask 1040384   ;;  %vm9492_vm12 = vmmov 1  }
  0x34   : > { %1593 = vst.msk [vmem:[#allocation2 + $0x8] sm:$0x3] %vm1592_vm3, %v12894_v3  ;;  %1596 = vst.msk [vmem:[#allocation2 + $0x98] sm:$0x3] %vm1592_vm3, %v12894_v3  ;;  %vm5769_vm14 = vcmask 72704   ;;  %vm5668_vm15 = vcmask 130048  }
  0x35   : > { %1619 = vst.msk [vmem:[#allocation3 + $0x8] sm:$0x3] %vm1592_vm3, %v12894_v3  ;;  %1622 = vst.msk [vmem:[#allocation3 + $0x98] sm:$0x3] %vm1592_vm3, %v12894_v3  ;;  %vm5675_vm3 = vcmask 392192  }
  0x36   : > { %1608 = vst.msk [vmem:[#allocation2 + $0x9] sm:$0x1] %vm1597_vm2, %v12894_v3  ;;  %1617 = vst.msk [vmem:[#allocation2 + $0x99] sm:$0x1] %vm1597_vm2, %v12894_v3 }
  0x37   : > { %1633 = vst.msk [vmem:[#allocation3 + $0x9] sm:$0x1] %vm1597_vm2, %v12894_v3  ;;  %1642 = vst.msk [vmem:[#allocation3 + $0x99] sm:$0x1] %vm1597_vm2, %v12894_v3  ;;  %vm5673_vm2 = vcmask 326656  }
  0x38   : > { %5231 = vst.msk [vmem:[#allocation5 + $0x10] sm:$0xff] %vm4934_vm8, %v12894_v3  ;;  %4935 = vst.msk [vmem:[#allocation4] sm:$0xff] %vm4934_vm8, %v12894_v3 }
  0x39   : > { %5232 = vst.msk [vmem:[#allocation5 + $0x18] sm:$0x3] %vm4936_vm9, %v12894_v3  ;;  %4943 = vst.msk [vmem:[#allocation4 + $0x38] sm:$0x3] %vm4936_vm9, %v12894_v3 }
  0x3a   : > { %4938 = vst.msk [vmem:[#allocation4 + $0x10] sm:$0xff] %vm4934_vm8, %v12894_v3  ;;  %4940 = vst.msk [vmem:[#allocation4 + $0x20] sm:$0xff] %vm4934_vm8, %v12894_v3 }
  0x3b   : > { %v1660_v54 = vld [vmem:[#allocation2 + $0x1] sm:$0xff]  ;;  %4942 = vst.msk [vmem:[#allocation4 + $0x30] sm:$0xff] %vm4934_vm8, %v12894_v3  ;;  %4944 = vst.msk [vmem:[#allocation4 + $0x40] sm:$0xff] %vm4934_vm8, %v12894_v3 }
  0x3c   : > { %v8994_v57 = vpack.i.bf16 %v9863_v55, %v1660_v54  ;;  %4945 = vst.msk [vmem:[#allocation4 + $0x48] sm:$0x3] %vm4936_vm9, %v12894_v3  ;;  %4947 = vst.msk [vmem:[#allocation4 + $0x58] sm:$0x3] %vm4936_vm9, %v12894_v3 }
  0x3d   : > { %v1668_v60 = vld [vmem:[#allocation2 + $0x2] sm:$0xff]  ;;  %4946 = vst.msk [vmem:[#allocation4 + $0x50] sm:$0xff] %vm4934_vm8, %v12894_v3  ;;  %4948 = vst.msk [vmem:[#allocation4 + $0x60] sm:$0xff] %vm4934_vm8, %v12894_v3 }
  0x3e   : > { %v9004_v62 = vpack.i.bf16 %v1692_v52, %v1668_v60  ;;  %4949 = vst.msk [vmem:[#allocation4 + $0x68] sm:$0x3] %vm4936_vm9, %v12894_v3  ;;  %4951 = vst.msk [vmem:[#allocation4 + $0x78] sm:$0x3] %vm4936_vm9, %v12894_v3 }
  0x3f   : > { %4950 = vst.msk [vmem:[#allocation4 + $0x70] sm:$0xff] %vm4934_vm8, %v12894_v3  ;;  %4952 = vst.msk [vmem:[#allocation4 + $0x80] sm:$0xff] %vm4934_vm8, %v12894_v3 }
  0x40   : > { %4953 = vst.msk [vmem:[#allocation4 + $0x88] sm:$0x3] %vm4936_vm9, %v12894_v3  ;;  %5230 = vst.msk [vmem:[#allocation5 + $0x8] sm:$0x3] %vm4936_vm9, %v12894_v3 }
  0x41   : > { %5229 = vst.msk [vmem:[#allocation5] sm:$0xff] %vm4934_vm8, %v12894_v3  ;;  %5233 = vst.msk [vmem:[#allocation5 + $0x20] sm:$0xff] %vm4934_vm8, %v12894_v3 }
  0x42   : > { %5234 = vst.msk [vmem:[#allocation5 + $0x28] sm:$0x3] %vm4936_vm9, %v12894_v3  ;;  %5236 = vst.msk [vmem:[#allocation5 + $0x38] sm:$0x3] %vm4936_vm9, %v12894_v3 }
  0x43   : > { %5235 = vst.msk [vmem:[#allocation5 + $0x30] sm:$0xff] %vm4934_vm8, %v12894_v3  ;;  %5237 = vst.msk [vmem:[#allocation5 + $0x40] sm:$0xff] %vm4934_vm8, %v12894_v3 }
  0x44   : > { %5238 = vst.msk [vmem:[#allocation5 + $0x48] sm:$0x3] %vm4936_vm9, %v12894_v3  ;;  %5240 = vst.msk [vmem:[#allocation5 + $0x58] sm:$0x3] %vm4936_vm9, %v12894_v3 }
  0x45   : > { %5239 = vst.msk [vmem:[#allocation5 + $0x50] sm:$0xff] %vm4934_vm8, %v12894_v3  ;;  %5241 = vst.msk [vmem:[#allocation5 + $0x60] sm:$0xff] %vm4934_vm8, %v12894_v3 }
  0x46   : > { %5242 = vst.msk [vmem:[#allocation5 + $0x68] sm:$0x3] %vm4936_vm9, %v12894_v3  ;;  %5244 = vst.msk [vmem:[#allocation5 + $0x78] sm:$0x3] %vm4936_vm9, %v12894_v3 }
  0x47   : > { %5243 = vst.msk [vmem:[#allocation5 + $0x70] sm:$0xff] %vm4934_vm8, %v12894_v3  ;;  %vm8950_vm13 = vmpackc.low %vm5773_vm11, %vm9492_vm12 }
  0xfc   : > { %v8641_v20 = vpop.f32.mrb[0].mxu1  ;;  %v854_v24 = vpop.f32.mrb[0].mxu0 }
  0xfd   : > { %v933_v22 = vpop.f32.mrb[1].mxu1  ;;  %v942_v25 = vadd.f32 %v8641_v20, %v8263_v21  ;;  %v8633_v28 = vpop.f32.mrb[1].mxu0  ;;  %v855_v48 = vadd.f32 %v8259_v45, %v854_v24  ;;  %v9044_v20 = vpack.i.bf16 %v9898_v8, %v9872_v59  ;;  %v9930_v24 = vld [vmem:[#allocation2 + $0x60] sm:$0xff] }
  0xfe   : > { %v8642_v23 = vpop.f32.mrb[2].mxu1  ;;  %v934_v29 = vadd.f32 %v8263_v21, %v933_v22  ;;  %v857_v31 = vpop.f32.mrb[2].mxu0  ;;  %v9924_v22 = vld [vmem:[#allocation2 + $0x62] sm:$0xff]  ;;  %v9941_v28 = vld [vmem:[#allocation2 + $0x71] sm:$0xff] }
  0xff   : > { %v945_v26 = vadd.f32 %v8642_v23, %v8263_v21  ;;  %v936_v27 = vpop.f32.mrb[3].mxu1  ;;  %v8634_v33 = vpop.f32.mrb[3].mxu0  ;;  %v9817_v49 = vpack.c.bf16 %v855_v48, %v855_v48  ;;  %v9949_v31 = vld [vmem:[#allocation2 + $0x72] sm:$0xff] }
 0x100   : > { %v937_v30 = vadd.f32 %v8263_v21, %v936_v27  ;;  %v9939_v27 = vld [vmem:[#allocation2 + $0x61] sm:$0xff]  ;;  %v9074_v33 = vpack.i.bf16 %v9930_v24, %v9900_v10 }
 0x101   : > { %v9796_v32 = vpack.c.bf16 %v945_v26, %v942_v25  ;;  %v9932_v25 = vld [vmem:[#allocation2 + $0x70] sm:$0xff] }
 0x102   : > { %v965_v34 = vpack.c.bf16 %v937_v30, %v934_v29  ;;  %v9059_v26 = vpack.i.bf16 %v9932_v25, %v9930_v24  ;;  %v9069_v30 = vpack.i.bf16 %v9941_v28, %v9939_v27 }
 0x103   : > { %1099 = vrot.lane.b32.xlu1 %v9796_v32, %s12882_s29  ;;  %v977_v47 = vsel %vm969_vm4, %v9796_v32, 0 }
 0x104   : > { %v8645_v35 = vpop.f32.mrb[4].mxu1  ;;  %1097 = vrot.lane.b32.xlu0 %v965_v34, %s12882_s29  ;;  %v974_v36 = vsel %vm969_vm4, %v965_v34, 0 }
 0x105   : > { %v958_v37 = vadd.f32 %v8645_v35, %v8263_v21  ;;  %v949_v38 = vpop.f32.mrb[5].mxu1  ;;  %8648 = vmatpush3.bf16.xpose.msra.mxu0 %v974_v36  ;;  %v1707_v35 = vld [vmem:[#allocation2 + $0x80] sm:$0xff]  ;;  %v1708_v36 = vld [vmem:[#allocation2 + $0x90] sm:$0xff] }
 0x106   : > { %v950_v39 = vadd.f32 %v8263_v21, %v949_v38  ;;  %v8646_v40 = vpop.f32.mrb[6].mxu1  ;;  %8649 = vmatprep.subr.bf16.mxu0 %v12894_v3  ;;  %v9961_v38 = vld [vmem:[#allocation2 + $0x81] sm:$0xff] }
 0x107   : > { %v961_v41 = vadd.f32 %v8646_v40, %v8263_v21  ;;  %1034 = vrot.lane.b32.xlu1 %v9796_v32, %s9468_s2  ;;  %v952_v42 = vpop.f32.mrb[7].mxu1  ;;  %v9094_v40 = vpack.i.bf16 %v9949_v31, %v9924_v22 }
 0x108   : > { %v953_v43 = vadd.f32 %v8263_v21, %v952_v42  ;;  %1032 = vrot.lane.b32.xlu0 %v965_v34, %s9468_s2  ;;  %v9922_v21 = vld [vmem:[#allocation2 + $0x52] sm:$0xff]  ;;  %v9104_v42 = vpack.i.bf16 %v1707_v35, %v9932_v25 }
 0x109   : > { %v9804_v44 = vpack.c.bf16 %v961_v41, %v958_v37  ;;  %v9049_v23 = vpack.i.bf16 %v9924_v22, %v9922_v21  ;;  %v9064_v29 = vpack.i.bf16 %v9922_v21, %v9892_v6  ;;  %v9089_v37 = vpack.i.bf16 %v1708_v36, %v1707_v35 }
 0x10a   : > { %v9809_v46 = vpack.c.bf16 %v953_v43, %v950_v39  ;;  %v1716_v39 = vld [vmem:[#allocation2 + $0x91] sm:$0xff] }
 0x10b   : > { %v983_v51 = vsel %vm969_vm4, %v9804_v44, 0  ;;  %v9099_v41 = vpack.i.bf16 %v1716_v39, %v9961_v38 }
 0x10c   : > { %1036 = vrot.lane.b32.xlu1 %v9809_v46, %s9468_s2  ;;  %1101 = vrot.lane.b32.xlu0 %v9809_v46, %s12882_s29  ;;  %v980_v50 = vsel %vm969_vm4, %v9809_v46, 0 }
 0x10d   : > { %8650 = vmatpush3.bf16.xpose.msra.mxu0 %v977_v47 }
 0x10e   : > { %8651 = vmatprep.subr.bf16.mxu0 %v12894_v3 }
 0x110   : > { %1038 = vrot.lane.b32.xlu1 %v9804_v44, %s9468_s2  ;;  %1103 = vrot.lane.b32.xlu0 %v9804_v44, %s12882_s29 }
 0x114   : > { %1095 = vrot.lane.b32.xlu1 %v9817_v49, %s12882_s29  ;;  %1227 = vrot.lane.b32.xlu0 %v965_v34, %s12884_s1  ;;  %s12898_s29 = smov 1  }
 0x115   : > { %8652 = vmatpush3.bf16.xpose.msra.mxu0 %v980_v50 }
 0x116   : > { %8653 = vmatprep.subr.bf16.mxu0 %v12894_v3 }
 0x118   : > { %1229 = vrot.lane.b32.xlu1 %v9796_v32, %s12884_s1  ;;  %1162 = vrot.lane.b32.xlu0 %v965_v34, %s9470_s8 }
 0x11c   : > { %1164 = vrot.lane.b32.xlu1 %v9796_v32, %s9470_s8  ;;  %1026 = vrot.lane.b32.xlu0 %v9817_v49, %s9468_s2  ;;  %s12888_s2 = smov 64  }
 0x11d   : > { %8654 = vmatpush3.bf16.xpose.msra.mxu0 %v983_v51 }
 0x11e   : > { %8671 = vmatprep.subr.bf16.mxu0 %v12894_v3 }
 0x120   : > { %1166 = vrot.lane.b32.xlu1 %v9809_v46, %s9470_s8  ;;  %1231 = vrot.lane.b32.xlu0 %v9809_v46, %s12884_s1 }
 0x124   : > { %1168 = vrot.lane.b32.xlu1 %v9804_v44, %s9470_s8  ;;  %1233 = vrot.lane.b32.xlu0 %v9804_v44, %s12884_s1 }
 0x125   : > { %8656 = vmatmul.mubr.msk.bf16.vlgmr.msra.gmra.mrb[4].mxu0 %vm969_vm4, %v9817_v49 }
 0x126   : > { %8679 = vmatprep.mubr.msk.bf16.mxu0 %vm9466_vm1, %v12894_v3 }
 0x128   : > { %1225 = vrot.lane.b32.xlu1 %v9817_v49, %s12884_s1  ;;  %1357 = vrot.lane.b32.xlu0 %v965_v34, %s12880_s27  ;;  %s12977_s1 = sld [smem:[#allocation65_spill]] }
 0x12c   : > { %1359 = vrot.lane.b32.xlu1 %v9796_v32, %s12880_s27  ;;  %1292 = vrot.lane.b32.xlu0 %v965_v34, %s9472_s28 }
 0x130   : > { %1294 = vrot.lane.b32.xlu1 %v9796_v32, %s9472_s28  ;;  %1160 = vrot.lane.b32.xlu0 %v9817_v49, %s9470_s8  ;;  %s12973_s8 = sld [smem:[#allocation63_spill]] }
 0x134   : > { %1298 = vrot.lane.b32.xlu1 %v9804_v44, %s9472_s28  ;;  %1361 = vrot.lane.b32.xlu0 %v9809_v46, %s12880_s27 }
 0x138   : > { %1296 = vrot.lane.b32.xlu1 %v9809_v46, %s9472_s28  ;;  %1363 = vrot.lane.b32.xlu0 %v9804_v44, %s12880_s27 }
 0x13c   : > { %1422 = vrot.lane.b32.xlu1 %v965_v34, %s9473_s9  ;;  %1355 = vrot.lane.b32.xlu0 %v9817_v49, %s12880_s27  ;;  %s12945_s27 = smov 16  }
 0x140   : > { %1424 = vrot.lane.b32.xlu1 %v9796_v32, %s9473_s9  ;;  %1290 = vrot.lane.b32.xlu0 %v9817_v49, %s9472_s28  ;;  %v9951_v32 = vld [vmem:[#allocation2 + $0x82] sm:$0xff]  ;;  %s12974_s28 = sld [smem:[#allocation64_spill]] }
 0x141   : > { %v9079_v34 = vpack.i.bf16 %v9951_v32, %v9949_v31 }
 0x144   : > { %8990 = vrot.lane.b32.xlu1 %v8989_v56, %s12890_s5  ;;  %8995 = vrot.lane.b32.xlu0 %v8994_v57, %s12890_s5 }
 0x148   : > { %9000 = vrot.lane.b32.xlu1 %v8999_v61, %s12888_s2  ;;  %9005 = vrot.lane.b32.xlu0 %v9004_v62, %s12888_s2 }
 0x14c   : > { %9010 = vrot.lane.b32.xlu1 %v9009_v2, %s12886_s7  ;;  %9015 = vrot.lane.b32.xlu0 %v9014_v4, %s12886_s7 }
 0x150   : > { %1428 = vrot.lane.b32.xlu1 %v9804_v44, %s9473_s9  ;;  %9020 = vrot.lane.b32.xlu0 %v9019_v7, %s12890_s5 }
 0x154   : > { %9030 = vrot.lane.b32.xlu0 %v9029_v11, %s12888_s2  ;;  %9025 = vrot.lane.b32.xlu1 %v9009_v2, %s12890_s5 }
 0x158   : > { %1426 = vrot.lane.b32.xlu0 %v9809_v46, %s9473_s9  ;;  %9035 = vrot.lane.b32.xlu1 %v9034_v12, %s12888_s2 }
 0x15c   : > { %9040 = vrot.lane.b32.xlu0 %v9039_v17, %s12886_s7  ;;  %9045 = vrot.lane.b32.xlu1 %v9044_v20, %s12886_s7 }
 0x160   : > { %1420 = vrot.lane.b32.xlu0 %v9817_v49, %s9473_s9  ;;  %9050 = vrot.lane.b32.xlu1 %v9049_v23, %s12890_s5  ;;  %s12900_s9 = smov 72  }
 0x164   : > { %9055 = vrot.lane.b32.xlu0 %v9039_v17, %s12890_s5  ;;  %9060 = vrot.lane.b32.xlu1 %v9059_v26, %s12888_s2 }
 0x168   : > { %9065 = vrot.lane.b32.xlu0 %v9064_v29, %s12888_s2  ;;  %9070 = vrot.lane.b32.xlu1 %v9069_v30, %s12886_s7 }
 0x16c   : > { %9075 = vrot.lane.b32.xlu0 %v9074_v33, %s12886_s7  ;;  %9080 = vrot.lane.b32.xlu1 %v9079_v34, %s12890_s5 }
 0x170   : > { %9085 = vrot.lane.b32.xlu0 %v9069_v30, %s12890_s5  ;;  %9090 = vrot.lane.b32.xlu1 %v9089_v37, %s12888_s2 }
 0x174   : > { %9095 = vrot.lane.b32.xlu0 %v9094_v40, %s12888_s2  ;;  %9100 = vrot.lane.b32.xlu1 %v9099_v41, %s12886_s7  ;;  %s12985_s2 = smov 120  }
 0x175   : > { %v1100_v43 = vpop.permute.xlu1 %1099 }
 0x176   : > { %v1098_v44 = vpop.permute.xlu0 %1097  ;;  %v1112_v51 = vsel %vm969_vm4, %v1100_v43, 0 }
 0x177   : > { %v1109_v45 = vsel %vm969_vm4, %v1098_v44, 0 }
 0x178   : > { %8672 = vmatpush3.bf16.xpose.msra.mxu0 %v1109_v45  ;;  %9105 = vrot.lane.b32.xlu0 %v9104_v42, %s12886_s7  ;;  %s12980_s7 = smov 96  }
 0x179   : > { %v1035_v46 = vpop.permute.xlu1 %1034  ;;  %8673 = vmatprep.subr.bf16.mxu0 %v12894_v3 }
 0x17a   : > { %v1033_v47 = vpop.permute.xlu0 %1032  ;;  %v1047_v56 = vsel %vm969_vm4, %v1035_v46, 0 }
 0x17b   : > { %v1044_v48 = vsel %vm969_vm4, %v1033_v47, 0 }
 0x17c   : > { %8660 = vmatpush3.bf16.xpose.msra.mxu1 %v1044_v48 }
 0x17d   : > { %8661 = vmatprep.subr.bf16.mxu1 %v12894_v3 }
 0x17e   : > { %v1037_v49 = vpop.permute.xlu1 %1036  ;;  %v1102_v50 = vpop.permute.xlu0 %1101 }
 0x17f   : > { %v1115_v61 = vsel %vm969_vm4, %v1102_v50, 0  ;;  %v1050_v4 = vsel %vm969_vm4, %v1037_v49, 0 }
 0x180   : > { %8674 = vmatpush3.bf16.xpose.msra.mxu0 %v1112_v51 }
 0x181   : > { %8675 = vmatprep.subr.bf16.mxu0 %v12894_v3 }
 0x182   : > { %v1039_v52 = vpop.permute.xlu1 %1038  ;;  %v1104_v54 = vpop.permute.xlu0 %1103 }
 0x183   : > { %v1118_v12 = vsel %vm969_vm4, %v1104_v54, 0  ;;  %v1053_v23 = vsel %vm969_vm4, %v1039_v52, 0 }
 0x184   : > { %8662 = vmatpush3.bf16.xpose.msra.mxu1 %v1047_v56 }
 0x185   : > { %8663 = vmatprep.subr.bf16.mxu1 %v12894_v3 }
 0x186   : > { %v1096_v57 = vpop.permute.xlu1 %1095  ;;  %v1228_v60 = vpop.permute.xlu0 %1227 }
 0x187   : > { %v1239_v30 = vsel %vm969_vm4, %v1228_v60, 0 }
 0x188   : > { %8676 = vmatpush3.bf16.xpose.msra.mxu0 %v1115_v61 }
 0x189   : > { %8677 = vmatprep.subr.bf16.mxu0 %v12894_v3 }
 0x18a   : > { %v1230_v62 = vpop.permute.xlu1 %1229  ;;  %v1163_v2 = vpop.permute.xlu0 %1162 }
 0x18b   : > { %v1174_v35 = vsel %vm969_vm4, %v1163_v2, 0  ;;  %v1242_v39 = vsel %vm969_vm4, %v1230_v62, 0 }
 0x18c   : > { %8664 = vmatpush3.bf16.xpose.msra.mxu1 %v1050_v4 }
 0x18d   : > { %8665 = vmatprep.subr.bf16.mxu1 %v12894_v3 }
 0x18e   : > { %v1165_v7 = vpop.permute.xlu1 %1164  ;;  %v1027_v11 = vpop.permute.xlu0 %1026 }
 0x18f   : > { %v1177_v42 = vsel %vm969_vm4, %v1165_v7, 0 }
 0x190   : > { %8678 = vmatpush3.bf16.xpose.msra.mxu0 %v1118_v12 }
 0x191   : > { %8695 = vmatprep.subr.bf16.mxu0 %v12894_v3 }
 0x192   : > { %v1167_v17 = vpop.permute.xlu1 %1166  ;;  %v1232_v20 = vpop.permute.xlu0 %1231 }
 0x193   : > { %v1245_v45 = vsel %vm969_vm4, %v1232_v20, 0  ;;  %v1180_v48 = vsel %vm969_vm4, %v1167_v17, 0 }
 0x194   : > { %8666 = vmatpush3.bf16.xpose.msra.mxu1 %v1053_v23 }
 0x195   : > { %8683 = vmatprep.subr.bf16.mxu1 %v12894_v3 }
 0x196   : > { %v1169_v26 = vpop.permute.xlu1 %1168  ;;  %v1234_v29 = vpop.permute.xlu0 %1233 }
 0x197   : > { %8680 = vmatmul.mubr.msk.bf16.vlgmr.msra.gmra.mrb[8].mxu0 %vm969_vm4, %v1096_v57  ;;  %v1248_v51 = vsel %vm969_vm4, %v1234_v29, 0  ;;  %v1183_v56 = vsel %vm969_vm4, %v1169_v26, 0 }
 0x198   : > { %8696 = vmatpush3.bf16.xpose.msra.mxu0 %v1239_v30  ;;  %8703 = vmatprep.mubr.msk.bf16.mxu0 %vm9466_vm1, %v12894_v3 }
 0x199   : > { %8697 = vmatprep.subr.bf16.mxu0 %v12894_v3 }
 0x19a   : > { %v1226_v33 = vpop.permute.xlu1 %1225  ;;  %v1358_v34 = vpop.permute.xlu0 %1357 }
 0x19b   : > { %8668 = vmatmul.mubr.msk.bf16.vlgmr.msra.gmra.mrb[8].mxu1 %vm969_vm4, %v1027_v11  ;;  %v1369_v60 = vsel %vm969_vm4, %v1358_v34, 0 }
 0x19c   : > { %8684 = vmatpush3.bf16.xpose.msra.mxu1 %v1174_v35  ;;  %8691 = vmatprep.mubr.msk.bf16.mxu1 %vm9466_vm1, %v12894_v3 }
 0x19d   : > { %8685 = vmatprep.subr.bf16.mxu1 %v12894_v3 }
 0x19e   : > { %v1360_v36 = vpop.permute.xlu1 %1359  ;;  %v1293_v37 = vpop.permute.xlu0 %1292 }
 0x19f   : > { %v1304_v2 = vsel %vm969_vm4, %v1293_v37, 0  ;;  %v1372_v7 = vsel %vm969_vm4, %v1360_v36, 0 }
 0x1a0   : > { %8698 = vmatpush3.bf16.xpose.msra.mxu0 %v1242_v39 }
 0x1a1   : > { %8699 = vmatprep.subr.bf16.mxu0 %v12894_v3 }
 0x1a2   : > { %v1295_v40 = vpop.permute.xlu1 %1294  ;;  %v1161_v41 = vpop.permute.xlu0 %1160 }
 0x1a3   : > { %v1307_v12 = vsel %vm969_vm4, %v1295_v40, 0 }
 0x1a4   : > { %8686 = vmatpush3.bf16.xpose.msra.mxu1 %v1177_v42  ;;  %v9355_v42 = vld [vmem:[%s12973_s8 + $0x40] sm:$0xff]  }
 0x1a5   : > { %8687 = vmatprep.subr.bf16.mxu1 %v12894_v3 }
 0x1a6   : > { %v10002_v43 = vpop.permute.xlu1 %1298  ;;  %v1362_v44 = vpop.permute.xlu0 %1361 }
 0x1a7   : > { %v1375_v23 = vsel %vm969_vm4, %v1362_v44, 0 }
 0x1a8   : > { %8700 = vmatpush3.bf16.xpose.msra.mxu0 %v1245_v45 }
 0x1a9   : > { %8701 = vmatprep.subr.bf16.mxu0 %v12894_v3 }
 0x1aa   : > { %v1297_v46 = vpop.permute.xlu1 %1296  ;;  %v1364_v47 = vpop.permute.xlu0 %1363 }
 0x1ab   : > { %v1310_v36 = vsel %vm969_vm4, %v1297_v46, 0  ;;  %v1378_v46 = vsel %vm969_vm4, %v1364_v47, 0 }
 0x1ac   : > { %8688 = vmatpush3.bf16.xpose.msra.mxu1 %v1180_v48 }
 0x1ad   : > { %8689 = vmatprep.subr.bf16.mxu1 %v12894_v3 }
 0x1ae   : > { %v10008_v49 = vpop.permute.xlu1 %1422  ;;  %v10010_v50 = vpop.permute.xlu0 %1355 }
 0x1b0   : > { %8702 = vmatpush3.bf16.xpose.msra.mxu0 %v1248_v51 }
 0x1b1   : > { %8719 = vmatprep.subr.bf16.mxu0 %v12894_v3 }
 0x1b2   : > { %v10014_v52 = vpop.permute.xlu1 %1424  ;;  %v10016_v54 = vpop.permute.xlu0 %1290 }
 0x1b4   : > { %8690 = vmatpush3.bf16.xpose.msra.mxu1 %v1183_v56  ;;  %v1313_v56 = vsel %vm969_vm4, %v10002_v43, 0  ;;  %v9358_v43 = vld [vmem:[%s12973_s8 + $0x8] sm:$0xff]  }
 0x1b5   : > { %8707 = vmatprep.subr.bf16.mxu1 %v12894_v3 }
 0x1b6   : > { %v8991_v57 = vpop.permute.xlu1 %8990  ;;  %v10021_v61 = vpop.permute.xlu0 %8995 }
 0x1b7   : > { %8704 = vmatmul.mubr.msk.bf16.vlgmr.msra.gmra.mrb[12].mxu0 %vm969_vm4, %v1226_v33  ;;  %v8993_v26 = vunpack.i.h.bf16 %v8991_v57  ;;  %v8992_v29 = vunpack.i.l.bf16 %v8991_v57  ;;  %v9356_v57 = vld [vmem:[%s12973_s8] sm:$0xff]  }
 0x1b8   : > { %8720 = vmatpush3.bf16.xpose.msra.mxu0 %v1369_v60  ;;  %8727 = vmatprep.mubr.msk.bf16.mxu0 %vm9466_vm1, %v12894_v3 }
 0x1b9   : > { %8721 = vmatprep.subr.bf16.mxu0 %v12894_v3  ;;  %v1943_v37 = vsel %vm816_vm0, %v9878_v63, %v8993_v26  ;;  %v1942_v39 = vsel %vm816_vm0, %v9863_v55, %v8992_v29  ;;  %v9363_v29 = vld [vmem:[%s12973_s8 + $0x60] sm:$0xff]  }
 0x1ba   : > { %v9001_v62 = vpop.permute.xlu1 %9000  ;;  %v10031_v4 = vpop.permute.xlu0 %9005 }
 0x1bb   : > { %8692 = vmatmul.mubr.msk.bf16.vlgmr.msra.gmra.mrb[12].mxu1 %vm969_vm4, %v1161_v41  ;;  %v9003_v33 = vunpack.i.h.bf16 %v9001_v62  ;;  %v9002_v34 = vunpack.i.l.bf16 %v9001_v62  ;;  %v9357_v62 = vld [vmem:[%s12973_s8 + $0x48] sm:$0xff]  }
 0x1bc   : > { %8708 = vmatpush3.bf16.xpose.msra.mxu1 %v1304_v2  ;;  %8715 = vmatprep.mubr.msk.bf16.mxu1 %vm9466_vm1, %v12894_v3 }
 0x1bd   : > { %8709 = vmatprep.subr.bf16.mxu1 %v12894_v3  ;;  %v1950_v44 = vsel %vm1493_vm5, %v1942_v39, %v9002_v34  ;;  %v1951_v45 = vsel %vm1493_vm5, %v1943_v37, %v9003_v33  ;;  %v1437_v34 = vsel %vm969_vm4, %v10014_v52, 0  ;;  %v9365_v37 = vld [vmem:[%s12973_s8 + $0x68] sm:$0xff]   ;;  %v1652_v52 = vld [vmem:[#allocation2] sm:$0xff] }
 0x1be   : > { %v9011_v11 = vpop.permute.xlu1 %9010  ;;  %v10037_v17 = vpop.permute.xlu0 %9015 }
 0x1bf   : > { %v9013_v40 = vunpack.i.h.bf16 %v9011_v11  ;;  %v9012_v41 = vunpack.i.l.bf16 %v9011_v11  ;;  %v1434_v11 = vsel %vm969_vm4, %v10008_v49, 0  ;;  %v9361_v49 = vld [vmem:[%s12973_s8 + $0x58] sm:$0xff]  }
 0x1c0   : > { %8722 = vmatpush3.bf16.xpose.msra.mxu0 %v1372_v7  ;;  %v9359_v7 = vld [vmem:[%s12973_s8 + $0x50] sm:$0xff]  }
 0x1c1   : > { %8723 = vmatprep.subr.bf16.mxu0 %v12894_v3  ;;  %v1958_v48 = vsel %vm1933_vm6, %v1950_v44, %v9012_v41  ;;  %v1959_v51 = vsel %vm1933_vm6, %v1951_v45, %v9013_v40  ;;  %v8998_v40 = vunpack.i.h.bf16 %v10021_v61  ;;  %v8997_v41 = vunpack.i.l.bf16 %v10021_v61 }
 0x1c2   : > { %v10040_v20 = vpop.permute.xlu1 %1428  ;;  %v10043_v30 = vpop.permute.xlu0 %9020  ;;  %v1967_v47 = vpack.c.bf16 %v1959_v51, %v1958_v48  ;;  %v9367_v48 = vld [vmem:[%s12973_s8 + $0x70] sm:$0xff]   ;;  %v9008_v51 = vunpack.i.h.bf16 %v10031_v4  ;;  %v9007_v61 = vunpack.i.l.bf16 %v10031_v4  ;;  %v9018_v4 = vunpack.i.h.bf16 %v10037_v17 }
 0x1c3   : > { %v9023_v45 = vunpack.i.h.bf16 %v10043_v30 }
 0x1c4   : > { %8710 = vmatpush3.bf16.xpose.msra.mxu1 %v1307_v12 }
 0x1c5   : > { %8711 = vmatprep.subr.bf16.mxu1 %v12894_v3 }
 0x1c6   : > { %v10046_v35 = vpop.permute.xlu1 %9025  ;;  %v10060_v63 = vpop.permute.xlu0 %9030 }
 0x1c8   : > { %8724 = vmatpush3.bf16.xpose.msra.mxu0 %v1375_v23 }
 0x1c9   : > { %8725 = vmatprep.subr.bf16.mxu0 %v12894_v3 }
 0x1ca   : > { %v10062_v55 = vpop.permute.xlu1 %9035  ;;  %v1427_v60 = vpop.permute.xlu0 %1426 }
 0x1cc   : > { %8712 = vmatpush3.bf16.xpose.msra.mxu1 %v1310_v36  ;;  %v9364_v36 = vld [vmem:[%s12973_s8 + $0x20] sm:$0xff]  }
 0x1cd   : > { %8713 = vmatprep.subr.bf16.mxu1 %v12894_v3 }
 0x1ce   : > { %v10075_v2 = vpop.permute.xlu1 %9045  ;;  %v10087_v12 = vpop.permute.xlu0 %9040 }
 0x1d0   : > { %8726 = vmatpush3.bf16.xpose.msra.mxu0 %v1378_v46  ;;  %v9022_v46 = vunpack.i.l.bf16 %v10043_v30  ;;  %v9033_v30 = vunpack.i.h.bf16 %v10060_v63 }
 0x1d1   : > { %8431 = vmatprep.subr.bf16.mxu0 %v9355_v42  ;;  %v9366_v42 = vld [vmem:[%s12973_s8 + $0x28] sm:$0xff]  }
 0x1d2   : > { %v10094_v23 = vpop.permute.xlu1 %9050  ;;  %v10105_v26 = vpop.permute.xlu0 %1420 }
 0x1d4   : > { %8714 = vmatpush3.bf16.xpose.msra.mxu1 %v1313_v56  ;;  %v1918_v56 = vsel %vm816_vm0, %v9882_v1, %v8998_v40  ;;  %v9017_v1 = vunpack.i.l.bf16 %v10037_v17  ;;  %v9027_v17 = vunpack.i.l.bf16 %v10046_v35 }
 0x1d5   : > { %8731 = vmatprep.subr.bf16.mxu1 %v12894_v3 }
 0x1d6   : > { %v10110_v33 = vpop.permute.xlu1 %9060  ;;  %v10121_v39 = vpop.permute.xlu0 %9055 }
 0x1d7   : > { %8728 = vmatmul.mubr.msk.bf16.vlgmr.msra.gmra.mrb[16].mxu0 %vm969_vm4, %v10010_v50  ;;  %v9360_v50 = vld [vmem:[%s12973_s8 + $0x10] sm:$0xff]  }
 0x1d8   : > { %8432 = vmatpush3.bf16.msra.mxu0 %v9356_v57  ;;  %2173 = vmatprep.mubr.bf16.mxu0 %v1967_v47  ;;  %v1917_v57 = vsel %vm816_vm0, %v1652_v52, %v8997_v41  ;;  %v1440_v47 = vsel %vm969_vm4, %v1427_v60, 0  ;;  %v1944_v60 = vsel %vm816_vm0, %v9880_v0, %v9022_v46  ;;  %v9042_v0 = vunpack.i.l.bf16 %v10087_v12 }
 0x1d9   : > { %8433 = vmatprep.subr.bf16.mxu0 %v9357_v62 }
 0x1da   : > { %v10128_v44 = vpop.permute.xlu1 %9070  ;;  %v10141_v62 = vpop.permute.xlu0 %9065 }
 0x1db   : > { %8716 = vmatmul.mubr.msk.bf16.vlgmr.msra.gmra.mrb[16].mxu1 %vm969_vm4, %v10016_v54  ;;  %v9362_v54 = vld [vmem:[%s12973_s8 + $0x18] sm:$0xff]  }
 0x1dc   : > { %8732 = vmatpush3.bf16.xpose.msra.mxu1 %v1434_v11  ;;  %8434 = vmatpush3.bf16.msra.mxu0 %v9358_v43  ;;  %v9032_v43 = vunpack.i.l.bf16 %v10060_v63  ;;  %v1945_v11 = vsel %vm816_vm0, %v9911_v15, %v9023_v45  ;;  %v9369_v63 = vld [vmem:[%s12973_s8 + $0x78] sm:$0xff]   ;;  %v9043_v15 = vunpack.i.h.bf16 %v10087_v12  ;;  %v1443_v45 = vsel %vm969_vm4, %v10040_v20, 0 }
 0x1dd   : > { %8435 = vmatprep.subr.bf16.mxu0 %v9359_v7  ;;  %8733 = vmatprep.subr.bf16.mxu1 %v12894_v3  ;;  %v9368_v7 = vld [vmem:[%s12973_s8 + $0x30] sm:$0xff]   ;;  %v1953_v41 = vsel %vm1493_vm5, %v1945_v11, %v9033_v30 }
 0x1de   : > { %8739 = vmatprep.mubr.msk.bf16.mxu1 %vm9466_vm1, %v12894_v3  ;;  %v1952_v40 = vsel %vm1493_vm5, %v1944_v60, %v9032_v43  ;;  %v10176_v12 = vpop.permute.xlu0 %9075 }
 0x1e0   : > { %8436 = vmatpush3.bf16.msra.mxu0 %v9360_v50  ;;  %v1925_v50 = vsel %vm1493_vm5, %v1917_v57, %v9007_v61  ;;  %v9063_v61 = vunpack.i.h.bf16 %v10110_v33  ;;  %v1960_v57 = vsel %vm1933_vm6, %v1952_v40, %v9042_v0 }
 0x1e1   : > { %8437 = vmatprep.subr.bf16.mxu0 %v9361_v49  ;;  %v1926_v49 = vsel %vm1493_vm5, %v1918_v56, %v9008_v51  ;;  %v9038_v51 = vunpack.i.h.bf16 %v10062_v55  ;;  %v9062_v56 = vunpack.i.l.bf16 %v10110_v33 }
 0x1e2   : > { %v1935_v52 = vsel %vm1933_vm6, %v1926_v49, %v9018_v4  ;;  %v9072_v4 = vunpack.i.l.bf16 %v10128_v44  ;;  %v9086_v60 = vpop.permute.xlu0 %9085  ;;  %v9057_v49 = vunpack.i.l.bf16 %v10121_v39 }
 0x1e4   : > { %8734 = vmatpush3.bf16.xpose.msra.mxu1 %v1437_v34  ;;  %8438 = vmatpush3.bf16.msra.mxu0 %v9362_v54  ;;  %v9028_v54 = vunpack.i.h.bf16 %v10046_v35  ;;  %v9053_v34 = vunpack.i.h.bf16 %v10094_v23  ;;  %v1934_v35 = vsel %vm1933_vm6, %v1925_v50, %v9017_v1  ;;  %v9058_v50 = vunpack.i.h.bf16 %v10121_v39 }
 0x1e5   : > { %8439 = vmatprep.subr.bf16.mxu0 %v9363_v29  ;;  %8735 = vmatprep.subr.bf16.mxu1 %v12894_v3  ;;  %v10162_v29 = vpop.permute.xlu1 %9080  ;;  %v1966_v43 = vpack.c.bf16 %v1935_v52, %v1934_v35  ;;  %v9068_v35 = vunpack.i.h.bf16 %v10141_v62 }
 0x1e6   : > { %v1920_v46 = vsel %vm816_vm0, %v9872_v59, %v9028_v54  ;;  %v1947_v30 = vsel %vm816_vm0, %v9939_v27, %v9053_v34  ;;  %v9082_v11 = vunpack.i.l.bf16 %v10162_v29 }
 0x1e7   : > { %v1928_v27 = vsel %vm1493_vm5, %v1920_v46, %v9038_v51  ;;  %v1921_v46 = vsel %vm816_vm0, %v9898_v8, %v9057_v49  ;;  %v1971_v8 = vpack.c.bf16 %v9922_v21, %v9892_v6 }
 0x1e8   : > { %8440 = vmatpush3.bf16.msra.mxu0 %v9364_v36  ;;  %v9052_v36 = vunpack.i.l.bf16 %v10094_v23  ;;  %v9371_v23 = vld [vmem:[%s12973_s8 + $0x80] sm:$0xff]   ;;  %v1948_v52 = vsel %vm816_vm0, %v9941_v28, %v9082_v11  ;;  %v9078_v28 = vunpack.i.h.bf16 %v10176_v12 }
 0x1e9   : > { %8441 = vmatprep.subr.bf16.mxu0 %v9365_v37  ;;  %v9370_v37 = vld [vmem:[%s12973_s8 + $0x38] sm:$0xff]   ;;  %v9091_v59 = vpop.permute.xlu1 %9090 }
 0x1ea   : > { %v1946_v20 = vsel %vm816_vm0, %v9913_v16, %v9052_v36  ;;  %v9083_v16 = vunpack.i.h.bf16 %v10162_v29  ;;  %v9372_v29 = vld [vmem:[%s12973_s8 + $0x88] sm:$0xff]   ;;  %v9093_v36 = vunpack.i.h.bf16 %v9091_v59  ;;  %s13054_s8 = smov 16  }
 0x1ec   : > { %8736 = vmatpush3.bf16.xpose.msra.mxu1 %v1440_v47  ;;  %8442 = vmatpush3.bf16.msra.mxu0 %v9366_v42  ;;  %v9037_v42 = vunpack.i.l.bf16 %v10062_v55  ;;  %v1961_v47 = vsel %vm1933_vm6, %v1953_v41, %v9043_v15  ;;  %v9047_v55 = vunpack.i.l.bf16 %v10075_v2 }
 0x1ed   : > { %8443 = vmatprep.subr.bf16.mxu0 %v9367_v48  ;;  %8737 = vmatprep.subr.bf16.mxu1 %v12894_v3  ;;  %v1919_v48 = vsel %vm816_vm0, %v9870_v58, %v9027_v17  ;;  %v9048_v58 = vunpack.i.h.bf16 %v10075_v2  ;;  %v1970_v1 = vpack.c.bf16 %v1961_v47, %v1960_v57  ;;  %v1955_v2 = vsel %vm1493_vm5, %v1947_v30, %v9063_v61  ;;  %v9101_v41 = vpop.permute.xlu1 %9100 }
 0x1ee   : > { %v1927_v33 = vsel %vm1493_vm5, %v1919_v48, %v9037_v42  ;;  %v9103_v51 = vunpack.i.h.bf16 %v9101_v41  ;;  %v9102_v61 = vunpack.i.l.bf16 %v9101_v41  ;;  %v9088_v47 = vunpack.i.h.bf16 %v9086_v60 }
 0x1ef   : > { %v1936_v15 = vsel %vm1933_vm6, %v1927_v33, %v9047_v55  ;;  %v1937_v0 = vsel %vm1933_vm6, %v1928_v27, %v9048_v58  ;;  %v9087_v30 = vunpack.i.l.bf16 %v9086_v60 }
 0x1f0   : > { %8444 = vmatpush3.bf16.msra.mxu0 %v9368_v7  ;;  %v9073_v7 = vunpack.i.h.bf16 %v10128_v44  ;;  %v1968_v44 = vpack.c.bf16 %v9890_v5, %v9861_v53  ;;  %v9067_v53 = vunpack.i.l.bf16 %v10141_v62  ;;  %v1949_v5 = vsel %vm816_vm0, %v9961_v38, %v9083_v16  ;;  %v9096_v62 = vpop.permute.xlu0 %9095 }
 0x1f1   : > { %8445 = vmatprep.subr.bf16.mxu0 %v9369_v63  ;;  %v1954_v63 = vsel %vm1493_vm5, %v1946_v20, %v9062_v56  ;;  %v1969_v48 = vpack.c.bf16 %v1937_v0, %v1936_v15  ;;  %v9077_v56 = vunpack.i.l.bf16 %v10176_v12  ;;  %v1974_v20 = vpack.c.bf16 %v9949_v31, %v9924_v22  ;;  %v1724_v31 = vld [vmem:[#allocation2 + $0x92] sm:$0xff]  ;;  %v2292_v0 = vld [vmem:[%s12872_s22] sm:$0xff] }
 0x1f2   : > { %v1962_v39 = vsel %vm1933_vm6, %v1954_v63, %v9072_v4  ;;  %v1963_v40 = vsel %vm1933_vm6, %v1955_v2, %v9073_v7  ;;  %v9098_v6 = vunpack.i.h.bf16 %v9096_v62  ;;  %v9097_v21 = vunpack.i.l.bf16 %v9096_v62 }
 0x1f3   : > { %v1973_v38 = vpack.c.bf16 %v1963_v40, %v1962_v39  ;;  %v1924_v33 = vsel %vm816_vm0, %v9932_v25, %v9088_v47  ;;  %v1923_v7 = vsel %vm816_vm0, %v9930_v24, %v9087_v30  ;;  %v1977_v16 = vpack.c.bf16 %v1724_v31, %v9951_v32  ;;  %v2294_v39 = vld [vmem:[%s12872_s22 + $0x10] sm:$0xff]  ;;  %v2295_v40 = vld [vmem:[%s12872_s22 + $0x18] sm:$0xff] }
 0x1f4   : > { %8738 = vmatpush3.bf16.xpose.msra.mxu1 %v1443_v45  ;;  %8446 = vmatpush3.bf16.msra.mxu0 %v9370_v37  ;;  %v9092_v37 = vunpack.i.l.bf16 %v9091_v59  ;;  %v1922_v45 = vsel %vm816_vm0, %v9900_v10, %v9058_v50  ;;  %v1957_v10 = vsel %vm1493_vm5, %v1949_v5, %v9093_v36  ;;  %v1931_v11 = vsel %vm1493_vm5, %v1923_v7, %v9097_v21 }
 0x1f5   : > { %8743 = vmatprep.subr.bf16.mxu1 %v9371_v23  ;;  %v1930_v57 = vsel %vm1493_vm5, %v1922_v45, %v9068_v35  ;;  %v1965_v59 = vsel %vm1933_vm6, %v1957_v10, %v9103_v51  ;;  %v1932_v60 = vsel %vm1493_vm5, %v1924_v33, %v9098_v6  ;;  %v10281_v41 = vpack.c.bf16 %v2295_v40, %v2294_v39 }
 0x1f6   : > { %v1939_v55 = vsel %vm1933_vm6, %v1930_v57, %v9078_v28 }
 0x1f7   : > { %2174 = vmatmul.mubr.bf16.vlgmr.msra.gmra.mrb[20].mxu0 %v1966_v43  ;;  %v9106_v43 = vpop.permute.xlu0 %9105 }
 0x1f8   : > { %v10208_v54 = vpop.f32.mrb[4].mxu0  ;;  %2181 = vmatprep.mubr.bf16.mxu0 %v1970_v1  ;;  %v9108_v1 = vunpack.i.h.bf16 %v9106_v43  ;;  %v9107_v27 = vunpack.i.l.bf16 %v9106_v43  ;;  %v8278_v43 = vld [vmem:[%s12974_s28] ss:$0 sm:$0xff]  ;;  %s12905_s28 = smov 88  }
 0x1f9   : > { %v8657_v17 = vpop.f32.mrb[5].mxu0 }
 0x1fa   : > { %v1022_v34 = vpop.f32.mrb[6].mxu0  ;;  %v1940_v25 = vsel %vm1933_vm6, %v1931_v11, %v9107_v27  ;;  %v1941_v63 = vsel %vm1933_vm6, %v1932_v60, %v9108_v1 }
 0x1fb   : > { %v8658_v42 = vpop.f32.mrb[7].mxu0  ;;  %8740 = vmatmul.mubr.msk.bf16.vlgmr.msra.gmra.mrb[20].mxu1 %vm969_vm4, %v10105_v26  ;;  %v1956_v26 = vsel %vm1493_vm5, %v1948_v52, %v9092_v37  ;;  %v1975_v24 = vpack.c.bf16 %v1941_v63, %v1940_v25  ;;  %v2293_v34 = vld [vmem:[%s12872_s22 + $0x8] sm:$0xff]  ;;  %v12893_v37 = vmov 0.0|0.0   ;;  %vm5677_vm4 = vcmask 457728  }
 0x1fc   : > { %8744 = vmatpush3.bf16.msra.mxu1 %v9371_v23  ;;  %8747 = vmatprep.mubr.msk.bf16.mxu1 %vm816_vm0, %v1968_v44  ;;  %v1929_v23 = vsel %vm1493_vm5, %v1921_v46, %v9067_v53  ;;  %v1964_v12 = vsel %vm1933_vm6, %v1956_v26, %v9102_v61  ;;  %v10270_v36 = vpack.c.bf16 %v2293_v34, %v2292_v0 }
 0x1fd   : > { %8745 = vmatprep.subr.bf16.mxu1 %v9372_v29  ;;  %v1938_v58 = vsel %vm1933_vm6, %v1929_v23, %v9077_v56  ;;  %v1976_v22 = vpack.c.bf16 %v1965_v59, %v1964_v12 }
 0x1fe   : > { %v1972_v4 = vpack.c.bf16 %v1939_v55, %v1938_v58 }
 0x1ff   : > { %2182 = vmatmul.mubr.bf16.gmra.mrb[24].mxu0 %v1969_v48 }
 0x200   : > { %2189 = vmatprep.mubr.bf16.mxu0 %v1973_v38  ;;  %8746 = vmatpush3.bf16.msra.mxu1 %v9372_v29 }
 0x201   : > { %8912 = vmatprep.subr.bf16.mxu1 %v12893_v37 }
 0x203   : > { %8748 = vmatmul.mubr.msk.bf16.vlgmr.msra.gmra.mrb[24].mxu1 %vm816_vm0, %v1971_v8 }
 0x204   : > { %8751 = vmatprep.mubr.msk.bf16.mxu1 %vm816_vm0, %v1974_v20  ;;  %8914 = vmatpush3.bf16.msra.mxu1 %v10270_v36 }
 0x205   : > { %8915 = vmatprep.subr.bf16.mxu1 %v12893_v37 }
 0x207   : > { %2190 = vmatmul.mubr.bf16.gmra.mrb[28].mxu0 %v1972_v4 }
 0x208   : > { %2197 = vmatprep.mubr.bf16.mxu0 %v1976_v22  ;;  %8917 = vmatpush3.bf16.msra.mxu1 %v10281_v41 }
 0x209   : > { %8766 = vmatprep.subr.mxu1 %v12894_v3 }
 0x20b   : > { %8752 = vmatmul.mubr.msk.bf16.gmra.mrb[28].mxu1 %vm816_vm0, %v1977_v16 }
 0x20c   : > { %8763 = vmatprep.mubr.msk.f32.mxu1 %vm9466_vm1, %v12894_v3 }
 0x20f   : > { %2198 = vmatmul.mubr.bf16.gmra.mrb[32].mxu0 %v1975_v24 }
 0x26a   : > { %v10260_v2 = vpop.f32.mrb[8].mxu0 }
 0x26b   : > { %v8681_v50 = vpop.f32.mrb[9].mxu0 }
 0x26c   : > { %v1157_v32 = vpop.f32.mrb[10].mxu0 }
 0x26d   : > { %v8682_v49 = vpop.f32.mrb[11].mxu0 }
 0x26e   : > { %v10262_v44 = vpop.f32.mrb[8].mxu1 }
 0x26f   : > { %v8669_v17 = vpop.f32.mrb[9].mxu1 }
 0x270   : > { %v1092_v29 = vpop.f32.mrb[10].mxu1 }
 0x271   : > { %v8670_v15 = vpop.f32.mrb[11].mxu1 }
 0x28a   : > { %v10285_v35 = vpop.f32.mrb[12].mxu0 }
 0x28b   : > { %v8705_v53 = vpop.f32.mrb[13].mxu0 }
 0x28c   : > { %v1287_v5 = vpop.f32.mrb[14].mxu0 }
 0x28d   : > { %v8706_v52 = vpop.f32.mrb[15].mxu0 }
 0x28e   : > { %v10287_v42 = vpop.f32.mrb[12].mxu1 }
 0x28f   : > { %v8693_v45 = vpop.f32.mrb[13].mxu1 }
 0x290   : > { %v1222_v46 = vpop.f32.mrb[14].mxu1 }
 0x291   : > { %v8694_v62 = vpop.f32.mrb[15].mxu1 }
 0x2aa   : > { %v10289_v48 = vpop.f32.mrb[16].mxu0 }
 0x2ab   : > { %v8729_v38 = vpop.f32.mrb[17].mxu0 }
 0x2ac   : > { %v1417_v51 = vpop.f32.mrb[18].mxu0 }
 0x2ad   : > { %v8730_v61 = vpop.f32.mrb[19].mxu0 }
 0x2ae   : > { %v10291_v28 = vpop.f32.mrb[16].mxu1 }
 0x2af   : > { %v8717_v56 = vpop.f32.mrb[17].mxu1 }
 0x2b0   : > { %v1352_v26 = vpop.f32.mrb[18].mxu1 }
 0x2b1   : > { %v8718_v10 = vpop.f32.mrb[19].mxu1 }
 0x2ca   : > { %v8447_v8 = vpop.f32.mrb[20].mxu0 }
 0x2cb   : > { %v8448_v23 = vpop.f32.mrb[21].mxu0 }
 0x2cc   : > { %v8449_v57 = vadd.f32 %v8448_v23, %v8447_v8  ;;  %v8450_v47 = vpop.f32.mrb[22].mxu0 }
 0x2cd   : > { %v8451_v30 = vpop.f32.mrb[23].mxu0 }
 0x2ce   : > { %v8452_v20 = vadd.f32 %v8451_v30, %v8450_v47  ;;  %v10293_v12 = vpop.f32.mrb[20].mxu1  ;;  %v2176_v27 = vadd.f32 %v8449_v57, %v8278_v43 }
 0x2cf   : > { %v8741_v59 = vpop.f32.mrb[21].mxu1 }
 0x2d0   : > { %v1482_v58 = vpop.f32.mrb[22].mxu1  ;;  %v2179_v24 = vadd.f32 %v8452_v20, %v8278_v43 }
 0x2d1   : > { %v8742_v55 = vpop.f32.mrb[23].mxu1 }
 0x2d2   : > { %v8453_v6 = vpop.f32.mrb[24].mxu0 }
 0x2d3   : > { %v8454_v21 = vpop.f32.mrb[25].mxu0 }
 0x2d4   : > { %v8455_v33 = vadd.f32 %v8454_v21, %v8453_v6  ;;  %v8456_v7 = vpop.f32.mrb[26].mxu0 }
 0x2d5   : > { %v8457_v22 = vpop.f32.mrb[27].mxu0 }
 0x2d6   : > { %v8458_v31 = vadd.f32 %v8457_v22, %v8456_v7  ;;  %v2184_v4 = vadd.f32 %v8455_v33, %v8278_v43  ;;  %v8749_v1 = vpop.f32.mrb[24].mxu1 }
 0x2d7   : > { %v2240_v16 = vpop.f32.mrb[25].mxu1 }
 0x2d8   : > { %v10298_v11 = vadd.f32 %v8749_v1, %v2184_v4  ;;  %v10300_v60 = vadd.f32 %v2240_v16, %v2176_v27  ;;  %v2187_v25 = vadd.f32 %v8458_v31, %v8278_v43  ;;  %v8750_v63 = vpop.f32.mrb[26].mxu1 }
 0x2d9   : > { %v2243_v50 = vpop.f32.mrb[27].mxu1 }
 0x2da   : > { %v10302_v32 = vadd.f32 %v8750_v63, %v2187_v25  ;;  %v10304_v49 = vadd.f32 %v2243_v50, %v2179_v24  ;;  %v8459_v17 = vpop.f32.mrb[28].mxu0  ;;  %v2271_v15 = vsel %vm816_vm0, %v10300_v60, 0.0  ;;  %v2274_v5 = vsel %vm816_vm0, %v10298_v11, 0.0 }
 0x2db   : > { %v8460_v29 = vpop.f32.mrb[29].mxu0 }
 0x2dc   : > { %v2272_v0 = vsel %vm816_vm0, %v10304_v49, 0.0  ;;  %v8461_v34 = vadd.f32 %v8460_v29, %v8459_v17  ;;  %v8462_v39 = vpop.f32.mrb[30].mxu0  ;;  %v2276_v51 = vsel %vm816_vm0, %v10302_v32, 0.0 }
 0x2dd   : > { %v2273_v40 = vadd.f32 %v2272_v0, %v2271_v15  ;;  %v8463_v53 = vpop.f32.mrb[31].mxu0  ;;  %v2370_v0 = vld [vmem:[%s12873_s23] sm:$0xff] }
 0x2de   : > { %v8464_v52 = vadd.f32 %v8463_v53, %v8462_v39  ;;  %v8753_v45 = vpop.f32.mrb[28].mxu1  ;;  %v2192_v46 = vadd.f32 %v8461_v34, %v8278_v43 }
 0x2df   : > { %v2275_v62 = vadd.f32 %v2274_v5, %v2273_v40  ;;  %v2256_v38 = vpop.f32.mrb[29].mxu1  ;;  %v2445_v40 = vlaneseq }
 0x2e0   : > { %v2257_v61 = vadd.f32 %v2256_v38, %v2192_v46  ;;  %v8754_v56 = vpop.f32.mrb[30].mxu1  ;;  %v2195_v26 = vadd.f32 %v8464_v52, %v8278_v43 }
 0x2e1   : > { %v2277_v10 = vadd.f32 %v2276_v51, %v2275_v62  ;;  %v2259_v8 = vpop.f32.mrb[31].mxu1  ;;  %v10332_v53 = vshrl.u32 %v2445_v40, 7  ;;  %v9373_v40 = vld [vmem:[%s12976_s10 + $0x80] sm:$0xff]  }
 0x2e2   : > { %v2278_v23 = vsel %vm816_vm0, %v2257_v61, 0.0  ;;  %v2260_v57 = vadd.f32 %v2259_v8, %v2195_v26  ;;  %v8465_v47 = vpop.f32.mrb[32].mxu0 }
 0x2e3   : > { %v8466_v30 = vpop.f32.mrb[33].mxu0  ;;  %v2279_v58 = vadd.f32 %v2278_v23, %v2277_v10  ;;  %v10335_v5 = vsub.s32 0, %v10332_v53 }
 0x2e4   : > { %v8467_v20 = vadd.f32 %v8466_v30, %v8465_v47  ;;  %v8468_v59 = vpop.f32.mrb[34].mxu0  ;;  %v2280_v6 = vsel %vm816_vm0, %v2260_v57, 0.0 }
 0x2e5   : > { %v8469_v55 = vpop.f32.mrb[35].mxu0  ;;  %v2281_v31 = vadd.f32 %v2280_v6, %v2279_v58  ;;  %12975 = vst [vmem:[#allocation8_spill] sm:$0xff] %v10335_v5 }
 0x2e6   : > { %v2200_v21 = vadd.f32 %v8467_v20, %v8278_v43  ;;  %v8470_v33 = vadd.f32 %v8469_v55, %v8468_v59 }
 0x2e8   : > { %v2265_v7 = vadd.f32 %v8753_v45, %v2200_v21  ;;  %v2203_v22 = vadd.f32 %v8470_v33, %v8278_v43 }
 0x2ea   : > { %v2282_v4 = vsel %vm816_vm0, %v2265_v7, 0.0  ;;  %v2268_v1 = vadd.f32 %v8754_v56, %v2203_v22 }
 0x2eb   : > { %v2283_v27 = vadd.f32 %v2282_v4, %v2281_v31 }
 0x2ec   : > { %v2284_v16 = vsel %vm816_vm0, %v2268_v1, 0.0 }
 0x2ed   : > { %v2285_v25 = vadd.f32 %v2284_v16, %v2283_v27 }
 0x2ef   : > { %v2286_v63 = vrot.slane %v2285_v25, 4 }
 0x2f1   : > { %v2287_v24 = vadd.f32 %v2286_v63, %v2285_v25 }
 0x2f3   : > { %v2288_v50 = vrot.slane %v2287_v24, 2 }
 0x2f5   : > { %v2289_v17 = vadd.f32 %v2288_v50, %v2287_v24 }
 0x2f7   : > { %v2290_v29 = vrot.slane %v2289_v17, 1 }
 0x2f9   : > { %v2291_v15 = vadd.f32 %v2290_v29, %v2289_v17 }
 0x2fb   : > { %8764 = vmatmul.mubr.msk.f32.vlgmr.msra.gmra.mrb[32].mxu1 %vm816_vm0, %v2291_v15 }
 0x2fc   : > { %8767 = vmatpush3.msra.mxu1 %v2370_v0  ;;  %8768 = vmatprep.mubr.msk.f32.mxu1 %vm9466_vm1, %v12894_v3 }
 0x2fd   : > { %8918 = vmatprep.subr.bf16.mxu1 %v12893_v37 }
 0x3ce   : > { %v2365_v43 = vpop.f32.mrb[32].mxu1 }
 0x3cf   : > { %v2369_v34 = vmul.f32 0.00390625, %v2365_v43  ;;  %v8765_v39 = vpop.f32.mrb[33].mxu1 }
 0x3d1   : > { %8769 = vmatmul.mubr.msk.f32.vlgmr.msra.gmra.mrb[34].mxu1 %vm2371_vm7, %v2369_v34 }
 0x3d2   : > { %8920 = vmatpush3.bf16.msra.mxu1 %v10270_v36  ;;  %8779 = vmatprep.mubr.msk.f32.mxu1 %vm9466_vm1, %v12894_v3 }
 0x3d3   : > { %8921 = vmatprep.subr.bf16.mxu1 %v12893_v37 }
 0x3d6   : > { %8923 = vmatpush3.bf16.msra.mxu1 %v10281_v41 }
 0x3d7   : > { %8782 = vmatprep.subr.mxu1 %v12894_v3 }
 0x4a4   : > { %v2441_v52 = vpop.f32.mrb[34].mxu1 }
 0x4a5   : > { %v2448_v45 = vrot.slane %v2441_v52, %v10335_v5  ;;  %v8770_v46 = vpop.f32.mrb[35].mxu1  ;;  %v9374_v52 = vld [vmem:[%s12976_s10 + $0x88] sm:$0xff]  }
 0x4a6   : > { %v9377_v46 = vld [vmem:[%s12976_s10 + $0x48] sm:$0xff]  }
 0x4a7   : > { %v10339_v36 = vsub.f32 %v10300_v60, %v2448_v45  ;;  %v10342_v62 = vsub.f32 %v10304_v49, %v2448_v45  ;;  %v10345_v41 = vsub.f32 %v10298_v11, %v2448_v45  ;;  %v10348_v38 = vsub.f32 %v10302_v32, %v2448_v45 }
 0x4a8   : > { %v10350_v51 = vsub.f32 %v2257_v61, %v2448_v45  ;;  %v10358_v10 = vsub.f32 %v2260_v57, %v2448_v45  ;;  %v10364_v8 = vsub.f32 %v2265_v7, %v2448_v45  ;;  %v10369_v20 = vsub.f32 %v2268_v1, %v2448_v45  ;;  %v9376_v45 = vld [vmem:[%s12976_s10] sm:$0xff]  }
 0x4a9   : > { %v2457_v56 = vmul.f32 %v10339_v36, %v10339_v36  ;;  %v2458_v26 = vmul.f32 %v10342_v62, %v10342_v62  ;;  %v2459_v60 = vmul.f32 %v10345_v41, %v10345_v41  ;;  %v2460_v11 = vmul.f32 %v10348_v38, %v10348_v38 }
 0x4aa   : > { %v2461_v23 = vmul.f32 %v10350_v51, %v10350_v51  ;;  %v2462_v57 = vmul.f32 %v10358_v10, %v10358_v10  ;;  %v2463_v55 = vmul.f32 %v10364_v8, %v10364_v8  ;;  %v2464_v33 = vmul.f32 %v10369_v20, %v10369_v20 }
 0x4ab   : > { %v2465_v49 = vsel %vm816_vm0, %v2457_v56, 0.0  ;;  %v2466_v32 = vsel %vm816_vm0, %v2458_v26, 0.0  ;;  %v2468_v47 = vsel %vm816_vm0, %v2459_v60, 0.0  ;;  %v2470_v59 = vsel %vm816_vm0, %v2460_v11, 0.0  ;;  %v9378_v56 = vld [vmem:[%s12976_s10 + $0x8] sm:$0xff]   ;;  %v9379_v26 = vld [vmem:[%s12976_s10 + $0x50] sm:$0xff]  }
 0x4ac   : > { %v2467_v61 = vadd.f32 %v2466_v32, %v2465_v49  ;;  %v2472_v6 = vsel %vm816_vm0, %v2461_v23, 0.0  ;;  %v2474_v7 = vsel %vm816_vm0, %v2462_v57, 0.0  ;;  %v2476_v31 = vsel %vm816_vm0, %v2463_v55, 0.0  ;;  %v9380_v60 = vld [vmem:[%s12976_s10 + $0x10] sm:$0xff]   ;;  %v9381_v11 = vld [vmem:[%s12976_s10 + $0x58] sm:$0xff]   ;;  %v9383_v32 = vld [vmem:[%s12976_s10 + $0x60] sm:$0xff]  }
 0x4ad   : > { %v2478_v1 = vsel %vm816_vm0, %v2464_v33, 0.0  ;;  %v9382_v49 = vld [vmem:[%s12976_s10 + $0x18] sm:$0xff]   ;;  %v8305_v57 = vld [vmem:[%s12977_s1] ss:$0 sm:$0xff]  ;;  %s12983_s1 = smov 32  }
 0x4ae   : > { %v2469_v30 = vadd.f32 %v2468_v47, %v2467_v61  ;;  %v9384_v61 = vld [vmem:[%s12976_s10 + $0x20] sm:$0xff]  }
 0x4b0   : > { %v2471_v58 = vadd.f32 %v2470_v59, %v2469_v30 }
 0x4b2   : > { %v2473_v21 = vadd.f32 %v2472_v6, %v2471_v58 }
 0x4b4   : > { %v2475_v22 = vadd.f32 %v2474_v7, %v2473_v21 }
 0x4b6   : > { %v2477_v4 = vadd.f32 %v2476_v31, %v2475_v22  ;;  %v8306_v31 = vld [vmem:[%s12978_s0] ss:$0 sm:$0xff]  ;;  %s12939_s0 = smov 24  }
 0x4b8   : > { %v2479_v27 = vadd.f32 %v2478_v1, %v2477_v4 }
 0x4ba   : > { %v2480_v16 = vrot.slane %v2479_v27, 4 }
 0x4bc   : > { %v2481_v25 = vadd.f32 %v2480_v16, %v2479_v27 }
 0x4be   : > { %v2482_v63 = vrot.slane %v2481_v25, 2 }
 0x4c0   : > { %v2483_v24 = vadd.f32 %v2482_v63, %v2481_v25 }
 0x4c2   : > { %v2484_v50 = vrot.slane %v2483_v24, 1 }
 0x4c4   : > { %v2485_v17 = vadd.f32 %v2484_v50, %v2483_v24 }
 0x4c6   : > { %8780 = vmatmul.mubr.msk.f32.vlgmr.msra.gmra.mrb[36].mxu1 %vm816_vm0, %v2485_v17 }
 0x4c7   : > { %8783 = vmatpush3.msra.mxu1 %v2370_v0  ;;  %8784 = vmatprep.mubr.msk.f32.mxu1 %vm9466_vm1, %v12894_v3  ;;  %v9375_v0 = vld [vmem:[%s12976_s10 + $0x40] sm:$0xff]  }
 0x4c8   : > { %8787 = vmatprep.subr.bf16.mxu1 %v9373_v40  ;;  %8491 = vmatprep.subr.bf16.mxu0 %v9375_v0  ;;  %v9385_v0 = vld [vmem:[%s12976_s10 + $0x68] sm:$0xff]  }
 0x4c9   : > { %8492 = vmatpush3.bf16.msra.mxu0 %v9376_v45  ;;  %v9386_v45 = vld [vmem:[%s12976_s10 + $0x28] sm:$0xff]  }
 0x4ca   : > { %8493 = vmatprep.subr.bf16.mxu0 %v9377_v46  ;;  %v9387_v46 = vld [vmem:[%s12976_s10 + $0x70] sm:$0xff]  }
 0x4cd   : > { %8494 = vmatpush3.bf16.msra.mxu0 %v9378_v56  ;;  %v9388_v56 = vld [vmem:[%s12976_s10 + $0x30] sm:$0xff]  }
 0x4ce   : > { %8495 = vmatprep.subr.bf16.mxu0 %v9379_v26  ;;  %v2702_v26 = vld [vmem:[#allocation3 + $0x1] sm:$0xff] }
 0x4d1   : > { %8496 = vmatpush3.bf16.msra.mxu0 %v9380_v60 }
 0x4d2   : > { %8497 = vmatprep.subr.bf16.mxu0 %v9381_v11 }
 0x4d5   : > { %8498 = vmatpush3.bf16.msra.mxu0 %v9382_v49 }
 0x4d6   : > { %8499 = vmatprep.subr.bf16.mxu0 %v9383_v32 }
 0x4d9   : > { %8500 = vmatpush3.bf16.msra.mxu0 %v9384_v61 }
 0x4da   : > { %8501 = vmatprep.subr.bf16.mxu0 %v9385_v0 }
 0x4dd   : > { %8502 = vmatpush3.bf16.msra.mxu0 %v9386_v45 }
 0x4de   : > { %8503 = vmatprep.subr.bf16.mxu0 %v9387_v46 }
 0x4e1   : > { %8504 = vmatpush3.bf16.msra.mxu0 %v9388_v56 }
 0x599   : > { %v2555_v29 = vpop.f32.mrb[36].mxu1 }
 0x59a   : > { %v2559_v15 = vmul.f32 0.00390625, %v2555_v29  ;;  %v8781_v43 = vpop.f32.mrb[37].mxu1 }
 0x59c   : > { %v2560_v34 = vadd.f32 1e-05, %v2559_v15 }
 0x59e   : > { %9413 = vrsqrt.f32 %v2560_v34 }
 0x5a8   : > { %v9414_v39 = vpop.eup %9413 }
 0x5a9   : > { %8785 = vmatmul.mubr.msk.f32.vlgmr.msra.gmra.mrb[38].mxu1 %vm2371_vm7, %v9414_v39 }
 0x5aa   : > { %8788 = vmatpush3.bf16.msra.mxu1 %v9373_v40 }
 0x5ab   : > { %8789 = vmatprep.subr.bf16.mxu1 %v9374_v52 }
 0x5ae   : > { %8790 = vmatpush3.bf16.msra.mxu1 %v9374_v52 }
 0x5af   : > { %8924 = vmatprep.subr.bf16.mxu1 %v12893_v37 }
 0x67c   : > { %v2631_v23 = vpop.f32.mrb[38].mxu1 }
 0x67d   : > { %v2638_v47 = vrot.slane %v2631_v23, %v10335_v5  ;;  %v8786_v30 = vpop.f32.mrb[39].mxu1 }
 0x67f   : > { %v2639_v59 = vmul.f32 %v2638_v47, %v10339_v36  ;;  %v2640_v58 = vmul.f32 %v2638_v47, %v10342_v62  ;;  %v2641_v55 = vmul.f32 %v2638_v47, %v10345_v41  ;;  %v2642_v6 = vmul.f32 %v2638_v47, %v10348_v38 }
 0x680   : > { %v2643_v21 = vmul.f32 %v2638_v47, %v10350_v51  ;;  %v2644_v33 = vmul.f32 %v2638_v47, %v10358_v10  ;;  %v2645_v7 = vmul.f32 %v2638_v47, %v10364_v8  ;;  %v2646_v22 = vmul.f32 %v2638_v47, %v10369_v20 }
 0x681   : > { %v2654_v4 = vmul.f32 %v8305_v57, %v2639_v59  ;;  %v2655_v36 = vmul.f32 %v8305_v57, %v2640_v58  ;;  %v2656_v1 = vmul.f32 %v8305_v57, %v2641_v55  ;;  %v2657_v62 = vmul.f32 %v8305_v57, %v2642_v6 }
 0x682   : > { %v2658_v27 = vmul.f32 %v8305_v57, %v2643_v21  ;;  %v2659_v41 = vmul.f32 %v8305_v57, %v2644_v33  ;;  %v2660_v16 = vmul.f32 %v8305_v57, %v2645_v7  ;;  %v2661_v38 = vmul.f32 %v8305_v57, %v2646_v22  ;;  %v2710_v7 = vld [vmem:[#allocation3 + $0x2] sm:$0xff] }
 0x683   : > { %v2669_v25 = vadd.f32 %v8306_v31, %v2654_v4  ;;  %v2670_v51 = vadd.f32 %v8306_v31, %v2655_v36  ;;  %v2671_v63 = vadd.f32 %v8306_v31, %v2656_v1  ;;  %v2672_v10 = vadd.f32 %v8306_v31, %v2657_v62 }
 0x684   : > { %v2673_v24 = vadd.f32 %v8306_v31, %v2658_v27  ;;  %v2674_v8 = vadd.f32 %v8306_v31, %v2659_v41  ;;  %v2675_v50 = vadd.f32 %v8306_v31, %v2660_v16  ;;  %v2676_v20 = vadd.f32 %v8306_v31, %v2661_v38  ;;  %v2766_v27 = vld [vmem:[#allocation3 + $0x92] sm:$0xff] }
 0x685   : > { %v2677_v17 = vmax.f32 %v2669_v25, 0.0  ;;  %v2678_v29 = vmax.f32 %v2670_v51, 0.0  ;;  %v2679_v15 = vmax.f32 %v2671_v63, 0.0  ;;  %v2680_v43 = vmax.f32 %v2672_v10, 0.0  ;;  %v9389_v41 = vld [vmem:[%s12976_s10 + $0x78] sm:$0xff]  }
 0x686   : > { %v2681_v34 = vmax.f32 %v2673_v24, 0.0  ;;  %v2682_v39 = vmax.f32 %v2674_v8, 0.0  ;;  %v2683_v40 = vmax.f32 %v2675_v50, 0.0  ;;  %v2684_v52 = vmax.f32 %v2676_v20, 0.0  ;;  %v9390_v16 = vld [vmem:[%s12976_s10 + $0x38] sm:$0xff]   ;;  %8505 = vmatprep.subr.bf16.mxu0 %v9389_v41  ;;  %s13056_s10 = smov 80  }
 0x687   : > { %2687 = vst.msk [vmem:[#allocation3 + $0x21] sm:$0xff] %vm816_vm0, %v2678_v29  ;;  %2688 = vst.msk [vmem:[#allocation3 + $0x31] sm:$0xff] %vm816_vm0, %v2679_v15  ;;  %8506 = vmatpush3.bf16.msra.mxu0 %v9390_v16 }
 0x688   : > { %2689 = vst.msk [vmem:[#allocation3 + $0x41] sm:$0xff] %vm816_vm0, %v2680_v43  ;;  %2686 = vst.msk [vmem:[#allocation3 + $0x11] sm:$0xff] %vm816_vm0, %v2677_v17 }
 0x689   : > { %2690 = vst.msk [vmem:[#allocation3 + $0x51] sm:$0xff] %vm816_vm0, %v2681_v34  ;;  %2691 = vst.msk [vmem:[#allocation3 + $0x61] sm:$0xff] %vm816_vm0, %v2682_v39 }
 0x68a   : > { %2692 = vst.msk [vmem:[#allocation3 + $0x71] sm:$0xff] %vm816_vm0, %v2683_v40  ;;  %2693 = vst.msk [vmem:[#allocation3 + $0x81] sm:$0xff] %vm816_vm0, %v2684_v52 }
 0x68e   : > { %v2759_v60 = vld [vmem:[#allocation3 + $0x22] sm:$0xff]  ;;  %v2760_v11 = vld [vmem:[#allocation3 + $0x32] sm:$0xff] }
 0x68f   : > { %v2734_v49 = vld [vmem:[#allocation3 + $0x12] sm:$0xff]  ;;  %v3009_v32 = vpack.c.bf16 %v2760_v11, %v2759_v60  ;;  %v2761_v47 = vld [vmem:[#allocation3 + $0x42] sm:$0xff]  ;;  %v9154_v50 = vpack.i.bf16 %v2760_v11, %v2759_v60 }
 0x690   : > { %v9109_v61 = vpack.i.bf16 %v2759_v60, %v2734_v49  ;;  %v10458_v23 = vld [vmem:[#allocation3 + $0x11] sm:$0xff]  ;;  %v10461_v58 = vld [vmem:[#allocation3 + $0x62] sm:$0xff]  ;;  %v9124_v31 = vpack.i.bf16 %v2734_v49, %v2710_v7  ;;  %v9139_v63 = vpack.i.bf16 %v2761_v47, %v2760_v11 }
 0x691   : > { %v2762_v30 = vld [vmem:[#allocation3 + $0x52] sm:$0xff]  ;;  %v9114_v57 = vpack.i.bf16 %v10458_v23, %v2702_v26  ;;  %v10465_v6 = vld [vmem:[#allocation3 + $0x20] sm:$0xff]  ;;  %8791 = vmatprep.mubr.msk.bf16.mxu1 %vm816_vm0, %v3009_v32 }
 0x692   : > { %v3012_v59 = vpack.c.bf16 %v2762_v30, %v2761_v47  ;;  %v10463_v55 = vld [vmem:[#allocation3 + $0x72] sm:$0xff]  ;;  %9110 = vrot.lane.b32.xlu1 %v9109_v61, %s12890_s5  ;;  %v10478_v4 = vld [vmem:[#allocation3 + $0x21] sm:$0xff]  ;;  %v9169_v43 = vpack.i.bf16 %v10461_v58, %v2762_v30  ;;  %v9184_v52 = vpack.i.bf16 %v2762_v30, %v2761_v47 }
 0x693   : > { %v3015_v21 = vpack.c.bf16 %v10463_v55, %v10461_v58  ;;  %v10471_v33 = vld [vmem:[#allocation3 + $0x30] sm:$0xff]  ;;  %9115 = vrot.lane.b32.xlu0 %v9114_v57, %s12890_s5  ;;  %v2765_v62 = vld [vmem:[#allocation3 + $0x82] sm:$0xff]  ;;  %v9214_v32 = vpack.i.bf16 %v10463_v55, %v10461_v58 }
 0x694   : > { %8792 = vmatmul.mubr.msk.bf16.vlgmr.msra.gmra.mrb[40].mxu1 %vm816_vm0, %v3012_v59  ;;  %v9119_v22 = vpack.i.bf16 %v10471_v33, %v10465_v6  ;;  %v10480_v36 = vld [vmem:[#allocation3 + $0x31] sm:$0xff]  ;;  %v3018_v51 = vpack.c.bf16 %v2766_v27, %v2765_v62  ;;  %v10501_v10 = vld [vmem:[#allocation3 + $0x40] sm:$0xff]  ;;  %v9199_v26 = vpack.i.bf16 %v2765_v62, %v10463_v55 }
 0x695   : > { %8795 = vmatprep.mubr.msk.bf16.mxu1 %vm816_vm0, %v3015_v21  ;;  %v10483_v1 = vld [vmem:[#allocation3 + $0x10] sm:$0xff]  ;;  %v9129_v38 = vpack.i.bf16 %v10480_v36, %v10478_v4  ;;  %v10509_v20 = vld [vmem:[#allocation3 + $0x41] sm:$0xff]  ;;  %v9164_v15 = vpack.i.bf16 %v10501_v10, %v10471_v33 }
 0x696   : > { %9120 = vrot.lane.b32.xlu1 %v9119_v22, %s12979_s21  ;;  %v9134_v25 = vpack.i.bf16 %v10465_v6, %v10483_v1  ;;  %v10503_v24 = vld [vmem:[#allocation3 + $0x50] sm:$0xff]  ;;  %v10522_v34 = vld [vmem:[#allocation3 + $0x60] sm:$0xff] }
 0x697   : > { %9125 = vrot.lane.b32.xlu0 %v9124_v31, %s12979_s21  ;;  %v9149_v8 = vpack.i.bf16 %v10503_v24, %v10501_v10  ;;  %v10511_v17 = vld [vmem:[#allocation3 + $0x51] sm:$0xff]  ;;  %v10530_v0 = vld [vmem:[#allocation3 + $0x61] sm:$0xff]  ;;  %v9194_v56 = vpack.i.bf16 %v10522_v34, %v10503_v24 }
 0x698   : > { %v9159_v29 = vpack.i.bf16 %v10511_v17, %v10509_v20  ;;  %v10524_v39 = vld [vmem:[#allocation3 + $0x70] sm:$0xff]  ;;  %v2749_v60 = vld [vmem:[#allocation3 + $0x80] sm:$0xff] }
 0x699   : > { %v9179_v40 = vpack.i.bf16 %v10524_v39, %v10522_v34  ;;  %v10532_v45 = vld [vmem:[#allocation3 + $0x71] sm:$0xff]  ;;  %v10547_v61 = vld [vmem:[#allocation3 + $0x81] sm:$0xff]  ;;  %v9224_v57 = vpack.i.bf16 %v2749_v60, %v10524_v39 }
 0x69a   : > { %9130 = vrot.lane.b32.xlu1 %v9129_v38, %s12980_s7  ;;  %v9189_v46 = vpack.i.bf16 %v10532_v45, %v10530_v0  ;;  %v2750_v11 = vld [vmem:[#allocation3 + $0x90] sm:$0xff]  ;;  %v2694_v27 = vld [vmem:[#allocation3] sm:$0xff] }
 0x69b   : > { %9135 = vrot.lane.b32.xlu0 %v9134_v25, %s12980_s7  ;;  %v9209_v49 = vpack.i.bf16 %v2750_v11, %v2749_v60  ;;  %v2758_v47 = vld [vmem:[#allocation3 + $0x91] sm:$0xff] }
 0x69c   : > { %8796 = vmatmul.mubr.msk.bf16.gmra.mrb[44].mxu1 %vm816_vm0, %v3018_v51  ;;  %v9219_v30 = vpack.i.bf16 %v2758_v47, %v10547_v61 }
 0x69d   : > { %8807 = vmatprep.mubr.msk.f32.mxu1 %vm9466_vm1, %v12894_v3 }
 0x69e   : > { %9140 = vrot.lane.b32.xlu1 %v9139_v63, %s12890_s5 }
 0x69f   : > { %9145 = vrot.lane.b32.xlu0 %v9129_v38, %s12890_s5 }
 0x6a2   : > { %9150 = vrot.lane.b32.xlu1 %v9149_v8, %s12979_s21 }
 0x6a3   : > { %9155 = vrot.lane.b32.xlu0 %v9154_v50, %s12979_s21 }
 0x6a6   : > { %9160 = vrot.lane.b32.xlu1 %v9159_v29, %s12980_s7 }
 0x6a7   : > { %9165 = vrot.lane.b32.xlu0 %v9164_v15, %s12980_s7 }
 0x6aa   : > { %9170 = vrot.lane.b32.xlu1 %v9169_v43, %s12890_s5 }
 0x6ab   : > { %9175 = vrot.lane.b32.xlu0 %v9159_v29, %s12890_s5 }
 0x6ae   : > { %9180 = vrot.lane.b32.xlu1 %v9179_v40, %s12979_s21 }
 0x6af   : > { %9185 = vrot.lane.b32.xlu0 %v9184_v52, %s12979_s21 }
 0x6b2   : > { %9190 = vrot.lane.b32.xlu1 %v9189_v46, %s12980_s7 }
 0x6b3   : > { %9195 = vrot.lane.b32.xlu0 %v9194_v56, %s12980_s7 }
 0x6b6   : > { %9200 = vrot.lane.b32.xlu1 %v9199_v26, %s12890_s5 }
 0x6b7   : > { %9205 = vrot.lane.b32.xlu0 %v9189_v46, %s12890_s5  ;;  %s12903_s5 = smov 80  }
 0x6ba   : > { %9210 = vrot.lane.b32.xlu1 %v9209_v49, %s12979_s21 }
 0x6bb   : > { %9215 = vrot.lane.b32.xlu0 %v9214_v32, %s12979_s21 }
 0x6be   : > { %9220 = vrot.lane.b32.xlu1 %v9219_v30, %s12980_s7 }
 0x6bf   : > { %9225 = vrot.lane.b32.xlu0 %v9224_v57, %s12980_s7 }
 0x704   : > { %v9111_v59 = vpop.permute.xlu1 %9110 }
 0x705   : > { %v9116_v21 = vpop.permute.xlu0 %9115  ;;  %v9113_v7 = vunpack.i.h.bf16 %v9111_v59  ;;  %v9112_v22 = vunpack.i.l.bf16 %v9111_v59 }
 0x706   : > { %v9118_v55 = vunpack.i.h.bf16 %v9116_v21  ;;  %v9117_v31 = vunpack.i.l.bf16 %v9116_v21 }
 0x707   : > { %v2984_v51 = vsel %vm816_vm0, %v10478_v4, %v9113_v7  ;;  %v2983_v63 = vsel %vm816_vm0, %v10458_v23, %v9112_v22 }
 0x708   : > { %v9121_v58 = vpop.permute.xlu1 %9120  ;;  %v2959_v50 = vsel %vm816_vm0, %v2694_v27, %v9117_v31  ;;  %v2960_v29 = vsel %vm816_vm0, %v10483_v1, %v9118_v55 }
 0x709   : > { %v9126_v62 = vpop.permute.xlu0 %9125  ;;  %v9123_v41 = vunpack.i.h.bf16 %v9121_v58  ;;  %v9122_v16 = vunpack.i.l.bf16 %v9121_v58 }
 0x70a   : > { %v9128_v38 = vunpack.i.h.bf16 %v9126_v62  ;;  %v9127_v25 = vunpack.i.l.bf16 %v9126_v62 }
 0x70b   : > { %v2991_v56 = vsel %vm1493_vm5, %v2983_v63, %v9122_v16  ;;  %v2992_v26 = vsel %vm1493_vm5, %v2984_v51, %v9123_v41 }
 0x70c   : > { %v9131_v8 = vpop.permute.xlu1 %9130  ;;  %v2967_v4 = vsel %vm1493_vm5, %v2959_v50, %v9127_v25  ;;  %v2968_v60 = vsel %vm1493_vm5, %v2960_v29, %v9128_v38 }
 0x70d   : > { %v9133_v15 = vunpack.i.h.bf16 %v9131_v8  ;;  %v9132_v43 = vunpack.i.l.bf16 %v9131_v8  ;;  %v9136_v40 = vpop.permute.xlu0 %9135 }
 0x70e   : > { %v9138_v52 = vunpack.i.h.bf16 %v9136_v40  ;;  %v9137_v46 = vunpack.i.l.bf16 %v9136_v40 }
 0x70f   : > { %v2999_v23 = vsel %vm1933_vm6, %v2991_v56, %v9132_v43  ;;  %v3000_v11 = vsel %vm1933_vm6, %v2992_v26, %v9133_v15 }
 0x710   : > { %v2975_v49 = vsel %vm1933_vm6, %v2967_v4, %v9137_v46  ;;  %v2976_v1 = vsel %vm1933_vm6, %v2968_v60, %v9138_v52  ;;  %v9141_v32 = vpop.permute.xlu1 %9140  ;;  %v3008_v47 = vpack.c.bf16 %v3000_v11, %v2999_v23 }
 0x711   : > { %v3007_v30 = vpack.c.bf16 %v2976_v1, %v2975_v49  ;;  %v9146_v57 = vpop.permute.xlu0 %9145  ;;  %v9143_v59 = vunpack.i.h.bf16 %v9141_v32  ;;  %v9142_v21 = vunpack.i.l.bf16 %v9141_v32 }
 0x712   : > { %3214 = vmatprep.mubr.bf16.mxu0 %v3008_v47  ;;  %v9148_v22 = vunpack.i.h.bf16 %v9146_v57  ;;  %v9147_v58 = vunpack.i.l.bf16 %v9146_v57 }
 0x713   : > { %3215 = vmatmul.mubr.bf16.vlgmr.msra.gmra.mrb[36].mxu0 %v3007_v30  ;;  %v2986_v16 = vsel %vm816_vm0, %v10509_v20, %v9143_v59  ;;  %v2985_v38 = vsel %vm816_vm0, %v10480_v36, %v9142_v21 }
 0x714   : > { %v9151_v7 = vpop.permute.xlu1 %9150  ;;  %v2962_v51 = vsel %vm816_vm0, %v10471_v33, %v9148_v22  ;;  %v2961_v63 = vsel %vm816_vm0, %v10465_v6, %v9147_v58 }
 0x715   : > { %v9156_v55 = vpop.permute.xlu0 %9155  ;;  %v9153_v31 = vunpack.i.h.bf16 %v9151_v7  ;;  %v9152_v62 = vunpack.i.l.bf16 %v9151_v7 }
 0x716   : > { %v9158_v27 = vunpack.i.h.bf16 %v9156_v55  ;;  %v9157_v41 = vunpack.i.l.bf16 %v9156_v55 }
 0x717   : > { %v2993_v40 = vsel %vm1493_vm5, %v2985_v38, %v9152_v62  ;;  %v2994_v52 = vsel %vm1493_vm5, %v2986_v16, %v9153_v31 }
 0x718   : > { %v9161_v25 = vpop.permute.xlu1 %9160  ;;  %v2969_v46 = vsel %vm1493_vm5, %v2961_v63, %v9157_v41  ;;  %v2970_v33 = vsel %vm1493_vm5, %v2962_v51, %v9158_v27 }
 0x719   : > { %v9163_v8 = vunpack.i.h.bf16 %v9161_v25  ;;  %v9162_v50 = vunpack.i.l.bf16 %v9161_v25  ;;  %v9166_v29 = vpop.permute.xlu0 %9165 }
 0x71a   : > { %v9168_v15 = vunpack.i.h.bf16 %v9166_v29  ;;  %v9167_v43 = vunpack.i.l.bf16 %v9166_v29 }
 0x71b   : > { %v3001_v20 = vsel %vm1933_vm6, %v2993_v40, %v9162_v50  ;;  %v3002_v36 = vsel %vm1933_vm6, %v2994_v52, %v9163_v8 }
 0x71c   : > { %v9171_v56 = vpop.permute.xlu1 %9170  ;;  %v3011_v26 = vpack.c.bf16 %v3002_v36, %v3001_v20  ;;  %v2977_v6 = vsel %vm1933_vm6, %v2969_v46, %v9167_v43  ;;  %v2978_v4 = vsel %vm1933_vm6, %v2970_v33, %v9168_v15 }
 0x71d   : > { %v9176_v60 = vpop.permute.xlu0 %9175  ;;  %v3010_v23 = vpack.c.bf16 %v2978_v4, %v2977_v6  ;;  %v9173_v11 = vunpack.i.h.bf16 %v9171_v56  ;;  %v9172_v49 = vunpack.i.l.bf16 %v9171_v56 }
 0x71e   : > { %3222 = vmatprep.mubr.bf16.mxu0 %v3011_v26  ;;  %v9178_v32 = vunpack.i.h.bf16 %v9176_v60  ;;  %v9177_v47 = vunpack.i.l.bf16 %v9176_v60 }
 0x71f   : > { %3223 = vmatmul.mubr.bf16.gmra.mrb[40].mxu0 %v3010_v23  ;;  %v2988_v22 = vsel %vm816_vm0, %v10530_v0, %v9173_v11  ;;  %v2987_v58 = vsel %vm816_vm0, %v10511_v17, %v9172_v49 }
 0x720   : > { %v9181_v1 = vpop.permute.xlu1 %9180  ;;  %v2964_v31 = vsel %vm816_vm0, %v10503_v24, %v9178_v32  ;;  %v2963_v62 = vsel %vm816_vm0, %v10501_v10, %v9177_v47 }
 0x721   : > { %v9186_v30 = vpop.permute.xlu0 %9185  ;;  %v9183_v57 = vunpack.i.h.bf16 %v9181_v1  ;;  %v9182_v59 = vunpack.i.l.bf16 %v9181_v1 }
 0x722   : > { %v9188_v21 = vunpack.i.h.bf16 %v9186_v30  ;;  %v9187_v7 = vunpack.i.l.bf16 %v9186_v30 }
 0x723   : > { %v2995_v51 = vsel %vm1493_vm5, %v2987_v58, %v9182_v59  ;;  %v2996_v63 = vsel %vm1493_vm5, %v2988_v22, %v9183_v57 }
 0x724   : > { %v9191_v55 = vpop.permute.xlu1 %9190  ;;  %v2971_v8 = vsel %vm1493_vm5, %v2963_v62, %v9187_v7  ;;  %v2972_v24 = vsel %vm1493_vm5, %v2964_v31, %v9188_v21 }
 0x725   : > { %v9193_v27 = vunpack.i.h.bf16 %v9191_v55  ;;  %v9192_v41 = vunpack.i.l.bf16 %v9191_v55  ;;  %v9196_v16 = vpop.permute.xlu0 %9195 }
 0x726   : > { %v9198_v38 = vunpack.i.h.bf16 %v9196_v16  ;;  %v9197_v25 = vunpack.i.l.bf16 %v9196_v16 }
 0x727   : > { %v3003_v0 = vsel %vm1933_vm6, %v2995_v51, %v9192_v41  ;;  %v3004_v17 = vsel %vm1933_vm6, %v2996_v63, %v9193_v27 }
 0x728   : > { %v9201_v50 = vpop.permute.xlu1 %9200  ;;  %v3014_v29 = vpack.c.bf16 %v3004_v17, %v3003_v0  ;;  %v2979_v10 = vsel %vm1933_vm6, %v2971_v8, %v9197_v25  ;;  %v2980_v15 = vsel %vm1933_vm6, %v2972_v24, %v9198_v38  ;;  %v3333_v17 = vld [vmem:[%s12872_s22] sm:$0xff]  ;;  %v3334_v8 = vld [vmem:[%s12872_s22 + $0x8] sm:$0xff] }
 0x729   : > { %v9206_v43 = vpop.permute.xlu0 %9205  ;;  %v3013_v40 = vpack.c.bf16 %v2980_v15, %v2979_v10  ;;  %v9203_v52 = vunpack.i.h.bf16 %v9201_v50  ;;  %v9202_v20 = vunpack.i.l.bf16 %v9201_v50  ;;  %v10626_v24 = vpack.c.bf16 %v3334_v8, %v3333_v17  ;;  %v3335_v50 = vld [vmem:[%s12872_s22 + $0x10] sm:$0xff] }
 0x72a   : > { %3230 = vmatprep.mubr.bf16.mxu0 %v3014_v29  ;;  %v9208_v46 = vunpack.i.h.bf16 %v9206_v43  ;;  %v9207_v33 = vunpack.i.l.bf16 %v9206_v43  ;;  %v3336_v29 = vld [vmem:[%s12872_s22 + $0x18] sm:$0xff]  ;;  %v8307_v43 = vld [vmem:[%s12981_s11] ss:$0 sm:$0xff]  ;;  %s13057_s11 = smov 72  }
 0x72b   : > { %3231 = vmatmul.mubr.bf16.gmra.mrb[44].mxu0 %v3013_v40  ;;  %v2990_v23 = vsel %vm816_vm0, %v10547_v61, %v9203_v52  ;;  %v2989_v11 = vsel %vm816_vm0, %v10532_v45, %v9202_v20  ;;  %8926 = vmatpush3.bf16.msra.mxu1 %v10626_v24  ;;  %v10635_v10 = vpack.c.bf16 %v3336_v29, %v3335_v50 }
 0x72c   : > { %v9211_v36 = vpop.permute.xlu1 %9210  ;;  %v2966_v1 = vsel %vm816_vm0, %v10524_v39, %v9208_v46  ;;  %v2965_v32 = vsel %vm816_vm0, %v10522_v34, %v9207_v33  ;;  %8927 = vmatprep.subr.bf16.mxu1 %v12893_v37 }
 0x72d   : > { %v9216_v56 = vpop.permute.xlu0 %9215  ;;  %v9213_v26 = vunpack.i.h.bf16 %v9211_v36  ;;  %v9212_v6 = vunpack.i.l.bf16 %v9211_v36 }
 0x72e   : > { %v9218_v4 = vunpack.i.h.bf16 %v9216_v56  ;;  %v9217_v60 = vunpack.i.l.bf16 %v9216_v56 }
 0x72f   : > { %v2997_v7 = vsel %vm1493_vm5, %v2989_v11, %v9212_v6  ;;  %v2998_v22 = vsel %vm1493_vm5, %v2990_v23, %v9213_v26  ;;  %8929 = vmatpush3.bf16.msra.mxu1 %v10635_v10 }
 0x730   : > { %v9221_v49 = vpop.permute.xlu1 %9220  ;;  %v2973_v58 = vsel %vm1493_vm5, %v2965_v32, %v9217_v60  ;;  %v2974_v39 = vsel %vm1493_vm5, %v2966_v1, %v9218_v4  ;;  %8810 = vmatprep.subr.mxu1 %v12894_v3 }
 0x731   : > { %v9223_v47 = vunpack.i.h.bf16 %v9221_v49  ;;  %v9222_v30 = vunpack.i.l.bf16 %v9221_v49  ;;  %v9226_v57 = vpop.permute.xlu0 %9225 }
 0x732   : > { %v9228_v59 = vunpack.i.h.bf16 %v9226_v57  ;;  %v9227_v21 = vunpack.i.l.bf16 %v9226_v57 }
 0x733   : > { %v3005_v61 = vsel %vm1933_vm6, %v2997_v7, %v9222_v30  ;;  %v3006_v45 = vsel %vm1933_vm6, %v2998_v22, %v9223_v47 }
 0x734   : > { %v3017_v55 = vpack.c.bf16 %v3006_v45, %v3005_v61  ;;  %v2981_v34 = vsel %vm1933_vm6, %v2973_v58, %v9227_v21  ;;  %v2982_v31 = vsel %vm1933_vm6, %v2974_v39, %v9228_v59 }
 0x735   : > { %v3016_v62 = vpack.c.bf16 %v2982_v31, %v2981_v34 }
 0x736   : > { %3238 = vmatprep.mubr.bf16.mxu0 %v3017_v55 }
 0x737   : > { %3239 = vmatmul.mubr.bf16.gmra.mrb[48].mxu0 %v3016_v62 }
 0x767   : > { %v8793_v27 = vpop.f32.mrb[40].mxu1 }
 0x768   : > { %v3281_v41 = vpop.f32.mrb[41].mxu1 }
 0x769   : > { %v8794_v16 = vpop.f32.mrb[42].mxu1 }
 0x76a   : > { %v3284_v38 = vpop.f32.mrb[43].mxu1 }
 0x76f   : > { %v8797_v25 = vpop.f32.mrb[44].mxu1 }
 0x770   : > { %v3297_v51 = vpop.f32.mrb[45].mxu1 }
 0x771   : > { %v10618_v63 = vpop.f32.mrb[46].mxu1 }
 0x772   : > { %v3300_v0 = vpop.f32.mrb[47].mxu1 }
 0x7e6   : > { %v8507_v15 = vpop.f32.mrb[36].mxu0 }
 0x7e7   : > { %v8508_v40 = vpop.f32.mrb[37].mxu0 }
 0x7e8   : > { %v8509_v52 = vadd.f32 %v8508_v40, %v8507_v15  ;;  %v8510_v20 = vpop.f32.mrb[38].mxu0 }
 0x7e9   : > { %v8511_v36 = vpop.f32.mrb[39].mxu0 }
 0x7ea   : > { %v3217_v46 = vadd.f32 %v8509_v52, %v8307_v43  ;;  %v8512_v33 = vadd.f32 %v8511_v36, %v8510_v20 }
 0x7ec   : > { %v10643_v56 = vadd.f32 %v3281_v41, %v3217_v46  ;;  %v3220_v26 = vadd.f32 %v8512_v33, %v8307_v43 }
 0x7ee   : > { %v10645_v6 = vadd.f32 %v3284_v38, %v3220_v26  ;;  %v3312_v55 = vsel %vm816_vm0, %v10643_v56, 0.0 }
 0x7f0   : > { %v3313_v45 = vsel %vm816_vm0, %v10645_v6, 0.0 }
 0x7f2   : > { %v8513_v4 = vpop.f32.mrb[40].mxu0 }
 0x7f3   : > { %v8514_v60 = vpop.f32.mrb[41].mxu0 }
 0x7f4   : > { %v8515_v23 = vadd.f32 %v8514_v60, %v8513_v4  ;;  %v8516_v11 = vpop.f32.mrb[42].mxu0 }
 0x7f5   : > { %v8517_v49 = vpop.f32.mrb[43].mxu0 }
 0x7f6   : > { %v3225_v1 = vadd.f32 %v8515_v23, %v8307_v43  ;;  %v8518_v32 = vadd.f32 %v8517_v49, %v8516_v11 }
 0x7f8   : > { %v10647_v47 = vadd.f32 %v8793_v27, %v3225_v1  ;;  %v3228_v30 = vadd.f32 %v8518_v32, %v8307_v43  ;;  %v3314_v27 = vadd.f32 %v3313_v45, %v3312_v55 }
 0x7fa   : > { %v3293_v57 = vadd.f32 %v8794_v16, %v3228_v30  ;;  %v3315_v34 = vsel %vm816_vm0, %v10647_v47, 0.0 }
 0x7fb   : > { %v3316_v16 = vadd.f32 %v3315_v34, %v3314_v27 }
 0x7fc   : > { %v3317_v38 = vsel %vm816_vm0, %v3293_v57, 0.0 }
 0x7fd   : > { %v3318_v50 = vadd.f32 %v3317_v38, %v3316_v16 }
 0x7fe   : > { %v8519_v59 = vpop.f32.mrb[44].mxu0 }
 0x7ff   : > { %v8520_v21 = vpop.f32.mrb[45].mxu0 }
 0x800   : > { %v8521_v7 = vadd.f32 %v8520_v21, %v8519_v59  ;;  %v8522_v22 = vpop.f32.mrb[46].mxu0 }
 0x801   : > { %v8523_v61 = vpop.f32.mrb[47].mxu0 }
 0x802   : > { %v3233_v58 = vadd.f32 %v8521_v7, %v8307_v43  ;;  %v8524_v39 = vadd.f32 %v8523_v61, %v8522_v22 }
 0x804   : > { %v3298_v31 = vadd.f32 %v3297_v51, %v3233_v58  ;;  %v3236_v62 = vadd.f32 %v8524_v39, %v8307_v43 }
 0x806   : > { %v3301_v41 = vadd.f32 %v3300_v0, %v3236_v62  ;;  %v3319_v17 = vsel %vm816_vm0, %v3298_v31, 0.0 }
 0x807   : > { %v3320_v52 = vadd.f32 %v3319_v17, %v3318_v50 }
 0x808   : > { %v3321_v36 = vsel %vm816_vm0, %v3301_v41, 0.0 }
 0x809   : > { %v3322_v4 = vadd.f32 %v3321_v36, %v3320_v52 }
 0x80a   : > { %v8525_v8 = vpop.f32.mrb[48].mxu0 }
 0x80b   : > { %v8526_v29 = vpop.f32.mrb[49].mxu0 }
 0x80c   : > { %v8527_v15 = vadd.f32 %v8526_v29, %v8525_v8  ;;  %v8528_v40 = vpop.f32.mrb[50].mxu0 }
 0x80d   : > { %v8529_v20 = vpop.f32.mrb[51].mxu0 }
 0x80e   : > { %v3241_v46 = vadd.f32 %v8527_v15, %v8307_v43  ;;  %v8530_v33 = vadd.f32 %v8529_v20, %v8528_v40 }
 0x810   : > { %v3306_v51 = vadd.f32 %v8797_v25, %v3241_v46  ;;  %v3244_v26 = vadd.f32 %v8530_v33, %v8307_v43  ;;  %v3411_v25 = vld [vmem:[%s12873_s23] sm:$0xff] }
 0x812   : > { %v3323_v0 = vsel %vm816_vm0, %v3306_v51, 0.0  ;;  %v3309_v60 = vadd.f32 %v10618_v63, %v3244_v26 }
 0x813   : > { %v3324_v23 = vadd.f32 %v3323_v0, %v3322_v4 }
 0x814   : > { %v3325_v11 = vsel %vm816_vm0, %v3309_v60, 0.0 }
 0x815   : > { %v3326_v49 = vadd.f32 %v3325_v11, %v3324_v23 }
 0x817   : > { %v3327_v1 = vrot.slane %v3326_v49, 4 }
 0x819   : > { %v3328_v32 = vadd.f32 %v3327_v1, %v3326_v49 }
 0x81b   : > { %v3329_v30 = vrot.slane %v3328_v32, 2 }
 0x81d   : > { %v3330_v59 = vadd.f32 %v3329_v30, %v3328_v32 }
 0x81f   : > { %v3331_v21 = vrot.slane %v3330_v59, 1 }
 0x821   : > { %v3332_v7 = vadd.f32 %v3331_v21, %v3330_v59 }
 0x823   : > { %8808 = vmatmul.mubr.msk.f32.vlgmr.msra.gmra.mrb[48].mxu1 %vm816_vm0, %v3332_v7 }
 0x824   : > { %8811 = vmatpush3.msra.mxu1 %v3411_v25  ;;  %8812 = vmatprep.mubr.msk.f32.mxu1 %vm9466_vm1, %v12894_v3 }
 0x825   : > { %8930 = vmatprep.subr.bf16.mxu1 %v12893_v37 }
 0x8f6   : > { %v3406_v63 = vpop.f32.mrb[48].mxu1 }
 0x8f7   : > { %v3410_v43 = vmul.f32 0.00390625, %v3406_v63  ;;  %v8809_v22 = vpop.f32.mrb[49].mxu1 }
 0x8f8   : > { %v9391_v22 = vld [vmem:[%s12864_s14 + $0x80] sm:$0xff]  }
 0x8f9   : > { %8813 = vmatmul.mubr.msk.f32.vlgmr.msra.gmra.mrb[50].mxu1 %vm2371_vm7, %v3410_v43 }
 0x8fa   : > { %8932 = vmatpush3.bf16.msra.mxu1 %v10626_v24  ;;  %8823 = vmatprep.mubr.msk.f32.mxu1 %vm9466_vm1, %v12894_v3 }
 0x8fb   : > { %8933 = vmatprep.subr.bf16.mxu1 %v12893_v37 }
 0x8fe   : > { %8935 = vmatpush3.bf16.msra.mxu1 %v10635_v10 }
 0x8ff   : > { %8826 = vmatprep.subr.mxu1 %v12894_v3 }
 0x9cc   : > { %v3481_v61 = vpop.f32.mrb[50].mxu1 }
 0x9cd   : > { %v3488_v45 = vrot.slane %v3481_v61, %v10335_v5  ;;  %v8814_v58 = vpop.f32.mrb[51].mxu1  ;;  %v9392_v61 = vld [vmem:[%s12864_s14 + $0x88] sm:$0xff]  }
 0x9ce   : > { %v9395_v58 = vld [vmem:[%s12864_s14 + $0x48] sm:$0xff]  }
 0x9cf   : > { %v10677_v39 = vsub.f32 %v10643_v56, %v3488_v45  ;;  %v10680_v55 = vsub.f32 %v10645_v6, %v3488_v45  ;;  %v10683_v24 = vsub.f32 %v10647_v47, %v3488_v45  ;;  %v10685_v34 = vsub.f32 %v3293_v57, %v3488_v45 }
 0x9d0   : > { %v10687_v62 = vsub.f32 %v3298_v31, %v3488_v45  ;;  %v10695_v16 = vsub.f32 %v3301_v41, %v3488_v45  ;;  %v10701_v38 = vsub.f32 %v3306_v51, %v3488_v45  ;;  %v10706_v29 = vsub.f32 %v3309_v60, %v3488_v45  ;;  %v9394_v45 = vld [vmem:[%s12864_s14] sm:$0xff]  }
 0x9d1   : > { %v3497_v10 = vmul.f32 %v10677_v39, %v10677_v39  ;;  %v3498_v27 = vmul.f32 %v10680_v55, %v10680_v55  ;;  %v3499_v56 = vmul.f32 %v10683_v24, %v10683_v24  ;;  %v3500_v6 = vmul.f32 %v10685_v34, %v10685_v34 }
 0x9d2   : > { %v3501_v17 = vmul.f32 %v10687_v62, %v10687_v62  ;;  %v3502_v41 = vmul.f32 %v10695_v16, %v10695_v16  ;;  %v3503_v52 = vmul.f32 %v10701_v38, %v10701_v38  ;;  %v3504_v46 = vmul.f32 %v10706_v29, %v10706_v29 }
 0x9d3   : > { %v3505_v47 = vsel %vm816_vm0, %v3497_v10, 0.0  ;;  %v3506_v57 = vsel %vm816_vm0, %v3498_v27, 0.0  ;;  %v3508_v8 = vsel %vm816_vm0, %v3499_v56, 0.0  ;;  %v3510_v15 = vsel %vm816_vm0, %v3500_v6, 0.0  ;;  %v9396_v10 = vld [vmem:[%s12864_s14 + $0x8] sm:$0xff]   ;;  %v9397_v27 = vld [vmem:[%s12864_s14 + $0x50] sm:$0xff]  }
 0x9d4   : > { %v3507_v31 = vadd.f32 %v3506_v57, %v3505_v47  ;;  %v3512_v20 = vsel %vm816_vm0, %v3501_v17, 0.0  ;;  %v3514_v33 = vsel %vm816_vm0, %v3502_v41, 0.0  ;;  %v3516_v26 = vsel %vm816_vm0, %v3503_v52, 0.0  ;;  %v9398_v56 = vld [vmem:[%s12864_s14 + $0x10] sm:$0xff]   ;;  %v9399_v6 = vld [vmem:[%s12864_s14 + $0x58] sm:$0xff]   ;;  %v9401_v57 = vld [vmem:[%s12864_s14 + $0x60] sm:$0xff]  }
 0x9d5   : > { %v3518_v0 = vsel %vm816_vm0, %v3504_v46, 0.0  ;;  %v9400_v47 = vld [vmem:[%s12864_s14 + $0x18] sm:$0xff]   ;;  %v9402_v17 = vld [vmem:[%s12864_s14 + $0x20] sm:$0xff]  }
 0x9d6   : > { %v3509_v50 = vadd.f32 %v3508_v8, %v3507_v31  ;;  %v8334_v41 = vld [vmem:[%s12982_s12] ss:$0 sm:$0xff]  ;;  %s13058_s12 = smov 8  }
 0x9d8   : > { %v3511_v40 = vadd.f32 %v3510_v15, %v3509_v50 }
 0x9da   : > { %v3513_v36 = vadd.f32 %v3512_v20, %v3511_v40 }
 0x9dc   : > { %v3515_v51 = vadd.f32 %v3514_v33, %v3513_v36 }
 0x9de   : > { %v3517_v4 = vadd.f32 %v3516_v26, %v3515_v51  ;;  %v8335_v26 = vld [vmem:[%s12863_s13] ss:$0 sm:$0xff] }
 0x9e0   : > { %v3519_v60 = vadd.f32 %v3518_v0, %v3517_v4 }
 0x9e2   : > { %v3520_v23 = vrot.slane %v3519_v60, 4 }
 0x9e4   : > { %v3521_v11 = vadd.f32 %v3520_v23, %v3519_v60 }
 0x9e6   : > { %v3522_v49 = vrot.slane %v3521_v11, 2 }
 0x9e8   : > { %v3523_v1 = vadd.f32 %v3522_v49, %v3521_v11 }
 0x9ea   : > { %v3524_v32 = vrot.slane %v3523_v1, 1 }
 0x9ec   : > { %v3525_v30 = vadd.f32 %v3524_v32, %v3523_v1 }
 0x9ee   : > { %8824 = vmatmul.mubr.msk.f32.vlgmr.msra.gmra.mrb[52].mxu1 %vm816_vm0, %v3525_v30 }
 0x9ef   : > { %8827 = vmatpush3.msra.mxu1 %v3411_v25  ;;  %8828 = vmatprep.mubr.msk.f32.mxu1 %vm9466_vm1, %v12894_v3  ;;  %v9393_v25 = vld [vmem:[%s12864_s14 + $0x40] sm:$0xff]  }
 0x9f0   : > { %8831 = vmatprep.subr.bf16.mxu1 %v9391_v22  ;;  %8551 = vmatprep.subr.bf16.mxu0 %v9393_v25  ;;  %v9403_v25 = vld [vmem:[%s12864_s14 + $0x68] sm:$0xff]  }
 0x9f1   : > { %8552 = vmatpush3.bf16.msra.mxu0 %v9394_v45  ;;  %v9404_v45 = vld [vmem:[%s12864_s14 + $0x28] sm:$0xff]  }
 0x9f2   : > { %8553 = vmatprep.subr.bf16.mxu0 %v9395_v58  ;;  %v9405_v58 = vld [vmem:[%s12864_s14 + $0x70] sm:$0xff]  }
 0x9f5   : > { %8554 = vmatpush3.bf16.msra.mxu0 %v9396_v10  ;;  %v9406_v10 = vld [vmem:[%s12864_s14 + $0x30] sm:$0xff]  }
 0x9f6   : > { %8555 = vmatprep.subr.bf16.mxu0 %v9397_v27  ;;  %v3741_v27 = vld [vmem:[#allocation3 + $0x1] sm:$0xff] }
 0x9f9   : > { %8556 = vmatpush3.bf16.msra.mxu0 %v9398_v56 }
 0x9fa   : > { %8557 = vmatprep.subr.bf16.mxu0 %v9399_v6 }
 0x9fd   : > { %8558 = vmatpush3.bf16.msra.mxu0 %v9400_v47 }
 0x9fe   : > { %8559 = vmatprep.subr.bf16.mxu0 %v9401_v57 }
 0xa01   : > { %8560 = vmatpush3.bf16.msra.mxu0 %v9402_v17 }
 0xa02   : > { %8561 = vmatprep.subr.bf16.mxu0 %v9403_v25 }
 0xa05   : > { %8562 = vmatpush3.bf16.msra.mxu0 %v9404_v45 }
 0xa06   : > { %8563 = vmatprep.subr.bf16.mxu0 %v9405_v58 }
 0xa09   : > { %8564 = vmatpush3.bf16.msra.mxu0 %v9406_v10 }
 0xac1   : > { %v3595_v59 = vpop.f32.mrb[52].mxu1 }
 0xac2   : > { %v3599_v21 = vmul.f32 0.00390625, %v3595_v59  ;;  %v8825_v7 = vpop.f32.mrb[53].mxu1 }
 0xac4   : > { %v3600_v63 = vadd.f32 1e-05, %v3599_v21 }
 0xac6   : > { %9415 = vrsqrt.f32 %v3600_v63 }
 0xad0   : > { %v9416_v43 = vpop.eup %9415 }
 0xad1   : > { %8829 = vmatmul.mubr.msk.f32.vlgmr.msra.gmra.mrb[54].mxu1 %vm2371_vm7, %v9416_v43 }
 0xad2   : > { %8832 = vmatpush3.bf16.msra.mxu1 %v9391_v22 }
 0xad3   : > { %8833 = vmatprep.subr.bf16.mxu1 %v9392_v61 }
 0xad6   : > { %8834 = vmatpush3.bf16.msra.mxu1 %v9392_v61 }
 0xad7   : > { %8936 = vmatprep.subr.bf16.mxu1 %v12893_v37 }
 0xba4   : > { %v3671_v31 = vpop.f32.mrb[54].mxu1 }
 0xba5   : > { %v3678_v8 = vrot.slane %v3671_v31, %v10335_v5  ;;  %v8830_v50 = vpop.f32.mrb[55].mxu1 }
 0xba7   : > { %v3679_v15 = vmul.f32 %v3678_v8, %v10677_v39  ;;  %v3680_v40 = vmul.f32 %v3678_v8, %v10680_v55  ;;  %v3681_v52 = vmul.f32 %v3678_v8, %v10683_v24  ;;  %v3682_v20 = vmul.f32 %v3678_v8, %v10685_v34 }
 0xba8   : > { %v3683_v36 = vmul.f32 %v3678_v8, %v10687_v62  ;;  %v3684_v46 = vmul.f32 %v3678_v8, %v10695_v16  ;;  %v3685_v33 = vmul.f32 %v3678_v8, %v10701_v38  ;;  %v3686_v51 = vmul.f32 %v3678_v8, %v10706_v29 }
 0xba9   : > { %v3694_v39 = vmul.f32 %v8334_v41, %v3679_v15  ;;  %v3695_v4 = vmul.f32 %v8334_v41, %v3680_v40  ;;  %v3696_v55 = vmul.f32 %v8334_v41, %v3681_v52  ;;  %v3697_v0 = vmul.f32 %v8334_v41, %v3682_v20 }
 0xbaa   : > { %v3698_v24 = vmul.f32 %v8334_v41, %v3683_v36  ;;  %v3699_v60 = vmul.f32 %v8334_v41, %v3684_v46  ;;  %v3700_v34 = vmul.f32 %v8334_v41, %v3685_v33  ;;  %v3701_v23 = vmul.f32 %v8334_v41, %v3686_v51  ;;  %v3749_v33 = vld [vmem:[#allocation3 + $0x2] sm:$0xff] }
 0xbab   : > { %v3709_v62 = vadd.f32 %v8335_v26, %v3694_v39  ;;  %v3710_v11 = vadd.f32 %v8335_v26, %v3695_v4  ;;  %v3711_v16 = vadd.f32 %v8335_v26, %v3696_v55  ;;  %v3712_v49 = vadd.f32 %v8335_v26, %v3697_v0 }
 0xbac   : > { %v3713_v38 = vadd.f32 %v8335_v26, %v3698_v24  ;;  %v3714_v1 = vadd.f32 %v8335_v26, %v3699_v60  ;;  %v3715_v29 = vadd.f32 %v8335_v26, %v3700_v34  ;;  %v3716_v32 = vadd.f32 %v8335_v26, %v3701_v23  ;;  %v3804_v24 = vld [vmem:[#allocation3 + $0x92] sm:$0xff] }
 0xbad   : > { %v3717_v30 = vmax.f32 %v3709_v62, 0.0  ;;  %v3718_v59 = vmax.f32 %v3710_v11, 0.0  ;;  %v3719_v21 = vmax.f32 %v3711_v16, 0.0  ;;  %v3720_v7 = vmax.f32 %v3712_v49, 0.0  ;;  %v9407_v60 = vld [vmem:[%s12864_s14 + $0x78] sm:$0xff]  }
 0xbae   : > { %v3721_v63 = vmax.f32 %v3713_v38, 0.0  ;;  %v3722_v43 = vmax.f32 %v3714_v1, 0.0  ;;  %v3723_v22 = vmax.f32 %v3715_v29, 0.0  ;;  %v3724_v61 = vmax.f32 %v3716_v32, 0.0  ;;  %v9408_v34 = vld [vmem:[%s12864_s14 + $0x38] sm:$0xff]   ;;  %8565 = vmatprep.subr.bf16.mxu0 %v9407_v60 }
 0xbaf   : > { %3725 = vst.msk [vmem:[#allocation3 + $0x11] sm:$0xff] %vm816_vm0, %v3717_v30  ;;  %3726 = vst.msk [vmem:[#allocation3 + $0x21] sm:$0xff] %vm816_vm0, %v3718_v59  ;;  %8566 = vmatpush3.bf16.msra.mxu0 %v9408_v34 }
 0xbb0   : > { %3727 = vst.msk [vmem:[#allocation3 + $0x31] sm:$0xff] %vm816_vm0, %v3719_v21  ;;  %3728 = vst.msk [vmem:[#allocation3 + $0x41] sm:$0xff] %vm816_vm0, %v3720_v7 }
 0xbb1   : > { %3729 = vst.msk [vmem:[#allocation3 + $0x51] sm:$0xff] %vm816_vm0, %v3721_v63  ;;  %3730 = vst.msk [vmem:[#allocation3 + $0x61] sm:$0xff] %vm816_vm0, %v3722_v43 }
 0xbb2   : > { %3731 = vst.msk [vmem:[#allocation3 + $0x71] sm:$0xff] %vm816_vm0, %v3723_v22  ;;  %3732 = vst.msk [vmem:[#allocation3 + $0x81] sm:$0xff] %vm816_vm0, %v3724_v61 }
 0xbb6   : > { %v3797_v56 = vld [vmem:[#allocation3 + $0x22] sm:$0xff]  ;;  %v3773_v47 = vld [vmem:[#allocation3 + $0x12] sm:$0xff] }
 0xbb7   : > { %v3798_v6 = vld [vmem:[#allocation3 + $0x32] sm:$0xff]  ;;  %v9229_v31 = vpack.i.bf16 %v3797_v56, %v3773_v47  ;;  %v3799_v8 = vld [vmem:[#allocation3 + $0x42] sm:$0xff]  ;;  %v9244_v26 = vpack.i.bf16 %v3773_v47, %v3749_v33  ;;  %v10904_v33 = vmul.f32 0.5, %v10285_v35 }
 0xbb8   : > { %v4047_v57 = vpack.c.bf16 %v3798_v6, %v3797_v56  ;;  %v10795_v17 = vld [vmem:[#allocation3 + $0x11] sm:$0xff]  ;;  %v10798_v40 = vld [vmem:[#allocation3 + $0x62] sm:$0xff]  ;;  %v9259_v16 = vpack.i.bf16 %v3799_v8, %v3798_v6  ;;  %v9274_v29 = vpack.i.bf16 %v3798_v6, %v3797_v56 }
 0xbb9   : > { %v3800_v50 = vld [vmem:[#allocation3 + $0x52] sm:$0xff]  ;;  %v9234_v41 = vpack.i.bf16 %v10795_v17, %v3741_v27  ;;  %v10802_v20 = vld [vmem:[#allocation3 + $0x20] sm:$0xff]  ;;  %9230 = vrot.lane.b32.xlu1 %v9229_v31, %s12983_s1  ;;  %v1506_v35 = vsel %vm1493_vm5, %v10904_v33, -inf }
 0xbba   : > { %v4050_v15 = vpack.c.bf16 %v3800_v50, %v3799_v8  ;;  %v10800_v52 = vld [vmem:[#allocation3 + $0x72] sm:$0xff]  ;;  %8835 = vmatprep.mubr.msk.bf16.mxu1 %vm816_vm0, %v4047_v57  ;;  %v10815_v39 = vld [vmem:[#allocation3 + $0x21] sm:$0xff]  ;;  %v9289_v7 = vpack.i.bf16 %v10798_v40, %v3800_v50  ;;  %v9304_v61 = vpack.i.bf16 %v3800_v50, %v3799_v8 }
 0xbbb   : > { %v4053_v36 = vpack.c.bf16 %v10800_v52, %v10798_v40  ;;  %v10808_v46 = vld [vmem:[#allocation3 + $0x30] sm:$0xff]  ;;  %9235 = vrot.lane.b32.xlu0 %v9234_v41, %s12983_s1  ;;  %v3803_v0 = vld [vmem:[#allocation3 + $0x82] sm:$0xff]  ;;  %v9334_v57 = vpack.i.bf16 %v10800_v52, %v10798_v40  ;;  %v10896_v40 = vmul.f32 0.5, %v10208_v54 }
 0xbbc   : > { %8836 = vmatmul.mubr.msk.bf16.vlgmr.msra.gmra.mrb[56].mxu1 %vm816_vm0, %v4050_v15  ;;  %v9239_v51 = vpack.i.bf16 %v10808_v46, %v10802_v20  ;;  %v10817_v4 = vld [vmem:[#allocation3 + $0x31] sm:$0xff]  ;;  %v4056_v11 = vpack.c.bf16 %v3804_v24, %v3803_v0  ;;  %v10838_v49 = vld [vmem:[#allocation3 + $0x40] sm:$0xff]  ;;  %v9319_v27 = vpack.i.bf16 %v3803_v0, %v10800_v52  ;;  %v10893_v15 = vmul.f32 0.5, %v10262_v44 }
 0xbbd   : > { %8839 = vmatprep.mubr.msk.bf16.mxu1 %vm816_vm0, %v4053_v36  ;;  %v10820_v55 = vld [vmem:[#allocation3 + $0x10] sm:$0xff]  ;;  %v9249_v23 = vpack.i.bf16 %v10817_v4, %v10815_v39  ;;  %v10846_v32 = vld [vmem:[#allocation3 + $0x41] sm:$0xff]  ;;  %v9284_v21 = vpack.i.bf16 %v10838_v49, %v10808_v46  ;;  %v10899_v52 = vmul.f32 0.5, %v10260_v2  ;;  %v1494_v54 = vsel %vm1493_vm5, %v10896_v40, -inf }
 0xbbe   : > { %9240 = vrot.lane.b32.xlu1 %v9239_v51, %s12979_s21  ;;  %v9254_v62 = vpack.i.bf16 %v10802_v20, %v10820_v55  ;;  %v10840_v38 = vld [vmem:[#allocation3 + $0x50] sm:$0xff]  ;;  %v10859_v63 = vld [vmem:[#allocation3 + $0x60] sm:$0xff]  ;;  %v1497_v36 = vsel %vm1493_vm5, %v10893_v15, -inf  ;;  %v10907_v51 = vmul.f32 0.5, %v10287_v42  ;;  %v10914_v2 = vmul.f32 0.5, %v10289_v48 }
 0xbbf   : > { %9245 = vrot.lane.b32.xlu0 %v9244_v26, %s12979_s21  ;;  %v9269_v1 = vpack.i.bf16 %v10840_v38, %v10838_v49  ;;  %v10848_v30 = vld [vmem:[#allocation3 + $0x51] sm:$0xff]  ;;  %v10867_v25 = vld [vmem:[#allocation3 + $0x61] sm:$0xff]  ;;  %v9314_v10 = vpack.i.bf16 %v10859_v63, %v10840_v38  ;;  %v1500_v44 = vsel %vm1493_vm5, %v10899_v52, -inf  ;;  %v10917_v26 = vmul.f32 0.5, %v10291_v28 }
 0xbc0   : > { %v9279_v59 = vpack.i.bf16 %v10848_v30, %v10846_v32  ;;  %v10861_v43 = vld [vmem:[#allocation3 + $0x70] sm:$0xff]  ;;  %v3787_v56 = vld [vmem:[#allocation3 + $0x80] sm:$0xff]  ;;  %v1503_v42 = vsel %vm1493_vm5, %v10907_v51, -inf  ;;  %v10924_v0 = vmul.f32 0.5, %v10293_v12  ;;  %v1512_v24 = vsel %vm1493_vm5, %v10914_v2, -inf }
 0xbc1   : > { %v9299_v22 = vpack.i.bf16 %v10861_v43, %v10859_v63  ;;  %v10869_v45 = vld [vmem:[#allocation3 + $0x71] sm:$0xff]  ;;  %v10884_v31 = vld [vmem:[#allocation3 + $0x81] sm:$0xff]  ;;  %v9344_v41 = vpack.i.bf16 %v3787_v56, %v10861_v43  ;;  %v1509_v48 = vsel %vm1493_vm5, %v10917_v26, -inf }
 0xbc2   : > { %9250 = vrot.lane.b32.xlu1 %v9249_v23, %s12980_s7  ;;  %v9309_v58 = vpack.i.bf16 %v10869_v45, %v10867_v25  ;;  %v3788_v6 = vld [vmem:[#allocation3 + $0x90] sm:$0xff]  ;;  %v1515_v28 = vsel %vm1493_vm5, %v10924_v0, -inf }
 0xbc3   : > { %9255 = vrot.lane.b32.xlu0 %v9254_v62, %s12980_s7  ;;  %v9329_v47 = vpack.i.bf16 %v3788_v6, %v3787_v56  ;;  %v3796_v8 = vld [vmem:[#allocation3 + $0x91] sm:$0xff] }
 0xbc4   : > { %8840 = vmatmul.mubr.msk.bf16.gmra.mrb[60].mxu1 %vm816_vm0, %v4056_v11  ;;  %v9339_v50 = vpack.i.bf16 %v3796_v8, %v10884_v31 }
 0xbc5   : > { %8851 = vmatprep.mubr.msk.f32.mxu1 %vm9466_vm1, %v12894_v3 }
 0xbc6   : > { %9260 = vrot.lane.b32.xlu1 %v9259_v16, %s12983_s1 }
 0xbc7   : > { %9265 = vrot.lane.b32.xlu0 %v9249_v23, %s12983_s1 }
 0xbca   : > { %9270 = vrot.lane.b32.xlu1 %v9269_v1, %s12979_s21 }
 0xbcb   : > { %9275 = vrot.lane.b32.xlu0 %v9274_v29, %s12979_s21  ;;  %v3733_v29 = vld [vmem:[#allocation3] sm:$0xff] }
 0xbce   : > { %9280 = vrot.lane.b32.xlu1 %v9279_v59, %s12980_s7 }
 0xbcf   : > { %9285 = vrot.lane.b32.xlu0 %v9284_v21, %s12980_s7 }
 0xbd2   : > { %9290 = vrot.lane.b32.xlu1 %v9289_v7, %s12983_s1 }
 0xbd3   : > { %9295 = vrot.lane.b32.xlu0 %v9279_v59, %s12983_s1 }
 0xbd6   : > { %9300 = vrot.lane.b32.xlu1 %v9299_v22, %s12979_s21 }
 0xbd7   : > { %9305 = vrot.lane.b32.xlu0 %v9304_v61, %s12979_s21 }
 0xbda   : > { %9310 = vrot.lane.b32.xlu1 %v9309_v58, %s12980_s7 }
 0xbdb   : > { %9315 = vrot.lane.b32.xlu0 %v9314_v10, %s12980_s7 }
 0xbde   : > { %9320 = vrot.lane.b32.xlu1 %v9319_v27, %s12983_s1 }
 0xbdf   : > { %9325 = vrot.lane.b32.xlu0 %v9309_v58, %s12983_s1 }
 0xbe2   : > { %9330 = vrot.lane.b32.xlu1 %v9329_v47, %s12979_s21 }
 0xbe3   : > { %9335 = vrot.lane.b32.xlu0 %v9334_v57, %s12979_s21  ;;  %s12984_s21 = smov 112  }
 0xbe6   : > { %9340 = vrot.lane.b32.xlu1 %v9339_v50, %s12980_s7 }
 0xbe7   : > { %9345 = vrot.lane.b32.xlu0 %v9344_v41, %s12980_s7 }
 0xc06   : > { %1498 = vmax.xlane.f32.xlu0 %v1497_v36 }
 0xc0a   : > { %1501 = vmax.xlane.f32.xlu0 %v1500_v44  ;;  %1495 = vmax.xlane.f32.xlu1 %v1494_v54 }
 0xc0e   : > { %1507 = vmax.xlane.f32.xlu0 %v1506_v35  ;;  %1504 = vmax.xlane.f32.xlu1 %v1503_v42 }
 0xc12   : > { %1513 = vmax.xlane.f32.xlu0 %v1512_v24  ;;  %1510 = vmax.xlane.f32.xlu1 %v1509_v48 }
 0xc16   : > { %1516 = vmax.xlane.f32.xlu1 %v1515_v28 }
 0xc2b   : > { %v9231_v60 = vpop.permute.xlu1 %9230 }
 0xc2c   : > { %v9233_v23 = vunpack.i.h.bf16 %v9231_v60  ;;  %v9232_v62 = vunpack.i.l.bf16 %v9231_v60 }
 0xc2d   : > { %v9236_v34 = vpop.permute.xlu0 %9235 }
 0xc2e   : > { %v9238_v16 = vunpack.i.h.bf16 %v9236_v34  ;;  %v9237_v12 = vunpack.i.l.bf16 %v9236_v34  ;;  %v4022_v61 = vsel %vm816_vm0, %v10815_v39, %v9233_v23  ;;  %v4021_v58 = vsel %vm816_vm0, %v10795_v17, %v9232_v62 }
 0xc30   : > { %v9241_v11 = vpop.permute.xlu1 %9240  ;;  %v3997_v27 = vsel %vm816_vm0, %v3733_v29, %v9237_v12  ;;  %v3998_v56 = vsel %vm816_vm0, %v10820_v55, %v9238_v16 }
 0xc31   : > { %v9246_v1 = vpop.permute.xlu0 %9245  ;;  %v9243_v59 = vunpack.i.h.bf16 %v9241_v11  ;;  %v9242_v21 = vunpack.i.l.bf16 %v9241_v11 }
 0xc32   : > { %v9248_v7 = vunpack.i.h.bf16 %v9246_v1  ;;  %v9247_v22 = vunpack.i.l.bf16 %v9246_v1 }
 0xc33   : > { %v4029_v41 = vsel %vm1493_vm5, %v4021_v58, %v9242_v21  ;;  %v4030_v36 = vsel %vm1493_vm5, %v4022_v61, %v9243_v59 }
 0xc34   : > { %v9251_v10 = vpop.permute.xlu1 %9250  ;;  %v4005_v39 = vsel %vm1493_vm5, %v3997_v27, %v9247_v22  ;;  %v4006_v44 = vsel %vm1493_vm5, %v3998_v56, %v9248_v7 }
 0xc35   : > { %v9253_v6 = vunpack.i.h.bf16 %v9251_v10  ;;  %v9252_v47 = vunpack.i.l.bf16 %v9251_v10  ;;  %v9256_v57 = vpop.permute.xlu0 %9255 }
 0xc36   : > { %v9258_v8 = vunpack.i.h.bf16 %v9256_v57  ;;  %v9257_v50 = vunpack.i.l.bf16 %v9256_v57 }
 0xc37   : > { %v4037_v17 = vsel %vm1933_vm6, %v4029_v41, %v9252_v47  ;;  %v4038_v54 = vsel %vm1933_vm6, %v4030_v36, %v9253_v6 }
 0xc38   : > { %v4013_v35 = vsel %vm1933_vm6, %v4005_v39, %v9257_v50  ;;  %v4014_v55 = vsel %vm1933_vm6, %v4006_v44, %v9258_v8  ;;  %v9261_v42 = vpop.permute.xlu1 %9260  ;;  %v4046_v24 = vpack.c.bf16 %v4038_v54, %v4037_v17 }
 0xc39   : > { %v4045_v48 = vpack.c.bf16 %v4014_v55, %v4013_v35  ;;  %v9266_v28 = vpop.permute.xlu0 %9265  ;;  %v9263_v60 = vunpack.i.h.bf16 %v9261_v42  ;;  %v9262_v34 = vunpack.i.l.bf16 %v9261_v42 }
 0xc3a   : > { %4252 = vmatprep.mubr.bf16.mxu0 %v4046_v24  ;;  %v9268_v62 = vunpack.i.h.bf16 %v9266_v28  ;;  %v9267_v11 = vunpack.i.l.bf16 %v9266_v28 }
 0xc3b   : > { %4253 = vmatmul.mubr.bf16.vlgmr.msra.gmra.mrb[52].mxu0 %v4045_v48  ;;  %v4024_v21 = vsel %vm816_vm0, %v10846_v32, %v9263_v60  ;;  %v4023_v7 = vsel %vm816_vm0, %v10817_v4, %v9262_v34 }
 0xc3c   : > { %v9271_v23 = vpop.permute.xlu1 %9270  ;;  %v4000_v61 = vsel %vm816_vm0, %v10808_v46, %v9268_v62  ;;  %v3999_v58 = vsel %vm816_vm0, %v10802_v20, %v9267_v11 }
 0xc3d   : > { %v9276_v16 = vpop.permute.xlu0 %9275  ;;  %v9273_v12 = vunpack.i.h.bf16 %v9271_v23  ;;  %v9272_v1 = vunpack.i.l.bf16 %v9271_v23 }
 0xc3e   : > { %v9278_v29 = vunpack.i.h.bf16 %v9276_v16  ;;  %v9277_v59 = vunpack.i.l.bf16 %v9276_v16 }
 0xc3f   : > { %v4031_v57 = vsel %vm1493_vm5, %v4023_v7, %v9272_v1  ;;  %v4032_v8 = vsel %vm1493_vm5, %v4024_v21, %v9273_v12 }
 0xc40   : > { %v9281_v22 = vpop.permute.xlu1 %9280  ;;  %v4007_v50 = vsel %vm1493_vm5, %v3999_v58, %v9277_v59  ;;  %v4008_v46 = vsel %vm1493_vm5, %v4000_v61, %v9278_v29 }
 0xc41   : > { %v9283_v10 = vunpack.i.h.bf16 %v9281_v22  ;;  %v9282_v27 = vunpack.i.l.bf16 %v9281_v22  ;;  %v9286_v56 = vpop.permute.xlu0 %9285 }
 0xc42   : > { %v9288_v6 = vunpack.i.h.bf16 %v9286_v56  ;;  %v9287_v47 = vunpack.i.l.bf16 %v9286_v56 }
 0xc43   : > { %v4039_v32 = vsel %vm1933_vm6, %v4031_v57, %v9282_v27  ;;  %v4040_v4 = vsel %vm1933_vm6, %v4032_v8, %v9283_v10 }
 0xc44   : > { %v9291_v41 = vpop.permute.xlu1 %9290  ;;  %v4049_v36 = vpack.c.bf16 %v4040_v4, %v4039_v32  ;;  %v4015_v20 = vsel %vm1933_vm6, %v4007_v50, %v9287_v47  ;;  %v4016_v39 = vsel %vm1933_vm6, %v4008_v46, %v9288_v6 }
 0xc45   : > { %v9296_v44 = vpop.permute.xlu0 %9295  ;;  %v4048_v17 = vpack.c.bf16 %v4016_v39, %v4015_v20  ;;  %v9293_v54 = vunpack.i.h.bf16 %v9291_v41  ;;  %v9292_v35 = vunpack.i.l.bf16 %v9291_v41 }
 0xc46   : > { %4260 = vmatprep.mubr.bf16.mxu0 %v4049_v36  ;;  %v9298_v42 = vunpack.i.h.bf16 %v9296_v44  ;;  %v9297_v24 = vunpack.i.l.bf16 %v9296_v44 }
 0xc47   : > { %4261 = vmatmul.mubr.bf16.gmra.mrb[56].mxu0 %v4048_v17  ;;  %v4026_v62 = vsel %vm816_vm0, %v10867_v25, %v9293_v54  ;;  %v4025_v11 = vsel %vm816_vm0, %v10848_v30, %v9292_v35 }
 0xc48   : > { %v9301_v55 = vpop.permute.xlu1 %9300  ;;  %v4002_v12 = vsel %vm816_vm0, %v10840_v38, %v9298_v42  ;;  %v4001_v1 = vsel %vm816_vm0, %v10838_v49, %v9297_v24 }
 0xc49   : > { %v9306_v48 = vpop.permute.xlu0 %9305  ;;  %v9303_v28 = vunpack.i.h.bf16 %v9301_v55  ;;  %v9302_v60 = vunpack.i.l.bf16 %v9301_v55 }
 0xc4a   : > { %v9308_v34 = vunpack.i.h.bf16 %v9306_v48  ;;  %v9307_v23 = vunpack.i.l.bf16 %v9306_v48 }
 0xc4b   : > { %v4033_v61 = vsel %vm1493_vm5, %v4025_v11, %v9302_v60  ;;  %v4034_v58 = vsel %vm1493_vm5, %v4026_v62, %v9303_v28 }
 0xc4c   : > { %v9311_v16 = vpop.permute.xlu1 %9310  ;;  %v4009_v10 = vsel %vm1493_vm5, %v4001_v1, %v9307_v23  ;;  %v4010_v38 = vsel %vm1493_vm5, %v4002_v12, %v9308_v34 }
 0xc4d   : > { %v9313_v29 = vunpack.i.h.bf16 %v9311_v16  ;;  %v9312_v59 = vunpack.i.l.bf16 %v9311_v16  ;;  %v9316_v21 = vpop.permute.xlu0 %9315 }
 0xc4e   : > { %v9318_v7 = vunpack.i.h.bf16 %v9316_v21  ;;  %v9317_v22 = vunpack.i.l.bf16 %v9316_v21 }
 0xc4f   : > { %v4041_v25 = vsel %vm1933_vm6, %v4033_v61, %v9312_v59  ;;  %v4042_v30 = vsel %vm1933_vm6, %v4034_v58, %v9313_v29 }
 0xc50   : > { %v9321_v27 = vpop.permute.xlu1 %9320  ;;  %v4052_v56 = vpack.c.bf16 %v4042_v30, %v4041_v25  ;;  %v4017_v49 = vsel %vm1933_vm6, %v4009_v10, %v9317_v22  ;;  %v4018_v6 = vsel %vm1933_vm6, %v4010_v38, %v9318_v7 }
 0xc51   : > { %v9326_v47 = vpop.permute.xlu0 %9325  ;;  %v4051_v57 = vpack.c.bf16 %v4018_v6, %v4017_v49  ;;  %v9323_v8 = vunpack.i.h.bf16 %v9321_v27  ;;  %v9322_v32 = vunpack.i.l.bf16 %v9321_v27 }
 0xc52   : > { %4268 = vmatprep.mubr.bf16.mxu0 %v4052_v56  ;;  %v9328_v50 = vunpack.i.h.bf16 %v9326_v47  ;;  %v9327_v46 = vunpack.i.l.bf16 %v9326_v47 }
 0xc53   : > { %4269 = vmatmul.mubr.bf16.gmra.mrb[60].mxu0 %v4051_v57  ;;  %v4028_v17 = vsel %vm816_vm0, %v10884_v31, %v9323_v8  ;;  %v4027_v54 = vsel %vm816_vm0, %v10869_v45, %v9322_v32 }
 0xc54   : > { %v9331_v4 = vpop.permute.xlu1 %9330  ;;  %v4004_v55 = vsel %vm816_vm0, %v10861_v43, %v9328_v50  ;;  %v4003_v42 = vsel %vm816_vm0, %v10859_v63, %v9327_v46 }
 0xc55   : > { %v9336_v41 = vpop.permute.xlu0 %9335  ;;  %v9333_v36 = vunpack.i.h.bf16 %v9331_v4  ;;  %v9332_v20 = vunpack.i.l.bf16 %v9331_v4 }
 0xc56   : > { %v9338_v39 = vunpack.i.h.bf16 %v9336_v41  ;;  %v9337_v44 = vunpack.i.l.bf16 %v9336_v41 }
 0xc57   : > { %v4035_v23 = vsel %vm1493_vm5, %v4027_v54, %v9332_v20  ;;  %v4036_v62 = vsel %vm1493_vm5, %v4028_v17, %v9333_v36 }
 0xc58   : > { %v9341_v35 = vpop.permute.xlu1 %9340  ;;  %v4011_v11 = vsel %vm1493_vm5, %v4003_v42, %v9337_v44  ;;  %v4012_v43 = vsel %vm1493_vm5, %v4004_v55, %v9338_v39 }
 0xc59   : > { %v9343_v24 = vunpack.i.h.bf16 %v9341_v35  ;;  %v9342_v48 = vunpack.i.l.bf16 %v9341_v35  ;;  %v9346_v28 = vpop.permute.xlu0 %9345 }
 0xc5a   : > { %v9348_v60 = vunpack.i.h.bf16 %v9346_v28  ;;  %v9347_v34 = vunpack.i.l.bf16 %v9346_v28 }
 0xc5b   : > { %v4043_v31 = vsel %vm1933_vm6, %v4035_v23, %v9342_v48  ;;  %v4044_v45 = vsel %vm1933_vm6, %v4036_v62, %v9343_v24 }
 0xc5c   : > { %v4055_v16 = vpack.c.bf16 %v4044_v45, %v4043_v31  ;;  %v4019_v63 = vsel %vm1933_vm6, %v4011_v11, %v9347_v34  ;;  %v4020_v12 = vsel %vm1933_vm6, %v4012_v43, %v9348_v60  ;;  %v4371_v31 = vld [vmem:[%s12872_s22] sm:$0xff]  ;;  %v4372_v45 = vld [vmem:[%s12872_s22 + $0x8] sm:$0xff]  ;;  %v4373_v43 = vld [vmem:[%s12872_s22 + $0x10] sm:$0xff] }
 0xc5d   : > { %v4054_v1 = vpack.c.bf16 %v4020_v12, %v4019_v63  ;;  %v11059_v11 = vpack.c.bf16 %v4372_v45, %v4371_v31 }
 0xc5e   : > { %4276 = vmatprep.mubr.bf16.mxu0 %v4055_v16  ;;  %v4374_v16 = vld [vmem:[%s12872_s22 + $0x18] sm:$0xff] }
 0xc5f   : > { %4277 = vmatmul.mubr.bf16.gmra.mrb[64].mxu0 %v4054_v1  ;;  %8938 = vmatpush3.bf16.msra.mxu1 %v11059_v11  ;;  %v11069_v63 = vpack.c.bf16 %v4374_v16, %v4373_v43  ;;  %v8336_v1 = vld [vmem:[%s12865_s15] ss:$0 sm:$0xff] }
 0xc60   : > { %8879 = vmatprep.mubr.msk.bf16.mxu0 %vm816_vm0, %v9671_v9  ;;  %8939 = vmatprep.subr.bf16.mxu1 %v12893_v37 }
 0xc63   : > { %8941 = vmatpush3.bf16.msra.mxu1 %v11069_v63 }
 0xc64   : > { %8854 = vmatprep.subr.mxu1 %v12894_v3 }
 0xc8f   : > { %v10997_v29 = vpop.f32.mrb[56].mxu1 }
 0xc90   : > { %v10999_v59 = vpop.f32.mrb[57].mxu1 }
 0xc91   : > { %v11001_v21 = vpop.f32.mrb[58].mxu1 }
 0xc92   : > { %v11003_v7 = vpop.f32.mrb[59].mxu1 }
 0xc93   : > { %v1499_v22 = vpop.xlane.xlu0 %1498 }
 0xc94   : > { %v1519_v61 = vsub.f32 %v10893_v15, %v1499_v22 }
 0xc96   : > { %v1528_v58 = vmul.f32 1.442695, %v1519_v61 }
 0xc97   : > { %v11006_v25 = vpop.f32.mrb[60].mxu1  ;;  %v1502_v30 = vpop.xlane.xlu0 %1501 }
 0xc98   : > { %v1496_v10 = vpop.xlane.xlu1 %1495  ;;  %9417 = vpow2.f32 %v1528_v58  ;;  %v1520_v38 = vsub.f32 %v10899_v52, %v1502_v30  ;;  %v11010_v27 = vpop.f32.mrb[61].mxu1 }
 0xc99   : > { %v1518_v9 = vsub.f32 %v10896_v40, %v1496_v10  ;;  %v11012_v56 = vpop.f32.mrb[62].mxu1 }
 0xc9a   : > { %v11014_v6 = vpop.f32.mrb[63].mxu1  ;;  %v1530_v47 = vmul.f32 1.442695, %v1520_v38 }
 0xc9b   : > { %v1526_v49 = vmul.f32 1.442695, %v1518_v9  ;;  %v1508_v57 = vpop.xlane.xlu0 %1507 }
 0xc9c   : > { %v1505_v15 = vpop.xlane.xlu1 %1504  ;;  %v1522_v8 = vsub.f32 %v10904_v33, %v1508_v57 }
 0xc9d   : > { %v1521_v32 = vsub.f32 %v10907_v51, %v1505_v15  ;;  %9419 = vpow2.f32 %v1526_v49 }
 0xc9e   : > { %9421 = vpow2.f32 %v1530_v47  ;;  %v1534_v52 = vmul.f32 1.442695, %v1522_v8 }
 0xc9f   : > { %v1532_v4 = vmul.f32 1.442695, %v1521_v32  ;;  %v1514_v50 = vpop.xlane.xlu0 %1513 }
 0xca0   : > { %v1511_v40 = vpop.xlane.xlu1 %1510  ;;  %v1524_v46 = vsub.f32 %v10914_v2, %v1514_v50 }
 0xca1   : > { %v1523_v41 = vsub.f32 %v10917_v26, %v1511_v40  ;;  %9423 = vpow2.f32 %v1532_v4 }
 0xca2   : > { %v11020_v36 = vpop.eup %9417  ;;  %9425 = vpow2.f32 %v1534_v52  ;;  %v1538_v39 = vmul.f32 1.442695, %v1524_v46 }
 0xca3   : > { %v1536_v20 = vmul.f32 1.442695, %v1523_v41  ;;  %v1545_v33 = vsel %vm1493_vm5, %v11020_v36, 0.0 }
 0xca4   : > { %v1517_v44 = vpop.xlane.xlu1 %1516  ;;  %1546 = vadd.xlane.f32.xlu1 %v1545_v33 }
 0xca5   : > { %v1525_v51 = vsub.f32 %v10924_v0, %v1517_v44  ;;  %9427 = vpow2.f32 %v1536_v20 }
 0xca6   : > { %9429 = vpow2.f32 %v1538_v39 }
 0xca7   : > { %v1540_v17 = vmul.f32 1.442695, %v1525_v51  ;;  %v11025_v54 = vpop.eup %9419 }
 0xca8   : > { %v1542_v2 = vsel %vm1493_vm5, %v11025_v54, 0.0  ;;  %v11029_v26 = vpop.eup %9421 }
 0xca9   : > { %9431 = vpow2.f32 %v1540_v17  ;;  %1543 = vadd.xlane.f32.xlu0 %v1542_v2  ;;  %v1548_v0 = vsel %vm1493_vm5, %v11029_v26, 0.0 }
 0xcab   : > { %v11031_v35 = vpop.eup %9423 }
 0xcac   : > { %v1551_v55 = vsel %vm1493_vm5, %v11031_v35, 0.0  ;;  %v11037_v42 = vpop.eup %9425 }
 0xcad   : > { %1552 = vadd.xlane.f32.xlu1 %v1551_v55  ;;  %1549 = vadd.xlane.f32.xlu0 %v1548_v0  ;;  %v1554_v28 = vsel %vm1493_vm5, %v11037_v42, 0.0 }
 0xcaf   : > { %v11039_v24 = vpop.eup %9427 }
 0xcb0   : > { %v1557_v48 = vsel %vm1493_vm5, %v11039_v24, 0.0  ;;  %v11045_v60 = vpop.eup %9429 }
 0xcb1   : > { %1558 = vadd.xlane.f32.xlu1 %v1557_v48  ;;  %1555 = vadd.xlane.f32.xlu0 %v1554_v28  ;;  %v1560_v62 = vsel %vm1493_vm5, %v11045_v60, 0.0 }
 0xcb3   : > { %v11047_v34 = vpop.eup %9431 }
 0xcb4   : > { %v1563_v23 = vsel %vm1493_vm5, %v11047_v34, 0.0 }
 0xcb5   : > { %1564 = vadd.xlane.f32.xlu1 %v1563_v23  ;;  %1561 = vadd.xlane.f32.xlu0 %v1560_v62 }
 0xd0e   : > { %v8567_v12 = vpop.f32.mrb[52].mxu0 }
 0xd0f   : > { %v8568_v22 = vpop.f32.mrb[53].mxu0 }
 0xd10   : > { %v8569_v61 = vadd.f32 %v8568_v22, %v8567_v12  ;;  %v8570_v58 = vpop.f32.mrb[54].mxu0 }
 0xd11   : > { %v8571_v30 = vpop.f32.mrb[55].mxu0 }
 0xd12   : > { %v4255_v10 = vadd.f32 %v8569_v61, %v8336_v1  ;;  %v8572_v38 = vadd.f32 %v8571_v30, %v8570_v58 }
 0xd14   : > { %v11077_v9 = vadd.f32 %v10999_v59, %v4255_v10  ;;  %v4258_v49 = vadd.f32 %v8572_v38, %v8336_v1 }
 0xd16   : > { %v11080_v47 = vadd.f32 %v11003_v7, %v4258_v49  ;;  %v4350_v2 = vsel %vm816_vm0, %v11077_v9, 0.0 }
 0xd18   : > { %v4351_v33 = vsel %vm816_vm0, %v11080_v47, 0.0 }
 0xd19   : > { %v4352_v0 = vadd.f32 %v4351_v33, %v4350_v2 }
 0xd1a   : > { %v8573_v57 = vpop.f32.mrb[56].mxu0 }
 0xd1b   : > { %v8574_v15 = vpop.f32.mrb[57].mxu0 }
 0xd1c   : > { %v8575_v8 = vadd.f32 %v8574_v15, %v8573_v57  ;;  %v8576_v32 = vpop.f32.mrb[58].mxu0 }
 0xd1d   : > { %v8577_v4 = vpop.f32.mrb[59].mxu0 }
 0xd1e   : > { %v4263_v52 = vadd.f32 %v8575_v8, %v8336_v1  ;;  %v8578_v50 = vadd.f32 %v8577_v4, %v8576_v32 }
 0xd20   : > { %v11083_v40 = vadd.f32 %v10997_v29, %v4263_v52  ;;  %v4266_v46 = vadd.f32 %v8578_v50, %v8336_v1 }
 0xd22   : > { %v11086_v41 = vadd.f32 %v11001_v21, %v4266_v46  ;;  %v4353_v29 = vsel %vm816_vm0, %v11083_v40, 0.0 }
 0xd23   : > { %v4354_v28 = vadd.f32 %v4353_v29, %v4352_v0 }
 0xd24   : > { %v4355_v23 = vsel %vm816_vm0, %v11086_v41, 0.0 }
 0xd25   : > { %v4356_v45 = vadd.f32 %v4355_v23, %v4354_v28 }
 0xd26   : > { %v8579_v59 = vpop.f32.mrb[60].mxu0 }
 0xd27   : > { %v8580_v20 = vpop.f32.mrb[61].mxu0 }
 0xd28   : > { %v8581_v39 = vadd.f32 %v8580_v20, %v8579_v59  ;;  %v8582_v44 = vpop.f32.mrb[62].mxu0 }
 0xd29   : > { %v8583_v7 = vpop.f32.mrb[63].mxu0 }
 0xd2a   : > { %v4271_v51 = vadd.f32 %v8581_v39, %v8336_v1  ;;  %v8584_v17 = vadd.f32 %v8583_v7, %v8582_v44 }
 0xd2c   : > { %v11095_v55 = vadd.f32 %v11010_v27, %v4271_v51  ;;  %v4274_v21 = vadd.f32 %v8584_v17, %v8336_v1 }
 0xd2e   : > { %v11098_v48 = vadd.f32 %v11014_v6, %v4274_v21  ;;  %v4357_v62 = vsel %vm816_vm0, %v11095_v55, 0.0 }
 0xd2f   : > { %v4358_v22 = vadd.f32 %v4357_v62, %v4356_v45 }
 0xd30   : > { %v4359_v58 = vsel %vm816_vm0, %v11098_v48, 0.0 }
 0xd31   : > { %v1547_v27 = vpop.xlane.xlu1 %1546  ;;  %v4360_v57 = vadd.f32 %v4359_v58, %v4358_v22 }
 0xd32   : > { %v8585_v31 = vpop.f32.mrb[64].mxu0 }
 0xd33   : > { %v8586_v43 = vpop.f32.mrb[65].mxu0 }
 0xd34   : > { %v8587_v16 = vadd.f32 %v8586_v43, %v8585_v31  ;;  %v8588_v12 = vpop.f32.mrb[66].mxu0 }
 0xd35   : > { %v8589_v61 = vpop.f32.mrb[67].mxu0 }
 0xd36   : > { %v4279_v6 = vadd.f32 %v8587_v16, %v8336_v1  ;;  %v1544_v30 = vpop.xlane.xlu0 %1543  ;;  %v8590_v10 = vadd.f32 %v8589_v61, %v8588_v12 }
 0xd37   : > { %9433 = vrcp.f32 %v1544_v30 }
 0xd38   : > { %9435 = vrcp.f32 %v1547_v27  ;;  %v11107_v38 = vadd.f32 %v11006_v25, %v4279_v6  ;;  %v4282_v49 = vadd.f32 %v8590_v10, %v8336_v1 }
 0xd3a   : > { %v4361_v15 = vsel %vm816_vm0, %v11107_v38, 0.0  ;;  %v11112_v8 = vadd.f32 %v11012_v56, %v4282_v49  ;;  %v1553_v32 = vpop.xlane.xlu1 %1552  ;;  %v1550_v4 = vpop.xlane.xlu0 %1549 }
 0xd3b   : > { %v4362_v52 = vadd.f32 %v4361_v15, %v4360_v57  ;;  %9437 = vrcp.f32 %v1553_v32 }
 0xd3c   : > { %v4363_v50 = vsel %vm816_vm0, %v11112_v8, 0.0  ;;  %9439 = vrcp.f32 %v1550_v4  ;;  %v9482_v4 = vmov 1934713408  }
 0xd3d   : > { %v4364_v46 = vadd.f32 %v4363_v50, %v4362_v52  ;;  %v5065_v52 = vunpack.c.l.s4 %v9482_v4 }
 0xd3e   : > { %v1559_v59 = vpop.xlane.xlu1 %1558  ;;  %v1556_v25 = vpop.xlane.xlu0 %1555 }
 0xd3f   : > { %v4365_v20 = vrot.slane %v4364_v46, 4  ;;  %9441 = vrcp.f32 %v1559_v59 }
 0xd40   : > { %9443 = vrcp.f32 %v1556_v25 }
 0xd41   : > { %v9434_v1 = vpop.eup %9433  ;;  %v4366_v39 = vadd.f32 %v4365_v20, %v4364_v46 }
 0xd42   : > { %v9436_v44 = vpop.eup %9435  ;;  %v1565_v7 = vpop.xlane.xlu1 %1564  ;;  %v1574_v33 = vmul.f32 %v9434_v1, %v11025_v54  ;;  %v5066_v1 = vunpack.c.0.s8 %v5065_v52 }
 0xd43   : > { %v1562_v56 = vpop.xlane.xlu0 %1561  ;;  %v4367_v51 = vrot.slane %v4366_v39, 2  ;;  %9445 = vrcp.f32 %v1565_v7  ;;  %v1575_v2 = vmul.f32 %v9436_v44, %v11020_v36 }
 0xd44   : > { %9447 = vrcp.f32 %v1562_v56 }
 0xd45   : > { %v9438_v17 = vpop.eup %9437  ;;  %v4368_v29 = vadd.f32 %v4367_v51, %v4366_v39  ;;  %v1583_v0 = vadd.f32 %v1575_v2, %v1574_v33 }
 0xd46   : > { %v9440_v21 = vpop.eup %9439  ;;  %v1577_v45 = vmul.f32 %v9438_v17, %v11031_v35  ;;  %v11219_v17 = vsub.s32 %v5066_v1, %v10332_v53 }
 0xd47   : > { %v4369_v28 = vrot.slane %v4368_v29, 1  ;;  %v1576_v23 = vmul.f32 %v9440_v21, %v11029_v26 }
 0xd49   : > { %v9442_v62 = vpop.eup %9441  ;;  %v4370_v31 = vadd.f32 %v4369_v28, %v4368_v29  ;;  %v1584_v43 = vadd.f32 %v1583_v0, %v1576_v23 }
 0xd4a   : > { %v9444_v16 = vpop.eup %9443  ;;  %v1579_v22 = vmul.f32 %v9442_v62, %v11039_v24 }
 0xd4b   : > { %v1585_v12 = vadd.f32 %v1584_v43, %v1577_v45  ;;  %v1578_v54 = vmul.f32 %v9444_v16, %v11037_v42  ;;  %8852 = vmatmul.mubr.msk.f32.vlgmr.msra.gmra.mrb[64].mxu1 %vm816_vm0, %v4370_v31  ;;  %v11146_v42 = vld [vmem:[%s12873_s23] sm:$0xff] }
 0xd4c   : > { %8856 = vmatprep.mubr.msk.f32.mxu1 %vm9466_vm1, %v12894_v3  ;;  %8855 = vmatpush3.msra.mxu1 %v11146_v42 }
 0xd4d   : > { %v9446_v36 = vpop.eup %9445  ;;  %v1586_v27 = vadd.f32 %v1585_v12, %v1578_v54  ;;  %8942 = vmatprep.subr.bf16.mxu1 %v12893_v37 }
 0xd4e   : > { %v9448_v61 = vpop.eup %9447  ;;  %v1581_v35 = vmul.f32 %v9446_v36, %v11047_v34  ;;  %v9481_v34 = vmov 1983009808  }
 0xd4f   : > { %v1587_v26 = vadd.f32 %v1586_v27, %v1579_v22  ;;  %v1580_v58 = vmul.f32 %v9448_v61, %v11045_v60  ;;  %v5001_v49 = vunpack.c.l.s4 %v9481_v34 }
 0xd51   : > { %v1588_v6 = vadd.f32 %v1587_v26, %v1580_v58  ;;  %v5002_v32 = vunpack.c.0.s8 %v5001_v49 }
 0xd53   : > { %v1589_v30 = vadd.f32 %v1588_v6, %v1581_v35  ;;  %v11213_v25 = vsub.s32 %v5002_v32, %v10332_v53 }
 0xd55   : > { %v11127_v10 = vmul.f32 0.125, %v1589_v30 }
 0xd57   : > { %5249 = vrot.lane.b32.xlu1 %v11127_v10, %s12984_s21  ;;  %5246 = vrot.lane.b32.xlu0 %v11127_v10, %s12985_s2 }
 0xd5b   : > { %5255 = vrot.lane.b32.xlu1 %v11127_v10, %s12980_s7  ;;  %5252 = vrot.lane.b32.xlu0 %v11127_v10, %s12986_s4 }
 0xd5f   : > { %5261 = vrot.lane.b32.xlu1 %v11127_v10, %s12903_s5  ;;  %5258 = vrot.lane.b32.xlu0 %v11127_v10, %s12905_s28  ;;  %s12931_s5 = smov 127   ;;  %s12933_s28 = smov 56  }
 0xd63   : > { %5264 = vrot.lane.b32.xlu0 %v11127_v10, %s12900_s9  ;;  %s12935_s9 = smov 40  }
 0xdc9   : > { %v5250_v24 = vpop.permute.xlu1 %5249  ;;  %v5247_v60 = vpop.permute.xlu0 %5246 }
 0xdca   : > { %v5267_v20 = vcombine.low %v11127_v10, %v5250_v24  ;;  %v5268_v23 = vcombine.high %v11127_v10, %v5250_v24 }
 0xdcc   : > { %v5275_v56 = vrot.slane %v5267_v20, %v11213_v25  ;;  %v5282_v36 = vrot.slane %v5268_v23, %v11213_v25 }
 0xdcd   : > { %v5256_v57 = vpop.permute.xlu1 %5255  ;;  %v5253_v15 = vpop.permute.xlu0 %5252 }
 0xdce   : > { %v5283_v50 = vcombine.low %v5247_v60, %v5253_v15  ;;  %v5284_v2 = vcombine.high %v5247_v60, %v5253_v15 }
 0xdd0   : > { %v5291_v39 = vrot.slane %v5283_v50, %v11213_v25  ;;  %v5298_v43 = vrot.slane %v5284_v2, %v11213_v25 }
 0xdd1   : > { %v5262_v46 = vpop.permute.xlu1 %5261  ;;  %v5259_v59 = vpop.permute.xlu0 %5258 }
 0xdd2   : > { %v5299_v44 = vcombine.low %v5256_v57, %v5262_v46  ;;  %v5331_v29 = vcombine.low %v5275_v56, %v5291_v39  ;;  %v5300_v21 = vcombine.high %v5256_v57, %v5262_v46  ;;  %v5332_v16 = vcombine.high %v5275_v56, %v5291_v39 }
 0xdd3   : > { %v5347_v58 = vcombine.low %v5282_v36, %v5298_v43  ;;  %v5348_v60 = vcombine.high %v5282_v36, %v5298_v43 }
 0xdd4   : > { %v5307_v0 = vrot.slane %v5299_v44, %v11213_v25  ;;  %v5314_v12 = vrot.slane %v5300_v21, %v11213_v25  ;;  %v5339_v53 = vrot.slane %v5331_v29, %v11219_v17  ;;  %v5346_v35 = vrot.slane %v5332_v16, %v11219_v17 }
 0xdd5   : > { %v5265_v7 = vpop.permute.xlu0 %5264  ;;  %v5355_v34 = vrot.slane %v5347_v58, %v11219_v17  ;;  %v5362_v32 = vrot.slane %v5348_v60, %v11219_v17 }
 0xdd6   : > { %v5315_v33 = vcombine.low %v5259_v59, %v5265_v7  ;;  %v5316_v51 = vcombine.high %v5259_v59, %v5265_v7 }
 0xdd8   : > { %v5323_v28 = vrot.slane %v5315_v33, %v11213_v25  ;;  %v5330_v62 = vrot.slane %v5316_v51, %v11213_v25 }
 0xdda   : > { %v5363_v31 = vcombine.low %v5307_v0, %v5323_v28  ;;  %v5364_v45 = vcombine.high %v5307_v0, %v5323_v28  ;;  %v5379_v22 = vcombine.low %v5314_v12, %v5330_v62  ;;  %v5380_v6 = vcombine.high %v5314_v12, %v5330_v62 }
 0xddc   : > { %v5371_v54 = vrot.slane %v5363_v31, %v11219_v17  ;;  %v5378_v26 = vrot.slane %v5364_v45, %v11219_v17  ;;  %v5387_v24 = vrot.slane %v5379_v22, %v11219_v17  ;;  %v5394_v15 = vrot.slane %v5380_v6, %v11219_v17 }
 0xdde   : > { %v5396_v27 = vcombine.high %v5339_v53, %v5371_v54  ;;  %v5395_v61 = vcombine.low %v5339_v53, %v5371_v54  ;;  %v5398_v30 = vcombine.high %v5346_v35, %v5378_v26  ;;  %v5397_v10 = vcombine.low %v5346_v35, %v5378_v26 }
 0xddf   : > { %v5400_v49 = vcombine.high %v5355_v34, %v5387_v24  ;;  %v5399_v57 = vcombine.low %v5355_v34, %v5387_v24  ;;  %v5402_v4 = vcombine.high %v5362_v32, %v5394_v15  ;;  %v5401_v52 = vcombine.low %v5362_v32, %v5394_v15 }
 0xde0   : > { %5413 = vrot.lane.b32.xlu0 %v5396_v27, %s12898_s29  ;;  %5411 = vrot.lane.b32.xlu1 %v5395_v61, %s12898_s29 }
 0xde4   : > { %5417 = vrot.lane.b32.xlu0 %v5398_v30, %s12898_s29  ;;  %5415 = vrot.lane.b32.xlu1 %v5397_v10, %s12898_s29 }
 0xde8   : > { %5421 = vrot.lane.b32.xlu0 %v5400_v49, %s12898_s29  ;;  %5419 = vrot.lane.b32.xlu1 %v5399_v57, %s12898_s29 }
 0xdec   : > { %5425 = vrot.lane.b32.xlu0 %v5402_v4, %s12898_s29  ;;  %5423 = vrot.lane.b32.xlu1 %v5401_v52, %s12898_s29  ;;  %s12937_s29 = smov 48  }
 0xe1e   : > { %v4444_v50 = vpop.f32.mrb[64].mxu1 }
 0xe1f   : > { %v4448_v46 = vmul.f32 0.00390625, %v4444_v50  ;;  %v8853_v59 = vpop.f32.mrb[65].mxu1 }
 0xe21   : > { %8857 = vmatmul.mubr.msk.f32.vlgmr.msra.gmra.mrb[66].mxu1 %vm2371_vm7, %v4448_v46 }
 0xe22   : > { %8944 = vmatpush3.bf16.msra.mxu1 %v11059_v11  ;;  %8867 = vmatprep.mubr.msk.f32.mxu1 %vm9466_vm1, %v12894_v3 }
 0xe23   : > { %8945 = vmatprep.subr.bf16.mxu1 %v12893_v37 }
 0xe26   : > { %8947 = vmatpush3.bf16.msra.mxu1 %v11069_v63 }
 0xe27   : > { %8870 = vmatprep.subr.mxu1 %v12894_v3 }
 0xe52   : > { %v5414_v20 = vpop.permute.xlu0 %5413  ;;  %v5412_v1 = vpop.permute.xlu1 %5411 }
 0xe53   : > { %5436 = vst.msk [vmem:[#allocation5 + $0x11] sm:$0xff] %vm5219_vm10, %v5414_v20  ;;  %5435 = vst.msk [vmem:[#allocation5 + $0x1] sm:$0xff] %vm5219_vm10, %v5412_v1 }
 0xe56   : > { %v5418_v39 = vpop.permute.xlu0 %5417  ;;  %v5416_v44 = vpop.permute.xlu1 %5415 }
 0xe57   : > { %5438 = vst.msk [vmem:[#allocation5 + $0x31] sm:$0xff] %vm5219_vm10, %v5418_v39  ;;  %5437 = vst.msk [vmem:[#allocation5 + $0x21] sm:$0xff] %vm5219_vm10, %v5416_v44 }
 0xe5a   : > { %v5422_v11 = vpop.permute.xlu0 %5421  ;;  %v5420_v7 = vpop.permute.xlu1 %5419  ;;  %v11257_v33 = vld [vmem:[#allocation5] sm:$0xff]  ;;  %v11265_v29 = vld [vmem:[#allocation5 + $0x10] sm:$0xff] }
 0xe5b   : > { %5440 = vst.msk [vmem:[#allocation5 + $0x51] sm:$0xff] %vm5219_vm10, %v5422_v11  ;;  %5439 = vst.msk [vmem:[#allocation5 + $0x41] sm:$0xff] %vm5219_vm10, %v5420_v7  ;;  %v11275_v62 = vld [vmem:[#allocation5 + $0x1] sm:$0xff]  ;;  %v11277_v31 = vld [vmem:[#allocation5 + $0x11] sm:$0xff] }
 0xe5e   : > { %v5426_v63 = vpop.permute.xlu0 %5425  ;;  %v5424_v56 = vpop.permute.xlu1 %5423  ;;  %v11259_v51 = vld [vmem:[#allocation5 + $0x20] sm:$0xff]  ;;  %v11261_v2 = vld [vmem:[#allocation5 + $0x30] sm:$0xff] }
 0xe5f   : > { %5442 = vst.msk [vmem:[#allocation5 + $0x71] sm:$0xff] %vm5219_vm10, %v5426_v63  ;;  %5441 = vst.msk [vmem:[#allocation5 + $0x61] sm:$0xff] %vm5219_vm10, %v5424_v56  ;;  %v11267_v21 = vld [vmem:[#allocation5 + $0x21] sm:$0xff]  ;;  %v11269_v0 = vld [vmem:[#allocation5 + $0x31] sm:$0xff]  ;;  %v5503_v28 = vcombine.low %v11257_v33, %v11259_v51  ;;  %v5519_v23 = vcombine.low %v11265_v29, %v11261_v2  ;;  %v5504_v45 = vcombine.high %v11257_v33, %v11259_v51 }
 0xe60   : > { %v5520_v43 = vcombine.high %v11265_v29, %v11261_v2  ;;  %v6453_v16 = vcombine.low %v11275_v62, %v11267_v21  ;;  %v6469_v12 = vcombine.low %v11277_v31, %v11269_v0 }
 0xe61   : > { %v5511_v53 = vrot.slane %v5503_v28, %v11213_v25  ;;  %v5527_v54 = vrot.slane %v5519_v23, %v11213_v25  ;;  %v5518_v26 = vrot.slane %v5504_v45, %v11213_v25 }
 0xe62   : > { %v11289_v36 = vld [vmem:[#allocation5 + $0x40] sm:$0xff]  ;;  %v11291_v22 = vld [vmem:[#allocation5 + $0x50] sm:$0xff]  ;;  %v5534_v58 = vrot.slane %v5520_v43, %v11213_v25  ;;  %v11302_v6 = vrot.slane %v6453_v16, %v11213_v25  ;;  %v11305_v30 = vrot.slane %v6469_v12, %v11213_v25 }
 0xe63   : > { %v11315_v49 = vld [vmem:[#allocation5 + $0x41] sm:$0xff]  ;;  %v11317_v57 = vld [vmem:[#allocation5 + $0x51] sm:$0xff]  ;;  %v5568_v32 = vcombine.high %v5511_v53, %v5527_v54  ;;  %v5567_v4 = vcombine.low %v5511_v53, %v5527_v54 }
 0xe64   : > { %v5583_v56 = vcombine.low %v5518_v26, %v5534_v58  ;;  %v6517_v28 = vcombine.low %v11302_v6, %v11305_v30 }
 0xe65   : > { %v5582_v45 = vrot.slane %v5568_v32, %v11219_v17  ;;  %v11342_v16 = vrot.slane %v5567_v4, %v11219_v17 }
 0xe66   : > { %v11293_v27 = vld [vmem:[#allocation5 + $0x60] sm:$0xff]  ;;  %v11295_v61 = vld [vmem:[#allocation5 + $0x70] sm:$0xff]  ;;  %v5591_v32 = vrot.slane %v5583_v56, %v11219_v17 }
 0xe67   : > { %v11299_v35 = vld [vmem:[#allocation5 + $0x61] sm:$0xff]  ;;  %v5535_v10 = vcombine.low %v11289_v36, %v11293_v27  ;;  %v5551_v24 = vcombine.low %v11291_v22, %v11295_v61  ;;  %v5536_v60 = vcombine.high %v11289_v36, %v11293_v27  ;;  %v5552_v34 = vcombine.high %v11291_v22, %v11295_v61  ;;  %v11319_v15 = vld [vmem:[#allocation5 + $0x71] sm:$0xff]  ;;  %12987 = vst [vmem:[#allocation9_spill] sm:$0xff] %v11342_v16 }
 0xe68   : > { %v6485_v52 = vcombine.low %v11315_v49, %v11299_v35  ;;  %v6501_v50 = vcombine.low %v11317_v57, %v11319_v15 }
 0xe69   : > { %v5543_v46 = vrot.slane %v5535_v10, %v11213_v25  ;;  %v5559_v59 = vrot.slane %v5551_v24, %v11213_v25  ;;  %v5550_v20 = vrot.slane %v5536_v60, %v11213_v25  ;;  %v5566_v1 = vrot.slane %v5552_v34, %v11213_v25  ;;  %v11353_v34 = vld [vmem:[#allocation5 + $0x22] sm:$0xff] }
 0xe6a   : > { %v11330_v39 = vrot.slane %v6485_v52, %v11213_v25  ;;  %v11333_v44 = vrot.slane %v6501_v50, %v11213_v25  ;;  %v5584_v52 = vcombine.high %v5518_v26, %v5534_v58  ;;  %v11359_v50 = vrot.slane %v6517_v28, %v11219_v17  ;;  %v11378_v28 = vld [vmem:[#allocation5 + $0x42] sm:$0xff] }
 0xe6b   : > { %v5600_v11 = vcombine.high %v5543_v46, %v5559_v59  ;;  %v5599_v7 = vcombine.low %v5543_v46, %v5559_v59  ;;  %v5615_v63 = vcombine.low %v5550_v20, %v5566_v1  ;;  %v5616_v54 = vcombine.high %v5550_v20, %v5566_v1  ;;  %v11361_v46 = vld [vmem:[#allocation5 + $0x32] sm:$0xff]  ;;  %v11365_v59 = vld [vmem:[#allocation5 + $0x2] sm:$0xff] }
 0xe6c   : > { %v6549_v23 = vcombine.low %v11330_v39, %v11333_v44  ;;  %v11367_v20 = vld [vmem:[#allocation5 + $0x62] sm:$0xff]  ;;  %v7315_v56 = vcombine.high %v11365_v59, %v11353_v34 }
 0xe6d   : > { %v5614_v43 = vrot.slane %v5600_v11, %v11219_v17  ;;  %v11345_v12 = vrot.slane %v5599_v7, %v11219_v17  ;;  %v5623_v53 = vrot.slane %v5615_v63, %v11219_v17  ;;  %v5630_v26 = vrot.slane %v5616_v54, %v11219_v17  ;;  %v11374_v7 = vld [vmem:[#allocation5 + $0x12] sm:$0xff] }
 0xe6e   : > { %v11349_v10 = vrot.slane %v6549_v23, %v11219_v17  ;;  %v7314_v11 = vcombine.low %v11365_v59, %v11353_v34  ;;  %v7330_v23 = vcombine.low %v11374_v7, %v11361_v46  ;;  %v7331_v54 = vcombine.high %v11374_v7, %v11361_v46 }
 0xe6f   : > { %12988 = vst [vmem:[#allocation10_spill] sm:$0xff] %v11345_v12  ;;  %v5633_v24 = vcombine.low %v5582_v45, %v5614_v43  ;;  %v5632_v60 = vcombine.high %v11342_v16, %v11345_v12  ;;  %v5635_v1 = vcombine.low %v5591_v32, %v5623_v53  ;;  %v5634_v63 = vcombine.high %v5582_v45, %v5614_v43  ;;  %v11389_v45 = vld [vmem:[#allocation5 + $0x72] sm:$0xff] }
 0xe70   : > { %v7347_v58 = vcombine.high %v11378_v28, %v11367_v20  ;;  %12989 = vst [vmem:[#allocation11_spill] sm:$0xff] %v11389_v45  ;;  %v11394_v43 = vrot.slane %v7315_v56, %v11213_v25  ;;  %v11397_v4 = vrot.slane %v7331_v54, %v11213_v25  ;;  %v5636_v37 = vcombine.high %v5591_v32, %v5623_v53  ;;  %v11405_v16 = vld [vmem:[#allocation5 + $0x52] sm:$0xff] }
 0xe71   : > { %5644 = vrot.lane.b32.xlu0 %v5633_v24, %s12945_s27  ;;  %5640 = vrot.lane.b32.xlu1 %v5632_v60, %s12943_s3  ;;  %v5598_v24 = vrot.slane %v5584_v52, %v11219_v17  ;;  %v7346_v60 = vcombine.low %v11378_v28, %v11367_v20  ;;  %v11400_v3 = vrot.slane %v7314_v11, %v11213_v25 }
 0xe72   : > { %12990 = vst [vmem:[#allocation12_spill] sm:$0xff] %v11394_v43  ;;  %12991 = vst [vmem:[#allocation13_spill] sm:$0xff] %v11397_v4  ;;  %v11403_v12 = vrot.slane %v7330_v23, %v11213_v25  ;;  %v7362_v56 = vcombine.low %v11405_v16, %v11389_v45  ;;  %v7363_v53 = vcombine.high %v11405_v16, %v11389_v45 }
 0xe73   : > { %v5637_v52 = vcombine.low %v5598_v24, %v5630_v26  ;;  %12992 = vst [vmem:[#allocation14_spill] sm:$0xff] %v11400_v3  ;;  %v7395_v32 = vcombine.high %v11394_v43, %v11397_v4  ;;  %v5638_v54 = vcombine.high %v5598_v24, %v5630_v26 }
 0xe74   : > { %12993 = vst [vmem:[#allocation15_spill] sm:$0xff] %v11403_v12  ;;  %v11422_v11 = vrot.slane %v7362_v56, %v11213_v25  ;;  %v7378_v23 = vcombine.low %v11400_v3, %v11403_v12 }
 0xe75   : > { %5652 = vrot.lane.b32.xlu0 %v5635_v1, %s12983_s1  ;;  %5648 = vrot.lane.b32.xlu1 %v5634_v63, %s12939_s0  ;;  %v11408_v1 = vrot.slane %v7346_v60, %v11213_v25  ;;  %v11411_v63 = vrot.slane %v7347_v58, %v11213_v25  ;;  %v11425_v58 = vrot.slane %v7363_v53, %v11213_v25 }
 0xe76   : > { %12996 = vst [vmem:[#allocation18_spill] sm:$0xff] %v11422_v11  ;;  %v11443_v26 = vrot.slane %v7395_v32, %v11219_v17 }
 0xe77   : > { %12994 = vst [vmem:[#allocation16_spill] sm:$0xff] %v11408_v1  ;;  %12995 = vst [vmem:[#allocation17_spill] sm:$0xff] %v11411_v63  ;;  %v7410_v60 = vcombine.low %v11408_v1, %v11422_v11  ;;  %v7427_v43 = vcombine.high %v11411_v63, %v11425_v58 }
 0xe78   : > { %12997 = vst [vmem:[#allocation19_spill] sm:$0xff] %v11425_v58  ;;  %13000 = vst [vmem:[#allocation22_spill] sm:$0xff] %v11443_v26 }
 0xe79   : > { %5660 = vrot.lane.b32.xlu0 %v5637_v52, %s12937_s29  ;;  %5656 = vrot.lane.b32.xlu1 %v5636_v37, %s12935_s9  ;;  %v11437_v37 = vrot.slane %v7410_v60, %v11219_v17  ;;  %v11440_v52 = vrot.slane %v7378_v23, %v11219_v17  ;;  %v11446_v24 = vrot.slane %v7427_v43, %v11219_v17 }
 0xe7b   : > { %12998 = vst [vmem:[#allocation20_spill] sm:$0xff] %v11437_v37  ;;  %12999 = vst [vmem:[#allocation21_spill] sm:$0xff] %v11440_v52 }
 0xe7c   : > { %13001 = vst [vmem:[#allocation23_spill] sm:$0xff] %v11446_v24 }
 0xe7d   : > { %5865 = vrot.lane.b32.xlu0 %v11265_v29, %s12931_s5  ;;  %5664 = vrot.lane.b32.xlu1 %v5638_v54, %s12933_s28 }
 0xe81   : > { %5869 = vrot.lane.b32.xlu0 %v11261_v2, %s12931_s5  ;;  %5863 = vrot.lane.b32.xlu1 %v11257_v33, %s12931_s5 }
 0xe85   : > { %5873 = vrot.lane.b32.xlu0 %v11291_v22, %s12931_s5  ;;  %5867 = vrot.lane.b32.xlu1 %v11259_v51, %s12931_s5 }
 0xe89   : > { %5877 = vrot.lane.b32.xlu0 %v11295_v61, %s12931_s5  ;;  %5871 = vrot.lane.b32.xlu1 %v11289_v36, %s12931_s5 }
 0xe8d   : > { %5875 = vrot.lane.b32.xlu1 %v11293_v27, %s12931_s5  ;;  %s12941_s5 = smov 126  }
 0xee3   : > { %v11468_v43 = vpop.permute.xlu0 %5644  ;;  %v11470_v32 = vpop.permute.xlu1 %5640 }
 0xee4   : > { %13002 = vst [vmem:[#allocation24_spill] sm:$0xff] %v11468_v43  ;;  %13003 = vst [vmem:[#allocation25_spill] sm:$0xff] %v11470_v32 }
 0xee7   : > { %v11472_v23 = vpop.permute.xlu0 %5652  ;;  %v11474_v60 = vpop.permute.xlu1 %5648 }
 0xee8   : > { %13004 = vst [vmem:[#allocation26_spill] sm:$0xff] %v11472_v23  ;;  %13005 = vst [vmem:[#allocation27_spill] sm:$0xff] %v11474_v60 }
 0xeeb   : > { %v11476_v54 = vpop.permute.xlu0 %5660  ;;  %v11478_v53 = vpop.permute.xlu1 %5656 }
 0xeec   : > { %13006 = vst [vmem:[#allocation28_spill] sm:$0xff] %v11476_v54  ;;  %13007 = vst [vmem:[#allocation29_spill] sm:$0xff] %v11478_v53 }
 0xeef   : > { %v5866_v56 = vpop.permute.xlu0 %5865  ;;  %v11480_v24 = vpop.permute.xlu1 %5664 }
 0xef0   : > { %13008 = vst [vmem:[#allocation30_spill] sm:$0xff] %v11480_v24 }
 0xef3   : > { %v5870_v26 = vpop.permute.xlu0 %5869  ;;  %v5864_v4 = vpop.permute.xlu1 %5863 }
 0xef4   : > { %v4519_v63 = vpop.f32.mrb[66].mxu1  ;;  %v5904_v1 = vcombine.high %v5866_v56, %v5870_v26 }
 0xef5   : > { %v4526_v58 = vrot.slane %v4519_v63, %v10335_v5  ;;  %v8858_v52 = vpop.f32.mrb[67].mxu1  ;;  %v5903_v63 = vcombine.low %v5866_v56, %v5870_v26 }
 0xef7   : > { %v11484_v43 = vsub.f32 %v11077_v9, %v4526_v58  ;;  %v11487_v23 = vsub.f32 %v11080_v47, %v4526_v58  ;;  %v5874_v60 = vpop.permute.xlu0 %5873  ;;  %v5868_v32 = vpop.permute.xlu1 %5867  ;;  %v11490_v54 = vsub.f32 %v11083_v40, %v4526_v58  ;;  %v11497_v52 = vsub.f32 %v11086_v41, %v4526_v58 }
 0xef8   : > { %v5887_v53 = vcombine.low %v5864_v4, %v5868_v32  ;;  %v5888_v9 = vcombine.high %v5864_v4, %v5868_v32  ;;  %v11500_v12 = vsub.f32 %v11095_v55, %v4526_v58  ;;  %v11503_v40 = vsub.f32 %v11098_v48, %v4526_v58 }
 0xef9   : > { %13009 = vst [vmem:[#allocation31_spill] sm:$0xff] %v11484_v43  ;;  %13010 = vst [vmem:[#allocation32_spill] sm:$0xff] %v11487_v23  ;;  %v4535_v24 = vmul.f32 %v11484_v43, %v11484_v43  ;;  %v4536_v37 = vmul.f32 %v11487_v23, %v11487_v23  ;;  %v4537_v11 = vmul.f32 %v11490_v54, %v11490_v54 }
 0xefa   : > { %13011 = vst [vmem:[#allocation33_spill] sm:$0xff] %v11490_v54  ;;  %13012 = vst [vmem:[#allocation34_spill] sm:$0xff] %v11497_v52  ;;  %v5895_v18 = vrot.slane %v5887_v53, %v11213_v25  ;;  %v5911_v4 = vrot.slane %v5903_v63, %v11213_v25  ;;  %v11512_v55 = vsub.f32 %v11107_v38, %v4526_v58 }
 0xefb   : > { %v5878_v3 = vpop.permute.xlu0 %5877  ;;  %v5872_v47 = vpop.permute.xlu1 %5871  ;;  %13013 = vst [vmem:[#allocation35_spill] sm:$0xff] %v11503_v40  ;;  %v4543_v43 = vsel %vm816_vm0, %v4535_v24, 0.0  ;;  %v4544_v41 = vsel %vm816_vm0, %v4536_v37, 0.0  ;;  %v4538_v48 = vmul.f32 %v11497_v52, %v11497_v52  ;;  %v5902_v26 = vrot.slane %v5888_v9, %v11213_v25 }
 0xefc   : > { %v5935_v23 = vcombine.low %v5874_v60, %v5878_v3  ;;  %v5936_v32 = vcombine.high %v5874_v60, %v5878_v3  ;;  %v11518_v54 = vsub.f32 %v11112_v8, %v4526_v58  ;;  %v4539_v24 = vmul.f32 %v11500_v12, %v11500_v12 }
 0xefd   : > { %v4545_v53 = vadd.f32 %v4544_v41, %v4543_v43  ;;  %v4540_v3 = vmul.f32 %v11503_v40, %v11503_v40  ;;  %v4546_v38 = vsel %vm816_vm0, %v4537_v11, 0.0  ;;  %v5951_v60 = vcombine.low %v5895_v18, %v5911_v4 }
 0xefe   : > { %v5952_v63 = vcombine.high %v5895_v18, %v5911_v4  ;;  %v5943_v52 = vrot.slane %v5935_v23, %v11213_v25  ;;  %v5950_v45 = vrot.slane %v5936_v32, %v11213_v25  ;;  %v4548_v43 = vsel %vm816_vm0, %v4538_v48, 0.0 }
 0xeff   : > { %v5876_v56 = vpop.permute.xlu1 %5875  ;;  %v4547_v9 = vadd.f32 %v4546_v38, %v4545_v53  ;;  %v4541_v41 = vmul.f32 %v11512_v55, %v11512_v55  ;;  %v4550_v23 = vsel %vm816_vm0, %v4539_v24, 0.0  ;;  %v4542_v53 = vmul.f32 %v11518_v54, %v11518_v54 }
 0xf00   : > { %v5919_v37 = vcombine.low %v5872_v47, %v5876_v56  ;;  %v5920_v5 = vcombine.high %v5872_v47, %v5876_v56  ;;  %v5918_v47 = vrot.slane %v5904_v1, %v11213_v25  ;;  %v5966_v32 = vrot.slane %v5952_v63, %v11219_v17 }
 0xf01   : > { %v4549_v56 = vadd.f32 %v4548_v43, %v4547_v9  ;;  %v11539_v1 = vrot.slane %v5951_v60, %v11219_v17  ;;  %v4554_v24 = vsel %vm816_vm0, %v4541_v41, 0.0 }
 0xf02   : > { %v5927_v8 = vrot.slane %v5919_v37, %v11213_v25  ;;  %v5934_v58 = vrot.slane %v5920_v5, %v11213_v25  ;;  %v5967_v4 = vcombine.low %v5902_v26, %v5918_v47 }
 0xf03   : > { %v4551_v5 = vadd.f32 %v4550_v23, %v4549_v56 }
 0xf04   : > { %v5983_v11 = vcombine.low %v5927_v8, %v5943_v52  ;;  %v5984_v40 = vcombine.high %v5927_v8, %v5943_v52  ;;  %v5999_v18 = vcombine.low %v5934_v58, %v5950_v45  ;;  %v4552_v52 = vsel %vm816_vm0, %v4540_v3, 0.0 }
 0xf05   : > { %v4553_v38 = vadd.f32 %v4552_v52, %v4551_v5  ;;  %v6000_v9 = vcombine.high %v5934_v58, %v5950_v45  ;;  %v5975_v60 = vrot.slane %v5967_v4, %v11219_v17  ;;  %v4556_v3 = vsel %vm816_vm0, %v4542_v53, 0.0 }
 0xf06   : > { %v5998_v48 = vrot.slane %v5984_v40, %v11219_v17  ;;  %v11542_v37 = vrot.slane %v5983_v11, %v11219_v17  ;;  %v6007_v43 = vrot.slane %v5999_v18, %v11219_v17  ;;  %v5968_v40 = vcombine.high %v5902_v26, %v5918_v47 }
 0xf07   : > { %v4555_v56 = vadd.f32 %v4554_v24, %v4553_v38  ;;  %v6014_v23 = vrot.slane %v6000_v9, %v11219_v17  ;;  %v13014_v24 = vmov 0.0  }
 0xf08   : > { %v6017_v8 = vcombine.low %v5966_v32, %v5998_v48  ;;  %v6016_v63 = vcombine.high %v11539_v1, %v11542_v37  ;;  %v6019_v58 = vcombine.low %v5975_v60, %v6007_v43  ;;  %v6018_v11 = vcombine.high %v5966_v32, %v5998_v48 }
 0xf09   : > { %v4557_v45 = vadd.f32 %v4556_v3, %v4555_v56  ;;  %v5982_v26 = vrot.slane %v5968_v40, %v11219_v17  ;;  %v6020_v4 = vcombine.high %v5975_v60, %v6007_v43 }
 0xf0a   : > { %6028 = vrot.lane.b32.xlu0 %v6017_v8, %s12945_s27  ;;  %6024 = vrot.lane.b32.xlu1 %v6016_v63, %s12943_s3 }
 0xf0b   : > { %v4558_v5 = vrot.slane %v4557_v45, 4  ;;  %v6021_v18 = vcombine.low %v5982_v26, %v6014_v23  ;;  %v6022_v38 = vcombine.high %v5982_v26, %v6014_v23 }
 0xf0d   : > { %v4559_v47 = vadd.f32 %v4558_v5, %v4557_v45 }
 0xf0e   : > { %6036 = vrot.lane.b32.xlu0 %v6019_v58, %s12983_s1  ;;  %6032 = vrot.lane.b32.xlu1 %v6018_v11, %s12939_s0  ;;  %s13025_s0 = smov 56  }
 0xf0f   : > { %v4560_v52 = vrot.slane %v4559_v47, 2 }
 0xf11   : > { %v4561_v53 = vadd.f32 %v4560_v52, %v4559_v47 }
 0xf12   : > { %6044 = vrot.lane.b32.xlu0 %v6021_v18, %s12937_s29  ;;  %6040 = vrot.lane.b32.xlu1 %v6020_v4, %s12935_s9  ;;  %s13023_s9 = smov 48   ;;  %s13024_s29 = smov 40  }
 0xf13   : > { %v4562_v32 = vrot.slane %v4561_v53, 1 }
 0xf15   : > { %v4563_v48 = vadd.f32 %v4562_v32, %v4561_v53 }
 0xf16   : > { %6154 = vrot.lane.b32.xlu0 %v11257_v33, %s12941_s5  ;;  %6048 = vrot.lane.b32.xlu1 %v6022_v38, %s12933_s28  ;;  %v9410_v33 = vld [vmem:[%s12868_s18 + $0x8] sm:$0xff]   ;;  %s13022_s28 = smov 24  }
 0xf17   : > { %8868 = vmatmul.mubr.msk.f32.vlgmr.msra.gmra.mrb[68].mxu1 %vm816_vm0, %v4563_v48 }
 0xf18   : > { %8871 = vmatpush3.msra.mxu1 %v11146_v42  ;;  %8872 = vmatprep.mubr.msk.f32.mxu1 %vm9466_vm1, %v13014_v24  ;;  %v9409_v42 = vld [vmem:[%s12868_s18] sm:$0xff]  }
 0xf19   : > { %8887 = vmatprep.subr.bf16.mxu1 %v13014_v24  ;;  %8875 = vmatprep.subr.bf16.mxu0 %v9409_v42 }
 0xf1a   : > { %6158 = vrot.lane.b32.xlu0 %v11259_v51, %s12941_s5  ;;  %6156 = vrot.lane.b32.xlu1 %v11265_v29, %s12941_s5 }
 0xf1b   : > { %8876 = vmatpush3.bf16.msra.mxu0 %v9409_v42 }
 0xf1c   : > { %8877 = vmatprep.subr.bf16.mxu0 %v9410_v33 }
 0xf1e   : > { %6162 = vrot.lane.b32.xlu0 %v11289_v36, %s12941_s5  ;;  %6160 = vrot.lane.b32.xlu1 %v11261_v2, %s12941_s5 }
 0xf1f   : > { %8878 = vmatpush3.bf16.msra.mxu0 %v9410_v33 }
 0xf20   : > { %8899 = vmatprep.subr.bf16.mxu0 %v13014_v24 }
 0xf22   : > { %6166 = vrot.lane.b32.xlu0 %v11293_v27, %s12941_s5  ;;  %6164 = vrot.lane.b32.xlu1 %v11291_v22, %s12941_s5 }
 0xf23   : > { %8880 = vmatmul.mubr.msk.bf16.vlgmr.msra.gmra.mrb[68].mxu0 %vm816_vm0, %v9676_v13 }
 0xf24   : > { %8883 = vmatprep.mubr.msk.bf16.mxu0 %vm816_vm0, %v9679_v14 }
 0xf26   : > { %6168 = vrot.lane.b32.xlu1 %v11295_v61, %s12941_s5  ;;  %s13026_s5 = smov 127  }
 0xf2b   : > { %8884 = vmatmul.mubr.msk.bf16.gmra.mrb[72].mxu0 %vm816_vm0, %v9699_v19 }
 0xf2c   : > { %8901 = vmatprep.mubr.msk.bf16.mxu0 %vm9466_vm1, %v13014_v24 }
 0xf7c   : > { %v11594_v51 = vpop.permute.xlu0 %6028  ;;  %v11596_v2 = vpop.permute.xlu1 %6024 }
 0xf7d   : > { %13015 = vst [vmem:[#allocation36_spill] sm:$0xff] %v11594_v51  ;;  %v13074_v51 = vld [vmem:[#allocation22_spill] sm:$0xff] }
 0xf80   : > { %v11600_v29 = vpop.permute.xlu0 %6036  ;;  %v11602_v36 = vpop.permute.xlu1 %6032 }
 0xf81   : > { %13016 = vst [vmem:[#allocation37_spill] sm:$0xff] %v11600_v29  ;;  %13017 = vst [vmem:[#allocation38_spill] sm:$0xff] %v11602_v36 }
 0xf84   : > { %v11606_v22 = vpop.permute.xlu0 %6044  ;;  %v11608_v13 = vpop.permute.xlu1 %6040 }
 0xf85   : > { %13018 = vst [vmem:[#allocation39_spill] sm:$0xff] %v11606_v22  ;;  %13019 = vst [vmem:[#allocation40_spill] sm:$0xff] %v11608_v13 }
 0xf88   : > { %v6155_v27 = vpop.permute.xlu0 %6154  ;;  %v11610_v14 = vpop.permute.xlu1 %6048 }
 0xf89   : > { %13020 = vst [vmem:[#allocation41_spill] sm:$0xff] %v11610_v14 }
 0xf8c   : > { %v6159_v61 = vpop.permute.xlu0 %6158  ;;  %v6157_v9 = vpop.permute.xlu1 %6156 }
 0xf8d   : > { %v6178_v19 = vcombine.low %v6155_v27, %v6159_v61  ;;  %v6179_v11 = vcombine.high %v6155_v27, %v6159_v61 }
 0xf8f   : > { %v6186_v23 = vrot.slane %v6178_v19, %v11213_v25  ;;  %v6193_v42 = vrot.slane %v6179_v11, %v11213_v25 }
 0xf90   : > { %v6163_v8 = vpop.permute.xlu0 %6162  ;;  %v6161_v63 = vpop.permute.xlu1 %6160 }
 0xf91   : > { %v6194_v43 = vcombine.low %v6157_v9, %v6161_v63  ;;  %v6195_v60 = vcombine.high %v6157_v9, %v6161_v63 }
 0xf93   : > { %v6202_v3 = vrot.slane %v6194_v43, %v11213_v25  ;;  %v6209_v18 = vrot.slane %v6195_v60, %v11213_v25 }
 0xf94   : > { %v6167_v56 = vpop.permute.xlu0 %6166  ;;  %v6165_v40 = vpop.permute.xlu1 %6164 }
 0xf95   : > { %v6210_v45 = vcombine.low %v6163_v8, %v6167_v56  ;;  %v6211_v58 = vcombine.high %v6163_v8, %v6167_v56  ;;  %v6242_v4 = vcombine.low %v6186_v23, %v6202_v3  ;;  %v6243_v52 = vcombine.high %v6186_v23, %v6202_v3 }
 0xf96   : > { %v6258_v9 = vcombine.low %v6193_v42, %v6209_v18  ;;  %v6486_v23 = vcombine.high %v11315_v49, %v11299_v35 }
 0xf97   : > { %v6218_v53 = vrot.slane %v6210_v45, %v11213_v25  ;;  %v6225_v38 = vrot.slane %v6211_v58, %v11213_v25  ;;  %v6257_v8 = vrot.slane %v6243_v52, %v11219_v17  ;;  %v11623_v43 = vrot.slane %v6242_v4, %v11219_v17 }
 0xf98   : > { %v6169_v5 = vpop.permute.xlu1 %6168  ;;  %v6259_v58 = vcombine.high %v6193_v42, %v6209_v18  ;;  %v6266_v11 = vrot.slane %v6258_v9, %v11219_v17  ;;  %v6502_v4 = vcombine.high %v11317_v57, %v11319_v15  ;;  %v6454_v52 = vcombine.high %v11275_v62, %v11267_v21 }
 0xf99   : > { %v6226_v26 = vcombine.low %v6165_v40, %v6169_v5  ;;  %v6227_v47 = vcombine.high %v6165_v40, %v6169_v5  ;;  %v6500_v42 = vrot.slane %v6486_v23, %v11213_v25 }
 0xf9a   : > { %v6273_v18 = vrot.slane %v6259_v58, %v11219_v17 }
 0xf9b   : > { %v6234_v32 = vrot.slane %v6226_v26, %v11213_v25  ;;  %v6241_v48 = vrot.slane %v6227_v47, %v11213_v25 }
 0xf9d   : > { %v6274_v33 = vcombine.low %v6218_v53, %v6234_v32  ;;  %v6275_v27 = vcombine.high %v6218_v53, %v6234_v32  ;;  %v6290_v61 = vcombine.low %v6225_v38, %v6241_v48  ;;  %v6291_v56 = vcombine.high %v6225_v38, %v6241_v48 }
 0xf9e   : > { %v6470_v53 = vcombine.high %v11277_v31, %v11269_v0  ;;  %v6550_v38 = vcombine.high %v11330_v39, %v11333_v44  ;;  %v6582_v39 = vcombine.high %v11359_v50, %v11349_v10 }
 0xf9f   : > { %v6289_v63 = vrot.slane %v6275_v27, %v11219_v17  ;;  %v11626_v19 = vrot.slane %v6274_v33, %v11219_v17  ;;  %v6298_v3 = vrot.slane %v6290_v61, %v11219_v17  ;;  %v6305_v47 = vrot.slane %v6291_v56, %v11219_v17 }
 0xfa0   : > { %v6516_v33 = vrot.slane %v6502_v4, %v11213_v25  ;;  %v6518_v27 = vcombine.high %v11302_v6, %v11305_v30  ;;  %v6468_v61 = vrot.slane %v6454_v52, %v11213_v25  ;;  %v6484_v9 = vrot.slane %v6470_v53, %v11213_v25 }
 0xfa1   : > { %13021 = vst [vmem:[#allocation42_spill] sm:$0xff] %v11626_v19  ;;  %v6308_v40 = vcombine.low %v6257_v8, %v6289_v63  ;;  %v6307_v60 = vcombine.high %v11623_v43, %v11626_v19  ;;  %v6310_v5 = vcombine.low %v6266_v11, %v6298_v3  ;;  %v6309_v26 = vcombine.high %v6257_v8, %v6289_v63 }
 0xfa2   : > { %v6312_v32 = vcombine.low %v6273_v18, %v6305_v47  ;;  %v6311_v48 = vcombine.high %v6266_v11, %v6298_v3  ;;  %v6313_v44 = vcombine.high %v6273_v18, %v6305_v47  ;;  %v6564_v8 = vrot.slane %v6550_v38, %v11219_v17 }
 0xfa3   : > { %6319 = vrot.lane.b32.xlu1 %v6308_v40, %s12945_s27  ;;  %6315 = vrot.lane.b32.xlu0 %v6307_v60, %s12943_s3  ;;  %v6565_v63 = vcombine.low %v6500_v42, %v6516_v33  ;;  %v6532_v56 = vrot.slane %v6518_v27, %v11219_v17  ;;  %v6533_v40 = vcombine.low %v6468_v61, %v6484_v9 }
 0xfa4   : > { %v6566_v3 = vcombine.high %v6500_v42, %v6516_v33  ;;  %v6534_v11 = vcombine.high %v6468_v61, %v6484_v9 }
 0xfa5   : > { %v6584_v60 = vcombine.high %v6532_v56, %v6564_v8  ;;  %v6583_v6 = vcombine.low %v6532_v56, %v6564_v8  ;;  %v6573_v30 = vrot.slane %v6565_v63, %v11219_v17  ;;  %v6541_v58 = vrot.slane %v6533_v40, %v11219_v17 }
 0xfa6   : > { %v6548_v47 = vrot.slane %v6534_v11, %v11219_v17 }
 0xfa7   : > { %6327 = vrot.lane.b32.xlu1 %v6310_v5, %s12983_s1  ;;  %6323 = vrot.lane.b32.xlu0 %v6309_v26, %s13022_s28  ;;  %v6586_v23 = vcombine.high %v6541_v58, %v6573_v30  ;;  %v6585_v5 = vcombine.low %v6541_v58, %v6573_v30  ;;  %v6580_v26 = vrot.slane %v6566_v3, %v11219_v17 }
 0xfa9   : > { %v6588_v4 = vcombine.high %v6548_v47, %v6580_v26  ;;  %v6587_v18 = vcombine.low %v6548_v47, %v6580_v26 }
 0xfab   : > { %6335 = vrot.lane.b32.xlu1 %v6312_v32, %s13023_s9  ;;  %6331 = vrot.lane.b32.xlu0 %v6311_v48, %s13024_s29 }
 0xfaf   : > { %6590 = vrot.lane.b32.xlu1 %v6582_v39, %s12943_s3  ;;  %6339 = vrot.lane.b32.xlu0 %v6313_v44, %s13025_s0 }
 0xfb3   : > { %6598 = vrot.lane.b32.xlu1 %v6584_v60, %s13022_s28  ;;  %6594 = vrot.lane.b32.xlu0 %v6583_v6, %s12945_s27 }
 0xfb7   : > { %6606 = vrot.lane.b32.xlu1 %v6586_v23, %s13024_s29  ;;  %6602 = vrot.lane.b32.xlu0 %v6585_v5, %s12983_s1 }
 0xfbb   : > { %6614 = vrot.lane.b32.xlu1 %v6588_v4, %s13025_s0  ;;  %6610 = vrot.lane.b32.xlu0 %v6587_v18, %s13023_s9 }
 0xfbf   : > { %6724 = vrot.lane.b32.xlu1 %v11275_v62, %s13026_s5  ;;  %6726 = vrot.lane.b32.xlu0 %v11277_v31, %s13026_s5 }
 0xfc3   : > { %6728 = vrot.lane.b32.xlu1 %v11267_v21, %s13026_s5  ;;  %6730 = vrot.lane.b32.xlu0 %v11269_v0, %s13026_s5 }
 0xfc7   : > { %6732 = vrot.lane.b32.xlu1 %v11315_v49, %s13026_s5  ;;  %6734 = vrot.lane.b32.xlu0 %v11317_v57, %s13026_s5 }
 0xfcb   : > { %6736 = vrot.lane.b32.xlu1 %v11299_v35, %s13026_s5  ;;  %6738 = vrot.lane.b32.xlu0 %v11319_v15, %s13026_s5 }
 0xfea   : > { %v4633_v52 = vpop.f32.mrb[68].mxu1 }
 0xfeb   : > { %v4637_v53 = vmul.f32 0.00390625, %v4633_v52  ;;  %v8869_v38 = vpop.f32.mrb[69].mxu1 }
 0xfed   : > { %v4638_v32 = vadd.f32 1e-05, %v4637_v53 }
 0xfef   : > { %9449 = vrsqrt.f32 %v4638_v32 }
 0xff9   : > { %v9450_v48 = vpop.eup %9449 }
 0xffa   : > { %8873 = vmatmul.mubr.msk.f32.vlgmr.msra.gmra.mrb[70].mxu1 %vm2371_vm7, %v9450_v48 }
 0xffb   : > { %8895 = vmatprep.mubr.msk.bf16.mxu1 %vm9466_vm1, %v13014_v24 }
0x1015   : > { %v11693_v42 = vpop.permute.xlu1 %6319  ;;  %v11695_v33 = vpop.permute.xlu0 %6315 }
0x1016   : > { %13027 = vst [vmem:[#allocation43_spill] sm:$0xff] %v11693_v42 }
0x1019   : > { %v11697_v27 = vpop.permute.xlu1 %6327  ;;  %v11699_v61 = vpop.permute.xlu0 %6323 }
0x101a   : > { %13028 = vst [vmem:[#allocation44_spill] sm:$0xff] %v11697_v27  ;;  %13029 = vst [vmem:[#allocation45_spill] sm:$0xff] %v11699_v61 }
0x101d   : > { %v11701_v9 = vpop.permute.xlu1 %6335  ;;  %v11703_v39 = vpop.permute.xlu0 %6331 }
0x101e   : > { %13030 = vst [vmem:[#allocation46_spill] sm:$0xff] %v11701_v9  ;;  %13031 = vst [vmem:[#allocation47_spill] sm:$0xff] %v11703_v39 }
0x1021   : > { %v11705_v44 = vpop.permute.xlu1 %6590  ;;  %v11707_v8 = vpop.permute.xlu0 %6339 }
0x1022   : > { %13032 = vst [vmem:[#allocation48_spill] sm:$0xff] %v11707_v8 }
0x1025   : > { %v11709_v63 = vpop.permute.xlu1 %6598  ;;  %v11711_v56 = vpop.permute.xlu0 %6594 }
0x1029   : > { %v11713_v40 = vpop.permute.xlu1 %6606  ;;  %v11715_v60 = vpop.permute.xlu0 %6602 }
0x102d   : > { %v11717_v6 = vpop.permute.xlu1 %6614  ;;  %v11719_v30 = vpop.permute.xlu0 %6610 }
0x1031   : > { %v6725_v3 = vpop.permute.xlu1 %6724  ;;  %v6727_v58 = vpop.permute.xlu0 %6726 }
0x1035   : > { %v6729_v11 = vpop.permute.xlu1 %6728  ;;  %v6731_v23 = vpop.permute.xlu0 %6730 }
0x1036   : > { %v6748_v5 = vcombine.low %v6725_v3, %v6729_v11  ;;  %v6764_v26 = vcombine.low %v6727_v58, %v6731_v23  ;;  %v6749_v18 = vcombine.high %v6725_v3, %v6729_v11  ;;  %v6765_v53 = vcombine.high %v6727_v58, %v6731_v23 }
0x1038   : > { %v6756_v52 = vrot.slane %v6748_v5, %v11213_v25  ;;  %v6772_v38 = vrot.slane %v6764_v26, %v11213_v25  ;;  %v6763_v14 = vrot.slane %v6749_v18, %v11213_v25  ;;  %v6779_v22 = vrot.slane %v6765_v53, %v11213_v25 }
0x1039   : > { %v6733_v47 = vpop.permute.xlu1 %6732  ;;  %v6735_v4 = vpop.permute.xlu0 %6734 }
0x103a   : > { %v6812_v39 = vcombine.low %v6756_v52, %v6772_v38  ;;  %v6813_v27 = vcombine.high %v6756_v52, %v6772_v38  ;;  %v6829_v38 = vcombine.high %v6763_v14, %v6779_v22 }
0x103c   : > { %v11732_v53 = vrot.slane %v6812_v39, %v11219_v17 }
0x103d   : > { %v6737_v32 = vpop.permute.xlu1 %6736  ;;  %v6739_v48 = vpop.permute.xlu0 %6738 }
0x103e   : > { %v6780_v45 = vcombine.low %v6733_v47, %v6737_v32  ;;  %v6781_v41 = vcombine.high %v6733_v47, %v6737_v32  ;;  %v6796_v8 = vcombine.low %v6735_v4, %v6739_v48  ;;  %v6797_v9 = vcombine.high %v6735_v4, %v6739_v48  ;;  %13033 = vst [vmem:[#allocation49_spill] sm:$0xff] %v11732_v53 }
0x103f   : > { %v6828_v47 = vcombine.low %v6763_v14, %v6779_v22  ;;  %v6827_v4 = vrot.slane %v6813_v27, %v11219_v17  ;;  %v11758_v14 = vpop.f32.mrb[68].mxu0 }
0x1040   : > { %v6788_v13 = vrot.slane %v6780_v45, %v11213_v25  ;;  %v6795_v3 = vrot.slane %v6781_v41, %v11213_v25  ;;  %v6804_v58 = vrot.slane %v6796_v8, %v11213_v25  ;;  %v6811_v11 = vrot.slane %v6797_v9, %v11213_v25 }
0x1041   : > { %v6836_v27 = vrot.slane %v6828_v47, %v11219_v17 }
0x1042   : > { %v6844_v23 = vcombine.low %v6788_v13, %v6804_v58  ;;  %v6845_v5 = vcombine.high %v6788_v13, %v6804_v58  ;;  %v6860_v26 = vcombine.low %v6795_v3, %v6811_v11  ;;  %v6861_v45 = vcombine.high %v6795_v3, %v6811_v11 }
0x1043   : > { %v6843_v3 = vrot.slane %v6829_v38, %v11219_v17  ;;  %v13045_v38 = vld [vmem:[#allocation33_spill] sm:$0xff] }
0x1044   : > { %v6859_v18 = vrot.slane %v6845_v5, %v11219_v17  ;;  %v11735_v52 = vrot.slane %v6844_v23, %v11219_v17  ;;  %v6868_v9 = vrot.slane %v6860_v26, %v11219_v17  ;;  %v6875_v48 = vrot.slane %v6861_v45, %v11219_v17  ;;  %v11764_v23 = vpop.f32.mrb[69].mxu0  ;;  %v13044_v45 = vld [vmem:[#allocation8_spill] sm:$0xff] }
0x1045   : > { %v11766_v5 = vpop.f32.mrb[70].mxu0 }
0x1046   : > { %13034 = vst [vmem:[#allocation50_spill] sm:$0xff] %v11735_v52  ;;  %v6878_v41 = vcombine.low %v6827_v4, %v6859_v18  ;;  %v6877_v8 = vcombine.high %v11732_v53, %v11735_v52  ;;  %v6880_v39 = vcombine.low %v6836_v27, %v6868_v9  ;;  %v6879_v32 = vcombine.high %v6827_v4, %v6859_v18 }
0x1047   : > { %v6882_v58 = vcombine.low %v6843_v3, %v6875_v48  ;;  %v6881_v11 = vcombine.high %v6836_v27, %v6868_v9  ;;  %v6883_v22 = vcombine.high %v6843_v3, %v6875_v48  ;;  %v8363_v9 = vld [vmem:[%s12866_s16] ss:$0 sm:$0xff]  ;;  %v13046_v48 = vld [vmem:[#allocation31_spill] sm:$0xff] }
0x1048   : > { %6889 = vrot.lane.b32.xlu0 %v6878_v41, %s12945_s27  ;;  %6885 = vrot.lane.b32.xlu1 %v6877_v8, %s12943_s3  ;;  %s13035_s3 = smov 126   ;;  %s13055_s27 = smov 88  }
0x104c   : > { %6897 = vrot.lane.b32.xlu0 %v6880_v39, %s12983_s1  ;;  %6893 = vrot.lane.b32.xlu1 %v6879_v32, %s13022_s28 }
0x1050   : > { %6905 = vrot.lane.b32.xlu0 %v6882_v58, %s13023_s9  ;;  %6901 = vrot.lane.b32.xlu1 %v6881_v11, %s13024_s29  ;;  %v13047_v58 = vld [vmem:[#allocation34_spill] sm:$0xff] }
0x1054   : > { %7017 = vrot.lane.b32.xlu0 %v11277_v31, %s13035_s3  ;;  %6909 = vrot.lane.b32.xlu1 %v6883_v22, %s13025_s0  ;;  %v11768_v31 = vpop.f32.mrb[71].mxu0  ;;  %v13048_v22 = vld [vmem:[#allocation32_spill] sm:$0xff] }
0x1058   : > { %7021 = vrot.lane.b32.xlu0 %v11269_v0, %s13035_s3  ;;  %7015 = vrot.lane.b32.xlu1 %v11275_v62, %s13035_s3  ;;  %v11774_v0 = vpop.f32.mrb[72].mxu0 }
0x1059   : > { %v11776_v62 = vpop.f32.mrb[73].mxu0 }
0x105c   : > { %7025 = vrot.lane.b32.xlu0 %v11317_v57, %s13035_s3  ;;  %7019 = vrot.lane.b32.xlu1 %v11267_v21, %s13035_s3  ;;  %v11782_v21 = vpop.f32.mrb[74].mxu0 }
0x105d   : > { %v11788_v57 = vpop.f32.mrb[75].mxu0 }
0x1060   : > { %7029 = vrot.lane.b32.xlu0 %v11319_v15, %s13035_s3  ;;  %7023 = vrot.lane.b32.xlu1 %v11315_v49, %s13035_s3 }
0x1064   : > { %7585 = vrot.lane.b32.xlu0 %v11365_v59, %s13026_s5  ;;  %7027 = vrot.lane.b32.xlu1 %v11299_v35, %s13035_s3  ;;  %v13036_v35 = vld [vmem:[#allocation11_spill] sm:$0xff] }
0x1068   : > { %7589 = vrot.lane.b32.xlu0 %v11353_v34, %s13026_s5  ;;  %7587 = vrot.lane.b32.xlu1 %v11374_v7, %s13026_s5 }
0x106c   : > { %7593 = vrot.lane.b32.xlu0 %v11378_v28, %s13026_s5  ;;  %7591 = vrot.lane.b32.xlu1 %v11361_v46, %s13026_s5 }
0x1070   : > { %7597 = vrot.lane.b32.xlu0 %v11367_v20, %s13026_s5  ;;  %7595 = vrot.lane.b32.xlu1 %v11405_v16, %s13026_s5 }
0x1074   : > { %7878 = vrot.lane.b32.xlu0 %v11374_v7, %s13035_s3  ;;  %7599 = vrot.lane.b32.xlu1 %v13036_v35, %s13026_s5 }
0x1078   : > { %7882 = vrot.lane.b32.xlu0 %v11361_v46, %s13035_s3  ;;  %7876 = vrot.lane.b32.xlu1 %v11365_v59, %s13035_s3 }
0x107c   : > { %7886 = vrot.lane.b32.xlu0 %v11405_v16, %s13035_s3  ;;  %7880 = vrot.lane.b32.xlu1 %v11353_v34, %s13035_s3 }
0x1080   : > { %7884 = vrot.lane.b32.xlu1 %v11378_v28, %s13035_s3 }
0x10ba   : > { %v11812_v49 = vpop.permute.xlu0 %6889  ;;  %v11814_v15 = vpop.permute.xlu1 %6885 }
0x10bb   : > { %13037 = vst [vmem:[#allocation11_spill] sm:$0xff] %v11812_v49  ;;  %13038 = vst [vmem:[#allocation51_spill] sm:$0xff] %v11814_v15 }
0x10be   : > { %v11816_v20 = vpop.permute.xlu0 %6897  ;;  %v11818_v7 = vpop.permute.xlu1 %6893 }
0x10bf   : > { %13039 = vst [vmem:[#allocation52_spill] sm:$0xff] %v11816_v20  ;;  %13040 = vst [vmem:[#allocation53_spill] sm:$0xff] %v11818_v7 }
0x10c2   : > { %v11820_v46 = vpop.permute.xlu0 %6905  ;;  %v11822_v59 = vpop.permute.xlu1 %6901 }
0x10c3   : > { %13041 = vst [vmem:[#allocation54_spill] sm:$0xff] %v11820_v46  ;;  %13042 = vst [vmem:[#allocation55_spill] sm:$0xff] %v11822_v59 }
0x10c6   : > { %v11824_v26 = vpop.permute.xlu0 %7017  ;;  %v11826_v16 = vpop.permute.xlu1 %6909 }
0x10c7   : > { %13043 = vst [vmem:[#allocation56_spill] sm:$0xff] %v11826_v16 }
0x10ca   : > { %v11828_v34 = vpop.permute.xlu0 %7021  ;;  %v11830_v47 = vpop.permute.xlu1 %7015 }
0x10cd   : > { %v4709_v18 = vpop.f32.mrb[70].mxu1 }
0x10ce   : > { %v11832_v28 = vpop.permute.xlu0 %7025  ;;  %v11834_v4 = vpop.permute.xlu1 %7019  ;;  %v4716_v41 = vrot.slane %v4709_v18, %v13044_v45  ;;  %v8364_v18 = vld [vmem:[%s12867_s17] ss:$0 sm:$0xff] }
0x10cf   : > { %v8874_v8 = vpop.f32.mrb[71].mxu1 }
0x10d0   : > { %v4719_v27 = vmul.f32 %v4716_v41, %v13045_v38  ;;  %v4717_v3 = vmul.f32 %v4716_v41, %v13046_v48  ;;  %v4720_v11 = vmul.f32 %v4716_v41, %v13047_v58  ;;  %v4718_v35 = vmul.f32 %v4716_v41, %v13048_v22 }
0x10d1   : > { %v4723_v38 = vmul.f32 %v4716_v41, %v11512_v55  ;;  %v4721_v59 = vmul.f32 %v4716_v41, %v11500_v12 }
0x10d2   : > { %v11841_v39 = vpop.permute.xlu0 %7029  ;;  %v11843_v32 = vpop.permute.xlu1 %7023  ;;  %v4734_v8 = vmul.f32 %v8363_v9, %v4719_v27  ;;  %v4732_v13 = vmul.f32 %v8363_v9, %v4717_v3  ;;  %v4735_v16 = vmul.f32 %v8363_v9, %v4720_v11  ;;  %v4733_v46 = vmul.f32 %v8363_v9, %v4718_v35  ;;  %v11860_v27 = vld [vmem:[%s12869_s19] ss:$0 sm:$0xff] }
0x10d3   : > { %v4738_v29 = vmul.f32 %v8363_v9, %v4723_v38  ;;  %v4736_v15 = vmul.f32 %v8363_v9, %v4721_v59 }
0x10d4   : > { %v4749_v20 = vadd.f32 %v8364_v18, %v4734_v8  ;;  %v4747_v7 = vadd.f32 %v8364_v18, %v4732_v13  ;;  %v4750_v58 = vadd.f32 %v8364_v18, %v4735_v16  ;;  %v4748_v22 = vadd.f32 %v8364_v18, %v4733_v46 }
0x10d5   : > { %v4753_v12 = vadd.f32 %v8364_v18, %v4738_v29  ;;  %v4751_v35 = vadd.f32 %v8364_v18, %v4736_v15 }
0x10d6   : > { %v11853_v49 = vpop.permute.xlu0 %7585  ;;  %v11855_v48 = vpop.permute.xlu1 %7027  ;;  %v4757_v52 = vmax.f32 %v4749_v20, 0.0  ;;  %v4755_v53 = vmax.f32 %v4747_v7, 0.0  ;;  %v4758_v55 = vmax.f32 %v4750_v58, 0.0  ;;  %v4756_v3 = vmax.f32 %v4748_v22, 0.0 }
0x10d7   : > { %v4761_v59 = vmax.f32 %v4753_v12, 0.0 }
0x10d8   : > { %v4846_v13 = vadd.f32 %v11758_v14, %v4757_v52  ;;  %v4844_v11 = vadd.f32 %v11764_v23, %v4755_v53  ;;  %v4847_v20 = vadd.f32 %v11766_v5, %v4758_v55  ;;  %v4845_v7 = vadd.f32 %v11768_v31, %v4756_v3  ;;  %v13049_v23 = vld [vmem:[#allocation35_spill] sm:$0xff] }
0x10d9   : > { %v4850_v52 = vadd.f32 %v11774_v0, %v4761_v59  ;;  %v4759_v53 = vmax.f32 %v4751_v35, 0.0  ;;  %v4724_v14 = vmul.f32 %v4716_v41, %v11518_v54  ;;  %v4722_v15 = vmul.f32 %v4716_v41, %v13049_v23 }
0x10da   : > { %v11864_v8 = vpop.permute.xlu0 %7589  ;;  %v7588_v46 = vpop.permute.xlu1 %7587  ;;  %v4861_v16 = vadd.f32 %v11860_v27, %v4846_v13  ;;  %v4859_v38 = vadd.f32 %v11860_v27, %v4844_v11  ;;  %v4862_v58 = vadd.f32 %v11860_v27, %v4847_v20  ;;  %v4860_v29 = vadd.f32 %v11860_v27, %v4845_v7 }
0x10db   : > { %v7087_v31 = vcombine.low %v11832_v28, %v11841_v39  ;;  %v7610_v12 = vcombine.high %v11853_v49, %v11864_v8  ;;  %v7071_v13 = vcombine.low %v11843_v32, %v11855_v48  ;;  %v4848_v0 = vadd.f32 %v11776_v62, %v4759_v53 }
0x10dc   : > { %v4870_v55 = vpack.c.bf16 %v4862_v58, %v4861_v16  ;;  %v4869_v3 = vpack.c.bf16 %v4860_v29, %v4859_v38  ;;  %v4739_v11 = vmul.f32 %v8363_v9, %v4724_v14  ;;  %v4737_v35 = vmul.f32 %v8363_v9, %v4722_v15 }
0x10dd   : > { %v7055_v20 = vcombine.low %v11824_v26, %v11828_v34  ;;  %v7039_v58 = vcombine.low %v11830_v47, %v11834_v4  ;;  %v11888_v29 = vrot.slane %v7087_v31, %v11213_v25  ;;  %v7624_v62 = vrot.slane %v7610_v12, %v11213_v25 }
0x10de   : > { %v7594_v22 = vpop.permute.xlu0 %7593  ;;  %v7592_v5 = vpop.permute.xlu1 %7591  ;;  %v4882_v41 = vsel %vm816_vm0, %v4869_v3, 0  ;;  %v4754_v7 = vadd.f32 %v8364_v18, %v4739_v11  ;;  %v4752_v59 = vadd.f32 %v8364_v18, %v4737_v35  ;;  %v11894_v53 = vrot.slane %v7071_v13, %v11213_v25 }
0x10df   : > { %v7626_v54 = vcombine.high %v7588_v46, %v7592_v5  ;;  %8888 = vmatpush3.bf16.xpose.msra.mxu1 %v4882_v41  ;;  %v7625_v23 = vcombine.low %v7588_v46, %v7592_v5  ;;  %v4865_v15 = vadd.f32 %v11860_v27, %v4850_v52  ;;  %v7609_v3 = vcombine.low %v11853_v49, %v11864_v8 }
0x10e0   : > { %8889 = vmatprep.subr.bf16.mxu1 %v13014_v24  ;;  %v4762_v14 = vmax.f32 %v4754_v7, 0.0  ;;  %v4760_v18 = vmax.f32 %v4752_v59, 0.0  ;;  %v4863_v35 = vadd.f32 %v11860_v27, %v4848_v0  ;;  %v11905_v7 = vrot.slane %v7055_v20, %v11213_v25 }
0x10e1   : > { %v7640_v9 = vrot.slane %v7626_v54, %v11213_v25  ;;  %v11908_v46 = vrot.slane %v7039_v58, %v11213_v25  ;;  %v7135_v8 = vcombine.low %v11894_v53, %v11888_v29  ;;  %v4885_v59 = vsel %vm816_vm0, %v4870_v55, 0 }
0x10e2   : > { %v7598_v16 = vpop.permute.xlu0 %7597  ;;  %v7596_v38 = vpop.permute.xlu1 %7595  ;;  %v4851_v12 = vadd.f32 %v11782_v21, %v4762_v14  ;;  %v4849_v54 = vadd.f32 %v11788_v57, %v4760_v18  ;;  %v11915_v57 = vrot.slane %v7625_v23, %v11213_v25  ;;  %v11924_v58 = vrot.slane %v7609_v3, %v11213_v25 }
0x10e3   : > { %v7690_v11 = vcombine.high %v7624_v62, %v7640_v9  ;;  %v7642_v31 = vcombine.high %v7594_v22, %v7598_v16  ;;  %v7641_v41 = vcombine.low %v7594_v22, %v7598_v16  ;;  %v7103_v23 = vcombine.low %v11908_v46, %v11905_v7 }
0x10e4   : > { %v4866_v5 = vadd.f32 %v11860_v27, %v4851_v12  ;;  %v4864_v21 = vadd.f32 %v11860_v27, %v4849_v54  ;;  %v7673_v55 = vcombine.low %v11924_v58, %v11915_v57  ;;  %v11943_v12 = vrot.slane %v7135_v8, %v11219_v17 }
0x10e5   : > { %v7656_v22 = vrot.slane %v7642_v31, %v11213_v25  ;;  %v11927_v14 = vrot.slane %v7641_v41, %v11213_v25  ;;  %v7689_v54 = vcombine.low %v7624_v62, %v7640_v9 }
0x10e6   : > { %v11902_v61 = vpop.permute.xlu0 %7878  ;;  %v7600_v13 = vpop.permute.xlu1 %7599  ;;  %v4872_v16 = vpack.c.bf16 %v4866_v5, %v4865_v15  ;;  %13050 = vst [vmem:[#allocation8_spill] sm:$0xff] %v11943_v12  ;;  %v11956_v5 = vrot.slane %v7673_v55, %v11219_v17  ;;  %v11979_v55 = vrot.slane %v7690_v11, %v11219_v17  ;;  %v9411_v11 = vld [vmem:[%s12870_s20] sm:$0x1f]  }
0x10e7   : > { %v7657_v52 = vcombine.low %v7596_v38, %v7600_v13  ;;  %v7658_v49 = vcombine.high %v7596_v38, %v7600_v13  ;;  %v4871_v38 = vpack.c.bf16 %v4864_v21, %v4863_v35  ;;  %8890 = vmatpush3.bf16.xpose.msra.mxu1 %v4885_v59 }
0x10e8   : > { %8891 = vmatprep.subr.bf16.mxu1 %v13014_v24 }
0x10e9   : > { %v11919_v0 = vrot.slane %v7657_v52, %v11213_v25  ;;  %v7672_v20 = vrot.slane %v7658_v49, %v11213_v25  ;;  %v11950_v52 = vrot.slane %v7103_v23, %v11219_v17  ;;  %v4888_v9 = vsel %vm816_vm0, %v4871_v38, 0 }
0x10ea   : > { %v11929_v27 = vpop.permute.xlu0 %7882  ;;  %v11931_v18 = vpop.permute.xlu1 %7876 }
0x10eb   : > { %v7722_v31 = vcombine.high %v7656_v22, %v7672_v20  ;;  %v7705_v15 = vcombine.low %v11927_v14, %v11919_v0  ;;  %v7721_v3 = vcombine.low %v7656_v22, %v7672_v20  ;;  %v7917_v35 = vcombine.high %v11902_v61, %v11929_v27  ;;  %13051 = vst [vmem:[#allocation33_spill] sm:$0xff] %v11950_v52  ;;  %v13053_v22 = vld [vmem:[#allocation7_spill] sm:$0xff] }
0x10ec   : > { %v11971_v20 = vrot.slane %v7689_v54, %v11219_v17  ;;  %v4891_v54 = vsel %vm816_vm0, %v4872_v16, 0  ;;  %v7072_v16 = vcombine.high %v11843_v32, %v11855_v48  ;;  %v7104_v32 = vcombine.high %v11908_v46, %v11905_v7 }
0x10ed   : > { %v11953_v49 = vrot.slane %v7721_v3, %v11219_v17  ;;  %v11959_v21 = vrot.slane %v7705_v15, %v11219_v17  ;;  %v11962_v8 = vrot.slane %v7917_v35, %v11213_v25  ;;  %v11982_v38 = vrot.slane %v7722_v31, %v11219_v17  ;;  %v9412_v31 = vld [vmem:[%s12870_s20] sm:$0x1f]  }
0x10ee   : > { %v11945_v41 = vpop.permute.xlu1 %7880  ;;  %v7118_v7 = vrot.slane %v7104_v32, %v11219_v17 }
0x10ef   : > { %v7901_v13 = vcombine.high %v11931_v18, %v11945_v41  ;;  %8892 = vmatpush3.bf16.xpose.msra.mxu1 %v4888_v9  ;;  %v13052_v9 = vmov 0.0|0.0  }
0x10f0   : > { %8893 = vmatprep.subr.bf16.mxu1 %v13014_v24 }
0x10f1   : > { %v11965_v62 = vrot.slane %v7901_v13, %v11213_v25  ;;  %v5451_v13 = vsel %vm816_vm0, %v9412_v31, 0  ;;  %v7056_v31 = vcombine.high %v11824_v26, %v11828_v34 }
0x10f2   : > { %8900 = vmatpush3.bf16.xpose.msra.mxu0 %v5451_v13  ;;  %v7086_v13 = vrot.slane %v7072_v16, %v11213_v25 }
0x10f3   : > { %8948 = vmatprep.subr.bf16.mxu0 %v13052_v9 }
0x10f7   : > { %8894 = vmatpush3.bf16.xpose.msra.mxu1 %v4891_v54  ;;  %v7040_v54 = vcombine.high %v11830_v47, %v11834_v4 }
0x10f9   : > { %8902 = vmatmul.mubr.msk.bf16.vlgmr.msra.gmra.mrb[76].mxu0 %vm816_vm0, %v13053_v22  ;;  %v7136_v22 = vcombine.high %v11894_v53, %v11888_v29  ;;  %v7054_v35 = vrot.slane %v7040_v54, %v11213_v25  ;;  %v9455_v53 = vld [vmem:[#allocation5 + $0x72] sm:$0xff] }
0x10fa   : > { %8909 = vmatprep.mubr.msk.f32.mxu0 %vm9466_vm1, %v13014_v24  ;;  %vm5670_vm1 = vcmask 195584  }
0x10fb   : > { %v7150_v48 = vrot.slane %v7136_v22, %v11219_v17  ;;  %v7168_v22 = vcombine.high %v11950_v52, %v11943_v12 }
0x10fd   : > { %v7169_v46 = vcombine.low %v7118_v7, %v7150_v48 }
0x10fe   : > { %8896 = vmatmul.mubr.msk.bf16.vlgmr.msra.gmra.mrb[72].mxu1 %vm816_vm0, %v9411_v11  ;;  %v7088_v11 = vcombine.high %v11832_v28, %v11841_v39  ;;  %v7070_v28 = vrot.slane %v7056_v31, %v11213_v25  ;;  %v9456_v31 = vld [vmem:[#allocation5 + $0x62] sm:$0xff] }
0x1100   : > { %v7102_v47 = vrot.slane %v7088_v11, %v11213_v25  ;;  %v7119_v29 = vcombine.low %v7054_v35, %v7070_v28 }
0x1102   : > { %v7151_v4 = vcombine.low %v7086_v13, %v7102_v47  ;;  %v7127_v54 = vrot.slane %v7119_v29, %v11219_v17  ;;  %v7152_v32 = vcombine.high %v7086_v13, %v7102_v47  ;;  %v13059_v13 = vld [vmem:[#allocation18_spill] sm:$0xff] }
0x1104   : > { %v7159_v16 = vrot.slane %v7151_v4, %v11219_v17  ;;  %v7170_v4 = vcombine.high %v7118_v7, %v7150_v48  ;;  %v13062_v48 = vld [vmem:[#allocation14_spill] sm:$0xff] }
0x1106   : > { %v7171_v11 = vcombine.low %v7127_v54, %v7159_v16 }
0x11d1   : > { %v12015_v9 = vpop.f32.mrb[72].mxu1 }
0x11d2   : > { %4962 = vrot.lane.b32.xlu1 %v12015_v9, %s12984_s21  ;;  %4956 = vrot.lane.b32.xlu0 %v12015_v9, %s12985_s2  ;;  %v8897_v26 = vpop.f32.mrb[73].mxu1 }
0x11d3   : > { %v12025_v34 = vpop.f32.mrb[74].mxu1  ;;  %v7120_v26 = vcombine.high %v7054_v35, %v7070_v28  ;;  %v13060_v35 = vld [vmem:[#allocation16_spill] sm:$0xff]  ;;  %v13061_v28 = vld [vmem:[#allocation15_spill] sm:$0xff] }
0x11d4   : > { %v8898_v39 = vpop.f32.mrb[75].mxu1  ;;  %v7411_v47 = vcombine.high %v13060_v35, %v13059_v13  ;;  %v7379_v7 = vcombine.high %v13062_v48, %v13061_v28  ;;  %v13067_v13 = vld [vmem:[#allocation13_spill] sm:$0xff]  ;;  %v13068_v35 = vld [vmem:[#allocation12_spill] sm:$0xff]  ;;  %v7706_v28 = vcombine.high %v11927_v14, %v11919_v0  ;;  %v7738_v48 = vcombine.high %v11956_v5, %v11959_v21 }
0x11d5   : > { %v7166_v39 = vrot.slane %v7152_v32, %v11219_v17  ;;  %v7134_v29 = vrot.slane %v7120_v26, %v11219_v17  ;;  %v5494_v0 = vld [vmem:[%s12874_s24 + $0x8] sm:$0x1] }
0x11d6   : > { %4968 = vrot.lane.b32.xlu1 %v12015_v9, %s12986_s4  ;;  %7890 = vrot.lane.b32.xlu0 %v9455_v53, %s13035_s3 }
0x11d7   : > { %v7173_v53 = vcombine.low %v7134_v29, %v7166_v39 }
0x11da   : > { %4974 = vrot.lane.b32.xlu1 %v12015_v9, %s12980_s7  ;;  %7180 = vrot.lane.b32.xlu0 %v7169_v46, %s13054_s8  ;;  %v7172_v46 = vcombine.high %v7127_v54, %v7159_v16  ;;  %v7393_v16 = vrot.slane %v7379_v7, %v11219_v17  ;;  %v7741_v54 = vcombine.low %v11971_v20, %v11953_v49 }
0x11de   : > { %4980 = vrot.lane.b32.xlu1 %v12015_v9, %s13055_s27  ;;  %7188 = vrot.lane.b32.xlu0 %v7171_v11, %s12983_s1  ;;  %v7174_v11 = vcombine.high %v7134_v29, %v7166_v39  ;;  %v13065_v29 = vld [vmem:[#allocation19_spill] sm:$0xff] }
0x11e2   : > { %4986 = vrot.lane.b32.xlu1 %v12015_v9, %s13056_s10  ;;  %4964 = vrot.lane.b32.xlu0 %v12025_v34, %s12984_s21 }
0x11e6   : > { %4992 = vrot.lane.b32.xlu1 %v12015_v9, %s13057_s11  ;;  %4970 = vrot.lane.b32.xlu0 %v12025_v34, %s12986_s4 }
0x11ea   : > { %7888 = vrot.lane.b32.xlu1 %v9456_v31, %s13035_s3  ;;  %4976 = vrot.lane.b32.xlu0 %v12025_v34, %s12980_s7  ;;  %v13063_v31 = vld [vmem:[#allocation20_spill] sm:$0xff] }
0x11ee   : > { %7176 = vrot.lane.b32.xlu1 %v7168_v22, %s13058_s12  ;;  %4982 = vrot.lane.b32.xlu0 %v12025_v34, %s13055_s27  ;;  %v13064_v22 = vld [vmem:[#allocation21_spill] sm:$0xff]  ;;  %s13078_s27 = smov 1  }
0x11ef   : > { %v7443_v32 = vcombine.high %v13064_v22, %v13063_v31 }
0x11f2   : > { %4988 = vrot.lane.b32.xlu0 %v12025_v34, %s13056_s10  ;;  %4958 = vrot.lane.b32.xlu1 %v12025_v34, %s12985_s2 }
0x11f6   : > { %4994 = vrot.lane.b32.xlu0 %v12025_v34, %s13057_s11  ;;  %7184 = vrot.lane.b32.xlu1 %v7170_v4, %s13022_s28  ;;  %v7425_v4 = vrot.slane %v7411_v47, %v11219_v17  ;;  %v7394_v47 = vcombine.low %v13068_v35, %v13067_v13  ;;  %v5487_v35 = vpop.f32.mrb[76].mxu0 }
0x11f8   : > { %v7444_v26 = vcombine.low %v7393_v16, %v7425_v4  ;;  %v7445_v39 = vcombine.high %v7393_v16, %v7425_v4  ;;  %v7720_v16 = vrot.slane %v7706_v28, %v11219_v17 }
0x11fa   : > { %7196 = vrot.lane.b32.xlu0 %v7173_v53, %s13023_s9  ;;  %7192 = vrot.lane.b32.xlu1 %v7172_v46, %s13024_s29  ;;  %v13066_v53 = vld [vmem:[#allocation17_spill] sm:$0xff] }
0x11fb   : > { %v7426_v46 = vcombine.low %v13066_v53, %v13065_v29  ;;  %v7887_v29 = vpop.permute.xlu0 %7886  ;;  %v7885_v53 = vpop.permute.xlu1 %7884 }
0x11fd   : > { %v7434_v7 = vrot.slane %v7426_v46, %v11219_v17 }
0x11fe   : > { %7200 = vrot.lane.b32.xlu0 %v7174_v11, %s13025_s0  ;;  %7451 = vrot.lane.b32.xlu1 %v7443_v32, %s13058_s12  ;;  %v7674_v11 = vcombine.high %v11924_v58, %v11915_v57  ;;  %v7402_v32 = vrot.slane %v7394_v47, %v11219_v17 }
0x1200   : > { %v7446_v4 = vcombine.low %v7402_v32, %v7434_v7  ;;  %v7688_v57 = vrot.slane %v7674_v11, %v11219_v17 }
0x1202   : > { %7758 = vrot.lane.b32.xlu0 %v7741_v54, %s12983_s1  ;;  %7455 = vrot.lane.b32.xlu1 %v7444_v26, %s13054_s8  ;;  %v5493_v54 = vld [vmem:[%s12874_s24] sm:$0xff]  ;;  %v7739_v14 = vcombine.low %v7688_v57, %v7720_v16  ;;  %v7447_v26 = vcombine.high %v7402_v32, %v7434_v7 }
0x1203   : > { %v8949_v58 = vpack.c.bf16 %v5494_v0, %v5493_v54 }
0x1205   : > { %8951 = vmatpush3.bf16.msk.msra.mxu0 %vm8950_vm13, %v8949_v58  ;;  %v7900_v58 = vcombine.low %v11931_v18, %v11945_v41 }
0x1206   : > { %7459 = vrot.lane.b32.xlu1 %v7445_v39, %s13022_s28  ;;  %v7740_v39 = vcombine.high %v7688_v57, %v7720_v16 }
0x1208   : > { %8910 = vmatmul.mubr.msk.f32.vlgmr.msra.gmra.mrb[80].mxu0 %vm5769_vm14, %v5487_v35  ;;  %v7908_v35 = vrot.slane %v7900_v58, %v11213_v25 }
0x120a   : > { %7746 = vrot.lane.b32.xlu1 %v7738_v48, %s13058_s12  ;;  %v8903_v48 = vpop.f32.mrb[77].mxu0 }
0x120b   : > { %v5490_v11 = vpop.f32.mrb[78].mxu0 }
0x120c   : > { %v8904_v7 = vpop.f32.mrb[79].mxu0 }
0x120e   : > { %7463 = vrot.lane.b32.xlu1 %v7446_v4, %s12983_s1 }
0x1212   : > { %7750 = vrot.lane.b32.xlu1 %v7739_v14, %s13054_s8  ;;  %v7916_v14 = vcombine.low %v11902_v61, %v11929_v27  ;;  %v7980_v61 = vcombine.low %v11965_v62, %v11962_v8 }
0x1214   : > { %v7924_v11 = vrot.slane %v7916_v14, %v11213_v25 }
0x1216   : > { %7467 = vrot.lane.b32.xlu1 %v7447_v26, %s13024_s29  ;;  %v7964_v23 = vcombine.low %v7908_v35, %v7924_v11  ;;  %v7965_v41 = vcombine.high %v7908_v35, %v7924_v11 }
0x1218   : > { %v12156_v36 = vrot.slane %v7964_v23, %v11219_v17 }
0x121a   : > { %7754 = vrot.lane.b32.xlu1 %v7740_v39, %s13022_s28 }
0x1244   : > { %v12108_v46 = vpop.permute.xlu1 %4962  ;;  %v12110_v13 = vpop.permute.xlu0 %4956 }
0x1248   : > { %v12112_v47 = vpop.permute.xlu1 %4968  ;;  %v7891_v28 = vpop.permute.xlu0 %7890 }
0x1249   : > { %v7948_v48 = vcombine.low %v7887_v29, %v7891_v28  ;;  %v7949_v7 = vcombine.high %v7887_v29, %v7891_v28  ;;  %v5014_v27 = vcombine.low %v12110_v13, %v12112_v47 }
0x124b   : > { %v7956_v58 = vrot.slane %v7948_v48, %v11213_v25  ;;  %v7963_v14 = vrot.slane %v7949_v7, %v11213_v25  ;;  %v12153_v7 = vrot.slane %v7965_v41, %v11219_v17 }
0x124c   : > { %v12114_v32 = vpop.permute.xlu1 %4974  ;;  %v12116_v4 = vpop.permute.xlu0 %7180 }
0x124d   : > { %13069 = vst [vmem:[#allocation31_spill] sm:$0xff] %v12116_v4 }
0x1250   : > { %v12118_v16 = vpop.permute.xlu1 %4980  ;;  %v12120_v54 = vpop.permute.xlu0 %7188 }
0x1251   : > { %13070 = vst [vmem:[#allocation34_spill] sm:$0xff] %v12120_v54 }
0x1254   : > { %v12122_v0 = vpop.permute.xlu1 %4986  ;;  %v12124_v57 = vpop.permute.xlu0 %4964 }
0x1255   : > { %v5030_v29 = vcombine.low %v12114_v32, %v12122_v0 }
0x1258   : > { %v4993_v26 = vpop.permute.xlu1 %4992  ;;  %v12130_v39 = vpop.permute.xlu0 %4970 }
0x1259   : > { %v5046_v59 = vcombine.low %v12118_v16, %v4993_v26 }
0x125b   : > { %v5054_v35 = vrot.slane %v5046_v59, %v11213_v25  ;;  %v5022_v59 = vrot.slane %v5014_v27, %v11213_v25 }
0x125c   : > { %v7889_v15 = vpop.permute.xlu1 %7888  ;;  %v12134_v3 = vpop.permute.xlu0 %4976 }
0x125d   : > { %v7932_v54 = vcombine.low %v7885_v53, %v7889_v15  ;;  %v7933_v18 = vcombine.high %v7885_v53, %v7889_v15  ;;  %v4998_v53 = vcombine.low %v12015_v9, %v12108_v46 }
0x125f   : > { %v7940_v28 = vrot.slane %v7932_v54, %v11213_v25  ;;  %v7947_v4 = vrot.slane %v7933_v18, %v11213_v25  ;;  %v12159_v54 = vrot.slane %v7980_v61, %v11219_v17  ;;  %v13072_v18 = vcombine.high %v11965_v62, %v11962_v8 }
0x1260   : > { %v12147_v12 = vpop.permute.xlu1 %7176  ;;  %v4983_v15 = vpop.permute.xlu0 %4982  ;;  %v5006_v61 = vrot.slane %v4998_v53, %v11213_v25 }
0x1261   : > { %13071 = vst [vmem:[#allocation32_spill] sm:$0xff] %v12147_v12  ;;  %v7996_v11 = vcombine.low %v7940_v28, %v7956_v58  ;;  %v7997_v52 = vcombine.high %v7940_v28, %v7956_v58  ;;  %v8012_v48 = vcombine.low %v7947_v4, %v7963_v14  ;;  %v8013_v42 = vcombine.high %v7947_v4, %v7963_v14 }
0x1262   : > { %v12165_v12 = vrot.slane %v13072_v18, %v11219_v17  ;;  %v5038_v58 = vrot.slane %v5030_v29, %v11213_v25  ;;  %v5047_v14 = vcombine.high %v12118_v16, %v4993_v26  ;;  %v5015_v16 = vcombine.high %v12110_v13, %v12112_v47  ;;  %v13075_v18 = vld [vmem:[#allocation23_spill] sm:$0xff] }
0x1263   : > { %v12170_v41 = vrot.slane %v7997_v52, %v11219_v17  ;;  %v12173_v23 = vrot.slane %v7996_v11, %v11219_v17  ;;  %v12178_v8 = vrot.slane %v8012_v48, %v11219_v17  ;;  %v12181_v62 = vrot.slane %v8013_v42, %v11219_v17 }
0x1264   : > { %v4959_v4 = vpop.permute.xlu1 %4958  ;;  %v4989_v28 = vpop.permute.xlu0 %4988  ;;  %v5094_v27 = vcombine.low %v5038_v58, %v5054_v35  ;;  %v5031_v26 = vcombine.high %v12114_v32, %v12122_v0  ;;  %v5062_v53 = vcombine.low %v5006_v61, %v5022_v59  ;;  %v4999_v13 = vcombine.high %v12015_v9, %v12108_v46 }
0x1265   : > { %v8030_v29 = vcombine.low %v12153_v7, %v12170_v41  ;;  %v8029_v52 = vcombine.high %v12156_v36, %v12173_v23  ;;  %v5061_v47 = vrot.slane %v5047_v14, %v11213_v25  ;;  %v5095_v32 = vcombine.high %v5038_v58, %v5054_v35 }
0x1266   : > { %v5102_v0 = vrot.slane %v5094_v27, %v11219_v17  ;;  %v13076_v19 = vcombine.high %v13074_v51, %v13075_v18  ;;  %v13077_v9 = vcombine.low %v13074_v51, %v13075_v18  ;;  %v5070_v35 = vrot.slane %v5062_v53, %v11219_v17 }
0x1267   : > { %8041 = vrot.lane.b32.xlu0 %v8030_v29, %s13054_s8  ;;  %8037 = vrot.lane.b32.xlu1 %v8029_v52, %s13058_s12  ;;  %v5029_v29 = vrot.slane %v5015_v16, %v11213_v25  ;;  %v5045_v52 = vrot.slane %v5031_v26, %v11213_v25  ;;  %v5013_v58 = vrot.slane %v4999_v13, %v11213_v25 }
0x1268   : > { %v12197_v48 = vpop.permute.xlu1 %7184  ;;  %v4995_v42 = vpop.permute.xlu0 %4994  ;;  %v5127_v16 = vcombine.high %v5070_v35, %v5102_v0  ;;  %v5142_v11 = vcombine.low %v4959_v4, %v12130_v39  ;;  %v5134_v18 = vcombine.low %v12025_v34, %v12124_v57 }
0x1269   : > { %13073 = vst [vmem:[#allocation35_spill] sm:$0xff] %v12197_v48  ;;  %v5063_v48 = vcombine.high %v5006_v61, %v5022_v59  ;;  %v5110_v14 = vcombine.low %v5045_v52, %v5061_v47  ;;  %v5158_v27 = vcombine.low %v4983_v15, %v4995_v42  ;;  %v5126_v59 = vcombine.low %v5070_v35, %v5102_v0 }
0x126a   : > { %v5109_v61 = vrot.slane %v5095_v32, %v11219_v17  ;;  %v5078_v26 = vcombine.low %v5013_v58, %v5029_v29  ;;  %v5111_v15 = vcombine.high %v5045_v52, %v5061_v47  ;;  %v5141_v47 = vrot.slane %v5134_v18, %v11213_v25 }
0x126b   : > { %7475 = vrot.lane.b32.xlu0 %v13076_v19, %s13025_s0  ;;  %7471 = vrot.lane.b32.xlu1 %v13077_v9, %s13023_s9  ;;  %v5150_v19 = vcombine.low %v12134_v3, %v4989_v28  ;;  %v5077_v53 = vrot.slane %v5063_v48, %v11219_v17  ;;  %v5165_v42 = vrot.slane %v5158_v27, %v11213_v25 }
0x126c   : > { %v12217_v46 = vpop.permute.xlu1 %7192  ;;  %v5118_v0 = vrot.slane %v5110_v14, %v11219_v17  ;;  %v5079_v3 = vcombine.high %v5013_v58, %v5029_v29  ;;  %v5086_v39 = vrot.slane %v5078_v26, %v11219_v17  ;;  %v5149_v28 = vrot.slane %v5142_v11, %v11213_v25 }
0x126d   : > { %v5129_v13 = vcombine.high %v5077_v53, %v5109_v61  ;;  %v5128_v32 = vcombine.low %v5077_v53, %v5109_v61  ;;  %v5157_v4 = vrot.slane %v5150_v19, %v11213_v25  ;;  %v13079_v48 = vcombine.low %v13064_v22, %v13063_v31 }
0x126e   : > { %v5131_v9 = vcombine.high %v5086_v39, %v5118_v0  ;;  %v5130_v35 = vcombine.low %v5086_v39, %v5118_v0  ;;  %v5125_v58 = vrot.slane %v5111_v15, %v11219_v17  ;;  %v5166_v11 = vcombine.low %v5141_v47, %v5149_v28  ;;  %v12277_v28 = vpop.permute.xlu0 %7196 }
0x126f   : > { %5194 = vrot.lane.b32.xlu0 %v5127_v16, %s13078_s27  ;;  %5192 = vrot.lane.b32.xlu1 %v5126_v59, %s13078_s27  ;;  %v5174_v52 = vcombine.low %v5157_v4, %v5165_v42  ;;  %v5093_v22 = vrot.slane %v5079_v3, %v11219_v17  ;;  %v13080_v19 = vcombine.low %v11956_v5, %v11959_v21 }
0x1270   : > { %v7452_v51 = vpop.permute.xlu1 %7451  ;;  %v5173_v61 = vrot.slane %v5166_v11, %v11219_v17  ;;  %v8032_v53 = vcombine.low %v12159_v54, %v12178_v8  ;;  %v13082_v5 = vcombine.high %v11971_v20, %v11953_v49  ;;  %v8031_v0 = vcombine.high %v12153_v7, %v12170_v41 }
0x1271   : > { %v7478_v34 = vsel %vm2371_vm7, %v13079_v48, %v7452_v51  ;;  %v5181_v27 = vrot.slane %v5174_v52, %v11219_v17  ;;  %v5133_v16 = vcombine.high %v5093_v22, %v5125_v58  ;;  %v5132_v59 = vcombine.low %v5093_v22, %v5125_v58 }
0x1272   : > { %v13083_v4 = vcombine.low %v11979_v55, %v11982_v38  ;;  %v12279_v49 = vpop.permute.xlu0 %7200  ;;  %v13084_v7 = vcombine.low %v12156_v36, %v12173_v23 }
0x1273   : > { %5198 = vrot.lane.b32.xlu0 %v5129_v13, %s13078_s27  ;;  %5196 = vrot.lane.b32.xlu1 %v5128_v32, %s13078_s27  ;;  %v5182_v18 = vcombine.low %v5173_v61, %v5181_v27  ;;  %v13081_v13 = vcombine.high %v11979_v55, %v11982_v38 }
0x1274   : > { %v7456_v57 = vpop.permute.xlu1 %7455 }
0x1275   : > { %v7479_v29 = vsel %vm5668_vm15, %v7478_v34, %v7456_v57 }
0x1276   : > { %v7759_v20 = vpop.permute.xlu0 %7758 }
0x1277   : > { %5202 = vrot.lane.b32.xlu0 %v5131_v9, %s13078_s27  ;;  %5200 = vrot.lane.b32.xlu1 %v5130_v35, %s13078_s27 }
0x1278   : > { %v7460_v31 = vpop.permute.xlu1 %7459 }
0x1279   : > { %v7480_v14 = vsel %vm5670_vm1, %v7479_v29, %v7460_v31 }
0x127b   : > { %5206 = vrot.lane.b32.xlu0 %v5133_v16, %s13078_s27  ;;  %5204 = vrot.lane.b32.xlu1 %v5132_v59, %s13078_s27 }
0x127c   : > { %v7747_v26 = vpop.permute.xlu1 %7746 }
0x127d   : > { %v7773_v51 = vsel %vm2371_vm7, %v13080_v19, %v7747_v26 }
0x127f   : > { %8049 = vrot.lane.b32.xlu0 %v8032_v53, %s12983_s1  ;;  %5208 = vrot.lane.b32.xlu1 %v5182_v18, %s13078_s27 }
0x1280   : > { %v7464_v15 = vpop.permute.xlu1 %7463 }
0x1281   : > { %v7481_v42 = vsel %vm816_vm0, %v7480_v14, %v7464_v15 }
0x1283   : > { %7770 = vrot.lane.b32.xlu0 %v13081_v13, %s13025_s0  ;;  %7762 = vrot.lane.b32.xlu1 %v13082_v5, %s13024_s29 }
0x1284   : > { %v7751_v21 = vpop.permute.xlu1 %7750 }
0x1285   : > { %v7774_v32 = vsel %vm5668_vm15, %v7773_v51, %v7751_v21 }
0x1287   : > { %8045 = vrot.lane.b32.xlu1 %v8031_v0, %s13022_s28 }
0x1288   : > { %v7468_v3 = vpop.permute.xlu1 %7467 }
0x1289   : > { %v7482_v39 = vsel %vm5673_vm2, %v7481_v42, %v7468_v3 }
0x128b   : > { %7766 = vrot.lane.b32.xlu1 %v13083_v4, %s13023_s9 }
0x128c   : > { %v7755_v48 = vpop.permute.xlu1 %7754 }
0x128d   : > { %v7775_v53 = vsel %vm5670_vm1, %v7774_v32, %v7755_v48 }
0x128e   : > { %v7776_v42 = vsel %vm816_vm0, %v7775_v53, %v7759_v20 }
0x12d9   : > { %v8042_v34 = vpop.permute.xlu0 %8041  ;;  %v8038_v57 = vpop.permute.xlu1 %8037 }
0x12da   : > { %v8064_v41 = vsel %vm2371_vm7, %v13084_v7, %v8038_v57 }
0x12db   : > { %v8065_v47 = vsel %vm5668_vm15, %v8064_v41, %v8042_v34 }
0x12dd   : > { %v7476_v29 = vpop.permute.xlu0 %7475  ;;  %v7472_v52 = vpop.permute.xlu1 %7471 }
0x12de   : > { %v7483_v55 = vsel %vm5675_vm3, %v7482_v39, %v7472_v52 }
0x12df   : > { %v12288_v38 = vsel %vm5677_vm4, %v7483_v55, %v7476_v29 }
0x12e1   : > { %v5195_v9 = vpop.permute.xlu0 %5194  ;;  %v5193_v35 = vpop.permute.xlu1 %5192 }
0x12e2   : > { %5221 = vst.msk [vmem:[#allocation4 + $0x11] sm:$0xff] %vm5219_vm10, %v5195_v9  ;;  %5220 = vst.msk [vmem:[#allocation4 + $0x1] sm:$0xff] %vm5219_vm10, %v5193_v35 }
0x12e5   : > { %v5199_v36 = vpop.permute.xlu0 %5198  ;;  %v5197_v23 = vpop.permute.xlu1 %5196 }
0x12e6   : > { %5223 = vst.msk [vmem:[#allocation4 + $0x31] sm:$0xff] %vm5219_vm10, %v5199_v36  ;;  %5222 = vst.msk [vmem:[#allocation4 + $0x21] sm:$0xff] %vm5219_vm10, %v5197_v23 }
0x12e9   : > { %v5203_v58 = vpop.permute.xlu0 %5202  ;;  %v5201_v11 = vpop.permute.xlu1 %5200  ;;  %v6059_v31 = vld [vmem:[#allocation4 + $0x10] sm:$0xff]  ;;  %v5679_v16 = vld [vmem:[#allocation4] sm:$0xff] }
0x12ea   : > { %5225 = vst.msk [vmem:[#allocation4 + $0x51] sm:$0xff] %vm5219_vm10, %v5203_v58  ;;  %5224 = vst.msk [vmem:[#allocation4 + $0x41] sm:$0xff] %vm5219_vm10, %v5201_v11  ;;  %6061 = vrot.lane.b32.xlu0 %v6059_v31, %s13026_s5  ;;  %v5687_v59 = vrot.slane %v5679_v16, %v11213_v25  ;;  %v5680_v32 = vcombine.high %v5679_v16, %v13014_v24 }
0x12ec   : > { %v12306_v18 = vrot.slane %v5687_v59, %v11219_v17  ;;  %v5695_v4 = vcombine.high %v5687_v59, %v13014_v24  ;;  %v5694_v9 = vrot.slane %v5680_v32, %v11213_v25 }
0x12ed   : > { %v5207_v22 = vpop.permute.xlu0 %5206  ;;  %v5205_v14 = vpop.permute.xlu1 %5204  ;;  %v6350_v27 = vld [vmem:[#allocation4 + $0x20] sm:$0xff]  ;;  %v6625_v51 = vld [vmem:[#allocation4 + $0x31] sm:$0xff] }
0x12ee   : > { %5227 = vst.msk [vmem:[#allocation4 + $0x71] sm:$0xff] %vm5219_vm10, %v5207_v22  ;;  %5226 = vst.msk [vmem:[#allocation4 + $0x61] sm:$0xff] %vm5219_vm10, %v5205_v14  ;;  %6352 = vrot.lane.b32.xlu1 %v6350_v27, %s13035_s3  ;;  %v6633_v15 = vrot.slane %v6625_v51, %v11213_v25  ;;  %v5725_v3 = vcombine.high %v12306_v18, %v13014_v24  ;;  %v5709_v52 = vrot.slane %v5695_v4, %v11219_v17  ;;  %v12376_v4 = vpop.f32.mrb[80].mxu0 }
0x12ef   : > { %v5717_v35 = vrot.slane %v5694_v9, %v11219_v17  ;;  %v6626_v23 = vcombine.high %v6625_v51, %v13014_v24  ;;  %v5710_v53 = vcombine.high %v5694_v9, %v13014_v24 }
0x12f0   : > { %v12318_v39 = vrot.slane %v6633_v15, %v11219_v17  ;;  %v6641_v36 = vcombine.high %v6633_v15, %v13014_v24  ;;  %v5726_v58 = vcombine.high %v5709_v52, %v13014_v24 }
0x12f1   : > { %v5209_v61 = vpop.permute.xlu1 %5208  ;;  %v7211_v26 = vld [vmem:[#allocation4 + $0x51] sm:$0xff]  ;;  %v6920_v19 = vld [vmem:[#allocation4 + $0x41] sm:$0xff]  ;;  %v8050_v57 = vpop.permute.xlu0 %8049  ;;  %v6640_v31 = vrot.slane %v6626_v23, %v11213_v25  ;;  %v5727_v14 = vcombine.high %v5717_v35, %v13014_v24 }
0x12f2   : > { %5228 = vst.msk [vmem:[#allocation4 + $0x81] sm:$0xff] %vm5219_vm10, %v5209_v61  ;;  %7213 = vrot.lane.b32.xlu1 %v7211_v26, %s13035_s3  ;;  %6922 = vrot.lane.b32.xlu0 %v6920_v19, %s13026_s5  ;;  %v6671_v29 = vcombine.high %v12318_v39, %v13014_v24  ;;  %v6655_v11 = vrot.slane %v6641_v36, %v11219_v17 }
0x12f3   : > { %v6663_v27 = vrot.slane %v6640_v31, %v11219_v17 }
0x12f4   : > { %v6672_v59 = vcombine.high %v6655_v11, %v13014_v24 }
0x12f5   : > { %v7763_v13 = vpop.permute.xlu1 %7762  ;;  %v7781_v5 = vld [vmem:[#allocation4 + $0x72] sm:$0xff]  ;;  %v7486_v21 = vld [vmem:[#allocation4 + $0x62] sm:$0xff]  ;;  %v6673_v19 = vcombine.high %v6663_v27, %v13014_v24 }
0x12f6   : > { %v12311_v0 = vsel %vm5673_vm2, %v7776_v42, %v7763_v13  ;;  %7783 = vrot.lane.b32.xlu0 %v7781_v5, %s13026_s5  ;;  %v7487_v20 = vcombine.high %v7486_v21, %v13014_v24  ;;  %v7494_v22 = vrot.slane %v7486_v21, %v11213_v25  ;;  %v5724_v42 = vrot.slane %v5710_v53, %v11219_v17 }
0x12f7   : > { %v6656_v13 = vcombine.high %v6640_v31, %v13014_v24 }
0x12f8   : > { %v7501_v55 = vrot.slane %v7487_v20, %v11213_v25  ;;  %v12350_v16 = vrot.slane %v7494_v22, %v11219_v17  ;;  %v7502_v26 = vcombine.high %v7494_v22, %v13014_v24  ;;  %v8911_v20 = vpop.f32.mrb[81].mxu0 }
0x12f9   : > { %v8046_v48 = vpop.permute.xlu1 %8045  ;;  %v8072_v34 = vld [vmem:[#allocation4 + $0x82] sm:$0xff]  ;;  %v6670_v21 = vrot.slane %v6656_v13, %v11219_v17 }
0x12fa   : > { %v8066_v7 = vsel %vm5670_vm1, %v8065_v47, %v8046_v48  ;;  %5730 = vrot.lane.b32.xlu0 %v5725_v3, %s13058_s12  ;;  %8074 = vrot.lane.b32.xlu1 %v8072_v34, %s13035_s3  ;;  %v7524_v47 = vrot.slane %v7501_v55, %v11219_v17  ;;  %v7532_v61 = vcombine.high %v12350_v16, %v13014_v24 }
0x12fb   : > { %v12326_v41 = vsel %vm816_vm0, %v8066_v7, %v8050_v57  ;;  %v7516_v51 = vrot.slane %v7502_v26, %v11219_v17  ;;  %v7517_v32 = vcombine.high %v7501_v55, %v13014_v24  ;;  %v5728_v48 = vcombine.high %v5724_v42, %v13014_v24 }
0x12fc   : > { %13085 = vst [vmem:[#allocation7_spill] sm:$0xff] %v12326_v41  ;;  %v7534_v5 = vcombine.high %v7524_v47, %v13014_v24  ;;  %v6674_v34 = vcombine.high %v6670_v21, %v13014_v24  ;;  %v9493_v7 = vmov 0  }
0x12fd   : > { %v7533_v15 = vcombine.high %v7516_v51, %v13014_v24  ;;  %v7531_v3 = vrot.slane %v7517_v32, %v11219_v17  ;;  %9349 = vset.pattern.permute.xlu1 %v9493_v7  ;;  %9350 = vset.pattern.permute.xlu0 %v9493_v7 }
0x12fe   : > { %6676 = vrot.lane.b32.xlu0 %v6671_v29, %s13058_s12  ;;  %5734 = vrot.lane.b32.xlu1 %v5709_v52, %s13054_s8  ;;  %v12385_v29 = vpop.permute.xlu0 %7770  ;;  %v12387_v52 = vpop.permute.xlu1 %7766 }
0x12ff   : > { %v7535_v57 = vcombine.high %v7531_v3, %v13014_v24  ;;  %13086 = vst [vmem:[#allocation18_spill] sm:$0xff] %v12385_v29 }
0x1302   : > { %7549 = vrot.lane.b32.xlu0 %v7524_v47, %s12983_s1  ;;  %5742 = vrot.lane.b32.xlu1 %v5717_v35, %s12983_s1 }
0x1306   : > { %5738 = vrot.lane.b32.xlu0 %v5726_v58, %s13022_s28  ;;  %6680 = vrot.lane.b32.xlu1 %v6655_v11, %s13054_s8 }
0x130a   : > { %5746 = vrot.lane.b32.xlu0 %v5727_v14, %s13024_s29  ;;  %6688 = vrot.lane.b32.xlu1 %v6663_v27, %s12983_s1 }
0x130e   : > { %6684 = vrot.lane.b32.xlu0 %v6672_v59, %s13022_s28  ;;  %7537 = vrot.lane.b32.xlu1 %v7532_v61, %s13058_s12 }
0x1312   : > { %6692 = vrot.lane.b32.xlu0 %v6673_v19, %s13024_s29  ;;  %7541 = vrot.lane.b32.xlu1 %v7516_v51, %s13054_s8 }
0x1316   : > { %7545 = vrot.lane.b32.xlu0 %v7533_v15, %s13022_s28  ;;  %5750 = vrot.lane.b32.xlu1 %v5724_v42, %s13023_s9 }
0x131a   : > { %7553 = vrot.lane.b32.xlu0 %v7534_v5, %s13024_s29  ;;  %6696 = vrot.lane.b32.xlu1 %v6670_v21, %s13023_s9 }
0x131e   : > { %7557 = vrot.lane.b32.xlu0 %v7531_v3, %s13023_s9 }
0x1322   : > { %5754 = vrot.lane.b32.xlu0 %v5728_v48, %s13025_s0 }
0x1326   : > { %6700 = vrot.lane.b32.xlu0 %v6674_v34, %s13025_s0 }
0x132a   : > { %7561 = vrot.lane.b32.xlu0 %v7535_v57, %s13025_s0 }
0x135c   : > { %v6062_v55 = vpop.permute.xlu0 %6061 }
0x135d   : > { %v6064_v9 = vcombine.high %v6062_v55, %v13014_v24  ;;  %v6071_v47 = vrot.slane %v6062_v55, %v11213_v25 }
0x135f   : > { %v6079_v35 = vcombine.high %v6071_v47, %v13014_v24  ;;  %v12393_v36 = vrot.slane %v6071_v47, %v11219_v17  ;;  %v12396_v58 = vrot.slane %v6064_v9, %v11213_v25 }
0x1360   : > { %v6353_v23 = vpop.permute.xlu1 %6352 }
0x1361   : > { %v12399_v11 = vrot.slane %v6079_v35, %v11219_v17  ;;  %v6109_v31 = vcombine.high %v12393_v36, %v13014_v24  ;;  %v6355_v22 = vcombine.high %v6353_v23, %v13014_v24  ;;  %v6362_v14 = vrot.slane %v6353_v23, %v11213_v25 }
0x1362   : > { %v12411_v61 = vrot.slane %v12396_v58, %v11219_v17 }
0x1363   : > { %6118 = vrot.lane.b32.xlu0 %v12399_v11, %s13054_s8  ;;  %6114 = vrot.lane.b32.xlu1 %v6109_v31, %s13058_s12  ;;  %v6370_v27 = vcombine.high %v6362_v14, %v13014_v24  ;;  %v12414_v26 = vrot.slane %v6362_v14, %v11219_v17  ;;  %v12418_v51 = vrot.slane %v6355_v22, %v11213_v25 }
0x1364   : > { %v6923_v59 = vpop.permute.xlu0 %6922  ;;  %v7214_v15 = vpop.permute.xlu1 %7213 }
0x1365   : > { %v6932_v19 = vrot.slane %v6923_v59, %v11213_v25  ;;  %v12421_v53 = vrot.slane %v6370_v27, %v11219_v17  ;;  %v6400_v13 = vcombine.high %v12414_v26, %v13014_v24  ;;  %v6925_v5 = vcombine.high %v6923_v59, %v13014_v24 }
0x1366   : > { %v12433_v32 = vrot.slane %v12418_v51, %v11219_v17  ;;  %v7223_v20 = vrot.slane %v7214_v15, %v11213_v25  ;;  %v7216_v14 = vcombine.high %v7214_v15, %v13014_v24 }
0x1367   : > { %6126 = vrot.lane.b32.xlu0 %v12411_v61, %s12983_s1  ;;  %6409 = vrot.lane.b32.xlu1 %v12421_v53, %s13054_s8  ;;  %v6940_v21 = vcombine.high %v6932_v19, %v13014_v24  ;;  %v12436_v3 = vrot.slane %v6932_v19, %v11219_v17  ;;  %v12445_v57 = vrot.slane %v6925_v5, %v11213_v25 }
0x1368   : > { %v7784_v42 = vpop.permute.xlu0 %7783  ;;  %v7231_v9 = vcombine.high %v7223_v20, %v13014_v24  ;;  %v12465_v27 = vrot.slane %v7223_v20, %v11219_v17  ;;  %v12479_v15 = vrot.slane %v7216_v14, %v11213_v25 }
0x1369   : > { %v12448_v7 = vrot.slane %v6940_v21, %v11219_v17  ;;  %v6970_v55 = vcombine.high %v12436_v3, %v13014_v24  ;;  %v7793_v47 = vrot.slane %v7784_v42, %v11213_v25  ;;  %v12461_v22 = vrot.slane %v12445_v57, %v11219_v17 }
0x136a   : > { %v12469_v19 = vrot.slane %v7231_v9, %v11219_v17  ;;  %v7261_v21 = vcombine.high %v12465_v27, %v13014_v24  ;;  %v7786_v20 = vcombine.high %v7784_v42, %v13014_v24  ;;  %v12493_v14 = vrot.slane %v12479_v15, %v11219_v17 }
0x136b   : > { %6405 = vrot.lane.b32.xlu0 %v6400_v13, %s13058_s12  ;;  %6417 = vrot.lane.b32.xlu1 %v12433_v32, %s12983_s1  ;;  %v6971_v29 = vcombine.high %v12448_v7, %v13014_v24 }
0x136c   : > { %v5731_v48 = vpop.permute.xlu0 %5730  ;;  %v12442_v34 = vpop.permute.xlu1 %8074  ;;  %v12496_v42 = vrot.slane %v7786_v20, %v11213_v25  ;;  %v6094_v20 = vcombine.high %v12396_v58, %v13014_v24 }
0x136d   : > { %v5757_v35 = vsel %vm2371_vm7, %v12306_v18, %v5731_v48  ;;  %v12472_v18 = vrot.slane %v7793_v47, %v11219_v17  ;;  %v7801_v48 = vcombine.high %v7793_v47, %v13014_v24 }
0x136e   : > { %v12522_v58 = vrot.slane %v6094_v20, %v11219_v17 }
0x136f   : > { %6979 = vrot.lane.b32.xlu0 %v12448_v7, %s13054_s8  ;;  %6975 = vrot.lane.b32.xlu1 %v6970_v55, %s13058_s12  ;;  %v7831_v55 = vcombine.high %v12472_v18, %v13014_v24  ;;  %v6972_v7 = vcombine.high %v12461_v22, %v13014_v24 }
0x1370   : > { %v6677_v23 = vpop.permute.xlu0 %6676  ;;  %v5735_v31 = vpop.permute.xlu1 %5734 }
0x1371   : > { %v5758_v59 = vsel %vm5668_vm15, %v5757_v35, %v5735_v31  ;;  %v6703_v9 = vsel %vm2371_vm7, %v12318_v39, %v6677_v23 }
0x1373   : > { %6987 = vrot.lane.b32.xlu0 %v12461_v22, %s12983_s1  ;;  %7270 = vrot.lane.b32.xlu1 %v12469_v19, %s13054_s8  ;;  %v7262_v22 = vcombine.high %v12469_v19, %v13014_v24  ;;  %v13096_v19 = vld [vmem:[#allocation28_spill] sm:$0xff] }
0x1374   : > { %v7550_v13 = vpop.permute.xlu0 %7549  ;;  %v5743_v5 = vpop.permute.xlu1 %5742 }
0x1377   : > { %7266 = vrot.lane.b32.xlu0 %v7261_v21, %s13058_s12  ;;  %7836 = vrot.lane.b32.xlu1 %v7831_v55, %s13058_s12  ;;  %v12501_v21 = vrot.slane %v7801_v48, %v11219_v17 }
0x1378   : > { %v5739_v35 = vpop.permute.xlu0 %5738  ;;  %v6681_v31 = vpop.permute.xlu1 %6680 }
0x1379   : > { %v5759_v47 = vsel %vm5670_vm1, %v5758_v59, %v5739_v35  ;;  %v6704_v41 = vsel %vm5668_vm15, %v6703_v9, %v6681_v31  ;;  %v12512_v59 = vrot.slane %v12496_v42, %v11219_v17 }
0x137a   : > { %v5760_v39 = vsel %vm816_vm0, %v5759_v47, %v5743_v5  ;;  %v6110_v5 = vcombine.high %v12399_v11, %v13014_v24  ;;  %v6385_v47 = vcombine.high %v12418_v51, %v13014_v24  ;;  %v6401_v51 = vcombine.high %v12421_v53, %v13014_v24 }
0x137b   : > { %7278 = vrot.lane.b32.xlu0 %v12493_v14, %s12983_s1  ;;  %7840 = vrot.lane.b32.xlu1 %v12501_v21, %s13054_s8  ;;  %v6402_v53 = vcombine.high %v12433_v32, %v13014_v24  ;;  %v13091_v32 = vld [vmem:[#allocation24_spill] sm:$0xff] }
0x137c   : > { %v5747_v23 = vpop.permute.xlu0 %5746  ;;  %v6689_v55 = vpop.permute.xlu1 %6688 }
0x137d   : > { %v5761_v48 = vsel %vm5673_vm2, %v5760_v39, %v5747_v23  ;;  %v6111_v39 = vcombine.high %v12411_v61, %v13014_v24  ;;  %v12539_v61 = vrot.slane %v6385_v47, %v11219_v17  ;;  %v13088_v47 = vld [vmem:[#allocation9_spill] sm:$0xff] }
0x137f   : > { %7848 = vrot.lane.b32.xlu0 %v12512_v59, %s12983_s1  ;;  %6122 = vrot.lane.b32.xlu1 %v6110_v5, %s13022_s28 }
0x1380   : > { %v6685_v9 = vpop.permute.xlu0 %6684  ;;  %v7538_v35 = vpop.permute.xlu1 %7537 }
0x1381   : > { %v6705_v31 = vsel %vm5670_vm1, %v6704_v41, %v6685_v9  ;;  %v7564_v23 = vsel %vm2371_vm7, %v12350_v16, %v7538_v35  ;;  %v6955_v35 = vcombine.high %v12445_v57, %v13014_v24 }
0x1382   : > { %v6706_v11 = vsel %vm816_vm0, %v6705_v31, %v6689_v55 }
0x1383   : > { %6134 = vrot.lane.b32.xlu0 %v12522_v58, %s13023_s9  ;;  %6130 = vrot.lane.b32.xlu1 %v6111_v39, %s13024_s29 }
0x1384   : > { %v6693_v41 = vpop.permute.xlu0 %6692  ;;  %v7542_v5 = vpop.permute.xlu1 %7541 }
0x1385   : > { %v6707_v20 = vsel %vm5673_vm2, %v6706_v11, %v6693_v41  ;;  %v7565_v9 = vsel %vm5668_vm15, %v7564_v23, %v7542_v5  ;;  %v13087_v11 = vld [vmem:[#allocation25_spill] sm:$0xff]  ;;  %v13089_v23 = vld [vmem:[#allocation10_spill] sm:$0xff] }
0x1386   : > { %v13090_v41 = vcombine.low %v13088_v47, %v13089_v23 }
0x1387   : > { %6413 = vrot.lane.b32.xlu0 %v6401_v51, %s13022_s28  ;;  %6425 = vrot.lane.b32.xlu1 %v12539_v61, %s13023_s9  ;;  %v8084_v51 = vrot.slane %v12442_v34, %v11213_v25 }
0x1388   : > { %v7546_v16 = vpop.permute.xlu0 %7545  ;;  %v5751_v55 = vpop.permute.xlu1 %5750  ;;  %v5667_v5 = vsel %vm2371_vm7, %v13090_v41, %v13087_v11  ;;  %v13092_v11 = vld [vmem:[#allocation27_spill] sm:$0xff] }
0x1389   : > { %v7566_v31 = vsel %vm5670_vm1, %v7565_v9, %v7546_v16  ;;  %v5762_v39 = vsel %vm5675_vm3, %v5761_v48, %v5751_v55  ;;  %v5669_v9 = vsel %vm5668_vm15, %v5667_v5, %v13091_v32  ;;  %v6969_v55 = vrot.slane %v6955_v35, %v11219_v17 }
0x138a   : > { %v7567_v57 = vsel %vm816_vm0, %v7566_v31, %v7550_v13  ;;  %v5671_v47 = vsel %vm5670_vm1, %v5669_v9, %v13092_v11  ;;  %v12569_v23 = vrot.slane %v8084_v51, %v11219_v17 }
0x138b   : > { %6421 = vrot.lane.b32.xlu0 %v6402_v53, %s13024_s29  ;;  %6983 = vrot.lane.b32.xlu1 %v6971_v29, %s13022_s28  ;;  %v13093_v29 = vcombine.low %v11359_v50, %v11349_v10  ;;  %v13094_v53 = vld [vmem:[#allocation26_spill] sm:$0xff]  ;;  %v8092_v50 = vcombine.high %v8084_v51, %v13014_v24  ;;  %v7246_v51 = vcombine.high %v12479_v15, %v13014_v24 }
0x138c   : > { %v7554_v48 = vpop.permute.xlu0 %7553  ;;  %v5672_v41 = vsel %vm816_vm0, %v5671_v47, %v13094_v53  ;;  %v7816_v47 = vcombine.high %v12496_v42, %v13014_v24 }
0x138d   : > { %v7568_v16 = vsel %vm5673_vm2, %v7567_v57, %v7554_v48  ;;  %v6617_v13 = vsel %vm2371_vm7, %v13093_v29, %v11705_v44  ;;  %v13095_v57 = vld [vmem:[#allocation29_spill] sm:$0xff]  ;;  %v8122_v44 = vcombine.high %v12569_v23, %v13014_v24  ;;  %v7260_v53 = vrot.slane %v7246_v51, %v11219_v17 }
0x138e   : > { %v6618_v35 = vsel %vm5668_vm15, %v6617_v13, %v11711_v56  ;;  %v5674_v10 = vsel %vm5673_vm2, %v5672_v41, %v13095_v57  ;;  %v13097_v13 = vld [vmem:[#allocation30_spill] sm:$0xff]  ;;  %v7830_v57 = vrot.slane %v7816_v47, %v11219_v17 }
0x138f   : > { %6995 = vrot.lane.b32.xlu0 %v6969_v55, %s13023_s9  ;;  %6991 = vrot.lane.b32.xlu1 %v6972_v7, %s13024_s29  ;;  %v6619_v56 = vsel %vm5670_vm1, %v6618_v35, %v11709_v63  ;;  %v5676_v9 = vsel %vm5675_vm3, %v5674_v10, %v13096_v19  ;;  %v7263_v63 = vcombine.high %v12493_v14, %v13014_v24 }
0x1390   : > { %v7558_v31 = vpop.permute.xlu0 %7557  ;;  %v6620_v48 = vsel %vm816_vm0, %v6619_v56, %v11715_v60  ;;  %v8077_v60 = vcombine.high %v12442_v34, %v13014_v24  ;;  %v8106_v7 = vrot.slane %v8092_v50, %v11219_v17  ;;  %v5678_v35 = vsel %vm5677_vm4, %v5676_v9, %v13097_v13 }
0x1391   : > { %v7569_v5 = vsel %vm5675_vm3, %v7568_v16, %v7558_v31  ;;  %v6697_v16 = vpop.permute.xlu1 %6696  ;;  %v6621_v15 = vsel %vm5673_vm2, %v6620_v48, %v11713_v40  ;;  %v7833_v56 = vcombine.high %v12512_v59, %v13014_v24  ;;  %v6973_v48 = vcombine.high %v6969_v55, %v13014_v24  ;;  %v8378_v59 = vld [vmem:[#allocation6] ss:$0 sm:$0xff] }
0x1392   : > { %v6622_v14 = vsel %vm5675_vm3, %v6621_v15, %v11719_v30  ;;  %v6708_v42 = vsel %vm5675_vm3, %v6707_v20, %v6697_v16  ;;  %v8091_v41 = vrot.slane %v8077_v60, %v11213_v25  ;;  %v7832_v25 = vcombine.high %v12501_v21, %v13014_v24 }
0x1393   : > { %7274 = vrot.lane.b32.xlu0 %v7262_v22, %s13022_s28  ;;  %8127 = vrot.lane.b32.xlu1 %v8122_v44, %s13058_s12  ;;  %v6623_v30 = vsel %vm5677_vm4, %v6622_v14, %v11717_v6  ;;  %v6403_v21 = vcombine.high %v12539_v61, %v13014_v24  ;;  %v8123_v61 = vcombine.high %v8106_v7, %v13014_v24  ;;  %s13135_s12 = sshll.u32 %s13137_s30, 3 }
0x1394   : > { %v5755_v32 = vpop.permute.xlu0 %5754  ;;  %v13100_v9 = vcombine.low %v12165_v12, %v12181_v62  ;;  %s781_s3 = scalar_lea.vmem %s12875_s25, %s13135_s12 }
0x1395   : > { %v5763_v11 = vsel %vm5677_vm4, %v5762_v39, %v5755_v32  ;;  %v8107_v32 = vcombine.high %v8091_v41, %v13014_v24 }
0x1396   : > { %v5767_v29 = vrot.slane %v5763_v11, %v13044_v45 }
0x1397   : > { %7282 = vrot.lane.b32.xlu0 %v7263_v63, %s13024_s29  ;;  %8131 = vrot.lane.b32.xlu1 %v8106_v7, %s13054_s8  ;;  %v8121_v19 = vrot.slane %v8107_v32, %v11219_v17 }
0x1398   : > { %v6701_v34 = vpop.permute.xlu0 %6700  ;;  %v5768_v39 = vmul.f32 %v5767_v29, %v5678_v35 }
0x1399   : > { %v6709_v31 = vsel %vm5677_vm4, %v6708_v42, %v6701_v34 }
0x139a   : > { %v6713_v22 = vrot.slane %v6709_v31, %v13044_v45  ;;  %v12625_v40 = vadd.f32 %v12376_v4, %v5768_v39  ;;  %v8114_v4 = vrot.slane %v8091_v41, %v11219_v17  ;;  %v8125_v17 = vcombine.high %v8121_v19, %v13014_v24 }
0x139b   : > { %7286 = vrot.lane.b32.xlu0 %v7260_v53, %s13023_s9  ;;  %7856 = vrot.lane.b32.xlu1 %v7830_v57, %s13023_s9 }
0x139c   : > { %v12631_v20 = vmul.f32 %v6713_v22, %v6623_v30  ;;  %v7562_v10 = vpop.permute.xlu0 %7561  ;;  %v8124_v55 = vcombine.high %v8114_v4, %v13014_v24 }
0x139d   : > { %v7570_v50 = vsel %vm5677_vm4, %v7569_v5, %v7562_v10  ;;  %v6112_v5 = vcombine.high %v12522_v58, %v13014_v24  ;;  %v7264_v58 = vcombine.high %v7260_v53, %v13014_v24 }
0x139e   : > { %v7574_v44 = vrot.slane %v7570_v50, %v13044_v45 }
0x139f   : > { %7844 = vrot.lane.b32.xlu0 %v7832_v25, %s13022_s28  ;;  %8139 = vrot.lane.b32.xlu1 %v8114_v4, %s12983_s1 }
0x13a0   : > { %v12641_v6 = vmul.f32 %v7574_v44, %v12288_v38  ;;  %v13098_v38 = vcombine.high %v12159_v54, %v12178_v8  ;;  %v13099_v54 = vcombine.high %v12165_v12, %v12181_v62  ;;  %v7834_v8 = vcombine.high %v7830_v57, %v13014_v24 }
0x13a3   : > { %7852 = vrot.lane.b32.xlu0 %v7833_v56, %s13024_s29  ;;  %6138 = vrot.lane.b32.xlu1 %v6112_v5, %s13025_s0 }
0x13a7   : > { %6429 = vrot.lane.b32.xlu0 %v6403_v21, %s13025_s0  ;;  %8053 = vrot.lane.b32.xlu1 %v13098_v38, %s13024_s29 }
0x13ab   : > { %6999 = vrot.lane.b32.xlu0 %v6973_v48, %s13025_s0  ;;  %8174 = vperm.xlu1 %9349, %v8378_v59  }
0x13af   : > { %7290 = vrot.lane.b32.xlu0 %v7264_v58, %s13025_s0  ;;  %8147 = vrot.lane.b32.xlu1 %v8121_v19, %s13023_s9  ;;  %v13102_v19 = vld [vmem:[#allocation42_spill] sm:$0xff] }
0x13b3   : > { %8135 = vrot.lane.b32.xlu0 %v8123_v61, %s13022_s28  ;;  %8061 = vrot.lane.b32.xlu1 %v13099_v54, %s13025_s0  ;;  %v13103_v61 = vcombine.low %v11623_v43, %v13102_v19  ;;  %v13107_v43 = vld [vmem:[#allocation45_spill] sm:$0xff] }
0x13b5   : > { %v6342_v54 = vsel %vm2371_vm7, %v13103_v61, %v11695_v33  ;;  %v13116_v61 = vld [vmem:[#allocation11_spill] sm:$0xff] }
0x13b7   : > { %7860 = vrot.lane.b32.xlu0 %v7834_v8, %s13025_s0 }
0x13bb   : > { %8143 = vrot.lane.b32.xlu0 %v8124_v55, %s13024_s29 }
0x13bf   : > { %8151 = vrot.lane.b32.xlu0 %v8125_v17, %s13025_s0  ;;  %v13104_v17 = vld [vmem:[#allocation36_spill] sm:$0xff] }
0x13c3   : > { %8057 = vrot.lane.b32.xlu0 %v13100_v9, %s13023_s9 }
0x13d5   : > { %v6119_v51 = vpop.permute.xlu0 %6118  ;;  %v6115_v16 = vpop.permute.xlu1 %6114 }
0x13d6   : > { %v6141_v12 = vsel %vm2371_vm7, %v12393_v36, %v6115_v16 }
0x13d7   : > { %v6142_v34 = vsel %vm5668_vm15, %v6141_v12, %v6119_v51  ;;  %v13105_v51 = vld [vmem:[#allocation38_spill] sm:$0xff] }
0x13d9   : > { %v6127_v11 = vpop.permute.xlu0 %6126  ;;  %v6410_v63 = vpop.permute.xlu1 %6409 }
0x13dd   : > { %v6406_v47 = vpop.permute.xlu0 %6405  ;;  %v6418_v60 = vpop.permute.xlu1 %6417 }
0x13de   : > { %v6432_v8 = vsel %vm2371_vm7, %v12414_v26, %v6406_v47  ;;  %v13108_v47 = vld [vmem:[#allocation51_spill] sm:$0xff] }
0x13df   : > { %v6433_v16 = vsel %vm5668_vm15, %v6432_v8, %v6410_v63  ;;  %v13113_v63 = vld [vmem:[#allocation40_spill] sm:$0xff] }
0x13e1   : > { %v6980_v7 = vpop.permute.xlu0 %6979  ;;  %v6976_v29 = vpop.permute.xlu1 %6975 }
0x13e2   : > { %v7002_v10 = vsel %vm2371_vm7, %v12436_v3, %v6976_v29  ;;  %v13101_v3 = vcombine.low %v11539_v1, %v11542_v37  ;;  %v13106_v37 = vld [vmem:[#allocation43_spill] sm:$0xff]  ;;  %v13109_v29 = vld [vmem:[#allocation49_spill] sm:$0xff] }
0x13e3   : > { %v7003_v25 = vsel %vm5668_vm15, %v7002_v10, %v6980_v7 }
0x13e4   : > { %v6051_v32 = vsel %vm2371_vm7, %v13101_v3, %v11596_v2  ;;  %v6343_v2 = vsel %vm5668_vm15, %v6342_v54, %v13106_v37  ;;  %v13119_v37 = vld [vmem:[#allocation32_spill] sm:$0xff] }
0x13e5   : > { %v6988_v13 = vpop.permute.xlu0 %6987  ;;  %v12680_v35 = vpop.permute.xlu1 %7270  ;;  %v6052_v9 = vsel %vm5668_vm15, %v6051_v32, %v13104_v17  ;;  %v6344_v33 = vsel %vm5670_vm1, %v6343_v2, %v13107_v43  ;;  %v13115_v32 = vld [vmem:[#allocation47_spill] sm:$0xff]  ;;  %v13117_v17 = vld [vmem:[#allocation53_spill] sm:$0xff] }
0x13e6   : > { %v6053_v1 = vsel %vm5670_vm1, %v6052_v9, %v13105_v51  ;;  %v13120_v2 = vld [vmem:[#allocation33_spill] sm:$0xff] }
0x13e9   : > { %v7267_v15 = vpop.permute.xlu0 %7266  ;;  %v12682_v24 = vpop.permute.xlu1 %7836 }
0x13ed   : > { %v12684_v14 = vpop.permute.xlu0 %7278  ;;  %v12686_v42 = vpop.permute.xlu1 %7840 }
0x13f1   : > { %v12690_v62 = vpop.permute.xlu0 %7848  ;;  %v6123_v39 = vpop.permute.xlu1 %6122 }
0x13f2   : > { %v6143_v31 = vsel %vm5670_vm1, %v6142_v34, %v6123_v39 }
0x13f3   : > { %v6144_v53 = vsel %vm816_vm0, %v6143_v31, %v6127_v11  ;;  %v13112_v31 = vld [vmem:[#allocation37_spill] sm:$0xff] }
0x13f4   : > { %v6054_v10 = vsel %vm816_vm0, %v6053_v1, %v13112_v31  ;;  %v13118_v1 = vld [vmem:[#allocation39_spill] sm:$0xff] }
0x13f5   : > { %v6135_v41 = vpop.permute.xlu0 %6134  ;;  %v6131_v22 = vpop.permute.xlu1 %6130 }
0x13f6   : > { %v6145_v39 = vsel %vm5673_vm2, %v6144_v53, %v6131_v22 }
0x13f7   : > { %v6146_v22 = vsel %vm5675_vm3, %v6145_v39, %v6135_v41  ;;  %v13125_v39 = vld [vmem:[#allocation52_spill] sm:$0xff] }
0x13f9   : > { %v6414_v57 = vpop.permute.xlu0 %6413  ;;  %v6426_v30 = vpop.permute.xlu1 %6425 }
0x13fa   : > { %v6434_v7 = vsel %vm5670_vm1, %v6433_v16, %v6414_v57  ;;  %v13121_v16 = vld [vmem:[#allocation8_spill] sm:$0xff] }
0x13fb   : > { %v6435_v57 = vsel %vm816_vm0, %v6434_v7, %v6418_v60  ;;  %v13122_v43 = vcombine.low %v13120_v2, %v13121_v16  ;;  %v13123_v7 = vld [vmem:[#allocation41_spill] sm:$0xff]  ;;  %v13132_v2 = vld [vmem:[#allocation56_spill] sm:$0xff]  ;;  %v7863_v16 = vsel %vm2371_vm7, %v12472_v18, %v12682_v24 }
0x13fd   : > { %v6422_v50 = vpop.permute.xlu0 %6421  ;;  %v6984_v36 = vpop.permute.xlu1 %6983 }
0x13fe   : > { %v7004_v4 = vsel %vm5670_vm1, %v7003_v25, %v6984_v36  ;;  %v6055_v25 = vsel %vm5673_vm2, %v6054_v10, %v13113_v63  ;;  %v13114_v36 = vld [vmem:[#allocation44_spill] sm:$0xff]  ;;  %v6436_v53 = vsel %vm5673_vm2, %v6435_v57, %v6422_v50  ;;  %v7293_v50 = vsel %vm2371_vm7, %v12465_v27, %v7267_v15  ;;  %v13126_v27 = vld [vmem:[#allocation55_spill] sm:$0xff] }
0x13ff   : > { %v7005_v44 = vsel %vm816_vm0, %v7004_v4, %v6988_v13  ;;  %v13110_v13 = vld [vmem:[#allocation50_spill] sm:$0xff]  ;;  %v6345_v4 = vsel %vm816_vm0, %v6344_v33, %v13114_v36  ;;  %v6056_v60 = vsel %vm5675_vm3, %v6055_v25, %v13118_v1  ;;  %v7203_v33 = vsel %vm2371_vm7, %v13122_v43, %v13119_v37  ;;  %v13127_v36 = vld [vmem:[#allocation31_spill] sm:$0xff] }
0x1400   : > { %v13111_v12 = vcombine.low %v13109_v29, %v13110_v13  ;;  %v6346_v19 = vsel %vm5673_vm2, %v6345_v4, %v13115_v32  ;;  %v13124_v29 = vld [vmem:[#allocation46_spill] sm:$0xff]  ;;  %v7204_v4 = vsel %vm5668_vm15, %v7203_v33, %v13127_v36  ;;  %v7294_v57 = vsel %vm5668_vm15, %v7293_v50, %v12680_v35 }
0x1401   : > { %v6996_v56 = vpop.permute.xlu0 %6995  ;;  %v6992_v5 = vpop.permute.xlu1 %6991  ;;  %v6347_v13 = vsel %vm5675_vm3, %v6346_v19, %v13124_v29  ;;  %v7864_v33 = vsel %vm5668_vm15, %v7863_v16, %v12686_v42 }
0x1402   : > { %v6912_v34 = vsel %vm2371_vm7, %v13111_v12, %v13108_v47  ;;  %v6057_v47 = vsel %vm5677_vm4, %v6056_v60, %v13123_v7  ;;  %v7006_v10 = vsel %vm5673_vm2, %v7005_v44, %v6992_v5 }
0x1403   : > { %v6913_v54 = vsel %vm5668_vm15, %v6912_v34, %v13116_v61  ;;  %v6437_v34 = vsel %vm5675_vm3, %v6436_v53, %v6426_v30  ;;  %v13128_v30 = vld [vmem:[#allocation48_spill] sm:$0xff]  ;;  %v13129_v61 = vld [vmem:[#allocation35_spill] sm:$0xff] }
0x1404   : > { %v6914_v9 = vsel %vm5670_vm1, %v6913_v54, %v13117_v17  ;;  %v6348_v19 = vsel %vm5677_vm4, %v6347_v13, %v13128_v30  ;;  %v7205_v44 = vsel %vm5670_vm1, %v7204_v4, %v13129_v61  ;;  %v13130_v17 = vld [vmem:[#allocation54_spill] sm:$0xff] }
0x1405   : > { %v7275_v21 = vpop.permute.xlu0 %7274  ;;  %v12700_v38 = vpop.permute.xlu1 %8127  ;;  %v6915_v31 = vsel %vm816_vm0, %v6914_v9, %v13125_v39 }
0x1406   : > { %v6916_v15 = vsel %vm5673_vm2, %v6915_v31, %v13126_v27  ;;  %v7295_v5 = vsel %vm5670_vm1, %v7294_v57, %v7275_v21  ;;  %v13134_v57 = vld [vmem:[#allocation7_spill] sm:$0xff] }
0x1407   : > { %v6917_v9 = vsel %vm5675_vm3, %v6916_v15, %v13130_v17  ;;  %v7296_v60 = vsel %vm816_vm0, %v7295_v5, %v12684_v14 }
0x1409   : > { %v7283_v48 = vpop.permute.xlu0 %7282  ;;  %v12702_v59 = vpop.permute.xlu1 %8131 }
0x140a   : > { %v7297_v43 = vsel %vm5673_vm2, %v7296_v60, %v7283_v48 }
0x140d   : > { %v7287_v58 = vpop.permute.xlu0 %7286  ;;  %v12716_v55 = vpop.permute.xlu1 %7856 }
0x140e   : > { %v7298_v14 = vsel %vm5675_vm3, %v7297_v43, %v7287_v58 }
0x1411   : > { %v7845_v11 = vpop.permute.xlu0 %7844  ;;  %v12728_v26 = vpop.permute.xlu1 %8139 }
0x1415   : > { %v7853_v3 = vpop.permute.xlu0 %7852  ;;  %v6139_v8 = vpop.permute.xlu1 %6138 }
0x1416   : > { %v6147_v51 = vsel %vm5677_vm4, %v6146_v22, %v6139_v8  ;;  %v7007_v8 = vsel %vm5675_vm3, %v7006_v10, %v6996_v56 }
0x1417   : > { %v6151_v41 = vrot.slane %v6147_v51, %v13044_v45  ;;  %v13131_v51 = vld [vmem:[#allocation34_spill] sm:$0xff] }
0x1418   : > { %v7206_v1 = vsel %vm816_vm0, %v7205_v44, %v13131_v51 }
0x1419   : > { %v6430_v12 = vpop.permute.xlu0 %6429  ;;  %v6152_v63 = vmul.f32 %v6151_v41, %v6057_v47  ;;  %v7207_v56 = vsel %vm5673_vm2, %v7206_v1, %v12217_v46  ;;  %v7865_v47 = vsel %vm5670_vm1, %v7864_v33, %v7845_v11 }
0x141a   : > { %v6438_v25 = vsel %vm5677_vm4, %v6437_v34, %v6430_v12  ;;  %v7208_v46 = vsel %vm5675_vm3, %v7207_v56, %v12277_v28  ;;  %v7866_v42 = vsel %vm816_vm0, %v7865_v47, %v12690_v62  ;;  %v8054_v12 = vpop.permute.xlu1 %8053  ;;  %v7778_v34 = vsel %vm5675_vm3, %v12311_v0, %v12387_v52  ;;  %v13133_v52 = vld [vmem:[#allocation18_spill] sm:$0xff] }
0x141b   : > { %v6442_v32 = vrot.slane %v6438_v25, %v13044_v45  ;;  %v6153_v54 = vadd.f32 %v6152_v63, %v12625_v40  ;;  %v6918_v40 = vsel %vm5677_vm4, %v6917_v9, %v13132_v2  ;;  %v7209_v24 = vsel %vm5677_vm4, %v7208_v46, %v12279_v49 }
0x141c   : > { %v7867_v58 = vsel %vm5673_vm2, %v7866_v42, %v7853_v3  ;;  %v8154_v28 = vsel %vm2371_vm7, %v12569_v23, %v12700_v38  ;;  %v7779_v25 = vsel %vm5677_vm4, %v7778_v34, %v13133_v52 }
0x141d   : > { %v6443_v53 = vmul.f32 %v6442_v32, %v6348_v19  ;;  %v7000_v22 = vpop.permute.xlu0 %6999  ;;  %v7868_v62 = vsel %vm5675_vm3, %v7867_v58, %v12716_v55  ;;  %v8155_v31 = vsel %vm5668_vm15, %v8154_v28, %v12702_v59  ;;  %v8068_v32 = vsel %vm5673_vm2, %v13134_v57, %v8054_v12 }
0x141e   : > { %v7008_v35 = vsel %vm5677_vm4, %v7007_v8, %v7000_v22 }
0x141f   : > { %v6444_v37 = vadd.f32 %v6443_v53, %v6153_v54  ;;  %v7012_v21 = vrot.slane %v7008_v35, %v13044_v45 }
0x1421   : > { %v6715_v50 = vadd.f32 %v12631_v20, %v6444_v37  ;;  %v7013_v41 = vmul.f32 %v7012_v21, %v6918_v40  ;;  %v7291_v7 = vpop.permute.xlu0 %7290 }
0x1422   : > { %v7299_v29 = vsel %vm5677_vm4, %v7298_v14, %v7291_v7 }
0x1423   : > { %v7014_v13 = vadd.f32 %v7013_v41, %v6715_v50  ;;  %v7303_v18 = vrot.slane %v7299_v29, %v13044_v45 }
0x1425   : > { %v7304_v48 = vmul.f32 %v7303_v18, %v7209_v24  ;;  %v8136_v20 = vpop.permute.xlu0 %8135 }
0x1426   : > { %v8156_v10 = vsel %vm5670_vm1, %v8155_v31, %v8136_v20 }
0x1427   : > { %v7305_v11 = vadd.f32 %v7304_v48, %v7014_v13 }
0x1429   : > { %v7861_v39 = vpop.permute.xlu0 %7860  ;;  %v7576_v49 = vadd.f32 %v12641_v6, %v7305_v11  ;;  %v8157_v6 = vsel %vm816_vm0, %v8156_v10, %v12728_v26 }
0x142a   : > { %v7869_v3 = vsel %vm5677_vm4, %v7868_v62, %v7861_v39  ;;  %v8175_v0 = vpop.permute.xlu1 %8174 }
0x142b   : > { %v7873_v63 = vrot.slane %v7869_v3, %v13044_v45 }
0x142d   : > { %v7874_v23 = vmul.f32 %v7873_v63, %v7779_v25  ;;  %v8144_v38 = vpop.permute.xlu0 %8143 }
0x142e   : > { %v8158_v55 = vsel %vm5673_vm2, %v8157_v6, %v8144_v38  ;;  %v8148_v15 = vpop.permute.xlu1 %8147 }
0x142f   : > { %v7875_v27 = vadd.f32 %v7874_v23, %v7576_v49  ;;  %v8159_v36 = vsel %vm5675_vm3, %v8158_v55, %v8148_v15 }
0x1431   : > { %v8152_v59 = vpop.permute.xlu0 %8151 }
0x1432   : > { %v8160_v4 = vsel %vm5677_vm4, %v8159_v36, %v8152_v59  ;;  %v8062_v61 = vpop.permute.xlu1 %8061 }
0x1433   : > { %v8164_v19 = vrot.slane %v8160_v4, %v13044_v45 }
0x1435   : > { %v8058_v30 = vpop.permute.xlu0 %8057 }
0x1436   : > { %v8069_v44 = vsel %vm5675_vm3, %v8068_v32, %v8058_v30 }
0x1437   : > { %v8070_v26 = vsel %vm5677_vm4, %v8069_v44, %v8062_v61 }
0x1438   : > { %v8165_v5 = vmul.f32 %v8164_v19, %v8070_v26 }
0x143a   : > { %v8166_v54 = vadd.f32 %v8165_v5, %v7875_v27 }
0x143c   : > { %v8177_v53 = vadd.f32 %v8175_v0, %v8166_v54 }
0x143e   : > { %v8178_v22 = vsub.f32 0.0, %v8177_v53 }
0x1440   : > { %v8179_v8 = vmul.f32 1.442695, %v8178_v22 }
0x1442   : > { %9451 = vpow2.f32 %v8179_v8 }
0x144c   : > { %v9452_v17 = vpop.eup %9451 }
0x144d   : > { %v8181_v9 = vadd.f32 1.0, %v9452_v17 }
0x144f   : > { %9453 = vrcp.f32 %v8181_v9 }
0x1459   : > { %v9454_v45 = vpop.eup %9453 }
0x145a   : > { %8184 = vst.msk [vmem:[%s781_s3] sm:$0xff] %vm1493_vm5, %v9454_v45 }
0x145b PF: > { %s37_s6 = sadd.s32 1, %s9463_s6  }
0x145c   : > { %p34_p4 = scmp.ge.s32.totalorder %s37_s6, 4  }
0x145e   :  { %36 = sbr.rel (!%p34_p4) target bundleno = 14 (0xe), region = 167 }

</bundles_post_ra>
